<compile_context>
chip_gen: v6e
topology: v6e:2x2x1
jax: 0.10.0
libtpu: 0.0.40
codegen_flags: <defaults>
</compile_context>

<pallas_src>
import functools
import math

import jax
import jax.numpy as jnp
from jax.experimental import pallas as pl
from jax.experimental.pallas import tpu as pltpu


def decoder_xl_layer(x, mem, params, *, heads, block_batch=None,
                     mm_dtype=jnp.bfloat16):
    """Batched GTrXL decoder layer.

    x:   (B, S, D) f32 -- one independent sequence per batch row.
    mem: (B, M, D) f32 -- per-sequence XL memory (zeros initially).
    Returns (x_out (B,S,D), new_mem (B,M,D)).  B=1 reproduces the PyTorch
    module (which carries a single sequence + memory).
    """
    (ln_g, ln_b,
     wq, bq, wk, bk, wv, bv, wo, bo,
     g1_wr, g1_ur, g1_wz, g1_uz, g1_wg, g1_ug, g1_bg,
     w1, b1, w2, b2,
     g2_wr, g2_ur, g2_wz, g2_uz, g2_wg, g2_ug, g2_bg) = params

    B, S, D = x.shape
    M = mem.shape[1]
    T = M + S
    DM = w1.shape[1]
    dh = D // heads
    scale = 1.0 / math.sqrt(dh)
    f32 = jnp.float32

    # Alignment requirements (the demo shapes satisfy them).
    assert D % 128 == 0 and D % heads == 0, "embed_dim must be lane-aligned"
    assert S % 8 == 0 and M % 8 == 0, "seq / mem lengths must be sublane-aligned"
    # TODO(synk): for arbitrary S/M/D, pad to (8,128) multiples in the wrapper
    # and mask LayerNorm / softmax statistics over the padded rows/lanes.

    # ---- batch tile: target >=128 matmul rows per grid step (BT*T >= 256) ----
    if block_batch is None:
        block_batch = max(1, min(B, max(1, 128 // S)))
        while B % block_batch:
            block_batch -= 1
    BT = block_batch
    assert B % BT == 0
    Rf = BT * S                       # rows of every token-wise matmul per step

    # ---------------- trace-time weight fusion + bf16 cast ----------------
    wqkv = jnp.concatenate([wq, wk, wv], axis=1).astype(mm_dtype)     # (D, 3D)
    bqkv = jnp.concatenate([bq, bk, bv], axis=1)                      # (1, 3D)
    wo_c = wo.astype(mm_dtype)
    g1_w3 = jnp.concatenate([g1_wr, g1_wz, g1_wg], axis=1).astype(mm_dtype)
    g1_u2 = jnp.concatenate([g1_ur, g1_uz], axis=1).astype(mm_dtype)
    g1_ug_c = g1_ug.astype(mm_dtype)
    g2_w3 = jnp.concatenate([g2_wr, g2_wz, g2_wg], axis=1).astype(mm_dtype)
    g2_u2 = jnp.concatenate([g2_ur, g2_uz], axis=1).astype(mm_dtype)
    g2_ug_c = g2_ug.astype(mm_dtype)
    w1_c = w1.astype(mm_dtype)
    w2_c = w2.astype(mm_dtype)
    # TODO(synk): on v7x, store the large weights in fp8 (e4m3) with trace-time
    # scales to halve weight HBM traffic / VMEM residency.

    def kernel(x_ref, mem_ref, ln_g_ref, ln_b_ref,
               wqkv_ref, bqkv_ref, wo_ref, bo_ref,
               g1_w3_ref, g1_u2_ref, g1_ug_ref, g1_bg_ref,
               w1_ref, b1_ref, w2_ref, b2_ref,
               g2_w3_ref, g2_u2_ref, g2_ug_ref, g2_bg_ref,
               out_ref, mem_out_ref):
        dot = lambda a, b: jnp.dot(a.astype(mm_dtype), b,
                                   preferred_element_type=f32)

        xr = x_ref[...].reshape(Rf, D)                       # (BT*S, D) f32

        # Hoisted LayerNorm affine broadcasts (reused by both LN calls).
        g_b = jnp.broadcast_to(ln_g_ref[...], (Rf, D))
        b_b = jnp.broadcast_to(ln_b_ref[...], (Rf, D))

        def layernorm(v):                                    # (Rf, D) f32
            mu = jnp.mean(v, axis=-1, keepdims=True)
            var = jnp.mean((v - mu) ** 2, axis=-1, keepdims=True)
            return (v - mu) * jax.lax.rsqrt(var + 1e-5) * g_b + b_b

        def gru_gate(xv, y, w3_ref, u2_ref, ug_ref, bg_ref):
            # GTrXL gating (torch `gru` submodule not given in the spec):
            #   r = sig(Wr y + Ur x); z = sig(Wz y + Uz x - bg);
            #   h = tanh(Wg y + Ug (r*x)); out = (1-z)*x + z*h
            yw = dot(y, w3_ref[...])                         # (Rf, 3D)
            xu = dot(xv, u2_ref[...])                        # (Rf, 2D)
            r = jax.nn.sigmoid(yw[:, :D] + xu[:, :D])
            z = jax.nn.sigmoid(yw[:, D:2 * D] + xu[:, D:] - bg_ref[...])
            h = jnp.tanh(yw[:, 2 * D:] + dot(r * xv, ug_ref[...]))
            return (1.0 - z) * xv + z * h

        # ---- y = ln1(x); per-sequence concat([mem, y]) on the sublane axis ----
        y = layernorm(xr).reshape(BT, S, D)
        ycat = jnp.concatenate([mem_ref[...], y], axis=1)    # (BT, T, D)

        # ------------- causal MHA with fused QKV projection -------------
        # One (BT*T, D) @ (D, 3D) matmul: lane-dense, VMEM-resident weights.
        qkv = (dot(ycat.reshape(BT * T, D), wqkv_ref[...]) + bqkv_ref[...]
               ).reshape(BT, T, 3 * D)

        # Additive causal bias, built once and shared by all heads/sequences.
        rows = jax.lax.broadcasted_iota(jnp.int32, (T, T), 0)
        cols = jax.lax.broadcasted_iota(jnp.int32, (T, T), 1)
        bias = jnp.where(rows >= cols, f32(0.0), f32(-1e30))

        # TODO(synk): for large T, switch to a KV-block-tiled online softmax
        # (flash-style) loop so the (T,T) scores never materialize.
        ctx_heads = []
        for h in range(heads):                               # static unroll
            qh = qkv[:, :, h * dh:(h + 1) * dh].astype(mm_dtype)
            kh = qkv[:, :, D + h * dh:D + (h + 1) * dh].astype(mm_dtype)
            vh = qkv[:, :, 2 * D + h * dh:2 * D + (h + 1) * dh].astype(mm_dtype)
            s = jnp.einsum('bqd,bkd->bqk', qh, kh,
                           preferred_element_type=f32) * scale + bias
            s = s - jnp.max(s, axis=-1, keepdims=True)
            p = jnp.exp(s)                                   # f32 softmax
            # approx reciprocal = EUP slot; ~1e-3 rel. error vs exact division.
            p = p * pl.reciprocal(jnp.sum(p, axis=-1, keepdims=True), approx=True)
            ctx_heads.append(jnp.einsum('bqk,bkd->bqd', p.astype(mm_dtype), vh,
                                        preferred_element_type=f32))
        # Heads re-assembled lane-contiguously -> single 128-deep Wo matmul.
        ctx = jnp.concatenate(ctx_heads, axis=-1)            # (BT, T, D) f32
        y_attn = (dot(ctx.reshape(BT * T, D), wo_ref[...]) + bo_ref[...]
                  ).reshape(BT, T, D)

        mem_out_ref[...] = y_attn[:, :M, :]                  # updated XL memory
        y_seq = y_attn[:, M:, :].reshape(Rf, D)
        # TODO(synk): nn.Dropout(0.1) treated as identity (eval-mode semantics).

        x1 = gru_gate(xr, jnp.maximum(y_seq, 0.0),
                      g1_w3_ref, g1_u2_ref, g1_ug_ref, g1_bg_ref)

        # MLP branch (shares ln1 parameters, as in the PyTorch forward).
        y2 = layernorm(x1)
        hidden = jnp.maximum(dot(y2, w1_ref[...]) + b1_ref[...], 0.0)
        y2 = dot(hidden, w2_ref[...]) + b2_ref[...]

        out_ref[...] = gru_gate(x1, jnp.maximum(y2, 0.0),
                                g2_w3_ref, g2_u2_ref, g2_ug_ref,
                                g2_bg_ref).reshape(BT, S, D)

    weights = (ln_g, ln_b,
               wqkv, bqkv, wo_c, bo,
               g1_w3, g1_u2, g1_ug_c, g1_bg,
               w1_c, b1, w2_c, b2,
               g2_w3, g2_u2, g2_ug_c, g2_bg)

    # --- specs: x/mem/out stream per batch tile; weights stay VMEM-resident ---
    def resident(a):
        nd = a.ndim
        return pl.BlockSpec(a.shape, lambda b, _nd=nd: (0,) * _nd)

    in_specs = ([pl.BlockSpec((BT, S, D), lambda b: (b, 0, 0)),
                 pl.BlockSpec((BT, M, D), lambda b: (b, 0, 0))]
                + [resident(a) for a in weights])
    out_specs = (pl.BlockSpec((BT, S, D), lambda b: (b, 0, 0)),
                 pl.BlockSpec((BT, M, D), lambda b: (b, 0, 0)))

    # ------------------ cost / VMEM sizing (advisory) ------------------
    w_bytes = sum(int(a.size) * a.dtype.itemsize for a in weights)
    stream_bytes = 4 * (2 * BT * S * D + 2 * BT * M * D)     # x/out + mem/mem_out
    act_bytes = 4 * (BT * T * (4 * D + 3 * D)                # qkv + ycat/ctx/y_attn
                     + 2 * BT * T * T                        # live score tiles
                     + 8 * Rf * D + 2 * Rf * DM)
    need = 2 * (w_bytes + stream_bytes) + act_bytes          # x2: double buffering
    try:
        phys = getattr(pltpu.get_tpu_info(), "vmem_capacity_bytes", 64 * 2 ** 20)
    except Exception:  # noqa: BLE001
        phys = 64 * 2 ** 20                                  # v7x per-TC floor
    vmem_limit = int(min(int(0.75 * phys), max(32 * 2 ** 20, 2 * need)))

    mm_flops = B * (2 * T * D * 3 * D            # fused QKV projection
                    + 4 * T * T * D              # scores + context (all heads)
                    + 2 * T * D * D              # output projection
                    + 2 * (12 * S * D * D)       # two fused GRU gates
                    + 4 * S * D * DM)            # MLP
    trans = B * (heads * T * (T + 1) + 8 * S * D + 2 * S)
    io_bytes = (x.size + mem.size) * 4 * 2 + w_bytes
    cost = pl.CostEstimate(flops=mm_flops, transcendentals=trans,
                           bytes_accessed=io_bytes)

    return pl.pallas_call(
        kernel,
        out_shape=(jax.ShapeDtypeStruct((B, S, D), jnp.float32),   # gated x out
                   jax.ShapeDtypeStruct((B, M, D), jnp.float32)),  # new memory
        grid_spec=pltpu.PrefetchScalarGridSpec(
            num_scalar_prefetch=0,
            grid=(B // BT,),
            in_specs=in_specs,
            out_specs=out_specs),
        compiler_params=pltpu.CompilerParams(
            dimension_semantics=("parallel",),      # v7x: batch tiles across 2 TCs
            vmem_limit_bytes=vmem_limit),
        cost_estimate=cost,
    )(x, mem, *weights)


if __name__ == "__main__":
    # Small, lane-aligned demo shapes: batch=32 independent sequences, seq=8,
    # mem_length=8, embed_dim=128, mlp_dim=256, heads=4 (head_dim=32).
    B, S, M, D, DM, H = 32, 8, 8, 128, 256, 4

    key = jax.random.PRNGKey(0)
    keys = iter(jax.random.split(key, 48))
    w = lambda shape: 0.02 * jax.random.normal(next(keys), shape, dtype=jnp.float32)

    # Deterministic synthetic parameters (Linear weights stored as (in, out)).
    ln_g = jnp.ones((1, D), jnp.float32)
    ln_b = jnp.zeros((1, D), jnp.float32)
    mha_p = (w((D, D)), w((1, D)),   # Wq, bq
             w((D, D)), w((1, D)),   # Wk, bk
             w((D, D)), w((1, D)),   # Wv, bv
             w((D, D)), w((1, D)))   # Wo, bo
    gate_bias = 2.0 * jnp.ones((1, D), jnp.float32)   # GTrXL z-gate bias (param)
    g1_p = tuple(w((D, D)) for _ in range(6)) + (gate_bias,)   # Wr,Ur,Wz,Uz,Wg,Ug,bg
    mlp_p = (w((D, DM)), w((1, DM)), w((DM, D)), w((1, D)))
    g2_p = tuple(w((D, D)) for _ in range(6)) + (gate_bias,)
    params = (ln_g, ln_b) + mha_p + g1_p + mlp_p + g2_p

    x = jax.random.normal(next(keys), (B, S, D), dtype=jnp.float32)
    mem = jnp.zeros((B, M, D), jnp.float32)      # module initializes mem to zeros

    fn = jax.jit(functools.partial(decoder_xl_layer, heads=H, block_batch=16))
    x_out, new_mem = fn(x, mem, params)
    jax.block_until_ready((x_out, new_mem))
    assert x_out.shape == (B, S, D) and new_mem.shape == (B, M, D)
    assert bool(jnp.all(jnp.isfinite(x_out))) and bool(jnp.all(jnp.isfinite(new_mem)))
    print("KERNEL_OK")
</pallas_src>

<mosaic_0001>
module attributes {stable_mosaic.version = 11 : i64} {
  func.func @kernel(%arg0: i32, %arg1: memref<16x8x128xf32, #tpu.memory_space<vmem>>, %arg2: memref<16x8x128xf32, #tpu.memory_space<vmem>>, %arg3: memref<1x128xf32, #tpu.memory_space<vmem>>, %arg4: memref<1x128xf32, #tpu.memory_space<vmem>>, %arg5: memref<128x384xbf16, #tpu.memory_space<vmem>>, %arg6: memref<1x384xf32, #tpu.memory_space<vmem>>, %arg7: memref<128x128xbf16, #tpu.memory_space<vmem>>, %arg8: memref<1x128xf32, #tpu.memory_space<vmem>>, %arg9: memref<128x384xbf16, #tpu.memory_space<vmem>>, %arg10: memref<128x256xbf16, #tpu.memory_space<vmem>>, %arg11: memref<128x128xbf16, #tpu.memory_space<vmem>>, %arg12: memref<1x128xf32, #tpu.memory_space<vmem>>, %arg13: memref<128x256xbf16, #tpu.memory_space<vmem>>, %arg14: memref<1x256xf32, #tpu.memory_space<vmem>>, %arg15: memref<256x128xbf16, #tpu.memory_space<vmem>>, %arg16: memref<1x128xf32, #tpu.memory_space<vmem>>, %arg17: memref<128x384xbf16, #tpu.memory_space<vmem>>, %arg18: memref<128x256xbf16, #tpu.memory_space<vmem>>, %arg19: memref<128x128xbf16, #tpu.memory_space<vmem>>, %arg20: memref<1x128xf32, #tpu.memory_space<vmem>>, %arg21: memref<16x8x128xf32, #tpu.memory_space<vmem>>, %arg22: memref<16x8x128xf32, #tpu.memory_space<vmem>>) attributes {dimension_semantics = [#tpu.dimension_semantics<parallel>], iteration_bounds = array<i64: 2>, scalar_prefetch = 0 : i64, scratch_operands = 0 : i64, tpu.core_type = #tpu.core_type<tc>, window_params = [{transform_indices = @transform_0, window_bounds = array<i64: 16, 8, 128>}, {transform_indices = @transform_1, window_bounds = array<i64: 16, 8, 128>}, {pipeline_mode = #tpu.pipeline_mode<synchronous>, transform_indices = @transform_2, window_bounds = array<i64: 1, 128>}, {pipeline_mode = #tpu.pipeline_mode<synchronous>, transform_indices = @transform_3, window_bounds = array<i64: 1, 128>}, {pipeline_mode = #tpu.pipeline_mode<synchronous>, transform_indices = @transform_4, window_bounds = array<i64: 128, 384>}, {pipeline_mode = #tpu.pipeline_mode<synchronous>, transform_indices = @transform_5, window_bounds = array<i64: 1, 384>}, {pipeline_mode = #tpu.pipeline_mode<synchronous>, transform_indices = @transform_6, window_bounds = array<i64: 128, 128>}, {pipeline_mode = #tpu.pipeline_mode<synchronous>, transform_indices = @transform_7, window_bounds = array<i64: 1, 128>}, {pipeline_mode = #tpu.pipeline_mode<synchronous>, transform_indices = @transform_8, window_bounds = array<i64: 128, 384>}, {pipeline_mode = #tpu.pipeline_mode<synchronous>, transform_indices = @transform_9, window_bounds = array<i64: 128, 256>}, {pipeline_mode = #tpu.pipeline_mode<synchronous>, transform_indices = @transform_10, window_bounds = array<i64: 128, 128>}, {pipeline_mode = #tpu.pipeline_mode<synchronous>, transform_indices = @transform_11, window_bounds = array<i64: 1, 128>}, {pipeline_mode = #tpu.pipeline_mode<synchronous>, transform_indices = @transform_12, window_bounds = array<i64: 128, 256>}, {pipeline_mode = #tpu.pipeline_mode<synchronous>, transform_indices = @transform_13, window_bounds = array<i64: 1, 256>}, {pipeline_mode = #tpu.pipeline_mode<synchronous>, transform_indices = @transform_14, window_bounds = array<i64: 256, 128>}, {pipeline_mode = #tpu.pipeline_mode<synchronous>, transform_indices = @transform_15, window_bounds = array<i64: 1, 128>}, {pipeline_mode = #tpu.pipeline_mode<synchronous>, transform_indices = @transform_16, window_bounds = array<i64: 128, 384>}, {pipeline_mode = #tpu.pipeline_mode<synchronous>, transform_indices = @transform_17, window_bounds = array<i64: 128, 256>}, {pipeline_mode = #tpu.pipeline_mode<synchronous>, transform_indices = @transform_18, window_bounds = array<i64: 128, 128>}, {pipeline_mode = #tpu.pipeline_mode<synchronous>, transform_indices = @transform_19, window_bounds = array<i64: 1, 128>}, {transform_indices = @transform_20, window_bounds = array<i64: 16, 8, 128>}, {transform_indices = @transform_21, window_bounds = array<i64: 16, 8, 128>}]} {
    %c0 = arith.constant 0 : index
    %c0_0 = arith.constant 0 : index
    %c0_1 = arith.constant 0 : index
    %0 = vector.load %arg1[%c0, %c0_0, %c0_1] : memref<16x8x128xf32, #tpu.memory_space<vmem>>, vector<16x8x128xf32>
    %1 = vector.shape_cast %0 : vector<16x8x128xf32> to vector<128x128xf32>
    %c0_2 = arith.constant 0 : index
    %c0_3 = arith.constant 0 : index
    %2 = vector.load %arg3[%c0_2, %c0_3] : memref<1x128xf32, #tpu.memory_space<vmem>>, vector<1x128xf32>
    %3 = vector.shape_cast %2 : vector<1x128xf32> to vector<1x128xf32>
    %4 = vector.broadcast %3 : vector<1x128xf32> to vector<128x128xf32>
    %c0_4 = arith.constant 0 : index
    %c0_5 = arith.constant 0 : index
    %5 = vector.load %arg4[%c0_4, %c0_5] : memref<1x128xf32, #tpu.memory_space<vmem>>, vector<1x128xf32>
    %6 = vector.shape_cast %5 : vector<1x128xf32> to vector<1x128xf32>
    %7 = vector.broadcast %6 : vector<1x128xf32> to vector<128x128xf32>
    %cst = arith.constant dense<0.000000e+00> : vector<128xf32>
    %8 = vector.multi_reduction <add>, %1, %cst [1] : vector<128x128xf32> to vector<128xf32>
    %9 = vector.shape_cast %8 : vector<128xf32> to vector<128x1xf32>
    %cst_6 = arith.constant 1.280000e+02 : f32
    %10 = vector.broadcast %cst_6 : f32 to vector<128x1xf32>
    %11 = arith.divf %9, %10 : vector<128x1xf32>
    %12 = vector.broadcast %11 : vector<128x1xf32> to vector<128x128xf32>
    %13 = arith.subf %1, %12 : vector<128x128xf32>
    %14 = arith.mulf %13, %13 : vector<128x128xf32>
    %cst_7 = arith.constant dense<0.000000e+00> : vector<128xf32>
    %15 = vector.multi_reduction <add>, %14, %cst_7 [1] : vector<128x128xf32> to vector<128xf32>
    %16 = vector.shape_cast %15 : vector<128xf32> to vector<128x1xf32>
    %cst_8 = arith.constant 1.280000e+02 : f32
    %17 = vector.broadcast %cst_8 : f32 to vector<128x1xf32>
    %18 = arith.divf %16, %17 : vector<128x1xf32>
    %19 = vector.broadcast %11 : vector<128x1xf32> to vector<128x128xf32>
    %20 = arith.subf %1, %19 : vector<128x128xf32>
    %cst_9 = arith.constant 9.99999974E-6 : f32
    %21 = vector.broadcast %cst_9 : f32 to vector<128x1xf32>
    %22 = arith.addf %18, %21 : vector<128x1xf32>
    %23 = math.rsqrt %22 : vector<128x1xf32>
    %24 = vector.broadcast %23 : vector<128x1xf32> to vector<128x128xf32>
    %25 = arith.mulf %20, %24 : vector<128x128xf32>
    %26 = arith.mulf %25, %4 : vector<128x128xf32>
    %27 = arith.addf %26, %7 : vector<128x128xf32>
    %28 = vector.shape_cast %27 : vector<128x128xf32> to vector<16x8x128xf32>
    %c0_10 = arith.constant 0 : index
    %c0_11 = arith.constant 0 : index
    %c0_12 = arith.constant 0 : index
    %29 = vector.load %arg2[%c0_10, %c0_11, %c0_12] : memref<16x8x128xf32, #tpu.memory_space<vmem>>, vector<16x8x128xf32>
    %30 = tpu.concatenate %29, %28 in 1 : vector<16x8x128xf32>, vector<16x8x128xf32> -> vector<16x16x128xf32>
    %31 = vector.shape_cast %30 : vector<16x16x128xf32> to vector<256x128xf32>
    %c0_13 = arith.constant 0 : index
    %c0_14 = arith.constant 0 : index
    %32 = vector.load %arg5[%c0_13, %c0_14] : memref<128x384xbf16, #tpu.memory_space<vmem>>, vector<128x384xbf16>
    %33 = arith.truncf %31 : vector<256x128xf32> to vector<256x128xbf16>
    %cst_15 = arith.constant dense<0.000000e+00> : vector<256x384xf32>
    %34 = tpu.matmul %33, %32, %cst_15 {dimension_numbers = #tpu.dot_dimension_numbers<[1], [0], [0], [1], [0, 0, 1, 1], [], []>} : vector<256x128xbf16>, vector<128x384xbf16>, vector<256x384xf32> -> vector<256x384xf32>
    %c0_16 = arith.constant 0 : index
    %c0_17 = arith.constant 0 : index
    %35 = vector.load %arg6[%c0_16, %c0_17] : memref<1x384xf32, #tpu.memory_space<vmem>>, vector<1x384xf32>
    %36 = vector.broadcast %35 : vector<1x384xf32> to vector<256x384xf32>
    %37 = arith.addf %34, %36 : vector<256x384xf32>
    %38 = vector.shape_cast %37 : vector<256x384xf32> to vector<16x16x384xf32>
    %39 = tpu.iota {dimensions = array<i32: 0>} : vector<16x16xi32>
    %40 = tpu.iota {dimensions = array<i32: 1>} : vector<16x16xi32>
    %41 = arith.cmpi sge, %39, %40 : vector<16x16xi32>
    %cst_18 = arith.constant 0.000000e+00 : f32
    %cst_19 = arith.constant -1.000000e+30 : f32
    %42 = vector.broadcast %cst_18 : f32 to vector<16x16xf32>
    %43 = vector.broadcast %cst_19 : f32 to vector<16x16xf32>
    %44 = arith.select %41, %42, %43 : vector<16x16xi1>, vector<16x16xf32>
    %45 = vector.extract_strided_slice %38 {offsets = [0, 0, 0], sizes = [16, 16, 32], strides = [1, 1, 1]} : vector<16x16x384xf32> to vector<16x16x32xf32>
    %46 = arith.truncf %45 : vector<16x16x32xf32> to vector<16x16x32xbf16>
    %47 = vector.extract_strided_slice %38 {offsets = [0, 0, 128], sizes = [16, 16, 32], strides = [1, 1, 1]} : vector<16x16x384xf32> to vector<16x16x32xf32>
    %48 = arith.truncf %47 : vector<16x16x32xf32> to vector<16x16x32xbf16>
    %49 = vector.extract_strided_slice %38 {offsets = [0, 0, 256], sizes = [16, 16, 32], strides = [1, 1, 1]} : vector<16x16x384xf32> to vector<16x16x32xf32>
    %50 = arith.truncf %49 : vector<16x16x32xf32> to vector<16x16x32xbf16>
    "tpu.trace_start"() <{level = 10 : i32, message = "bqd,bkd->bqk"}> : () -> ()
    %cst_20 = arith.constant dense<0.000000e+00> : vector<16x16x16xf32>
    %51 = tpu.matmul %46, %48, %cst_20 {dimension_numbers = #tpu.dot_dimension_numbers<[2], [2], [1], [1], [0, 0, 0, 1, 1, 1], [0], [0]>} : vector<16x16x32xbf16>, vector<16x16x32xbf16>, vector<16x16x16xf32> -> vector<16x16x16xf32>
    "tpu.trace_stop"() : () -> ()
    %cst_21 = arith.constant 0.176776692 : f32
    %52 = vector.broadcast %cst_21 : f32 to vector<16x16x16xf32>
    %53 = arith.mulf %51, %52 : vector<16x16x16xf32>
    %54 = vector.shape_cast %44 : vector<16x16xf32> to vector<1x16x16xf32>
    %55 = vector.broadcast %54 : vector<1x16x16xf32> to vector<16x16x16xf32>
    %56 = arith.addf %53, %55 : vector<16x16x16xf32>
    %cst_22 = arith.constant dense<0xFF800000> : vector<16x16xf32>
    %57 = vector.multi_reduction <maximumf>, %56, %cst_22 [2] : vector<16x16x16xf32> to vector<16x16xf32>
    %58 = vector.shape_cast %57 : vector<16x16xf32> to vector<16x16x1xf32>
    %59 = vector.broadcast %58 : vector<16x16x1xf32> to vector<16x16x16xf32>
    %60 = arith.subf %56, %59 : vector<16x16x16xf32>
    %61 = math.exp %60 : vector<16x16x16xf32>
    %cst_23 = arith.constant dense<0.000000e+00> : vector<16x16xf32>
    %62 = vector.multi_reduction <add>, %61, %cst_23 [2] : vector<16x16x16xf32> to vector<16x16xf32>
    %63 = vector.shape_cast %62 : vector<16x16xf32> to vector<16x16x1xf32>
    %64 = tpu.reciprocal %63 {approx = true} : vector<16x16x1xf32> -> vector<16x16x1xf32>
    %65 = vector.broadcast %64 : vector<16x16x1xf32> to vector<16x16x16xf32>
    %66 = arith.mulf %61, %65 : vector<16x16x16xf32>
    %67 = arith.truncf %66 : vector<16x16x16xf32> to vector<16x16x16xbf16>
    "tpu.trace_start"() <{level = 10 : i32, message = "bqk,bkd->bqd"}> : () -> ()
    %cst_24 = arith.constant dense<0.000000e+00> : vector<16x16x32xf32>
    %68 = tpu.matmul %67, %50, %cst_24 {dimension_numbers = #tpu.dot_dimension_numbers<[2], [1], [1], [2], [0, 0, 0, 1, 1, 2], [0], [0]>} : vector<16x16x16xbf16>, vector<16x16x32xbf16>, vector<16x16x32xf32> -> vector<16x16x32xf32>
    "tpu.trace_stop"() : () -> ()
    %69 = vector.extract_strided_slice %38 {offsets = [0, 0, 32], sizes = [16, 16, 32], strides = [1, 1, 1]} : vector<16x16x384xf32> to vector<16x16x32xf32>
    %70 = arith.truncf %69 : vector<16x16x32xf32> to vector<16x16x32xbf16>
    %71 = vector.extract_strided_slice %38 {offsets = [0, 0, 160], sizes = [16, 16, 32], strides = [1, 1, 1]} : vector<16x16x384xf32> to vector<16x16x32xf32>
    %72 = arith.truncf %71 : vector<16x16x32xf32> to vector<16x16x32xbf16>
    %73 = vector.extract_strided_slice %38 {offsets = [0, 0, 288], sizes = [16, 16, 32], strides = [1, 1, 1]} : vector<16x16x384xf32> to vector<16x16x32xf32>
    %74 = arith.truncf %73 : vector<16x16x32xf32> to vector<16x16x32xbf16>
    "tpu.trace_start"() <{level = 10 : i32, message = "bqd,bkd->bqk"}> : () -> ()
    %cst_25 = arith.constant dense<0.000000e+00> : vector<16x16x16xf32>
    %75 = tpu.matmul %70, %72, %cst_25 {dimension_numbers = #tpu.dot_dimension_numbers<[2], [2], [1], [1], [0, 0, 0, 1, 1, 1], [0], [0]>} : vector<16x16x32xbf16>, vector<16x16x32xbf16>, vector<16x16x16xf32> -> vector<16x16x16xf32>
    "tpu.trace_stop"() : () -> ()
    %cst_26 = arith.constant 0.176776692 : f32
    %76 = vector.broadcast %cst_26 : f32 to vector<16x16x16xf32>
    %77 = arith.mulf %75, %76 : vector<16x16x16xf32>
    %78 = vector.shape_cast %44 : vector<16x16xf32> to vector<1x16x16xf32>
    %79 = vector.broadcast %78 : vector<1x16x16xf32> to vector<16x16x16xf32>
    %80 = arith.addf %77, %79 : vector<16x16x16xf32>
    %cst_27 = arith.constant dense<0xFF800000> : vector<16x16xf32>
    %81 = vector.multi_reduction <maximumf>, %80, %cst_27 [2] : vector<16x16x16xf32> to vector<16x16xf32>
    %82 = vector.shape_cast %81 : vector<16x16xf32> to vector<16x16x1xf32>
    %83 = vector.broadcast %82 : vector<16x16x1xf32> to vector<16x16x16xf32>
    %84 = arith.subf %80, %83 : vector<16x16x16xf32>
    %85 = math.exp %84 : vector<16x16x16xf32>
    %cst_28 = arith.constant dense<0.000000e+00> : vector<16x16xf32>
    %86 = vector.multi_reduction <add>, %85, %cst_28 [2] : vector<16x16x16xf32> to vector<16x16xf32>
    %87 = vector.shape_cast %86 : vector<16x16xf32> to vector<16x16x1xf32>
    %88 = tpu.reciprocal %87 {approx = true} : vector<16x16x1xf32> -> vector<16x16x1xf32>
    %89 = vector.broadcast %88 : vector<16x16x1xf32> to vector<16x16x16xf32>
    %90 = arith.mulf %85, %89 : vector<16x16x16xf32>
    %91 = arith.truncf %90 : vector<16x16x16xf32> to vector<16x16x16xbf16>
    "tpu.trace_start"() <{level = 10 : i32, message = "bqk,bkd->bqd"}> : () -> ()
    %cst_29 = arith.constant dense<0.000000e+00> : vector<16x16x32xf32>
    %92 = tpu.matmul %91, %74, %cst_29 {dimension_numbers = #tpu.dot_dimension_numbers<[2], [1], [1], [2], [0, 0, 0, 1, 1, 2], [0], [0]>} : vector<16x16x16xbf16>, vector<16x16x32xbf16>, vector<16x16x32xf32> -> vector<16x16x32xf32>
    "tpu.trace_stop"() : () -> ()
    %93 = vector.extract_strided_slice %38 {offsets = [0, 0, 64], sizes = [16, 16, 32], strides = [1, 1, 1]} : vector<16x16x384xf32> to vector<16x16x32xf32>
    %94 = arith.truncf %93 : vector<16x16x32xf32> to vector<16x16x32xbf16>
    %95 = vector.extract_strided_slice %38 {offsets = [0, 0, 192], sizes = [16, 16, 32], strides = [1, 1, 1]} : vector<16x16x384xf32> to vector<16x16x32xf32>
    %96 = arith.truncf %95 : vector<16x16x32xf32> to vector<16x16x32xbf16>
    %97 = vector.extract_strided_slice %38 {offsets = [0, 0, 320], sizes = [16, 16, 32], strides = [1, 1, 1]} : vector<16x16x384xf32> to vector<16x16x32xf32>
    %98 = arith.truncf %97 : vector<16x16x32xf32> to vector<16x16x32xbf16>
    "tpu.trace_start"() <{level = 10 : i32, message = "bqd,bkd->bqk"}> : () -> ()
    %cst_30 = arith.constant dense<0.000000e+00> : vector<16x16x16xf32>
    %99 = tpu.matmul %94, %96, %cst_30 {dimension_numbers = #tpu.dot_dimension_numbers<[2], [2], [1], [1], [0, 0, 0, 1, 1, 1], [0], [0]>} : vector<16x16x32xbf16>, vector<16x16x32xbf16>, vector<16x16x16xf32> -> vector<16x16x16xf32>
    "tpu.trace_stop"() : () -> ()
    %cst_31 = arith.constant 0.176776692 : f32
    %100 = vector.broadcast %cst_31 : f32 to vector<16x16x16xf32>
    %101 = arith.mulf %99, %100 : vector<16x16x16xf32>
    %102 = vector.shape_cast %44 : vector<16x16xf32> to vector<1x16x16xf32>
    %103 = vector.broadcast %102 : vector<1x16x16xf32> to vector<16x16x16xf32>
    %104 = arith.addf %101, %103 : vector<16x16x16xf32>
    %cst_32 = arith.constant dense<0xFF800000> : vector<16x16xf32>
    %105 = vector.multi_reduction <maximumf>, %104, %cst_32 [2] : vector<16x16x16xf32> to vector<16x16xf32>
    %106 = vector.shape_cast %105 : vector<16x16xf32> to vector<16x16x1xf32>
    %107 = vector.broadcast %106 : vector<16x16x1xf32> to vector<16x16x16xf32>
    %108 = arith.subf %104, %107 : vector<16x16x16xf32>
    %109 = math.exp %108 : vector<16x16x16xf32>
    %cst_33 = arith.constant dense<0.000000e+00> : vector<16x16xf32>
    %110 = vector.multi_reduction <add>, %109, %cst_33 [2] : vector<16x16x16xf32> to vector<16x16xf32>
    %111 = vector.shape_cast %110 : vector<16x16xf32> to vector<16x16x1xf32>
    %112 = tpu.reciprocal %111 {approx = true} : vector<16x16x1xf32> -> vector<16x16x1xf32>
    %113 = vector.broadcast %112 : vector<16x16x1xf32> to vector<16x16x16xf32>
    %114 = arith.mulf %109, %113 : vector<16x16x16xf32>
    %115 = arith.truncf %114 : vector<16x16x16xf32> to vector<16x16x16xbf16>
    "tpu.trace_start"() <{level = 10 : i32, message = "bqk,bkd->bqd"}> : () -> ()
    %cst_34 = arith.constant dense<0.000000e+00> : vector<16x16x32xf32>
    %116 = tpu.matmul %115, %98, %cst_34 {dimension_numbers = #tpu.dot_dimension_numbers<[2], [1], [1], [2], [0, 0, 0, 1, 1, 2], [0], [0]>} : vector<16x16x16xbf16>, vector<16x16x32xbf16>, vector<16x16x32xf32> -> vector<16x16x32xf32>
    "tpu.trace_stop"() : () -> ()
    %117 = vector.extract_strided_slice %38 {offsets = [0, 0, 96], sizes = [16, 16, 32], strides = [1, 1, 1]} : vector<16x16x384xf32> to vector<16x16x32xf32>
    %118 = arith.truncf %117 : vector<16x16x32xf32> to vector<16x16x32xbf16>
    %119 = vector.extract_strided_slice %38 {offsets = [0, 0, 224], sizes = [16, 16, 32], strides = [1, 1, 1]} : vector<16x16x384xf32> to vector<16x16x32xf32>
    %120 = arith.truncf %119 : vector<16x16x32xf32> to vector<16x16x32xbf16>
    %121 = vector.extract_strided_slice %38 {offsets = [0, 0, 352], sizes = [16, 16, 32], strides = [1, 1, 1]} : vector<16x16x384xf32> to vector<16x16x32xf32>
    %122 = arith.truncf %121 : vector<16x16x32xf32> to vector<16x16x32xbf16>
    "tpu.trace_start"() <{level = 10 : i32, message = "bqd,bkd->bqk"}> : () -> ()
    %cst_35 = arith.constant dense<0.000000e+00> : vector<16x16x16xf32>
    %123 = tpu.matmul %118, %120, %cst_35 {dimension_numbers = #tpu.dot_dimension_numbers<[2], [2], [1], [1], [0, 0, 0, 1, 1, 1], [0], [0]>} : vector<16x16x32xbf16>, vector<16x16x32xbf16>, vector<16x16x16xf32> -> vector<16x16x16xf32>
    "tpu.trace_stop"() : () -> ()
    %cst_36 = arith.constant 0.176776692 : f32
    %124 = vector.broadcast %cst_36 : f32 to vector<16x16x16xf32>
    %125 = arith.mulf %123, %124 : vector<16x16x16xf32>
    %126 = vector.shape_cast %44 : vector<16x16xf32> to vector<1x16x16xf32>
    %127 = vector.broadcast %126 : vector<1x16x16xf32> to vector<16x16x16xf32>
    %128 = arith.addf %125, %127 : vector<16x16x16xf32>
    %cst_37 = arith.constant dense<0xFF800000> : vector<16x16xf32>
    %129 = vector.multi_reduction <maximumf>, %128, %cst_37 [2] : vector<16x16x16xf32> to vector<16x16xf32>
    %130 = vector.shape_cast %129 : vector<16x16xf32> to vector<16x16x1xf32>
    %131 = vector.broadcast %130 : vector<16x16x1xf32> to vector<16x16x16xf32>
    %132 = arith.subf %128, %131 : vector<16x16x16xf32>
    %133 = math.exp %132 : vector<16x16x16xf32>
    %cst_38 = arith.constant dense<0.000000e+00> : vector<16x16xf32>
    %134 = vector.multi_reduction <add>, %133, %cst_38 [2] : vector<16x16x16xf32> to vector<16x16xf32>
    %135 = vector.shape_cast %134 : vector<16x16xf32> to vector<16x16x1xf32>
    %136 = tpu.reciprocal %135 {approx = true} : vector<16x16x1xf32> -> vector<16x16x1xf32>
    %137 = vector.broadcast %136 : vector<16x16x1xf32> to vector<16x16x16xf32>
    %138 = arith.mulf %133, %137 : vector<16x16x16xf32>
    %139 = arith.truncf %138 : vector<16x16x16xf32> to vector<16x16x16xbf16>
    "tpu.trace_start"() <{level = 10 : i32, message = "bqk,bkd->bqd"}> : () -> ()
    %cst_39 = arith.constant dense<0.000000e+00> : vector<16x16x32xf32>
    %140 = tpu.matmul %139, %122, %cst_39 {dimension_numbers = #tpu.dot_dimension_numbers<[2], [1], [1], [2], [0, 0, 0, 1, 1, 2], [0], [0]>} : vector<16x16x16xbf16>, vector<16x16x32xbf16>, vector<16x16x32xf32> -> vector<16x16x32xf32>
    "tpu.trace_stop"() : () -> ()
    %141 = tpu.concatenate %68, %92, %116, %140 in 2 : vector<16x16x32xf32>, vector<16x16x32xf32>, vector<16x16x32xf32>, vector<16x16x32xf32> -> vector<16x16x128xf32>
    %142 = vector.shape_cast %141 : vector<16x16x128xf32> to vector<256x128xf32>
    %c0_40 = arith.constant 0 : index
    %c0_41 = arith.constant 0 : index
    %143 = vector.load %arg7[%c0_40, %c0_41] : memref<128x128xbf16, #tpu.memory_space<vmem>>, vector<128x128xbf16>
    %144 = arith.truncf %142 : vector<256x128xf32> to vector<256x128xbf16>
    %cst_42 = arith.constant dense<0.000000e+00> : vector<256x128xf32>
    %145 = tpu.matmul %144, %143, %cst_42 {dimension_numbers = #tpu.dot_dimension_numbers<[1], [0], [0], [1], [0, 0, 1, 1], [], []>} : vector<256x128xbf16>, vector<128x128xbf16>, vector<256x128xf32> -> vector<256x128xf32>
    %c0_43 = arith.constant 0 : index
    %c0_44 = arith.constant 0 : index
    %146 = vector.load %arg8[%c0_43, %c0_44] : memref<1x128xf32, #tpu.memory_space<vmem>>, vector<1x128xf32>
    %147 = vector.broadcast %146 : vector<1x128xf32> to vector<256x128xf32>
    %148 = arith.addf %145, %147 : vector<256x128xf32>
    %149 = vector.shape_cast %148 : vector<256x128xf32> to vector<16x16x128xf32>
    %150 = vector.extract_strided_slice %149 {offsets = [0, 0, 0], sizes = [16, 8, 128], strides = [1, 1, 1]} : vector<16x16x128xf32> to vector<16x8x128xf32>
    %c0_45 = arith.constant 0 : index
    %c0_46 = arith.constant 0 : index
    %c0_47 = arith.constant 0 : index
    %151 = vector.load %arg22[%c0_45, %c0_46, %c0_47] : memref<16x8x128xf32, #tpu.memory_space<vmem>>, vector<16x8x128xf32>
    tpu.vector_store %arg22[%c0_45, %c0_46, %c0_47], %150 {strides = array<i32>} : memref<16x8x128xf32, #tpu.memory_space<vmem>>, vector<16x8x128xf32>,
    %152 = vector.extract_strided_slice %149 {offsets = [0, 8, 0], sizes = [16, 8, 128], strides = [1, 1, 1]} : vector<16x16x128xf32> to vector<16x8x128xf32>
    %153 = vector.shape_cast %152 : vector<16x8x128xf32> to vector<128x128xf32>
    %cst_48 = arith.constant 0.000000e+00 : f32
    %154 = vector.broadcast %cst_48 : f32 to vector<128x128xf32>
    %155 = arith.maximumf %153, %154 : vector<128x128xf32>
    %c0_49 = arith.constant 0 : index
    %c0_50 = arith.constant 0 : index
    %156 = vector.load %arg9[%c0_49, %c0_50] : memref<128x384xbf16, #tpu.memory_space<vmem>>, vector<128x384xbf16>
    %157 = arith.truncf %155 : vector<128x128xf32> to vector<128x128xbf16>
    %cst_51 = arith.constant dense<0.000000e+00> : vector<128x384xf32>
    %158 = tpu.matmul %157, %156, %cst_51 {dimension_numbers = #tpu.dot_dimension_numbers<[1], [0], [0], [1], [0, 0, 1, 1], [], []>} : vector<128x128xbf16>, vector<128x384xbf16>, vector<128x384xf32> -> vector<128x384xf32>
    %c0_52 = arith.constant 0 : index
    %c0_53 = arith.constant 0 : index
    %159 = vector.load %arg10[%c0_52, %c0_53] : memref<128x256xbf16, #tpu.memory_space<vmem>>, vector<128x256xbf16>
    %160 = arith.truncf %1 : vector<128x128xf32> to vector<128x128xbf16>
    %cst_54 = arith.constant dense<0.000000e+00> : vector<128x256xf32>
    %161 = tpu.matmul %160, %159, %cst_54 {dimension_numbers = #tpu.dot_dimension_numbers<[1], [0], [0], [1], [0, 0, 1, 1], [], []>} : vector<128x128xbf16>, vector<128x256xbf16>, vector<128x256xf32> -> vector<128x256xf32>
    %162 = vector.extract_strided_slice %158 {offsets = [0, 0], sizes = [128, 128], strides = [1, 1]} : vector<128x384xf32> to vector<128x128xf32>
    %163 = vector.extract_strided_slice %161 {offsets = [0, 0], sizes = [128, 128], strides = [1, 1]} : vector<128x256xf32> to vector<128x128xf32>
    %164 = arith.addf %162, %163 : vector<128x128xf32>
    %165 = arith.negf %164 : vector<128x128xf32>
    %166 = math.exp %165 : vector<128x128xf32>
    %cst_55 = arith.constant 1.000000e+00 : f32
    %167 = vector.broadcast %cst_55 : f32 to vector<128x128xf32>
    %168 = arith.addf %167, %166 : vector<128x128xf32>
    %169 = arith.divf %167, %168 : vector<128x128xf32>
    %170 = vector.extract_strided_slice %158 {offsets = [0, 128], sizes = [128, 128], strides = [1, 1]} : vector<128x384xf32> to vector<128x128xf32>
    %171 = vector.extract_strided_slice %161 {offsets = [0, 128], sizes = [128, 128], strides = [1, 1]} : vector<128x256xf32> to vector<128x128xf32>
    %172 = arith.addf %170, %171 : vector<128x128xf32>
    %c0_56 = arith.constant 0 : index
    %c0_57 = arith.constant 0 : index
    %173 = vector.load %arg12[%c0_56, %c0_57] : memref<1x128xf32, #tpu.memory_space<vmem>>, vector<1x128xf32>
    %174 = vector.broadcast %173 : vector<1x128xf32> to vector<128x128xf32>
    %175 = arith.subf %172, %174 : vector<128x128xf32>
    %176 = arith.negf %175 : vector<128x128xf32>
    %177 = math.exp %176 : vector<128x128xf32>
    %cst_58 = arith.constant 1.000000e+00 : f32
    %178 = vector.broadcast %cst_58 : f32 to vector<128x128xf32>
    %179 = arith.addf %178, %177 : vector<128x128xf32>
    %180 = arith.divf %178, %179 : vector<128x128xf32>
    %181 = vector.extract_strided_slice %158 {offsets = [0, 256], sizes = [128, 128], strides = [1, 1]} : vector<128x384xf32> to vector<128x128xf32>
    %182 = arith.mulf %169, %1 : vector<128x128xf32>
    %c0_59 = arith.constant 0 : index
    %c0_60 = arith.constant 0 : index
    %183 = vector.load %arg11[%c0_59, %c0_60] : memref<128x128xbf16, #tpu.memory_space<vmem>>, vector<128x128xbf16>
    %184 = arith.truncf %182 : vector<128x128xf32> to vector<128x128xbf16>
    %cst_61 = arith.constant dense<0.000000e+00> : vector<128x128xf32>
    %185 = tpu.matmul %184, %183, %cst_61 {dimension_numbers = #tpu.dot_dimension_numbers<[1], [0], [0], [1], [0, 0, 1, 1], [], []>} : vector<128x128xbf16>, vector<128x128xbf16>, vector<128x128xf32> -> vector<128x128xf32>
    %186 = arith.addf %181, %185 : vector<128x128xf32>
    %187 = math.tanh %186 : vector<128x128xf32>
    %cst_62 = arith.constant 1.000000e+00 : f32
    %188 = vector.broadcast %cst_62 : f32 to vector<128x128xf32>
    %189 = arith.subf %188, %180 : vector<128x128xf32>
    %190 = arith.mulf %189, %1 : vector<128x128xf32>
    %191 = arith.mulf %180, %187 : vector<128x128xf32>
    %192 = arith.addf %190, %191 : vector<128x128xf32>
    %cst_63 = arith.constant dense<0.000000e+00> : vector<128xf32>
    %193 = vector.multi_reduction <add>, %192, %cst_63 [1] : vector<128x128xf32> to vector<128xf32>
    %194 = vector.shape_cast %193 : vector<128xf32> to vector<128x1xf32>
    %cst_64 = arith.constant 1.280000e+02 : f32
    %195 = vector.broadcast %cst_64 : f32 to vector<128x1xf32>
    %196 = arith.divf %194, %195 : vector<128x1xf32>
    %197 = vector.broadcast %196 : vector<128x1xf32> to vector<128x128xf32>
    %198 = arith.subf %192, %197 : vector<128x128xf32>
    %199 = arith.mulf %198, %198 : vector<128x128xf32>
    %cst_65 = arith.constant dense<0.000000e+00> : vector<128xf32>
    %200 = vector.multi_reduction <add>, %199, %cst_65 [1] : vector<128x128xf32> to vector<128xf32>
    %201 = vector.shape_cast %200 : vector<128xf32> to vector<128x1xf32>
    %cst_66 = arith.constant 1.280000e+02 : f32
    %202 = vector.broadcast %cst_66 : f32 to vector<128x1xf32>
    %203 = arith.divf %201, %202 : vector<128x1xf32>
    %204 = vector.broadcast %196 : vector<128x1xf32> to vector<128x128xf32>
    %205 = arith.subf %192, %204 : vector<128x128xf32>
    %cst_67 = arith.constant 9.99999974E-6 : f32
    %206 = vector.broadcast %cst_67 : f32 to vector<128x1xf32>
    %207 = arith.addf %203, %206 : vector<128x1xf32>
    %208 = math.rsqrt %207 : vector<128x1xf32>
    %209 = vector.broadcast %208 : vector<128x1xf32> to vector<128x128xf32>
    %210 = arith.mulf %205, %209 : vector<128x128xf32>
    %211 = arith.mulf %210, %4 : vector<128x128xf32>
    %212 = arith.addf %211, %7 : vector<128x128xf32>
    %c0_68 = arith.constant 0 : index
    %c0_69 = arith.constant 0 : index
    %213 = vector.load %arg13[%c0_68, %c0_69] : memref<128x256xbf16, #tpu.memory_space<vmem>>, vector<128x256xbf16>
    %214 = arith.truncf %212 : vector<128x128xf32> to vector<128x128xbf16>
    %cst_70 = arith.constant dense<0.000000e+00> : vector<128x256xf32>
    %215 = tpu.matmul %214, %213, %cst_70 {dimension_numbers = #tpu.dot_dimension_numbers<[1], [0], [0], [1], [0, 0, 1, 1], [], []>} : vector<128x128xbf16>, vector<128x256xbf16>, vector<128x256xf32> -> vector<128x256xf32>
    %c0_71 = arith.constant 0 : index
    %c0_72 = arith.constant 0 : index
    %216 = vector.load %arg14[%c0_71, %c0_72] : memref<1x256xf32, #tpu.memory_space<vmem>>, vector<1x256xf32>
    %217 = vector.broadcast %216 : vector<1x256xf32> to vector<128x256xf32>
    %218 = arith.addf %215, %217 : vector<128x256xf32>
    %cst_73 = arith.constant 0.000000e+00 : f32
    %219 = vector.broadcast %cst_73 : f32 to vector<128x256xf32>
    %220 = arith.maximumf %218, %219 : vector<128x256xf32>
    %c0_74 = arith.constant 0 : index
    %c0_75 = arith.constant 0 : index
    %221 = vector.load %arg15[%c0_74, %c0_75] : memref<256x128xbf16, #tpu.memory_space<vmem>>, vector<256x128xbf16>
    %222 = arith.truncf %220 : vector<128x256xf32> to vector<128x256xbf16>
    %cst_76 = arith.constant dense<0.000000e+00> : vector<128x128xf32>
    %223 = tpu.matmul %222, %221, %cst_76 {dimension_numbers = #tpu.dot_dimension_numbers<[1], [0], [0], [1], [0, 0, 1, 1], [], []>} : vector<128x256xbf16>, vector<256x128xbf16>, vector<128x128xf32> -> vector<128x128xf32>
    %c0_77 = arith.constant 0 : index
    %c0_78 = arith.constant 0 : index
    %224 = vector.load %arg16[%c0_77, %c0_78] : memref<1x128xf32, #tpu.memory_space<vmem>>, vector<1x128xf32>
    %225 = vector.broadcast %224 : vector<1x128xf32> to vector<128x128xf32>
    %226 = arith.addf %223, %225 : vector<128x128xf32>
    %cst_79 = arith.constant 0.000000e+00 : f32
    %227 = vector.broadcast %cst_79 : f32 to vector<128x128xf32>
    %228 = arith.maximumf %226, %227 : vector<128x128xf32>
    %c0_80 = arith.constant 0 : index
    %c0_81 = arith.constant 0 : index
    %229 = vector.load %arg17[%c0_80, %c0_81] : memref<128x384xbf16, #tpu.memory_space<vmem>>, vector<128x384xbf16>
    %230 = arith.truncf %228 : vector<128x128xf32> to vector<128x128xbf16>
    %cst_82 = arith.constant dense<0.000000e+00> : vector<128x384xf32>
    %231 = tpu.matmul %230, %229, %cst_82 {dimension_numbers = #tpu.dot_dimension_numbers<[1], [0], [0], [1], [0, 0, 1, 1], [], []>} : vector<128x128xbf16>, vector<128x384xbf16>, vector<128x384xf32> -> vector<128x384xf32>
    %c0_83 = arith.constant 0 : index
    %c0_84 = arith.constant 0 : index
    %232 = vector.load %arg18[%c0_83, %c0_84] : memref<128x256xbf16, #tpu.memory_space<vmem>>, vector<128x256xbf16>
    %233 = arith.truncf %192 : vector<128x128xf32> to vector<128x128xbf16>
    %cst_85 = arith.constant dense<0.000000e+00> : vector<128x256xf32>
    %234 = tpu.matmul %233, %232, %cst_85 {dimension_numbers = #tpu.dot_dimension_numbers<[1], [0], [0], [1], [0, 0, 1, 1], [], []>} : vector<128x128xbf16>, vector<128x256xbf16>, vector<128x256xf32> -> vector<128x256xf32>
    %235 = vector.extract_strided_slice %231 {offsets = [0, 0], sizes = [128, 128], strides = [1, 1]} : vector<128x384xf32> to vector<128x128xf32>
    %236 = vector.extract_strided_slice %234 {offsets = [0, 0], sizes = [128, 128], strides = [1, 1]} : vector<128x256xf32> to vector<128x128xf32>
    %237 = arith.addf %235, %236 : vector<128x128xf32>
    %238 = arith.negf %237 : vector<128x128xf32>
    %239 = math.exp %238 : vector<128x128xf32>
    %cst_86 = arith.constant 1.000000e+00 : f32
    %240 = vector.broadcast %cst_86 : f32 to vector<128x128xf32>
    %241 = arith.addf %240, %239 : vector<128x128xf32>
    %242 = arith.divf %240, %241 : vector<128x128xf32>
    %243 = vector.extract_strided_slice %231 {offsets = [0, 128], sizes = [128, 128], strides = [1, 1]} : vector<128x384xf32> to vector<128x128xf32>
    %244 = vector.extract_strided_slice %234 {offsets = [0, 128], sizes = [128, 128], strides = [1, 1]} : vector<128x256xf32> to vector<128x128xf32>
    %245 = arith.addf %243, %244 : vector<128x128xf32>
    %c0_87 = arith.constant 0 : index
    %c0_88 = arith.constant 0 : index
    %246 = vector.load %arg20[%c0_87, %c0_88] : memref<1x128xf32, #tpu.memory_space<vmem>>, vector<1x128xf32>
    %247 = vector.broadcast %246 : vector<1x128xf32> to vector<128x128xf32>
    %248 = arith.subf %245, %247 : vector<128x128xf32>
    %249 = arith.negf %248 : vector<128x128xf32>
    %250 = math.exp %249 : vector<128x128xf32>
    %cst_89 = arith.constant 1.000000e+00 : f32
    %251 = vector.broadcast %cst_89 : f32 to vector<128x128xf32>
    %252 = arith.addf %251, %250 : vector<128x128xf32>
    %253 = arith.divf %251, %252 : vector<128x128xf32>
    %254 = vector.extract_strided_slice %231 {offsets = [0, 256], sizes = [128, 128], strides = [1, 1]} : vector<128x384xf32> to vector<128x128xf32>
    %255 = arith.mulf %242, %192 : vector<128x128xf32>
    %c0_90 = arith.constant 0 : index
    %c0_91 = arith.constant 0 : index
    %256 = vector.load %arg19[%c0_90, %c0_91] : memref<128x128xbf16, #tpu.memory_space<vmem>>, vector<128x128xbf16>
    %257 = arith.truncf %255 : vector<128x128xf32> to vector<128x128xbf16>
    %cst_92 = arith.constant dense<0.000000e+00> : vector<128x128xf32>
    %258 = tpu.matmul %257, %256, %cst_92 {dimension_numbers = #tpu.dot_dimension_numbers<[1], [0], [0], [1], [0, 0, 1, 1], [], []>} : vector<128x128xbf16>, vector<128x128xbf16>, vector<128x128xf32> -> vector<128x128xf32>
    %259 = arith.addf %254, %258 : vector<128x128xf32>
    %260 = math.tanh %259 : vector<128x128xf32>
    %cst_93 = arith.constant 1.000000e+00 : f32
    %261 = vector.broadcast %cst_93 : f32 to vector<128x128xf32>
    %262 = arith.subf %261, %253 : vector<128x128xf32>
    %263 = arith.mulf %262, %192 : vector<128x128xf32>
    %264 = arith.mulf %253, %260 : vector<128x128xf32>
    %265 = arith.addf %263, %264 : vector<128x128xf32>
    %266 = vector.shape_cast %265 : vector<128x128xf32> to vector<16x8x128xf32>
    %c0_94 = arith.constant 0 : index
    %c0_95 = arith.constant 0 : index
    %c0_96 = arith.constant 0 : index
    %267 = vector.load %arg21[%c0_94, %c0_95, %c0_96] : memref<16x8x128xf32, #tpu.memory_space<vmem>>, vector<16x8x128xf32>
    tpu.vector_store %arg21[%c0_94, %c0_95, %c0_96], %266 {strides = array<i32>} : memref<16x8x128xf32, #tpu.memory_space<vmem>>, vector<16x8x128xf32>,
    return
  }
  func.func @transform_0(%arg0: i32) -> (i32, i32, i32) {
    %c0_i32 = arith.constant 0 : i32
    %c0_i32_0 = arith.constant 0 : i32
    %c0_i32_1 = arith.constant 0 : i32
    return %arg0, %c0_i32, %c0_i32_0 : i32, i32, i32
  }
  func.func @transform_1(%arg0: i32) -> (i32, i32, i32) {
    %c0_i32 = arith.constant 0 : i32
    %c0_i32_0 = arith.constant 0 : i32
    %c0_i32_1 = arith.constant 0 : i32
    return %arg0, %c0_i32, %c0_i32_0 : i32, i32, i32
  }
  func.func @transform_2(%arg0: i32) -> (i32, i32) {
    %c0_i32 = arith.constant 0 : i32
    %c0_i32_0 = arith.constant 0 : i32
    %c0_i32_1 = arith.constant 0 : i32
    return %c0_i32, %c0_i32_0 : i32, i32
  }
  func.func @transform_3(%arg0: i32) -> (i32, i32) {
    %c0_i32 = arith.constant 0 : i32
    %c0_i32_0 = arith.constant 0 : i32
    %c0_i32_1 = arith.constant 0 : i32
    return %c0_i32, %c0_i32_0 : i32, i32
  }
  func.func @transform_4(%arg0: i32) -> (i32, i32) {
    %c0_i32 = arith.constant 0 : i32
    %c0_i32_0 = arith.constant 0 : i32
    %c0_i32_1 = arith.constant 0 : i32
    return %c0_i32, %c0_i32_0 : i32, i32
  }
  func.func @transform_5(%arg0: i32) -> (i32, i32) {
    %c0_i32 = arith.constant 0 : i32
    %c0_i32_0 = arith.constant 0 : i32
    %c0_i32_1 = arith.constant 0 : i32
    return %c0_i32, %c0_i32_0 : i32, i32
  }
  func.func @transform_6(%arg0: i32) -> (i32, i32) {
    %c0_i32 = arith.constant 0 : i32
    %c0_i32_0 = arith.constant 0 : i32
    %c0_i32_1 = arith.constant 0 : i32
    return %c0_i32, %c0_i32_0 : i32, i32
  }
  func.func @transform_7(%arg0: i32) -> (i32, i32) {
    %c0_i32 = arith.constant 0 : i32
    %c0_i32_0 = arith.constant 0 : i32
    %c0_i32_1 = arith.constant 0 : i32
    return %c0_i32, %c0_i32_0 : i32, i32
  }
  func.func @transform_8(%arg0: i32) -> (i32, i32) {
    %c0_i32 = arith.constant 0 : i32
    %c0_i32_0 = arith.constant 0 : i32
    %c0_i32_1 = arith.constant 0 : i32
    return %c0_i32, %c0_i32_0 : i32, i32
  }
  func.func @transform_9(%arg0: i32) -> (i32, i32) {
    %c0_i32 = arith.constant 0 : i32
    %c0_i32_0 = arith.constant 0 : i32
    %c0_i32_1 = arith.constant 0 : i32
    return %c0_i32, %c0_i32_0 : i32, i32
  }
  func.func @transform_10(%arg0: i32) -> (i32, i32) {
    %c0_i32 = arith.constant 0 : i32
    %c0_i32_0 = arith.constant 0 : i32
    %c0_i32_1 = arith.constant 0 : i32
    return %c0_i32, %c0_i32_0 : i32, i32
  }
  func.func @transform_11(%arg0: i32) -> (i32, i32) {
    %c0_i32 = arith.constant 0 : i32
    %c0_i32_0 = arith.constant 0 : i32
    %c0_i32_1 = arith.constant 0 : i32
    return %c0_i32, %c0_i32_0 : i32, i32
  }
  func.func @transform_12(%arg0: i32) -> (i32, i32) {
    %c0_i32 = arith.constant 0 : i32
    %c0_i32_0 = arith.constant 0 : i32
    %c0_i32_1 = arith.constant 0 : i32
    return %c0_i32, %c0_i32_0 : i32, i32
  }
  func.func @transform_13(%arg0: i32) -> (i32, i32) {
    %c0_i32 = arith.constant 0 : i32
    %c0_i32_0 = arith.constant 0 : i32
    %c0_i32_1 = arith.constant 0 : i32
    return %c0_i32, %c0_i32_0 : i32, i32
  }
  func.func @transform_14(%arg0: i32) -> (i32, i32) {
    %c0_i32 = arith.constant 0 : i32
    %c0_i32_0 = arith.constant 0 : i32
    %c0_i32_1 = arith.constant 0 : i32
    return %c0_i32, %c0_i32_0 : i32, i32
  }
  func.func @transform_15(%arg0: i32) -> (i32, i32) {
    %c0_i32 = arith.constant 0 : i32
    %c0_i32_0 = arith.constant 0 : i32
    %c0_i32_1 = arith.constant 0 : i32
    return %c0_i32, %c0_i32_0 : i32, i32
  }
  func.func @transform_16(%arg0: i32) -> (i32, i32) {
    %c0_i32 = arith.constant 0 : i32
    %c0_i32_0 = arith.constant 0 : i32
    %c0_i32_1 = arith.constant 0 : i32
    return %c0_i32, %c0_i32_0 : i32, i32
  }
  func.func @transform_17(%arg0: i32) -> (i32, i32) {
    %c0_i32 = arith.constant 0 : i32
    %c0_i32_0 = arith.constant 0 : i32
    %c0_i32_1 = arith.constant 0 : i32
    return %c0_i32, %c0_i32_0 : i32, i32
  }
  func.func @transform_18(%arg0: i32) -> (i32, i32) {
    %c0_i32 = arith.constant 0 : i32
    %c0_i32_0 = arith.constant 0 : i32
    %c0_i32_1 = arith.constant 0 : i32
    return %c0_i32, %c0_i32_0 : i32, i32
  }
  func.func @transform_19(%arg0: i32) -> (i32, i32) {
    %c0_i32 = arith.constant 0 : i32
    %c0_i32_0 = arith.constant 0 : i32
    %c0_i32_1 = arith.constant 0 : i32
    return %c0_i32, %c0_i32_0 : i32, i32
  }
  func.func @transform_20(%arg0: i32) -> (i32, i32, i32) {
    %c0_i32 = arith.constant 0 : i32
    %c0_i32_0 = arith.constant 0 : i32
    %c0_i32_1 = arith.constant 0 : i32
    return %arg0, %c0_i32, %c0_i32_0 : i32, i32, i32
  }
  func.func @transform_21(%arg0: i32) -> (i32, i32, i32) {
    %c0_i32 = arith.constant 0 : i32
    %c0_i32_0 = arith.constant 0 : i32
    %c0_i32_1 = arith.constant 0 : i32
    return %arg0, %c0_i32, %c0_i32_0 : i32, i32, i32
  }
}

</mosaic_0001>

<bundles_post_ra>
// kernel: decoder_xl_layer.1
= control target key start
LH: loop header
LB: loop body
LE: loop exit
PB: predicated region body
PF: predicated region fallthrough
CT: control target
= control target key end

     0   :  { %s21790_s0 = inlined_call_operand.vmem [shape: f32[32,8,128], index: 0, kind: input, shape index: {}]   ;;  %s21791_s1 = inlined_call_operand.vmem [shape: f32[32,8,128], index: 1, kind: input, shape index: {}]   ;;  %s21792_s2 = inlined_call_operand.vmem [shape: f32[1,128], index: 2, kind: input, shape index: {}]   ;;  %s21793_s3 = inlined_call_operand.vmem [shape: f32[1,128], index: 3, kind: input, shape index: {}]   ;;  %s21794_s4 = inlined_call_operand.vmem [shape: bf16[128,384], index: 4, kind: input, shape index: {}]   ;;  %s21795_s5 = inlined_call_operand.vmem [shape: f32[1,384], index: 5, kind: input, shape index: {}]   ;;  %s21796_s6 = inlined_call_operand.vmem [shape: bf16[128,128], index: 6, kind: input, shape index: {}]   ;;  %s21797_s7 = inlined_call_operand.vmem [shape: f32[1,128], index: 7, kind: input, shape index: {}]   ;;  %s21798_s8 = inlined_call_operand.vmem [shape: bf16[128,384], index: 8, kind: input, shape index: {}]   ;;  %s21799_s9 = inlined_call_operand.vmem [shape: bf16[128,256], index: 9, kind: input, shape index: {}]   ;;  %s21800_s10 = inlined_call_operand.vmem [shape: bf16[128,128], index: 10, kind: input, shape index: {}]   ;;  %s21801_s11 = inlined_call_operand.vmem [shape: f32[1,128], index: 11, kind: input, shape index: {}]   ;;  %s21802_s12 = inlined_call_operand.vmem [shape: bf16[128,256], index: 12, kind: input, shape index: {}]   ;;  %s21803_s13 = inlined_call_operand.vmem [shape: f32[1,256], index: 13, kind: input, shape index: {}]   ;;  %s21804_s14 = inlined_call_operand.vmem [shape: bf16[256,128], index: 14, kind: input, shape index: {}]   ;;  %s21805_s15 = inlined_call_operand.vmem [shape: f32[1,128], index: 15, kind: input, shape index: {}]   ;;  %s21806_s16 = inlined_call_operand.vmem [shape: bf16[128,384], index: 16, kind: input, shape index: {}]   ;;  %s21807_s17 = inlined_call_operand.vmem [shape: bf16[128,256], index: 17, kind: input, shape index: {}]   ;;  %s21808_s18 = inlined_call_operand.vmem [shape: bf16[128,128], index: 18, kind: input, shape index: {}]   ;;  %s21809_s19 = inlined_call_operand.vmem [shape: f32[1,128], index: 19, kind: input, shape index: {}]   ;;  %s21810_s20 = inlined_call_operand.hbm [shape: f32[32,8,128], index: 20, kind: output, shape index: {0}]   ;;  %s21811_s21 = inlined_call_operand.hbm [shape: f32[32,8,128], index: 21, kind: output, shape index: {1}]  }
   0x1   :  { %21964 = sst [smem:[#allocation124_spill]] %s21790_s0 }
   0x2   :  { %21965 = sst [smem:[#allocation125_spill]] %s21791_s1 }
   0x3   :  { %21966 = sst [smem:[#allocation126_spill]] %s21792_s2 }
   0x4   :  { %21967 = sst [smem:[#allocation127_spill]] %s21793_s3 }
   0x5   :  { %21968 = sst [smem:[#allocation128_spill]] %s21794_s4 }
   0x6   :  { %21969 = sst [smem:[#allocation129_spill]] %s21795_s5 }
   0x7   :  { %21970 = sst [smem:[#allocation130_spill]] %s21796_s6 }
   0x8   :  { %21971 = sst [smem:[#allocation131_spill]] %s21810_s20 }
   0x9   :  { %27 = vsyncpa [#allocation3], 0 }
   0xa   :  { %29 = vsyncpa [#allocation3 + $0x1], 0 }
   0xb   :  { %30 = vsyncpa [#allocation5], 0 }
   0xc   :  { %32 = vsyncpa [#allocation5 + $0x1], 0  ;;  %s16820_s2 = smov 0   ;;  %s16822_s25 = smov 0  }
   0xd   :  { %s16824_s26 = smov 0   ;;  %s16826_s27 = smov 0  }
   0xe LB: > { %21972 = sst [smem:[#allocation8_spill]] %s16685_s2  ;;  %s16841_s3 = sadd.s32 4294967295, %s16697_s27   ;;  %s16697_s27 = sphi %s16826_s27, %s22413_s27   ;;  %s16693_s26 = sphi %s16824_s26, %s22415_s26   ;;  %s16689_s25 = sphi %s16822_s25, %s22417_s25   ;;  %s16685_s2 = sphi %s16820_s2, %s22416_s2  }
   0xf   : > { %21973 = sst [smem:[#allocation9_spill]] %s16693_s26  ;;  %s13388_s28 = sadd.s32 4294967294, %s16697_s27  }
  0x10   : > { %21974 = sst [smem:[#allocation10_spill]] %s16697_s27  ;;  %s16845_s29 = sadd.s32 1, %s16697_s27  }
  0x11   : > { %21975 = sst [smem:[#allocation11_spill]] %s16845_s29  ;;  %s475_s0 = sadd.s32 1, %s16693_s26 }
  0x12   : > { %s472_s4 = ssub.s32 %s16697_s27, %s16845_s29  ;;  %p485_p0 = scmp.ne.s32.totalorder %s16693_s26, %s16689_s25 }
  0x13   : > { %p473_p1 = scmp.eq.s32.totalorder %s472_s4, 0  ;;  %p486_p2 = scmp.eq.s32.totalorder %s16841_s3, 1 }
  0x14   : > { %p491_p3 = scmp.ne.s32.totalorder %s16689_s25, %s16685_s2  ;;  %p492_p4 = scmp.eq.s32.totalorder %s13388_s28, 1 }
  0x15   : > { %s16856_s30 = scalar_select %p473_p1, %s16693_s26, %s475_s0  }
  0x16   : > { %p16858_p5 = por %p486_p2, %p485_p0  ;;  %p16862_p6 = por %p492_p4, %p491_p3 }
  0x17   : > { %21976 = sst [smem:[#allocation12_spill]] %s16856_s30  ;;  %p13391_p7 = scmp.ge.s32.totalorder %s16697_s27, 1 }
  0x18   : > { %s21978_s22 = scalar_select %p16862_p6, 1, 0 }
  0x19   : > { %p608_p8 = scmp.lt.s32.totalorder %s16697_s27, 3 }
  0x1a   : > { %21979 = sst [smem:[#allocation13_spill]] %s21978_s22 }
  0x1b   : > { %p609_p9 = pnand %p13391_p7, %p608_p8 }
  0x1d   : > { %612 = sbr.rel (%p609_p9) target bundleno = 5401 (0x1519), region = 100 }
  0x22   : > { %s13394_s23 = sshll.u32 %s16841_s3, 4  ;;  %s21980_s0 = sld [smem:[#allocation124_spill]]  ;;  %vm16701_vm0 = vmmov 0   ;;  %vm1552_vm1 = vcmask 261120   ;;  %vm2369_vm4 = vcmask 130048   ;;  %vm9906_vm5 = vcmask 523264  }
  0x23   : > { %p679_p10 = scmp.lt.s32.totalorder %s13394_s23, 31  ;;  %s21982_s20 = sld [smem:[#allocation126_spill]]  ;;  %vm9939_vm6 = vcmask 785408  }
  0x24   : > { %s21984_s29 = sld [smem:[#allocation125_spill]]  ;;  %s16704_s26 = smov 64  }
  0x25   : > { %s22419_s23 = smov (!%p679_p10, %s13394_s23), 31  ;;  %s21987_s28 = sld [smem:[#allocation129_spill]] }
  0x26   : > { %s21815_s1 = sshll.u32 %s22419_s23, 3  ;;  %s21983_s2 = sshll.u32 %s22419_s23, 3 }
  0x27   : > { %s21957_s27 = smov 32   ;;  %s22313_s6 = sld [smem:[#allocation130_spill]] }
  0x28   : > { %s16877_s4 = scalar_lea.vmem %s21980_s0, %s21815_s1  ;;  %s21981_s0 = sld [smem:[#allocation128_spill]] }
  0x29   : > { %v695_v0 = vld [vmem:[%s16877_s4 + $0x10] sm:$0xff]  ;;  %v693_v1 = vld [vmem:[%s16877_s4] sm:$0xff]  ;;  %v696_v2 = vld [vmem:[%s16877_s4 + $0x18] sm:$0xff]  ;;  %s20574_s1 = sand.u32 1, %s16689_s25  }
  0x2a   : > { %727 = vadd.xlane.f32.xlu1 %v695_v0  ;;  %723 = vadd.xlane.f32.xlu0 %v693_v1  ;;  %v694_v3 = vld [vmem:[%s16877_s4 + $0x8] sm:$0xff]  ;;  %v697_v5 = vld [vmem:[%s16877_s4 + $0x20] sm:$0xff]  ;;  %v700_v6 = vld [vmem:[%s16877_s4 + $0x38] sm:$0xff]  ;;  %s17082_s30 = scalar_lea.vmem %s21984_s29, %s21983_s2  ;;  %s16703_s2 = smov 96  }
  0x2b   : > { %v16884_v4 = vld [vmem:[%s16877_s4 + $0x28] sm:$0xff]  ;;  %v16889_v7 = vld [vmem:[%s16877_s4 + $0x30] sm:$0xff]  ;;  %v16896_v9 = vld [vmem:[%s16877_s4 + $0x40] sm:$0xff]  ;;  %s21959_s23 = sshll.u32 %s20574_s1, 7 }
  0x2c   : > { %v16893_v8 = vld [vmem:[%s16877_s4 + $0x48] sm:$0xff]  ;;  %v16900_v10 = vld [vmem:[%s16877_s4 + $0x50] sm:$0xff]  ;;  %v16905_v11 = vld [vmem:[%s16877_s4 + $0x58] sm:$0xff] }
  0x2d   : > { %v16909_v12 = vld [vmem:[%s16877_s4 + $0x60] sm:$0xff]  ;;  %v16913_v13 = vld [vmem:[%s16877_s4 + $0x68] sm:$0xff]  ;;  %v16917_v14 = vld [vmem:[%s16877_s4 + $0x70] sm:$0xff] }
  0x2e   : > { %729 = vadd.xlane.f32.xlu1 %v696_v2  ;;  %725 = vadd.xlane.f32.xlu0 %v694_v3  ;;  %v16921_v15 = vld [vmem:[%s16877_s4 + $0x78] sm:$0xff]  ;;  %v15485_v17 = vld [vmem:[%s21981_s0 + $0xa8] ss:$12 sps:$4 sm:$0xff]   ;;  %v15494_v59 = vld [vmem:[%s21981_s0 + $0x64] ss:$12 sps:$4 sm:$0xff]  }
  0x2f   : > { %v15483_v16 = vld [vmem:[%s21981_s0 + $0xac] ss:$12 sps:$4 sm:$0xff]   ;;  %v15486_v18 = vld [vmem:[%s21981_s0 + $0x94] ss:$12 sps:$4 sm:$0xff]   ;;  %v15488_v19 = vld [vmem:[%s21981_s0 + $0xb0] ss:$12 sps:$4 sm:$0xff]  }
  0x30   : > { %v15489_v20 = vld [vmem:[%s21981_s0 + $0x90] ss:$12 sps:$4 sm:$0xff]   ;;  %1141 = vmatprep.subr.bf16.mxu0 %v15483_v16  ;;  %14198 = vmatprep.subr.bf16.mxu1 %v15488_v19  ;;  %v15492_v50 = vld [vmem:[%s21981_s0 + $0x98] ss:$12 sps:$4 sm:$0xff]   ;;  %v15496_v60 = vld [vmem:[%s21981_s0 + $0x80] ss:$12 sps:$4 sm:$0xff]  }
  0x31   : > { %1142 = vmatpush1.bf16.msra.mxu0 %v15485_v17  ;;  %14199 = vmatpush3.bf16.msra.mxu1 %v15488_v19  ;;  %v15490_v49 = vld [vmem:[%s21981_s0 + $0x7c] ss:$12 sps:$4 sm:$0xff]   ;;  %v15493_v51 = vld [vmem:[%s21981_s0 + $0x78] ss:$12 sps:$4 sm:$0xff]   ;;  %v15497_v61 = vld [vmem:[%s21981_s0 + $0x60] ss:$12 sps:$4 sm:$0xff]  }
  0x32   : > { %733 = vadd.xlane.f32.xlu1 %v16884_v4  ;;  %731 = vadd.xlane.f32.xlu0 %v697_v5  ;;  %v15502_v19 = vld [vmem:[%s21981_s0 + $0x34] ss:$12 sps:$4 sm:$0xff]  }
  0x33   : > { %1143 = vmatprep.subr.bf16.mxu0 %v15486_v18  ;;  %14200 = vmatprep.subr.bf16.mxu1 %v15492_v50 }
  0x35   : > { %1144 = vmatpush1.bf16.msra.mxu0 %v15489_v20  ;;  %14201 = vmatpush3.bf16.msra.mxu1 %v15492_v50 }
  0x36   : > { %737 = vadd.xlane.f32.xlu1 %v700_v6  ;;  %735 = vadd.xlane.f32.xlu0 %v16889_v7 }
  0x37   : > { %1145 = vmatprep.subr.bf16.mxu0 %v15490_v49  ;;  %14202 = vmatprep.subr.bf16.mxu1 %v15496_v60 }
  0x39   : > { %1146 = vmatpush1.bf16.msra.mxu0 %v15493_v51  ;;  %14203 = vmatpush3.bf16.msra.mxu1 %v15496_v60 }
  0x3a   : > { %741 = vadd.xlane.f32.xlu1 %v16893_v8  ;;  %739 = vadd.xlane.f32.xlu0 %v16896_v9 }
  0x3b   : > { %1147 = vmatprep.subr.bf16.mxu0 %v15494_v59 }
  0x3d   : > { %1148 = vmatpush1.bf16.msra.mxu0 %v15497_v61 }
  0x3e   : > { %743 = vadd.xlane.f32.xlu1 %v16900_v10 }
  0x42   : > { %745 = vadd.xlane.f32.xlu1 %v16905_v11 }
  0x46   : > { %747 = vadd.xlane.f32.xlu1 %v16909_v12 }
  0x4a   : > { %749 = vadd.xlane.f32.xlu1 %v16913_v13 }
  0x4e   : > { %751 = vadd.xlane.f32.xlu1 %v16917_v14 }
  0x52   : > { %753 = vadd.xlane.f32.xlu1 %v16921_v15 }
  0xb3   : > { %v728_v21 = vpop.xlane.xlu1 %727  ;;  %v724_v22 = vpop.xlane.xlu0 %723 }
  0xb4   : > { %v756_v23 = vmul.f32 0.0078125, %v724_v22  ;;  %v758_v24 = vmul.f32 0.0078125, %v728_v21  ;;  %v15505_v22 = vld [vmem:[%s21981_s0 + $0x30] ss:$12 sps:$4 sm:$0xff]  }
  0xb6   : > { %v16940_v25 = vsub.f32 %v693_v1, %v756_v23  ;;  %v16946_v32 = vsub.f32 %v695_v0, %v758_v24 }
  0xb7   : > { %v730_v26 = vpop.xlane.xlu1 %729  ;;  %v726_v27 = vpop.xlane.xlu0 %725 }
  0xb8   : > { %v757_v28 = vmul.f32 0.0078125, %v726_v27  ;;  %v788_v29 = vmul.f32 %v16940_v25, %v16940_v25  ;;  %v759_v30 = vmul.f32 0.0078125, %v730_v26  ;;  %v790_v36 = vmul.f32 %v16946_v32, %v16946_v32  ;;  %v15506_v26 = vld [vmem:[%s21981_s0 + $0x1c] ss:$12 sps:$4 sm:$0xff]   ;;  %v15508_v27 = vld [vmem:[%s21981_s0 + $0x38] ss:$12 sps:$4 sm:$0xff]  }
  0xba   : > { %804 = vadd.xlane.f32.xlu0 %v788_v29  ;;  %v16944_v31 = vsub.f32 %v694_v3, %v757_v28  ;;  %v16952_v38 = vsub.f32 %v696_v2, %v759_v30  ;;  %v15498_v3 = vld [vmem:[%s21981_s0 + $0x4c] ss:$12 sps:$4 sm:$0xff]  }
  0xbb   : > { %v734_v33 = vpop.xlane.xlu1 %733  ;;  %v732_v34 = vpop.xlane.xlu0 %731  ;;  %1149 = vmatprep.subr.bf16.mxu0 %v15498_v3  ;;  %v15509_v30 = vld [vmem:[%s21981_s0 + $0x18] ss:$12 sps:$4 sm:$0xff]   ;;  %v17075_v3 = vld [vmem:[%s21982_s20] ss:$0 sm:$0xff] }
  0xbc   : > { %v789_v35 = vmul.f32 %v16944_v31, %v16944_v31  ;;  %v760_v37 = vmul.f32 0.0078125, %v732_v34  ;;  %v761_v42 = vmul.f32 0.0078125, %v734_v33  ;;  %v791_v44 = vmul.f32 %v16952_v38, %v16952_v38 }
  0xbe   : > { %806 = vadd.xlane.f32.xlu0 %v789_v35  ;;  %v16958_v45 = vsub.f32 %v697_v5, %v760_v37  ;;  %v16977_v55 = vsub.f32 %v16884_v4, %v761_v42  ;;  %v15500_v4 = vld [vmem:[%s21981_s0 + $0x68] ss:$12 sps:$4 sm:$0xff]  }
  0xbf   : > { %v738_v39 = vpop.xlane.xlu1 %737  ;;  %v736_v41 = vpop.xlane.xlu0 %735  ;;  %v15501_v5 = vld [vmem:[%s21981_s0 + $0x48] ss:$12 sps:$4 sm:$0xff]   ;;  %14204 = vmatprep.subr.bf16.mxu1 %v15500_v4 }
  0xc0   : > { %v763_v40 = vmul.f32 0.0078125, %v738_v39  ;;  %v792_v53 = vmul.f32 %v16958_v45, %v16958_v45  ;;  %v762_v54 = vmul.f32 0.0078125, %v736_v41  ;;  %v793_v62 = vmul.f32 %v16977_v55, %v16977_v55  ;;  %1150 = vmatpush1.bf16.msra.mxu0 %v15501_v5  ;;  %14205 = vmatpush3.bf16.msra.mxu1 %v15500_v4  ;;  %v15513_v39 = vld [vmem:[%s21981_s0] ss:$12 sps:$4 sm:$0xff]   ;;  %v15514_v42 = vld [vmem:[%s21981_s0 + $0x8] ss:$12 sps:$4 sm:$0xff]  }
  0xc1   : > { %1151 = vmatprep.subr.bf16.mxu0 %v15502_v19 }
  0xc2   : > { %808 = vadd.xlane.f32.xlu0 %v790_v36  ;;  %v16954_v43 = vsub.f32 %v700_v6, %v763_v40  ;;  %v16993_v0 = vsub.f32 %v16889_v7, %v762_v54 }
  0xc3   : > { %v742_v46 = vpop.xlane.xlu1 %741  ;;  %v740_v57 = vpop.xlane.xlu0 %739 }
  0xc4   : > { %v765_v47 = vmul.f32 0.0078125, %v742_v46  ;;  %v795_v48 = vmul.f32 %v16954_v43, %v16954_v43  ;;  %v764_v63 = vmul.f32 0.0078125, %v740_v57  ;;  %1152 = vmatpush1.bf16.msra.mxu0 %v15505_v22  ;;  %v21826_v46 = vmov 0  }
  0xc5   : > { %1153 = vmatprep.subr.bf16.mxu0 %v15506_v26  ;;  %1173 = vmatprep.mubr.bf16.mxu0 %v21826_v46 }
  0xc6   : > { %818 = vadd.xlane.f32.xlu1 %v795_v48  ;;  %810 = vadd.xlane.f32.xlu0 %v791_v44  ;;  %v16972_v52 = vsub.f32 %v16893_v8, %v765_v47  ;;  %v794_v8 = vmul.f32 %v16993_v0, %v16993_v0  ;;  %v17010_v16 = vsub.f32 %v16896_v9, %v764_v63 }
  0xc7   : > { %v744_v56 = vpop.xlane.xlu1 %743 }
  0xc8   : > { %v797_v58 = vmul.f32 %v16972_v52, %v16972_v52  ;;  %v766_v6 = vmul.f32 0.0078125, %v744_v56  ;;  %v796_v9 = vmul.f32 %v17010_v16, %v17010_v16  ;;  %1154 = vmatpush1.bf16.msra.mxu0 %v15509_v30 }
  0xca   : > { %822 = vadd.xlane.f32.xlu1 %v797_v58  ;;  %812 = vadd.xlane.f32.xlu0 %v792_v53  ;;  %v17023_v21 = vsub.f32 %v16900_v10, %v766_v6 }
  0xcb   : > { %v746_v1 = vpop.xlane.xlu1 %745 }
  0xcc   : > { %v767_v2 = vmul.f32 0.0078125, %v746_v1  ;;  %v798_v28 = vmul.f32 %v17023_v21, %v17023_v21 }
  0xce   : > { %814 = vadd.xlane.f32.xlu0 %v793_v62  ;;  %v17005_v7 = vsub.f32 %v16905_v11, %v767_v2  ;;  %v15504_v11 = vld [vmem:[%s21981_s0 + $0x50] ss:$12 sps:$4 sm:$0xff]  }
  0xcf   : > { %v748_v17 = vpop.xlane.xlu1 %747  ;;  %14206 = vmatprep.subr.bf16.mxu1 %v15504_v11 }
  0xd0   : > { %v799_v18 = vmul.f32 %v17005_v7, %v17005_v7  ;;  %v768_v20 = vmul.f32 0.0078125, %v748_v17  ;;  %14207 = vmatpush3.bf16.msra.mxu1 %v15504_v11 }
  0xd1   : > { %14208 = vmatprep.subr.bf16.mxu1 %v15508_v27 }
  0xd2   : > { %826 = vadd.xlane.f32.xlu1 %v799_v18  ;;  %816 = vadd.xlane.f32.xlu0 %v794_v8  ;;  %v17040_v29 = vsub.f32 %v16909_v12, %v768_v20  ;;  %v15512_v12 = vld [vmem:[%s21981_s0 + $0x20] ss:$12 sps:$4 sm:$0xff]  }
  0xd3   : > { %v750_v23 = vpop.xlane.xlu1 %749 }
  0xd4   : > { %v769_v24 = vmul.f32 0.0078125, %v750_v23  ;;  %14209 = vmatpush3.bf16.msra.mxu1 %v15508_v27  ;;  %v800_v36 = vmul.f32 %v17040_v29, %v17040_v29 }
  0xd5   : > { %14210 = vmatprep.subr.bf16.mxu1 %v15512_v12 }
  0xd6   : > { %820 = vadd.xlane.f32.xlu0 %v796_v9  ;;  %v17035_v10 = vsub.f32 %v16913_v13, %v769_v24  ;;  %v15510_v13 = vld [vmem:[%s21981_s0 + $0x4] ss:$12 sps:$4 sm:$0xff]   ;;  %s21985_s0 = sld [smem:[#allocation127_spill]] }
  0xd7   : > { %v752_v33 = vpop.xlane.xlu1 %751  ;;  %1155 = vmatprep.subr.bf16.mxu0 %v15510_v13  ;;  %v932_v9 = vld [vmem:[%s17082_s30] sm:$0xff] }
  0xd8   : > { %v770_v34 = vmul.f32 0.0078125, %v752_v33  ;;  %v801_v35 = vmul.f32 %v17035_v10, %v17035_v10  ;;  %1156 = vmatpush1.bf16.msra.mxu0 %v15513_v39  ;;  %14211 = vmatpush3.bf16.msra.mxu1 %v15512_v12 }
  0xd9   : > { %14212 = vmatprep.subr.bf16.mxu1 %v15514_v42 }
  0xda   : > { %830 = vadd.xlane.f32.xlu1 %v801_v35  ;;  %824 = vadd.xlane.f32.xlu0 %v798_v28  ;;  %v17056_v37 = vsub.f32 %v16917_v14, %v770_v34  ;;  %v933_v35 = vld [vmem:[%s17082_s30 + $0x8] sm:$0xff] }
  0xdb   : > { %v754_v40 = vpop.xlane.xlu1 %753 }
  0xdc   : > { %v771_v41 = vmul.f32 0.0078125, %v754_v40  ;;  %v802_v14 = vmul.f32 %v17056_v37, %v17056_v37  ;;  %14213 = vmatpush3.bf16.msra.mxu1 %v15514_v42  ;;  %v17088_v8 = vld [vmem:[%s21985_s0] ss:$0 sm:$0xff]  ;;  %v934_v42 = vld [vmem:[%s17082_s30 + $0x10] sm:$0xff] }
  0xde   : > { %828 = vadd.xlane.f32.xlu0 %v800_v36  ;;  %v17065_v44 = vsub.f32 %v16921_v15, %v771_v41 }
  0xe0   : > { %v803_v47 = vmul.f32 %v17065_v44, %v17065_v44 }
  0xe2   : > { %834 = vadd.xlane.f32.xlu1 %v803_v47  ;;  %832 = vadd.xlane.f32.xlu0 %v802_v14 }
 0x143   : > { %v805_v48 = vpop.xlane.xlu0 %804 }
 0x144   : > { %v836_v49 = vmul.f32 0.0078125, %v805_v48 }
 0x146   : > { %v852_v50 = vadd.f32 1e-05, %v836_v49 }
 0x147   : > { %v807_v51 = vpop.xlane.xlu0 %806 }
 0x148   : > { %15691 = vrsqrt.f32 %v852_v50  ;;  %v837_v15 = vmul.f32 0.0078125, %v807_v51 }
 0x14a   : > { %v853_v53 = vadd.f32 1e-05, %v837_v15 }
 0x14b   : > { %v809_v54 = vpop.xlane.xlu0 %808 }
 0x14c   : > { %15693 = vrsqrt.f32 %v853_v53  ;;  %v838_v56 = vmul.f32 0.0078125, %v809_v54 }
 0x14e   : > { %v854_v57 = vadd.f32 1e-05, %v838_v56 }
 0x14f   : > { %v811_v58 = vpop.xlane.xlu0 %810  ;;  %v819_v60 = vpop.xlane.xlu1 %818 }
 0x150   : > { %15695 = vrsqrt.f32 %v854_v57  ;;  %v839_v59 = vmul.f32 0.0078125, %v811_v58  ;;  %v843_v2 = vmul.f32 0.0078125, %v819_v60  ;;  %v935_v58 = vld [vmem:[%s17082_s30 + $0x18] sm:$0xff] }
 0x152   : > { %v855_v61 = vadd.f32 1e-05, %v839_v59  ;;  %v859_v20 = vadd.f32 1e-05, %v843_v2 }
 0x153   : > { %v813_v62 = vpop.xlane.xlu0 %812  ;;  %v823_v17 = vpop.xlane.xlu1 %822 }
 0x154   : > { %v840_v63 = vmul.f32 0.0078125, %v813_v62  ;;  %15697 = vrsqrt.f32 %v855_v61  ;;  %v845_v24 = vmul.f32 0.0078125, %v823_v17  ;;  %v936_v17 = vld [vmem:[%s17082_s30 + $0x20] sm:$0xff] }
 0x155   : > { %v15692_v1 = vpop.eup %15691 }
 0x156   : > { %v856_v4 = vadd.f32 1e-05, %v840_v63  ;;  %v884_v5 = vmul.f32 %v15692_v1, %v16940_v25  ;;  %v861_v12 = vadd.f32 1e-05, %v845_v24 }
 0x157   : > { %v815_v6 = vpop.xlane.xlu0 %814 }
 0x158   : > { %v841_v18 = vmul.f32 0.0078125, %v815_v6  ;;  %v900_v19 = vmul.f32 %v17075_v3, %v884_v5  ;;  %15699 = vrsqrt.f32 %v856_v4 }
 0x159   : > { %v15694_v11 = vpop.eup %15693 }
 0x15a   : > { %v857_v22 = vadd.f32 1e-05, %v841_v18  ;;  %v916_v23 = vadd.f32 %v17088_v8, %v900_v19  ;;  %v885_v25 = vmul.f32 %v15694_v11, %v16944_v31 }
 0x15b   : > { %v817_v26 = vpop.xlane.xlu0 %816  ;;  %v827_v47 = vpop.xlane.xlu1 %826 }
 0x15c   : > { %15701 = vrsqrt.f32 %v857_v22  ;;  %v842_v27 = vmul.f32 0.0078125, %v817_v26  ;;  %v980_v28 = vpack.c.bf16 %v916_v23, %v932_v9  ;;  %v901_v33 = vmul.f32 %v17075_v3, %v885_v25  ;;  %v937_v22 = vld [vmem:[%s17082_s30 + $0x28] sm:$0xff] }
 0x15d   : > { %v15696_v30 = vpop.eup %15695  ;;  %15703 = vrsqrt.f32 %v859_v20  ;;  %v847_v53 = vmul.f32 0.0078125, %v827_v47 }
 0x15e   : > { %v858_v34 = vadd.f32 1e-05, %v842_v27  ;;  %1174 = vmatmul.mubr.bf16.vlgmr.msra.gmra.mxu0 %v980_v28  ;;  %14214 = vmatprep.mubr.bf16.mxu1 %v980_v28  ;;  %v886_v13 = vmul.f32 %v15696_v30, %v16946_v32  ;;  %v917_v31 = vadd.f32 %v17088_v8, %v901_v33 }
 0x15f   : > { %v821_v36 = vpop.xlane.xlu0 %820  ;;  %1183 = vmatprep.mubr.bf16.mxu0 %v21826_v46  ;;  %v863_v63 = vadd.f32 1e-05, %v847_v53 }
 0x160   : > { %v844_v39 = vmul.f32 0.0078125, %v821_v36  ;;  %v902_v40 = vmul.f32 %v17075_v3, %v886_v13  ;;  %15705 = vrsqrt.f32 %v858_v34  ;;  %v981_v41 = vpack.c.bf16 %v917_v31, %v933_v35 }
 0x161   : > { %v15698_v14 = vpop.eup %15697  ;;  %15707 = vrsqrt.f32 %v861_v12  ;;  %v938_v12 = vld [vmem:[%s17082_s30 + $0x30] sm:$0xff] }
 0x162   : > { %v860_v48 = vadd.f32 1e-05, %v844_v39  ;;  %v918_v49 = vadd.f32 %v17088_v8, %v902_v40  ;;  %14215 = vmatmul.mubr.bf16.vlgmr.msra.gmra.mxu1 %v981_v41  ;;  %v887_v50 = vmul.f32 %v15698_v14, %v16952_v38  ;;  %v940_v14 = vld [vmem:[%s17082_s30 + $0x40] sm:$0xff] }
 0x163   : > { %v825_v32 = vpop.xlane.xlu0 %824  ;;  %v831_v5 = vpop.xlane.xlu1 %830 }
 0x164   : > { %15709 = vrsqrt.f32 %v860_v48  ;;  %v846_v51 = vmul.f32 0.0078125, %v825_v32  ;;  %v982_v15 = vpack.c.bf16 %v918_v49, %v934_v42  ;;  %v903_v54 = vmul.f32 %v17075_v3, %v887_v50  ;;  %v939_v48 = vld [vmem:[%s17082_s30 + $0x38] sm:$0xff] }
 0x165   : > { %v15700_v56 = vpop.eup %15699  ;;  %v849_v20 = vmul.f32 0.0078125, %v831_v5 }
 0x166   : > { %v862_v57 = vadd.f32 1e-05, %v846_v51  ;;  %1184 = vmatmul.mubr.bf16.gmra.mxu0 %v981_v41  ;;  %14218 = vmatprep.mubr.bf16.mxu1 %v982_v15  ;;  %v919_v60 = vadd.f32 %v17088_v8, %v903_v54  ;;  %v888_v61 = vmul.f32 %v15700_v56, %v16958_v45 }
 0x167   : > { %v829_v59 = vpop.xlane.xlu0 %828  ;;  %1193 = vmatprep.mubr.bf16.mxu0 %v21826_v46  ;;  %v865_v33 = vadd.f32 1e-05, %v849_v20 }
 0x168   : > { %v848_v38 = vmul.f32 0.0078125, %v829_v59  ;;  %15711 = vrsqrt.f32 %v862_v57  ;;  %v983_v1 = vpack.c.bf16 %v919_v60, %v935_v58  ;;  %v904_v2 = vmul.f32 %v17075_v3, %v888_v61  ;;  %v941_v58 = vld [vmem:[%s17082_s30 + $0x48] sm:$0xff]  ;;  %v942_v60 = vld [vmem:[%s17082_s30 + $0x50] sm:$0xff] }
 0x169   : > { %v15702_v62 = vpop.eup %15701  ;;  %15713 = vrsqrt.f32 %v863_v63 }
 0x16a   : > { %v15704_v4 = vpop.eup %15703  ;;  %v864_v6 = vadd.f32 1e-05, %v848_v38  ;;  %v889_v18 = vmul.f32 %v15702_v62, %v16977_v55  ;;  %14219 = vmatmul.mubr.bf16.gmra.mxu1 %v983_v1  ;;  %v920_v11 = vadd.f32 %v17088_v8, %v904_v2 }
 0x16b   : > { %v833_v19 = vpop.xlane.xlu0 %832  ;;  %v891_v23 = vmul.f32 %v15704_v4, %v16954_v43  ;;  %v835_v35 = vpop.xlane.xlu1 %834 }
 0x16c   : > { %v905_v45 = vmul.f32 %v17075_v3, %v889_v18  ;;  %v984_v9 = vpack.c.bf16 %v920_v11, %v936_v17  ;;  %15715 = vrsqrt.f32 %v864_v6  ;;  %v850_v24 = vmul.f32 0.0078125, %v833_v19  ;;  %v944_v17 = vld [vmem:[%s17082_s30 + $0x60] sm:$0xff] }
 0x16d   : > { %v15706_v25 = vpop.eup %15705  ;;  %v907_v43 = vmul.f32 %v17075_v3, %v891_v23  ;;  %15717 = vrsqrt.f32 %v865_v33  ;;  %v851_v40 = vmul.f32 0.0078125, %v835_v35  ;;  %v946_v23 = vld [vmem:[%s17082_s30 + $0x70] sm:$0xff] }
 0x16e   : > { %1194 = vmatmul.mubr.bf16.gmra.mxu0 %v982_v15  ;;  %v921_v26 = vadd.f32 %v17088_v8, %v905_v45  ;;  %14222 = vmatprep.mubr.bf16.mxu1 %v984_v9  ;;  %v890_v55 = vmul.f32 %v15706_v25, %v16993_v0  ;;  %v15708_v27 = vpop.eup %15707  ;;  %v866_v13 = vadd.f32 1e-05, %v850_v24 }
 0x16f   : > { %1203 = vmatprep.mubr.bf16.mxu0 %v21826_v46  ;;  %v893_v39 = vmul.f32 %v15708_v27, %v16972_v52  ;;  %v923_v42 = vadd.f32 %v17088_v8, %v907_v43  ;;  %v867_v52 = vadd.f32 1e-05, %v851_v40  ;;  %v947_v27 = vld [vmem:[%s17082_s30 + $0x78] sm:$0xff] }
 0x170   : > { %v985_v28 = vpack.c.bf16 %v921_v26, %v937_v22  ;;  %v906_v34 = vmul.f32 %v17075_v3, %v890_v55  ;;  %15719 = vrsqrt.f32 %v866_v13  ;;  %v945_v22 = vld [vmem:[%s17082_s30 + $0x68] sm:$0xff] }
 0x171   : > { %v15710_v30 = vpop.eup %15709  ;;  %v987_v50 = vpack.c.bf16 %v923_v42, %v939_v48  ;;  %v909_v51 = vmul.f32 %v17075_v3, %v893_v39  ;;  %15721 = vrsqrt.f32 %v867_v52 }
 0x172   : > { %v892_v36 = vmul.f32 %v15710_v30, %v17010_v16  ;;  %14223 = vmatmul.mubr.bf16.gmra.mxu1 %v985_v28  ;;  %v922_v31 = vadd.f32 %v17088_v8, %v906_v34  ;;  %v996_v34 = vld [vmem:[%s21987_s28] sm:$0x7]  ;;  %s21960_s28 = sshll.u32 %s16841_s3, 11 }
 0x173   : > { %v925_v56 = vadd.f32 %v17088_v8, %v909_v51 }
 0x174   : > { %v908_v0 = vmul.f32 %v17075_v3, %v892_v36  ;;  %v986_v41 = vpack.c.bf16 %v922_v31, %v938_v12 }
 0x175   : > { %v15712_v47 = vpop.eup %15711  ;;  %v989_v61 = vpack.c.bf16 %v925_v56, %v941_v58 }
 0x176   : > { %1204 = vmatmul.mubr.bf16.gmra.mxu0 %v983_v1  ;;  %v924_v49 = vadd.f32 %v17088_v8, %v908_v0  ;;  %14226 = vmatprep.mubr.bf16.mxu1 %v986_v41  ;;  %v894_v16 = vmul.f32 %v15712_v47, %v17023_v21  ;;  %v15714_v15 = vpop.eup %15713 }
 0x177   : > { %1213 = vmatprep.mubr.bf16.mxu0 %v21826_v46  ;;  %v895_v57 = vmul.f32 %v15714_v15, %v17005_v7 }
 0x178   : > { %v988_v32 = vpack.c.bf16 %v924_v49, %v940_v14  ;;  %v910_v53 = vmul.f32 %v17075_v3, %v894_v16 }
 0x179   : > { %v15716_v54 = vpop.eup %15715  ;;  %v911_v38 = vmul.f32 %v17075_v3, %v895_v57 }
 0x17a   : > { %14227 = vmatmul.mubr.bf16.gmra.mxu1 %v987_v50  ;;  %v926_v21 = vadd.f32 %v17088_v8, %v910_v53  ;;  %v896_v59 = vmul.f32 %v15716_v54, %v17040_v29  ;;  %v15718_v62 = vpop.eup %15717  ;;  %v943_v29 = vld [vmem:[%s17082_s30 + $0x58] sm:$0xff] }
 0x17b   : > { %14230 = vmatprep.mubr.bf16.mxu1 %v988_v32  ;;  %v927_v7 = vadd.f32 %v17088_v8, %v911_v38  ;;  %v897_v4 = vmul.f32 %v15718_v62, %v17035_v10 }
 0x17c   : > { %v990_v63 = vpack.c.bf16 %v926_v21, %v942_v60  ;;  %v912_v1 = vmul.f32 %v17075_v3, %v896_v59 }
 0x17d   : > { %v15720_v2 = vpop.eup %15719  ;;  %v991_v18 = vpack.c.bf16 %v927_v7, %v943_v29  ;;  %v913_v19 = vmul.f32 %v17075_v3, %v897_v4 }
 0x17e   : > { %1214 = vmatmul.mubr.bf16.gmra.mxu0 %v984_v9  ;;  %v928_v5 = vadd.f32 %v17088_v8, %v912_v1  ;;  %v898_v6 = vmul.f32 %v15720_v2, %v17056_v37  ;;  %v15722_v11 = vpop.eup %15721 }
 0x17f   : > { %1223 = vmatprep.mubr.bf16.mxu0 %v21826_v46  ;;  %v929_v10 = vadd.f32 %v17088_v8, %v913_v19  ;;  %v899_v9 = vmul.f32 %v15722_v11, %v17065_v44 }
 0x180   : > { %v992_v45 = vpack.c.bf16 %v928_v5, %v944_v17  ;;  %v914_v20 = vmul.f32 %v17075_v3, %v898_v6 }
 0x181   : > { %v993_v25 = vpack.c.bf16 %v929_v10, %v945_v22  ;;  %v915_v24 = vmul.f32 %v17075_v3, %v899_v9  ;;  %v21828_v3 = vlaneseq }
 0x182   : > { %14231 = vmatmul.mubr.bf16.gmra.mxu1 %v989_v61  ;;  %v930_v37 = vadd.f32 %v17088_v8, %v914_v20 }
 0x183   : > { %14234 = vmatprep.mubr.bf16.mxu1 %v990_v63  ;;  %v931_v55 = vadd.f32 %v17088_v8, %v915_v24  ;;  %v17175_v8 = vshrl.u32 %v21828_v3, 7 }
 0x184   : > { %v994_v26 = vpack.c.bf16 %v930_v37, %v946_v23 }
 0x185   : > { %v995_v44 = vpack.c.bf16 %v931_v55, %v947_v27  ;;  %21986 = vst [vmem:[#allocation14_spill] sm:$0xff] %v17175_v8  ;;  %v21825_v30 = vsub.s32 1, %v17175_v8  ;;  %v21824_v31 = vsub.s32 0, %v17175_v8 }
 0x186   : > { %1224 = vmatmul.mubr.bf16.gmra.mxu0 %v985_v28  ;;  %v21829_v28 = vmov 0.0  }
 0x187   : > { %1233 = vmatprep.mubr.bf16.mxu0 %v21826_v46  ;;  %14246 = vmatprep.subr.bf16.mxu1 %v21829_v28  ;;  %v17183_v35 = vrot.slane %v996_v34, %v21825_v30  ;;  %v17199_v49 = vrot.slane %v996_v34, %v21824_v31 }
 0x188   : > { %14294 = vmatprep.subr.bf16.mxu0 %v21829_v28 }
 0x18a   : > { %14235 = vmatmul.mubr.bf16.gmra.mxu1 %v991_v18 }
 0x18b   : > { %14238 = vmatprep.mubr.bf16.mxu1 %v992_v45 }
 0x18e   : > { %1234 = vmatmul.mubr.bf16.gmra.mxu0 %v986_v41  ;;  %v1008_v41 = vsub.s32 2, %v17175_v8 }
 0x18f   : > { %1243 = vmatprep.mubr.bf16.mxu0 %v21826_v46 }
 0x190   : > { %v17205_v52 = vrot.slane %v996_v34, %v1008_v41 }
 0x192   : > { %14239 = vmatmul.mubr.bf16.gmra.mxu1 %v993_v25 }
 0x193   : > { %14242 = vmatprep.mubr.bf16.mxu1 %v994_v26 }
 0x196   : > { %1244 = vmatmul.mubr.bf16.gmra.mxu0 %v987_v50 }
 0x197   : > { %1253 = vmatprep.mubr.bf16.mxu0 %v21826_v46 }
 0x19a   : > { %14243 = vmatmul.mubr.bf16.gmra.mxu1 %v995_v44 }
 0x19b   : > { %14248 = vmatprep.mubr.msk.bf16.mxu1 %vm16701_vm0, %v21829_v28 }
 0x19e   : > { %1254 = vmatmul.mubr.bf16.gmra.mxu0 %v988_v32 }
 0x19f   : > { %1263 = vmatprep.mubr.bf16.mxu0 %v21826_v46 }
 0x1a6   : > { %1264 = vmatmul.mubr.bf16.gmra.mxu0 %v989_v61 }
 0x1a7   : > { %1273 = vmatprep.mubr.bf16.mxu0 %v21826_v46 }
 0x1ae   : > { %1274 = vmatmul.mubr.bf16.gmra.mxu0 %v990_v63 }
 0x1af   : > { %1283 = vmatprep.mubr.bf16.mxu0 %v21826_v46 }
 0x1b6   : > { %1284 = vmatmul.mubr.bf16.gmra.mxu0 %v991_v18 }
 0x1b7   : > { %1293 = vmatprep.mubr.bf16.mxu0 %v21826_v46 }
 0x1be   : > { %1294 = vmatmul.mubr.bf16.gmra.mxu0 %v992_v45 }
 0x1bf   : > { %1303 = vmatprep.mubr.bf16.mxu0 %v21826_v46 }
 0x1c6   : > { %1304 = vmatmul.mubr.bf16.gmra.mxu0 %v993_v25 }
 0x1c7   : > { %1313 = vmatprep.mubr.bf16.mxu0 %v21826_v46 }
 0x1ce   : > { %1314 = vmatmul.mubr.bf16.gmra.mxu0 %v994_v26 }
 0x1cf   : > { %1323 = vmatprep.mubr.bf16.mxu0 %v21826_v46 }
 0x1d6   : > { %1324 = vmatmul.mubr.bf16.gmra.mxu0 %v995_v44 }
 0x1d7   : > { %14296 = vmatprep.mubr.msk.bf16.mxu0 %vm16701_vm0, %v21829_v28 }
 0x21e   : > { %v1175_v33 = vpop.f32.mrf.mxu0 }
 0x21f   : > { %v1176_v56 = vadd.f32 %v1175_v33, %v17199_v49 }
 0x220   : > { %v1177_v43 = vpop.f32.mrf.mxu0 }
 0x221   : > { %v1178_v0 = vadd.f32 %v1177_v43, %v17183_v35 }
 0x222   : > { %v1179_v13 = vpop.f32.mrf.mxu0  ;;  %v17185_v12 = vpop.f32.mrf.mxu1 }
 0x223   : > { %v1180_v51 = vadd.f32 %v1179_v13, %v17199_v49 }
 0x224   : > { %v1181_v36 = vpop.f32.mrf.mxu0  ;;  %v17190_v40 = vpop.f32.mrf.mxu1 }
 0x225   : > { %v1182_v39 = vadd.f32 %v1181_v36, %v17183_v35  ;;  %v17214_v61 = vpack.c.bf16 %v1180_v51, %v1176_v56 }
 0x226   : > { %v1185_v42 = vpop.f32.mrf.mxu0  ;;  %v17195_v47 = vpop.f32.mrf.mxu1 }
 0x227   : > { %v17193_v14 = vpack.c.bf16 %v1182_v39, %v1178_v0  ;;  %v1186_v45 = vadd.f32 %v1185_v42, %v17199_v49 }
 0x228   : > { %v1187_v48 = vpop.f32.mrf.mxu0  ;;  %v17201_v16 = vpop.f32.mrf.mxu1 }
 0x229   : > { %v1557_v32 = vsel %vm1552_vm1, %v17193_v14, 0  ;;  %v1188_v57 = vadd.f32 %v1187_v48, %v17183_v35 }
 0x22a   : > { %v1189_v50 = vpop.f32.mrf.mxu0  ;;  %14247 = vmatpush3.bf16.xpose.msra.mxu1 %v1557_v32  ;;  %v14220_v15 = vpop.f32.mrf.mxu1 }
 0x22b   : > { %14252 = vmatprep.subr.bf16.mxu1 %v21829_v28  ;;  %v1393_v53 = vadd.f32 %v14220_v15, %v17205_v52  ;;  %v1190_v6 = vadd.f32 %v1189_v50, %v17199_v49 }
 0x22c   : > { %v1191_v54 = vpop.f32.mrf.mxu0  ;;  %v1384_v21 = vpop.f32.mrf.mxu1 }
 0x22d   : > { %v1192_v58 = vadd.f32 %v1191_v54, %v17183_v35  ;;  %v1385_v59 = vadd.f32 %v1384_v21, %v17205_v52  ;;  %v17237_v23 = vpack.c.bf16 %v1190_v6, %v1186_v45 }
 0x22e   : > { %v1195_v60 = vpop.f32.mrf.mxu0  ;;  %v14221_v62 = vpop.f32.mrf.mxu1 }
 0x22f   : > { %v17216_v38 = vpack.c.bf16 %v1192_v58, %v1188_v57  ;;  %v1396_v63 = vadd.f32 %v14221_v62, %v17205_v52  ;;  %v1196_v42 = vadd.f32 %v1195_v60, %v17199_v49 }
 0x230   : > { %v1197_v1 = vpop.f32.mrf.mxu0  ;;  %v1387_v2 = vpop.f32.mrf.mxu1 }
 0x231   : > { %14249 = vmatmul.mubr.msk.bf16.vlgmr.msra.gmra.mxu1 %vm1552_vm1, %v17214_v61  ;;  %v1604_v7 = vsel %vm1552_vm1, %v17216_v38, 0  ;;  %v17223_v4 = vpack.c.bf16 %v1396_v63, %v1393_v53  ;;  %v1388_v29 = vadd.f32 %v1387_v2, %v17205_v52  ;;  %v1198_v20 = vadd.f32 %v1197_v1, %v17183_v35 }
 0x232   : > { %v1199_v5 = vpop.f32.mrf.mxu0  ;;  %14253 = vmatpush3.bf16.xpose.msra.mxu1 %v1604_v7  ;;  %14254 = vmatprep.mubr.msk.bf16.mxu1 %vm16701_vm0, %v21829_v28  ;;  %v14224_v17 = vpop.f32.mrf.mxu1 }
 0x233   : > { %21988 = vst [vmem:[#allocation15_spill] sm:$0xff] %v17223_v4  ;;  %14258 = vmatprep.subr.bf16.mxu1 %v21829_v28  ;;  %v17230_v18 = vpack.c.bf16 %v1388_v29, %v1385_v59  ;;  %v1409_v19 = vadd.f32 %v14224_v17, %v17205_v52  ;;  %v1200_v13 = vadd.f32 %v1199_v5, %v17199_v49 }
 0x234   : > { %v1201_v11 = vpop.f32.mrf.mxu0  ;;  %v1400_v9 = vpop.f32.mrf.mxu1 }
 0x235   : > { %21989 = vst [vmem:[#allocation16_spill] sm:$0xff] %v17230_v18  ;;  %v1202_v10 = vadd.f32 %v1201_v11, %v17183_v35  ;;  %v1401_v22 = vadd.f32 %v1400_v9, %v17205_v52  ;;  %v17260_v53 = vpack.c.bf16 %v1200_v13, %v1196_v42 }
 0x236   : > { %v1205_v37 = vpop.f32.mrf.mxu0  ;;  %v14225_v24 = vpop.f32.mrf.mxu1 }
 0x237   : > { %v17239_v25 = vpack.c.bf16 %v1202_v10, %v1198_v20  ;;  %v1412_v26 = vadd.f32 %v14225_v24, %v17205_v52  ;;  %v1206_v6 = vadd.f32 %v1205_v37, %v17199_v49 }
 0x238   : > { %v1207_v55 = vpop.f32.mrf.mxu0  ;;  %v1403_v27 = vpop.f32.mrf.mxu1 }
 0x239   : > { %21990 = vst [vmem:[#allocation17_spill] sm:$0xff] %v17239_v25  ;;  %14255 = vmatmul.mubr.msk.bf16.vlgmr.msra.gmra.mxu1 %vm1552_vm1, %v17237_v23  ;;  %v1651_v44 = vsel %vm1552_vm1, %v17239_v25, 0  ;;  %v17246_v33 = vpack.c.bf16 %v1412_v26, %v1409_v19  ;;  %v1404_v34 = vadd.f32 %v1403_v27, %v17205_v52  ;;  %v1208_v48 = vadd.f32 %v1207_v55, %v17183_v35 }
 0x23a   : > { %v1209_v43 = vpop.f32.mrf.mxu0  ;;  %14259 = vmatpush3.bf16.xpose.msra.mxu1 %v1651_v44  ;;  %14260 = vmatprep.mubr.msk.bf16.mxu1 %vm16701_vm0, %v21829_v28  ;;  %v14228_v36 = vpop.f32.mrf.mxu1 }
 0x23b   : > { %21991 = vst [vmem:[#allocation18_spill] sm:$0xff] %v17246_v33  ;;  %14264 = vmatprep.subr.bf16.mxu1 %v21829_v28  ;;  %v17253_v0 = vpack.c.bf16 %v1404_v34, %v1401_v22  ;;  %v1425_v39 = vadd.f32 %v14228_v36, %v17205_v52  ;;  %v1210_v1 = vadd.f32 %v1209_v43, %v17199_v49 }
 0x23c   : > { %v1211_v41 = vpop.f32.mrf.mxu0  ;;  %v1416_v50 = vpop.f32.mrf.mxu1 }
 0x23d   : > { %21992 = vst [vmem:[#allocation19_spill] sm:$0xff] %v17253_v0  ;;  %v1212_v32 = vadd.f32 %v1211_v41, %v17183_v35  ;;  %v1417_v51 = vadd.f32 %v1416_v50, %v17205_v52  ;;  %v17283_v10 = vpack.c.bf16 %v1210_v1, %v1206_v6 }
 0x23e   : > { %v1215_v15 = vpop.f32.mrf.mxu0  ;;  %v14229_v56 = vpop.f32.mrf.mxu1 }
 0x23f   : > { %v17262_v54 = vpack.c.bf16 %v1212_v32, %v1208_v48  ;;  %v1428_v57 = vadd.f32 %v14229_v56, %v17205_v52  ;;  %v1216_v42 = vadd.f32 %v1215_v15, %v17199_v49 }
 0x240   : > { %v1217_v58 = vpop.f32.mrf.mxu0  ;;  %v1419_v21 = vpop.f32.mrf.mxu1 }
 0x241   : > { %21993 = vst [vmem:[#allocation20_spill] sm:$0xff] %v17262_v54  ;;  %14261 = vmatmul.mubr.msk.bf16.vlgmr.msra.gmra.mxu1 %vm1552_vm1, %v17260_v53  ;;  %v1698_v59 = vsel %vm1552_vm1, %v17262_v54, 0  ;;  %v17269_v60 = vpack.c.bf16 %v1428_v57, %v1425_v39  ;;  %v1420_v62 = vadd.f32 %v1419_v21, %v17205_v52  ;;  %v1218_v17 = vadd.f32 %v1217_v58, %v17183_v35 }
 0x242   : > { %v1219_v63 = vpop.f32.mrf.mxu0  ;;  %14265 = vmatpush3.bf16.xpose.msra.mxu1 %v1698_v59  ;;  %14266 = vmatprep.mubr.msk.bf16.mxu1 %vm16701_vm0, %v21829_v28  ;;  %v14232_v2 = vpop.f32.mrf.mxu1 }
 0x243   : > { %21994 = vst [vmem:[#allocation21_spill] sm:$0xff] %v17269_v60  ;;  %14270 = vmatprep.subr.bf16.mxu1 %v21829_v28  ;;  %v17276_v7 = vpack.c.bf16 %v1420_v62, %v1417_v51  ;;  %v1441_v29 = vadd.f32 %v14232_v2, %v17205_v52  ;;  %v1220_v43 = vadd.f32 %v1219_v63, %v17199_v49 }
 0x244   : > { %v1221_v5 = vpop.f32.mrf.mxu0  ;;  %v1432_v11 = vpop.f32.mrf.mxu1 }
 0x245   : > { %21995 = vst [vmem:[#allocation22_spill] sm:$0xff] %v17276_v7  ;;  %v1222_v19 = vadd.f32 %v1221_v5, %v17183_v35  ;;  %v1433_v45 = vadd.f32 %v1432_v11, %v17205_v52  ;;  %v17306_v57 = vpack.c.bf16 %v1220_v43, %v1216_v42 }
 0x246   : > { %v1225_v20 = vpop.f32.mrf.mxu0  ;;  %v14233_v22 = vpop.f32.mrf.mxu1 }
 0x247   : > { %v17285_v9 = vpack.c.bf16 %v1222_v19, %v1218_v17  ;;  %v1444_v24 = vadd.f32 %v14233_v22, %v17205_v52 }
 0x248   : > { %v1227_v26 = vpop.f32.mrf.mxu0  ;;  %v1435_v55 = vpop.f32.mrf.mxu1 }
 0x249   : > { %21996 = vst [vmem:[#allocation23_spill] sm:$0xff] %v17285_v9  ;;  %14267 = vmatmul.mubr.msk.bf16.vlgmr.msra.gmra.mxu1 %vm1552_vm1, %v17283_v10  ;;  %v1745_v37 = vsel %vm1552_vm1, %v17285_v9, 0  ;;  %v17292_v27 = vpack.c.bf16 %v1444_v24, %v1441_v29  ;;  %v1436_v44 = vadd.f32 %v1435_v55, %v17205_v52  ;;  %v1228_v48 = vadd.f32 %v1227_v26, %v17183_v35 }
 0x24a   : > { %v1229_v34 = vpop.f32.mrf.mxu0  ;;  %14271 = vmatpush3.bf16.xpose.msra.mxu1 %v1745_v37  ;;  %14272 = vmatprep.mubr.msk.bf16.mxu1 %vm16701_vm0, %v21829_v28  ;;  %v14236_v13 = vpop.f32.mrf.mxu1 }
 0x24b   : > { %21997 = vst [vmem:[#allocation24_spill] sm:$0xff] %v17292_v27  ;;  %14276 = vmatprep.subr.bf16.mxu1 %v21829_v28  ;;  %v17299_v36 = vpack.c.bf16 %v1436_v44, %v1433_v45  ;;  %v1457_v39 = vadd.f32 %v14236_v13, %v17205_v52  ;;  %v1230_v5 = vadd.f32 %v1229_v34, %v17199_v49 }
 0x24c   : > { %v1231_v41 = vpop.f32.mrf.mxu0  ;;  %v1448_v50 = vpop.f32.mrf.mxu1  ;;  %v1226_v45 = vadd.f32 %v1225_v20, %v17199_v49 }
 0x24d   : > { %21998 = vst [vmem:[#allocation25_spill] sm:$0xff] %v17299_v36  ;;  %v1232_v32 = vadd.f32 %v1231_v41, %v17183_v35  ;;  %v1449_v51 = vadd.f32 %v1448_v50, %v17205_v52 }
 0x24e   : > { %v1235_v56 = vpop.f32.mrf.mxu0  ;;  %v14237_v21 = vpop.f32.mrf.mxu1  ;;  %v17329_v44 = vpack.c.bf16 %v1230_v5, %v1226_v45 }
 0x24f   : > { %v17308_v58 = vpack.c.bf16 %v1232_v32, %v1228_v48  ;;  %v1460_v59 = vadd.f32 %v14237_v21, %v17205_v52 }
 0x250   : > { %v1237_v62 = vpop.f32.mrf.mxu0  ;;  %v1451_v63 = vpop.f32.mrf.mxu1 }
 0x251   : > { %21999 = vst [vmem:[#allocation26_spill] sm:$0xff] %v17308_v58  ;;  %14273 = vmatmul.mubr.msk.bf16.vlgmr.msra.gmra.mxu1 %vm1552_vm1, %v17306_v57  ;;  %v1792_v15 = vsel %vm1552_vm1, %v17308_v58, 0  ;;  %v17315_v1 = vpack.c.bf16 %v1460_v59, %v1457_v39  ;;  %v1452_v2 = vadd.f32 %v1451_v63, %v17205_v52  ;;  %v1238_v22 = vadd.f32 %v1237_v62, %v17183_v35 }
 0x252   : > { %v1239_v29 = vpop.f32.mrf.mxu0  ;;  %14277 = vmatpush3.bf16.xpose.msra.mxu1 %v1792_v15  ;;  %14278 = vmatprep.mubr.msk.bf16.mxu1 %vm16701_vm0, %v21829_v28  ;;  %v14240_v6 = vpop.f32.mrf.mxu1  ;;  %v1236_v63 = vadd.f32 %v1235_v56, %v17199_v49 }
 0x253   : > { %22000 = vst [vmem:[#allocation27_spill] sm:$0xff] %v17315_v1  ;;  %14282 = vmatprep.subr.bf16.mxu1 %v21829_v28  ;;  %v17322_v17 = vpack.c.bf16 %v1452_v2, %v1449_v51  ;;  %v1473_v19 = vadd.f32 %v14240_v6, %v17205_v52  ;;  %v1240_v50 = vadd.f32 %v1239_v29, %v17199_v49 }
 0x254   : > { %v1241_v11 = vpop.f32.mrf.mxu0  ;;  %v1464_v26 = vpop.f32.mrf.mxu1 }
 0x255   : > { %22001 = vst [vmem:[#allocation28_spill] sm:$0xff] %v17322_v17  ;;  %v1242_v24 = vadd.f32 %v1241_v11, %v17183_v35  ;;  %v1465_v55 = vadd.f32 %v1464_v26, %v17205_v52  ;;  %v17352_v11 = vpack.c.bf16 %v1240_v50, %v1236_v63 }
 0x256   : > { %v1245_v37 = vpop.f32.mrf.mxu0  ;;  %v14241_v43 = vpop.f32.mrf.mxu1 }
 0x257   : > { %v17331_v34 = vpack.c.bf16 %v1242_v24, %v1238_v22  ;;  %v1476_v13 = vadd.f32 %v14241_v43, %v17205_v52 }
 0x258   : > { %v1247_v39 = vpop.f32.mrf.mxu0  ;;  %v1467_v41 = vpop.f32.mrf.mxu1 }
 0x259   : > { %22002 = vst [vmem:[#allocation29_spill] sm:$0xff] %v17331_v34  ;;  %14279 = vmatmul.mubr.msk.bf16.vlgmr.msra.gmra.mxu1 %vm1552_vm1, %v17329_v44  ;;  %v1839_v20 = vsel %vm1552_vm1, %v17331_v34, 0  ;;  %v17338_v42 = vpack.c.bf16 %v1476_v13, %v1473_v19  ;;  %v1468_v48 = vadd.f32 %v1467_v41, %v17205_v52  ;;  %v1248_v15 = vadd.f32 %v1247_v39, %v17183_v35 }
 0x25a   : > { %v1249_v32 = vpop.f32.mrf.mxu0  ;;  %14283 = vmatpush3.bf16.xpose.msra.mxu1 %v1839_v20  ;;  %14284 = vmatprep.mubr.msk.bf16.mxu1 %vm16701_vm0, %v21829_v28  ;;  %v14244_v51 = vpop.f32.mrf.mxu1 }
 0x25b   : > { %22003 = vst [vmem:[#allocation30_spill] sm:$0xff] %v17338_v42  ;;  %14288 = vmatprep.subr.bf16.mxu1 %v21829_v28  ;;  %v17345_v21 = vpack.c.bf16 %v1468_v48, %v1465_v55  ;;  %v1489_v59 = vadd.f32 %v14244_v51, %v17205_v52  ;;  %v1250_v39 = vadd.f32 %v1249_v32, %v17199_v49 }
 0x25c   : > { %v1251_v62 = vpop.f32.mrf.mxu0  ;;  %v1480_v5 = vpop.f32.mrf.mxu1  ;;  %v1246_v48 = vadd.f32 %v1245_v37, %v17199_v49 }
 0x25d   : > { %22004 = vst [vmem:[#allocation31_spill] sm:$0xff] %v17345_v21  ;;  %v1252_v2 = vadd.f32 %v1251_v62, %v17183_v35  ;;  %v1481_v6 = vadd.f32 %v1480_v5, %v17205_v52 }
 0x25e   : > { %v1255_v19 = vpop.f32.mrf.mxu0  ;;  %v14245_v45 = vpop.f32.mrf.mxu1  ;;  %v17373_v62 = vpack.c.bf16 %v1250_v39, %v1246_v48 }
 0x25f   : > { %v17354_v29 = vpack.c.bf16 %v1252_v2, %v1248_v15  ;;  %v1492_v22 = vadd.f32 %v14245_v45, %v17205_v52 }
 0x260   : > { %v1257_v24 = vpop.f32.mrf.mxu0  ;;  %v1483_v26 = vpop.f32.mrf.mxu1 }
 0x261   : > { %22005 = vst [vmem:[#allocation32_spill] sm:$0xff] %v17354_v29  ;;  %14285 = vmatmul.mubr.msk.bf16.vlgmr.msra.gmra.mxu1 %vm1552_vm1, %v17352_v11  ;;  %v1886_v56 = vsel %vm1552_vm1, %v17354_v29, 0  ;;  %v17361_v55 = vpack.c.bf16 %v1492_v22, %v1489_v59  ;;  %v1484_v43 = vadd.f32 %v1483_v26, %v17205_v52  ;;  %v1258_v50 = vadd.f32 %v1257_v24, %v17183_v35 }
 0x262   : > { %v1259_v13 = vpop.f32.mrf.mxu0  ;;  %14289 = vmatpush3.bf16.xpose.msra.mxu1 %v1886_v56  ;;  %14290 = vmatprep.mubr.msk.bf16.mxu1 %vm16701_vm0, %v21829_v28 }
 0x263   : > { %22006 = vst [vmem:[#allocation33_spill] sm:$0xff] %v17361_v55  ;;  %14300 = vmatprep.subr.bf16.mxu1 %v21829_v28  ;;  %v17368_v41 = vpack.c.bf16 %v1484_v43, %v1481_v6  ;;  %v1260_v37 = vadd.f32 %v1259_v13, %v17199_v49  ;;  %v1256_v6 = vadd.f32 %v1255_v19, %v17199_v49  ;;  %v22017_v55 = vmov 0.0  }
 0x264   : > { %v1261_v20 = vpop.f32.mrf.mxu0 }
 0x265   : > { %22007 = vst [vmem:[#allocation34_spill] sm:$0xff] %v17368_v41  ;;  %v1262_v51 = vadd.f32 %v1261_v20, %v17183_v35  ;;  %v17388_v26 = vpack.c.bf16 %v1260_v37, %v1256_v6 }
 0x266   : > { %v1265_v59 = vpop.f32.mrf.mxu0 }
 0x267   : > { %v17375_v63 = vpack.c.bf16 %v1262_v51, %v1258_v50  ;;  %v1266_v48 = vadd.f32 %v1265_v59, %v17199_v49 }
 0x268   : > { %v1267_v15 = vpop.f32.mrf.mxu0 }
 0x269   : > { %22008 = vst [vmem:[#allocation35_spill] sm:$0xff] %v17375_v63  ;;  %14291 = vmatmul.mubr.msk.bf16.vlgmr.msra.gmra.mxu1 %vm1552_vm1, %v17373_v62  ;;  %v1933_v32 = vsel %vm1552_vm1, %v17375_v63, 0  ;;  %v1268_v45 = vadd.f32 %v1267_v15, %v17183_v35 }
 0x26a   : > { %v1269_v2 = vpop.f32.mrf.mxu0  ;;  %14295 = vmatpush3.bf16.xpose.msra.mxu0 %v1933_v32  ;;  %14302 = vmatprep.mubr.msk.bf16.mxu1 %vm16701_vm0, %v21829_v28 }
 0x26b   : > { %14306 = vmatprep.subr.bf16.mxu0 %v21829_v28  ;;  %v1270_v19 = vadd.f32 %v1269_v2, %v17199_v49 }
 0x26c   : > { %v1271_v5 = vpop.f32.mrf.mxu0 }
 0x26d   : > { %v1272_v22 = vadd.f32 %v1271_v5, %v17183_v35  ;;  %v17403_v32 = vpack.c.bf16 %v1270_v19, %v1266_v48 }
 0x26e   : > { %v1275_v24 = vpop.f32.mrf.mxu0 }
 0x26f   : > { %v17390_v56 = vpack.c.bf16 %v1272_v22, %v1268_v45  ;;  %v1276_v22 = vadd.f32 %v1275_v24, %v17199_v49 }
 0x270   : > { %v1277_v43 = vpop.f32.mrf.mxu0 }
 0x271   : > { %22009 = vst [vmem:[#allocation36_spill] sm:$0xff] %v17390_v56  ;;  %14297 = vmatmul.mubr.msk.bf16.vlgmr.msra.gmra.mxu0 %vm1552_vm1, %v17388_v26  ;;  %v1980_v13 = vsel %vm1552_vm1, %v17390_v56, 0  ;;  %v1278_v50 = vadd.f32 %v1277_v43, %v17183_v35 }
 0x272   : > { %v1279_v39 = vpop.f32.mrf.mxu0  ;;  %14301 = vmatpush3.bf16.xpose.msra.mxu1 %v1980_v13  ;;  %14308 = vmatprep.mubr.msk.bf16.mxu0 %vm16701_vm0, %v21829_v28 }
 0x273   : > { %14312 = vmatprep.subr.bf16.mxu1 %v21829_v28  ;;  %v1280_v59 = vadd.f32 %v1279_v39, %v17199_v49 }
 0x274   : > { %v1281_v20 = vpop.f32.mrf.mxu0 }
 0x275   : > { %v1282_v51 = vadd.f32 %v1281_v20, %v17183_v35  ;;  %v17418_v20 = vpack.c.bf16 %v1280_v59, %v1276_v22 }
 0x276   : > { %v1285_v15 = vpop.f32.mrf.mxu0 }
 0x277   : > { %v17405_v37 = vpack.c.bf16 %v1282_v51, %v1278_v50 }
 0x278   : > { %v1287_v5 = vpop.f32.mrf.mxu0 }
 0x279   : > { %22010 = vst [vmem:[#allocation37_spill] sm:$0xff] %v17405_v37  ;;  %14303 = vmatmul.mubr.msk.bf16.vlgmr.msra.gmra.mxu1 %vm1552_vm1, %v17403_v32  ;;  %v2027_v2 = vsel %vm1552_vm1, %v17405_v37, 0  ;;  %v1288_v43 = vadd.f32 %v1287_v5, %v17183_v35 }
 0x27a   : > { %v1289_v6 = vpop.f32.mrf.mxu0  ;;  %14307 = vmatpush3.bf16.xpose.msra.mxu0 %v2027_v2  ;;  %14314 = vmatprep.mubr.msk.bf16.mxu1 %vm16701_vm0, %v21829_v28  ;;  %v1286_v2 = vadd.f32 %v1285_v15, %v17199_v49 }
 0x27b   : > { %14318 = vmatprep.subr.bf16.mxu0 %v21829_v28  ;;  %v1290_v24 = vadd.f32 %v1289_v6, %v17199_v49 }
 0x27c   : > { %v1291_v45 = vpop.f32.mrf.mxu0 }
 0x27d   : > { %v1292_v13 = vadd.f32 %v1291_v45, %v17183_v35 }
 0x27e   : > { %v1295_v19 = vpop.f32.mrf.mxu0 }
 0x27f   : > { %v17420_v48 = vpack.c.bf16 %v1292_v13, %v1288_v43  ;;  %v17433_v43 = vpack.c.bf16 %v1290_v24, %v1286_v2  ;;  %v1296_v24 = vadd.f32 %v1295_v19, %v17199_v49 }
 0x280   : > { %v1297_v50 = vpop.f32.mrf.mxu0 }
 0x281   : > { %22011 = vst [vmem:[#allocation38_spill] sm:$0xff] %v17420_v48  ;;  %14309 = vmatmul.mubr.msk.bf16.vlgmr.msra.gmra.mxu0 %vm1552_vm1, %v17418_v20  ;;  %v2074_v39 = vsel %vm1552_vm1, %v17420_v48, 0  ;;  %v1298_v59 = vadd.f32 %v1297_v50, %v17183_v35 }
 0x282   : > { %v1299_v51 = vpop.f32.mrf.mxu0  ;;  %14313 = vmatpush3.bf16.xpose.msra.mxu1 %v2074_v39  ;;  %14320 = vmatprep.mubr.msk.bf16.mxu0 %vm16701_vm0, %v21829_v28 }
 0x283   : > { %14324 = vmatprep.subr.bf16.mxu1 %v21829_v28  ;;  %v1300_v15 = vadd.f32 %v1299_v51, %v17199_v49 }
 0x284   : > { %v1301_v5 = vpop.f32.mrf.mxu0 }
 0x285   : > { %v1302_v45 = vadd.f32 %v1301_v5, %v17183_v35 }
 0x286   : > { %v1305_v22 = vpop.f32.mrf.mxu0 }
 0x287   : > { %v17435_v13 = vpack.c.bf16 %v1302_v45, %v1298_v59  ;;  %v17448_v45 = vpack.c.bf16 %v1300_v15, %v1296_v24  ;;  %v1306_v15 = vadd.f32 %v1305_v22, %v17199_v49 }
 0x288   : > { %v1307_v39 = vpop.f32.mrf.mxu0 }
 0x289   : > { %22012 = vst [vmem:[#allocation39_spill] sm:$0xff] %v17435_v13  ;;  %14315 = vmatmul.mubr.msk.bf16.vlgmr.msra.gmra.mxu1 %vm1552_vm1, %v17433_v43  ;;  %v2121_v6 = vsel %vm1552_vm1, %v17435_v13, 0  ;;  %v1308_v5 = vadd.f32 %v1307_v39, %v17183_v35  ;;  %22013 = vst [vmem:[#allocation40_spill] sm:$0xff] %v17448_v45 }
 0x28a   : > { %v1309_v31 = vpop.f32.mrf.mxu0  ;;  %14319 = vmatpush3.bf16.xpose.msra.mxu0 %v2121_v6  ;;  %14326 = vmatprep.mubr.msk.bf16.mxu1 %vm16701_vm0, %v21829_v28 }
 0x28b   : > { %14330 = vmatprep.subr.bf16.mxu0 %v21829_v28  ;;  %v1310_v19 = vadd.f32 %v1309_v31, %v17199_v49 }
 0x28c   : > { %v1311_v50 = vpop.f32.mrf.mxu0 }
 0x28d   : > { %v1312_v2 = vadd.f32 %v1311_v50, %v17183_v35 }
 0x28e   : > { %v1315_v59 = vpop.f32.mrf.mxu0 }
 0x28f   : > { %v17450_v30 = vpack.c.bf16 %v1312_v2, %v1308_v5  ;;  %v17463_v2 = vpack.c.bf16 %v1310_v19, %v1306_v15 }
 0x290   : > { %v1317_v6 = vpop.f32.mrf.mxu0 }
 0x291   : > { %22014 = vst [vmem:[#allocation41_spill] sm:$0xff] %v17450_v30  ;;  %14321 = vmatmul.mubr.msk.bf16.vlgmr.msra.gmra.mxu0 %vm1552_vm1, %v17448_v45  ;;  %v2168_v51 = vsel %vm1552_vm1, %v17450_v30, 0  ;;  %v1318_v50 = vadd.f32 %v1317_v6, %v17183_v35  ;;  %22015 = vst [vmem:[#allocation42_spill] sm:$0xff] %v17463_v2  ;;  %v1372_v6 = vadd.f32 %v17201_v16, %v17205_v52 }
 0x292   : > { %v1319_v46 = vpop.f32.mrf.mxu0  ;;  %14325 = vmatpush3.bf16.xpose.msra.mxu1 %v2168_v51  ;;  %14332 = vmatprep.mubr.msk.bf16.mxu0 %vm16701_vm0, %v21829_v28 }
 0x293   : > { %14336 = vmatprep.subr.bf16.mxu1 %v21829_v28  ;;  %v1320_v22 = vadd.f32 %v1319_v46, %v17199_v49 }
 0x294   : > { %v1321_v39 = vpop.f32.mrf.mxu0 }
 0x295   : > { %v1322_v24 = vadd.f32 %v1321_v39, %v17183_v35  ;;  %v1316_v39 = vadd.f32 %v1315_v59, %v17199_v49 }
 0x296   : > { %v1325_v5 = vpop.f32.mrf.mxu0 }
 0x297   : > { %v17465_v3 = vpack.c.bf16 %v1322_v24, %v1318_v50  ;;  %v1369_v24 = vadd.f32 %v17190_v40, %v17205_v52  ;;  %v1380_v40 = vadd.f32 %v17195_v47, %v17205_v52  ;;  %v1326_v59 = vadd.f32 %v1325_v5, %v17199_v49 }
 0x298   : > { %v1327_v51 = vpop.f32.mrf.mxu0 }
 0x299   : > { %22016 = vst [vmem:[#allocation43_spill] sm:$0xff] %v17465_v3  ;;  %14327 = vmatmul.mubr.msk.bf16.vlgmr.msra.gmra.mxu1 %vm1552_vm1, %v17463_v2  ;;  %v2215_v31 = vsel %vm1552_vm1, %v17465_v3, 0  ;;  %v1328_v15 = vadd.f32 %v1327_v51, %v17183_v35  ;;  %v17486_v46 = vpack.c.bf16 %v1372_v6, %v1369_v24  ;;  %v1377_v51 = vadd.f32 %v17185_v12, %v17205_v52 }
 0x29a   : > { %v1329_v28 = vpop.f32.mrf.mxu0  ;;  %14331 = vmatpush3.bf16.xpose.msra.mxu0 %v2215_v31  ;;  %14338 = vmatprep.mubr.msk.bf16.mxu1 %vm16701_vm0, %v22017_v55  ;;  %v17482_v31 = vpack.c.bf16 %v1320_v22, %v1316_v39  ;;  %v16702_v12 = vmov -1e+30  }
 0x29b   : > { %14342 = vmatprep.subr.bf16.mxu0 %v22017_v55  ;;  %22020 = vst [vmem:[#allocation46_spill] sm:$0xff] %v17486_v46  ;;  %v17505_v6 = vpack.c.bf16 %v1380_v40, %v1377_v51 }
 0x29c   : > { %v1331_v19 = vpop.f32.mrf.mxu0  ;;  %22018 = vst [vmem:[#allocation44_spill] sm:$0xff] %v17482_v31 }
 0x29d   : > { %v1332_v50 = vadd.f32 %v1331_v19, %v17183_v35  ;;  %v1330_v35 = vadd.f32 %v1329_v28, %v17199_v49  ;;  %22022 = vst [vmem:[#allocation48_spill] sm:$0xff] %v17505_v6  ;;  %v22023_v28 = vlaneseq  ;;  %v1497_v49 = vadd.s32 8, %v17175_v8 }
 0x29f   : > { %v17484_v41 = vpack.c.bf16 %v1332_v50, %v1328_v15  ;;  %v17503_v22 = vpack.c.bf16 %v1330_v35, %v1326_v59  ;;  %v1499_v47 = vand.u32 127, %v22023_v28 }
 0x2a1   : > { %22019 = vst [vmem:[#allocation45_spill] sm:$0xff] %v17484_v41  ;;  %14333 = vmatmul.mubr.msk.bf16.vlgmr.msra.gmra.mxu0 %vm1552_vm1, %v17482_v31  ;;  %v2262_v16 = vsel %vm1552_vm1, %v17484_v41, 0  ;;  %22021 = vst [vmem:[#allocation47_spill] sm:$0xff] %v17503_v22  ;;  %vm1500_vm2 = vcmp.ge.s32.totalorder %v17175_v8, %v1499_v47  ;;  %vm1501_vm3 = vcmp.ge.s32.totalorder %v1497_v49, %v1499_v47 }
 0x2a2   : > { %14337 = vmatpush3.bf16.xpose.msra.mxu1 %v2262_v16  ;;  %14343 = vmatpush3.bf16.msra.mxu0 %v17486_v46  ;;  %v17516_v52 = vsel %vm1500_vm2, 0.0, %v16702_v12  ;;  %v17521_v50 = vsel %vm1501_vm3, 0.0, %v16702_v12 }
 0x2a3   : > { %14348 = vmatprep.subr.bf16.mxu1 %v22017_v55  ;;  %14344 = vmatprep.mubr.msk.bf16.mxu0 %vm16701_vm0, %v22017_v55  ;;  %22024 = vst [vmem:[#allocation49_spill] sm:$0xff] %v17516_v52  ;;  %22025 = vst [vmem:[#allocation50_spill] sm:$0xff] %v17521_v50 }
 0x2a4   : > { %14354 = vmatprep.subr.bf16.mxu0 %v22017_v55 }
 0x2a9   : > { %14339 = vmatmul.mubr.msk.bf16.vlgmr.msra.gmra.mxu1 %vm1552_vm1, %v17503_v22 }
 0x2aa   : > { %14349 = vmatpush3.bf16.msra.mxu1 %v17505_v6  ;;  %14350 = vmatprep.mubr.msk.bf16.mxu1 %vm16701_vm0, %v22017_v55 }
 0x2ab   : > { %14360 = vmatprep.subr.bf16.mxu1 %v22017_v55 }
 0x2f1   : > { %v1593_v5 = vpop.f32.mrf.mxu1 }
 0x2f2   : > { %v2305_v19 = vmul.f32 0.17677669, %v1593_v5 }
 0x2f3   : > { %v14250_v39 = vpop.f32.mrf.mxu1 }
 0x2f4   : > { %v17519_v15 = vadd.f32 %v2305_v19, %v17516_v52 }
 0x2f5   : > { %v1596_v24 = vpop.f32.mrf.mxu1 }
 0x2f6   : > { %v2306_v16 = vmul.f32 0.17677669, %v1596_v24  ;;  %v2370_v35 = vsel %vm2369_vm4, %v17519_v15, -inf }
 0x2f7   : > { %2371 = vmax.xlane.f32.xlu0 %v2370_v35  ;;  %v14251_v40 = vpop.f32.mrf.mxu1 }
 0x2f8   : > { %v17526_v59 = vadd.f32 %v2306_v16, %v17521_v50 }
 0x2f9   : > { %v1640_v51 = vpop.f32.mrf.mxu1 }
 0x2fa   : > { %v2307_v28 = vmul.f32 0.17677669, %v1640_v51  ;;  %v2373_v47 = vsel %vm2369_vm4, %v17526_v59, -inf }
 0x2fb   : > { %2374 = vmax.xlane.f32.xlu1 %v2373_v47  ;;  %v14256_v49 = vpop.f32.mrf.mxu1 }
 0x2fc   : > { %v17531_v12 = vadd.f32 %v2307_v28, %v17516_v52 }
 0x2fd   : > { %v1643_v5 = vpop.f32.mrf.mxu1 }
 0x2fe   : > { %v2308_v19 = vmul.f32 0.17677669, %v1643_v5  ;;  %v2376_v39 = vsel %vm2369_vm4, %v17531_v12, -inf }
 0x2ff   : > { %2377 = vmax.xlane.f32.xlu0 %v2376_v39  ;;  %v14257_v24 = vpop.f32.mrf.mxu1 }
 0x300   : > { %v17536_v16 = vadd.f32 %v2308_v19, %v17521_v50 }
 0x301   : > { %v1687_v35 = vpop.f32.mrf.mxu1 }
 0x302   : > { %v2309_v40 = vmul.f32 0.17677669, %v1687_v35  ;;  %v2379_v51 = vsel %vm2369_vm4, %v17536_v16, -inf }
 0x303   : > { %2380 = vmax.xlane.f32.xlu1 %v2379_v51  ;;  %v14262_v47 = vpop.f32.mrf.mxu1 }
 0x304   : > { %v17541_v28 = vadd.f32 %v2309_v40, %v17516_v52 }
 0x305   : > { %v1690_v49 = vpop.f32.mrf.mxu1 }
 0x306   : > { %v2310_v5 = vmul.f32 0.17677669, %v1690_v49  ;;  %v2382_v8 = vsel %vm2369_vm4, %v17541_v28, -inf }
 0x307   : > { %2383 = vmax.xlane.f32.xlu0 %v2382_v8  ;;  %v14263_v39 = vpop.f32.mrf.mxu1 }
 0x308   : > { %v17546_v19 = vadd.f32 %v2310_v5, %v17521_v50 }
 0x309   : > { %v1734_v24 = vpop.f32.mrf.mxu1 }
 0x30a   : > { %v2311_v35 = vmul.f32 0.17677669, %v1734_v24  ;;  %v2385_v6 = vsel %vm2369_vm4, %v17546_v19, -inf }
 0x30b   : > { %2386 = vmax.xlane.f32.xlu1 %v2385_v6  ;;  %v14268_v51 = vpop.f32.mrf.mxu1 }
 0x30c   : > { %v17551_v40 = vadd.f32 %v2311_v35, %v17516_v52 }
 0x30d   : > { %v1737_v47 = vpop.f32.mrf.mxu1 }
 0x30e   : > { %v2312_v49 = vmul.f32 0.17677669, %v1737_v47  ;;  %v2388_v42 = vsel %vm2369_vm4, %v17551_v40, -inf }
 0x30f   : > { %2389 = vmax.xlane.f32.xlu0 %v2388_v42  ;;  %v14269_v8 = vpop.f32.mrf.mxu1 }
 0x310   : > { %v17556_v5 = vadd.f32 %v2312_v49, %v17521_v50 }
 0x311   : > { %v1781_v39 = vpop.f32.mrf.mxu1 }
 0x312   : > { %v2313_v24 = vmul.f32 0.17677669, %v1781_v39  ;;  %v2391_v22 = vsel %vm2369_vm4, %v17556_v5, -inf }
 0x313   : > { %2392 = vmax.xlane.f32.xlu1 %v2391_v22  ;;  %v14274_v6 = vpop.f32.mrf.mxu1 }
 0x314   : > { %v17561_v35 = vadd.f32 %v2313_v24, %v17516_v52 }
 0x315   : > { %v1784_v51 = vpop.f32.mrf.mxu1 }
 0x316   : > { %v2314_v47 = vmul.f32 0.17677669, %v1784_v51  ;;  %v2394_v41 = vsel %vm2369_vm4, %v17561_v35, -inf }
 0x317   : > { %2395 = vmax.xlane.f32.xlu0 %v2394_v41  ;;  %v14275_v42 = vpop.f32.mrf.mxu1 }
 0x318   : > { %v17566_v49 = vadd.f32 %v2314_v47, %v17521_v50 }
 0x319   : > { %v1828_v8 = vpop.f32.mrf.mxu1 }
 0x31a   : > { %v2315_v39 = vmul.f32 0.17677669, %v1828_v8  ;;  %v2397_v3 = vsel %vm2369_vm4, %v17566_v49, -inf }
 0x31b   : > { %2398 = vmax.xlane.f32.xlu1 %v2397_v3  ;;  %v14280_v22 = vpop.f32.mrf.mxu1 }
 0x31c   : > { %v17571_v24 = vadd.f32 %v2315_v39, %v17516_v52 }
 0x31d   : > { %v1831_v6 = vpop.f32.mrf.mxu1 }
 0x31e   : > { %v2316_v51 = vmul.f32 0.17677669, %v1831_v6  ;;  %v2400_v30 = vsel %vm2369_vm4, %v17571_v24, -inf }
 0x31f   : > { %2401 = vmax.xlane.f32.xlu0 %v2400_v30  ;;  %v14281_v41 = vpop.f32.mrf.mxu1 }
 0x320   : > { %v17576_v47 = vadd.f32 %v2316_v51, %v17521_v50 }
 0x321   : > { %v1875_v42 = vpop.f32.mrf.mxu1 }
 0x322   : > { %v2317_v8 = vmul.f32 0.17677669, %v1875_v42  ;;  %v2403_v1 = vsel %vm2369_vm4, %v17576_v47, -inf }
 0x323   : > { %2404 = vmax.xlane.f32.xlu1 %v2403_v1  ;;  %v14286_v3 = vpop.f32.mrf.mxu1 }
 0x324   : > { %v17581_v39 = vadd.f32 %v2317_v8, %v17516_v52 }
 0x325   : > { %v1878_v22 = vpop.f32.mrf.mxu1 }
 0x326   : > { %v2318_v6 = vmul.f32 0.17677669, %v1878_v22  ;;  %v2406_v13 = vsel %vm2369_vm4, %v17581_v39, -inf }
 0x327   : > { %2407 = vmax.xlane.f32.xlu0 %v2406_v13  ;;  %v14287_v30 = vpop.f32.mrf.mxu1 }
 0x328   : > { %v17586_v51 = vadd.f32 %v2318_v6, %v17521_v50 }
 0x329   : > { %v1922_v41 = vpop.f32.mrf.mxu1 }
 0x32a   : > { %v2319_v42 = vmul.f32 0.17677669, %v1922_v41  ;;  %v2409_v48 = vsel %vm2369_vm4, %v17586_v51, -inf }
 0x32b   : > { %2410 = vmax.xlane.f32.xlu1 %v2409_v48  ;;  %v14292_v1 = vpop.f32.mrf.mxu1 }
 0x32c   : > { %v17591_v8 = vadd.f32 %v2319_v42, %v17516_v52 }
 0x32d   : > { %v1925_v3 = vpop.f32.mrf.mxu1 }
 0x32e   : > { %v2320_v22 = vmul.f32 0.17677669, %v1925_v3  ;;  %v2412_v17 = vsel %vm2369_vm4, %v17591_v8, -inf }
 0x32f   : > { %2413 = vmax.xlane.f32.xlu0 %v2412_v17  ;;  %v14293_v13 = vpop.f32.mrf.mxu1 }
 0x330   : > { %v17596_v6 = vadd.f32 %v2320_v22, %v17521_v50 }
 0x331   : > { %v1969_v30 = vpop.f32.mrf.mxu0 }
 0x332   : > { %v2321_v41 = vmul.f32 0.17677669, %v1969_v30  ;;  %v2415_v37 = vsel %vm2369_vm4, %v17596_v6, -inf }
 0x333   : > { %2416 = vmax.xlane.f32.xlu1 %v2415_v37  ;;  %v14298_v48 = vpop.f32.mrf.mxu0 }
 0x334   : > { %v17601_v42 = vadd.f32 %v2321_v41, %v17516_v52 }
 0x335   : > { %v1972_v1 = vpop.f32.mrf.mxu0 }
 0x336   : > { %v2322_v3 = vmul.f32 0.17677669, %v1972_v1  ;;  %v2418_v21 = vsel %vm2369_vm4, %v17601_v42, -inf }
 0x337   : > { %2419 = vmax.xlane.f32.xlu0 %v2418_v21  ;;  %v14299_v17 = vpop.f32.mrf.mxu0 }
 0x338   : > { %v17606_v22 = vadd.f32 %v2322_v3, %v17521_v50 }
 0x339   : > { %v2016_v13 = vpop.f32.mrf.mxu1 }
 0x33a   : > { %v2323_v30 = vmul.f32 0.17677669, %v2016_v13  ;;  %v2421_v56 = vsel %vm2369_vm4, %v17606_v22, -inf }
 0x33b   : > { %v14304_v37 = vpop.f32.mrf.mxu1  ;;  %2422 = vmax.xlane.f32.xlu1 %v2421_v56 }
 0x33c   : > { %v17611_v41 = vadd.f32 %v2323_v30, %v17516_v52 }
 0x33d   : > { %v2019_v48 = vpop.f32.mrf.mxu1 }
 0x33e   : > { %v2324_v1 = vmul.f32 0.17677669, %v2019_v48  ;;  %v2424_v27 = vsel %vm2369_vm4, %v17611_v41, -inf }
 0x33f   : > { %v14305_v21 = vpop.f32.mrf.mxu1  ;;  %2425 = vmax.xlane.f32.xlu0 %v2424_v27 }
 0x340   : > { %v17616_v3 = vadd.f32 %v2324_v1, %v17521_v50 }
 0x341   : > { %v2063_v17 = vpop.f32.mrf.mxu0 }
 0x342   : > { %v2325_v13 = vmul.f32 0.17677669, %v2063_v17  ;;  %v2427_v63 = vsel %vm2369_vm4, %v17616_v3, -inf }
 0x343   : > { %2428 = vmax.xlane.f32.xlu1 %v2427_v63  ;;  %v14310_v56 = vpop.f32.mrf.mxu0 }
 0x344   : > { %v17621_v30 = vadd.f32 %v2325_v13, %v17516_v52 }
 0x345   : > { %v2066_v37 = vpop.f32.mrf.mxu0 }
 0x346   : > { %v2326_v48 = vmul.f32 0.17677669, %v2066_v37  ;;  %v2430_v29 = vsel %vm2369_vm4, %v17621_v30, -inf }
 0x347   : > { %2431 = vmax.xlane.f32.xlu0 %v2430_v29  ;;  %v14311_v27 = vpop.f32.mrf.mxu0 }
 0x348   : > { %v17626_v1 = vadd.f32 %v2326_v48, %v17521_v50 }
 0x349   : > { %v2110_v21 = vpop.f32.mrf.mxu1 }
 0x34a   : > { %v2327_v17 = vmul.f32 0.17677669, %v2110_v21  ;;  %v2433_v36 = vsel %vm2369_vm4, %v17626_v1, -inf }
 0x34b   : > { %v14316_v63 = vpop.f32.mrf.mxu1  ;;  %2434 = vmax.xlane.f32.xlu1 %v2433_v36 }
 0x34c   : > { %v17631_v13 = vadd.f32 %v2327_v17, %v17516_v52 }
 0x34d   : > { %v2113_v56 = vpop.f32.mrf.mxu1 }
 0x34e   : > { %v2328_v37 = vmul.f32 0.17677669, %v2113_v56  ;;  %v2436_v34 = vsel %vm2369_vm4, %v17631_v13, -inf }
 0x34f   : > { %v14317_v29 = vpop.f32.mrf.mxu1  ;;  %2437 = vmax.xlane.f32.xlu0 %v2436_v34 }
 0x350   : > { %v17636_v48 = vadd.f32 %v2328_v37, %v17521_v50 }
 0x351   : > { %v2157_v27 = vpop.f32.mrf.mxu0 }
 0x352   : > { %v2329_v21 = vmul.f32 0.17677669, %v2157_v27  ;;  %v2439_v58 = vsel %vm2369_vm4, %v17636_v48, -inf }
 0x353   : > { %2440 = vmax.xlane.f32.xlu1 %v2439_v58  ;;  %v14322_v36 = vpop.f32.mrf.mxu0 }
 0x354   : > { %v17641_v17 = vadd.f32 %v2329_v21, %v17516_v52 }
 0x355   : > { %v2160_v63 = vpop.f32.mrf.mxu0 }
 0x356   : > { %v2330_v56 = vmul.f32 0.17677669, %v2160_v63  ;;  %v2442_v46 = vsel %vm2369_vm4, %v17641_v17, -inf }
 0x357   : > { %2443 = vmax.xlane.f32.xlu0 %v2442_v46  ;;  %v14323_v34 = vpop.f32.mrf.mxu0 }
 0x358   : > { %v17646_v37 = vadd.f32 %v2330_v56, %v17521_v50 }
 0x359   : > { %v2204_v29 = vpop.f32.mrf.mxu1 }
 0x35a   : > { %v2331_v27 = vmul.f32 0.17677669, %v2204_v29  ;;  %v2445_v60 = vsel %vm2369_vm4, %v17646_v37, -inf }
 0x35b   : > { %v14328_v58 = vpop.f32.mrf.mxu1  ;;  %2446 = vmax.xlane.f32.xlu1 %v2445_v60 }
 0x35c   : > { %v17651_v21 = vadd.f32 %v2331_v27, %v17516_v52 }
 0x35d   : > { %v2207_v36 = vpop.f32.mrf.mxu1 }
 0x35e   : > { %v2332_v63 = vmul.f32 0.17677669, %v2207_v36  ;;  %v2448_v9 = vsel %vm2369_vm4, %v17651_v21, -inf }
 0x35f   : > { %v14329_v46 = vpop.f32.mrf.mxu1  ;;  %2449 = vmax.xlane.f32.xlu0 %v2448_v9 }
 0x360   : > { %v17656_v56 = vadd.f32 %v2332_v63, %v17521_v50 }
 0x361   : > { %v2251_v34 = vpop.f32.mrf.mxu0 }
 0x362   : > { %v2333_v29 = vmul.f32 0.17677669, %v2251_v34  ;;  %v2451_v31 = vsel %vm2369_vm4, %v17656_v56, -inf }
 0x363   : > { %2452 = vmax.xlane.f32.xlu1 %v2451_v31  ;;  %v14334_v60 = vpop.f32.mrf.mxu0 }
 0x364   : > { %v17661_v27 = vadd.f32 %v2333_v29, %v17516_v52 }
 0x365   : > { %v2254_v58 = vpop.f32.mrf.mxu0 }
 0x366   : > { %v2334_v36 = vmul.f32 0.17677669, %v2254_v58  ;;  %v2454_v54 = vsel %vm2369_vm4, %v17661_v27, -inf }
 0x367   : > { %2455 = vmax.xlane.f32.xlu0 %v2454_v54  ;;  %v14335_v9 = vpop.f32.mrf.mxu0 }
 0x368   : > { %v17666_v63 = vadd.f32 %v2334_v36, %v17521_v50 }
 0x369   : > { %v2298_v46 = vpop.f32.mrf.mxu1 }
 0x36a   : > { %v2335_v34 = vmul.f32 0.17677669, %v2298_v46  ;;  %v2457_v2 = vsel %vm2369_vm4, %v17666_v63, -inf }
 0x36b   : > { %v14340_v31 = vpop.f32.mrf.mxu1  ;;  %2458 = vmax.xlane.f32.xlu1 %v2457_v2 }
 0x36c   : > { %v17671_v29 = vadd.f32 %v2335_v34, %v17516_v52 }
 0x36d   : > { %v2301_v60 = vpop.f32.mrf.mxu1 }
 0x36e   : > { %v2336_v58 = vmul.f32 0.17677669, %v2301_v60  ;;  %v2460_v7 = vsel %vm2369_vm4, %v17671_v29, -inf }
 0x36f   : > { %v14341_v54 = vpop.f32.mrf.mxu1  ;;  %2461 = vmax.xlane.f32.xlu0 %v2460_v7 }
 0x370   : > { %v17676_v36 = vadd.f32 %v2336_v58, %v17521_v50 }
 0x372   : > { %v2463_v9 = vsel %vm2369_vm4, %v17676_v36, -inf }
 0x373   : > { %2464 = vmax.xlane.f32.xlu1 %v2463_v9 }
 0x380   : > { %v2372_v46 = vpop.xlane.xlu0 %2371 }
 0x381   : > { %v2466_v2 = vsub.f32 %v17519_v15, %v2372_v46 }
 0x383   : > { %v2498_v31 = vmul.f32 1.442695, %v2466_v2 }
 0x384   : > { %v2375_v34 = vpop.xlane.xlu1 %2374 }
 0x385   : > { %15723 = vpow2.f32 %v2498_v31  ;;  %v2467_v60 = vsub.f32 %v17526_v59, %v2375_v34 }
 0x387   : > { %v2500_v52 = vmul.f32 1.442695, %v2467_v60 }
 0x388   : > { %v2378_v25 = vpop.xlane.xlu0 %2377 }
 0x389   : > { %15725 = vpow2.f32 %v2500_v52  ;;  %v2468_v7 = vsub.f32 %v17531_v12, %v2378_v25 }
 0x38b   : > { %v2502_v54 = vmul.f32 1.442695, %v2468_v7 }
 0x38c   : > { %v2381_v58 = vpop.xlane.xlu1 %2380 }
 0x38d   : > { %15727 = vpow2.f32 %v2502_v54  ;;  %v2469_v50 = vsub.f32 %v17536_v16, %v2381_v58 }
 0x38f   : > { %v2504_v45 = vmul.f32 1.442695, %v2469_v50 }
 0x390   : > { %v2384_v9 = vpop.xlane.xlu0 %2383 }
 0x391   : > { %15729 = vpow2.f32 %v2504_v45  ;;  %v2470_v15 = vsub.f32 %v17541_v28, %v2384_v9 }
 0x392   : > { %v17685_v46 = vpop.eup %15723 }
 0x393   : > { %v2506_v2 = vmul.f32 1.442695, %v2470_v15  ;;  %v2562_v59 = vsel %vm2369_vm4, %v17685_v46, 0.0 }
 0x394   : > { %v2387_v31 = vpop.xlane.xlu1 %2386  ;;  %2563 = vadd.xlane.f32.xlu0 %v2562_v59 }
 0x395   : > { %15731 = vpow2.f32 %v2506_v2  ;;  %v2471_v25 = vsub.f32 %v17546_v19, %v2387_v31 }
 0x396   : > { %v17690_v52 = vpop.eup %15725 }
 0x397   : > { %v2508_v12 = vmul.f32 1.442695, %v2471_v25  ;;  %v2565_v50 = vsel %vm2369_vm4, %v17690_v52, 0.0 }
 0x398   : > { %v2390_v45 = vpop.xlane.xlu0 %2389  ;;  %2566 = vadd.xlane.f32.xlu1 %v2565_v50 }
 0x399   : > { %15733 = vpow2.f32 %v2508_v12  ;;  %v2472_v16 = vsub.f32 %v17551_v40, %v2390_v45 }
 0x39a   : > { %v17695_v28 = vpop.eup %15727 }
 0x39b   : > { %v2510_v34 = vmul.f32 1.442695, %v2472_v16  ;;  %v2568_v60 = vsel %vm2369_vm4, %v17695_v28, 0.0 }
 0x39c   : > { %v2393_v7 = vpop.xlane.xlu1 %2392  ;;  %2569 = vadd.xlane.f32.xlu0 %v2568_v60 }
 0x39d   : > { %15735 = vpow2.f32 %v2510_v34  ;;  %v2473_v19 = vsub.f32 %v17556_v5, %v2393_v7 }
 0x39e   : > { %v17700_v54 = vpop.eup %15729 }
 0x39f   : > { %v2512_v58 = vmul.f32 1.442695, %v2473_v19  ;;  %v2571_v9 = vsel %vm2369_vm4, %v17700_v54, 0.0 }
 0x3a0   : > { %v2396_v15 = vpop.xlane.xlu0 %2395  ;;  %2572 = vadd.xlane.f32.xlu1 %v2571_v9 }
 0x3a1   : > { %15737 = vpow2.f32 %v2512_v58  ;;  %v2474_v40 = vsub.f32 %v17561_v35, %v2396_v15 }
 0x3a2   : > { %v17705_v2 = vpop.eup %15731 }
 0x3a3   : > { %v2514_v59 = vmul.f32 1.442695, %v2474_v40  ;;  %v2574_v31 = vsel %vm2369_vm4, %v17705_v2, 0.0 }
 0x3a4   : > { %v2399_v25 = vpop.xlane.xlu1 %2398  ;;  %2575 = vadd.xlane.f32.xlu0 %v2574_v31 }
 0x3a5   : > { %15739 = vpow2.f32 %v2514_v59  ;;  %v2475_v5 = vsub.f32 %v17566_v49, %v2399_v25 }
 0x3a6   : > { %v17710_v12 = vpop.eup %15733 }
 0x3a7   : > { %v2516_v50 = vmul.f32 1.442695, %v2475_v5  ;;  %v2577_v45 = vsel %vm2369_vm4, %v17710_v12, 0.0 }
 0x3a8   : > { %v2402_v16 = vpop.xlane.xlu0 %2401  ;;  %2578 = vadd.xlane.f32.xlu1 %v2577_v45 }
 0x3a9   : > { %15741 = vpow2.f32 %v2516_v50  ;;  %v2476_v35 = vsub.f32 %v17571_v24, %v2402_v16 }
 0x3aa   : > { %v17715_v34 = vpop.eup %15735 }
 0x3ab   : > { %v2518_v60 = vmul.f32 1.442695, %v2476_v35  ;;  %v2580_v7 = vsel %vm2369_vm4, %v17715_v34, 0.0 }
 0x3ac   : > { %v2405_v19 = vpop.xlane.xlu1 %2404  ;;  %2581 = vadd.xlane.f32.xlu0 %v2580_v7 }
 0x3ad   : > { %15743 = vpow2.f32 %v2518_v60  ;;  %v2477_v49 = vsub.f32 %v17576_v47, %v2405_v19 }
 0x3ae   : > { %v17720_v58 = vpop.eup %15737 }
 0x3af   : > { %v2520_v9 = vmul.f32 1.442695, %v2477_v49  ;;  %v2583_v15 = vsel %vm2369_vm4, %v17720_v58, 0.0 }
 0x3b0   : > { %v2408_v40 = vpop.xlane.xlu0 %2407  ;;  %2584 = vadd.xlane.f32.xlu1 %v2583_v15 }
 0x3b1   : > { %15745 = vpow2.f32 %v2520_v9  ;;  %v2478_v24 = vsub.f32 %v17581_v39, %v2408_v40 }
 0x3b2   : > { %v17725_v59 = vpop.eup %15739 }
 0x3b3   : > { %v2522_v31 = vmul.f32 1.442695, %v2478_v24  ;;  %v2586_v25 = vsel %vm2369_vm4, %v17725_v59, 0.0 }
 0x3b4   : > { %v2411_v5 = vpop.xlane.xlu1 %2410  ;;  %2587 = vadd.xlane.f32.xlu0 %v2586_v25 }
 0x3b5   : > { %15747 = vpow2.f32 %v2522_v31  ;;  %v2479_v47 = vsub.f32 %v17586_v51, %v2411_v5 }
 0x3b6   : > { %v17730_v50 = vpop.eup %15741 }
 0x3b7   : > { %v2524_v45 = vmul.f32 1.442695, %v2479_v47  ;;  %v2589_v16 = vsel %vm2369_vm4, %v17730_v50, 0.0 }
 0x3b8   : > { %v2414_v35 = vpop.xlane.xlu0 %2413  ;;  %2590 = vadd.xlane.f32.xlu1 %v2589_v16 }
 0x3b9   : > { %15749 = vpow2.f32 %v2524_v45  ;;  %v2480_v39 = vsub.f32 %v17591_v8, %v2414_v35 }
 0x3ba   : > { %v17735_v60 = vpop.eup %15743 }
 0x3bb   : > { %v2526_v7 = vmul.f32 1.442695, %v2480_v39  ;;  %v2592_v19 = vsel %vm2369_vm4, %v17735_v60, 0.0 }
 0x3bc   : > { %v2417_v49 = vpop.xlane.xlu1 %2416  ;;  %2593 = vadd.xlane.f32.xlu0 %v2592_v19 }
 0x3bd   : > { %15751 = vpow2.f32 %v2526_v7  ;;  %v2481_v51 = vsub.f32 %v17596_v6, %v2417_v49 }
 0x3be   : > { %v17740_v9 = vpop.eup %15745 }
 0x3bf   : > { %v2528_v15 = vmul.f32 1.442695, %v2481_v51  ;;  %v2595_v40 = vsel %vm2369_vm4, %v17740_v9, 0.0 }
 0x3c0   : > { %v2420_v24 = vpop.xlane.xlu0 %2419  ;;  %2596 = vadd.xlane.f32.xlu1 %v2595_v40 }
 0x3c1   : > { %15753 = vpow2.f32 %v2528_v15  ;;  %v2482_v8 = vsub.f32 %v17601_v42, %v2420_v24 }
 0x3c2   : > { %v17745_v31 = vpop.eup %15747 }
 0x3c3   : > { %v2530_v25 = vmul.f32 1.442695, %v2482_v8  ;;  %v2598_v5 = vsel %vm2369_vm4, %v17745_v31, 0.0 }
 0x3c4   : > { %v2423_v47 = vpop.xlane.xlu1 %2422  ;;  %2599 = vadd.xlane.f32.xlu0 %v2598_v5 }
 0x3c5   : > { %15755 = vpow2.f32 %v2530_v25  ;;  %v2483_v6 = vsub.f32 %v17606_v22, %v2423_v47 }
 0x3c6   : > { %v17750_v45 = vpop.eup %15749 }
 0x3c7   : > { %v2532_v16 = vmul.f32 1.442695, %v2483_v6  ;;  %v2601_v35 = vsel %vm2369_vm4, %v17750_v45, 0.0 }
 0x3c8   : > { %v2426_v39 = vpop.xlane.xlu0 %2425  ;;  %2602 = vadd.xlane.f32.xlu1 %v2601_v35 }
 0x3c9   : > { %15757 = vpow2.f32 %v2532_v16  ;;  %v2484_v42 = vsub.f32 %v17611_v41, %v2426_v39 }
 0x3ca   : > { %v17755_v7 = vpop.eup %15751 }
 0x3cb   : > { %v2534_v19 = vmul.f32 1.442695, %v2484_v42  ;;  %v2604_v49 = vsel %vm2369_vm4, %v17755_v7, 0.0 }
 0x3cc   : > { %v2429_v51 = vpop.xlane.xlu1 %2428  ;;  %2605 = vadd.xlane.f32.xlu0 %v2604_v49 }
 0x3cd   : > { %15759 = vpow2.f32 %v2534_v19  ;;  %v2485_v22 = vsub.f32 %v17616_v3, %v2429_v51 }
 0x3ce   : > { %v17760_v15 = vpop.eup %15753 }
 0x3cf   : > { %v2536_v40 = vmul.f32 1.442695, %v2485_v22  ;;  %v2607_v24 = vsel %vm2369_vm4, %v17760_v15, 0.0 }
 0x3d0   : > { %v2432_v8 = vpop.xlane.xlu0 %2431  ;;  %2608 = vadd.xlane.f32.xlu1 %v2607_v24 }
 0x3d1   : > { %15761 = vpow2.f32 %v2536_v40  ;;  %v2486_v41 = vsub.f32 %v17621_v30, %v2432_v8 }
 0x3d2   : > { %v17765_v25 = vpop.eup %15755 }
 0x3d3   : > { %v2538_v5 = vmul.f32 1.442695, %v2486_v41  ;;  %v2610_v47 = vsel %vm2369_vm4, %v17765_v25, 0.0 }
 0x3d4   : > { %v2435_v6 = vpop.xlane.xlu1 %2434  ;;  %2611 = vadd.xlane.f32.xlu0 %v2610_v47 }
 0x3d5   : > { %15763 = vpow2.f32 %v2538_v5  ;;  %v2487_v3 = vsub.f32 %v17626_v1, %v2435_v6 }
 0x3d6   : > { %v17770_v16 = vpop.eup %15757 }
 0x3d7   : > { %v2540_v35 = vmul.f32 1.442695, %v2487_v3  ;;  %v2613_v39 = vsel %vm2369_vm4, %v17770_v16, 0.0 }
 0x3d8   : > { %v2438_v42 = vpop.xlane.xlu0 %2437  ;;  %2614 = vadd.xlane.f32.xlu1 %v2613_v39 }
 0x3d9   : > { %15765 = vpow2.f32 %v2540_v35  ;;  %v2488_v30 = vsub.f32 %v17631_v13, %v2438_v42 }
 0x3da   : > { %v17775_v19 = vpop.eup %15759 }
 0x3db   : > { %v2542_v49 = vmul.f32 1.442695, %v2488_v30  ;;  %v2616_v51 = vsel %vm2369_vm4, %v17775_v19, 0.0 }
 0x3dc   : > { %v2441_v22 = vpop.xlane.xlu1 %2440  ;;  %2617 = vadd.xlane.f32.xlu0 %v2616_v51 }
 0x3dd   : > { %15767 = vpow2.f32 %v2542_v49  ;;  %v2489_v1 = vsub.f32 %v17636_v48, %v2441_v22 }
 0x3de   : > { %v17780_v40 = vpop.eup %15761 }
 0x3df   : > { %v2544_v24 = vmul.f32 1.442695, %v2489_v1  ;;  %v2619_v8 = vsel %vm2369_vm4, %v17780_v40, 0.0 }
 0x3e0   : > { %v2444_v41 = vpop.xlane.xlu0 %2443  ;;  %2620 = vadd.xlane.f32.xlu1 %v2619_v8 }
 0x3e1   : > { %15769 = vpow2.f32 %v2544_v24  ;;  %v2490_v13 = vsub.f32 %v17641_v17, %v2444_v41 }
 0x3e2   : > { %v17785_v5 = vpop.eup %15763 }
 0x3e3   : > { %v2546_v47 = vmul.f32 1.442695, %v2490_v13  ;;  %v2622_v6 = vsel %vm2369_vm4, %v17785_v5, 0.0 }
 0x3e4   : > { %v2447_v3 = vpop.xlane.xlu1 %2446  ;;  %2623 = vadd.xlane.f32.xlu0 %v2622_v6 }
 0x3e5   : > { %15771 = vpow2.f32 %v2546_v47  ;;  %v2491_v48 = vsub.f32 %v17646_v37, %v2447_v3 }
 0x3e6   : > { %v17790_v35 = vpop.eup %15765 }
 0x3e7   : > { %v2548_v39 = vmul.f32 1.442695, %v2491_v48  ;;  %v2625_v42 = vsel %vm2369_vm4, %v17790_v35, 0.0 }
 0x3e8   : > { %v2450_v30 = vpop.xlane.xlu0 %2449  ;;  %2626 = vadd.xlane.f32.xlu1 %v2625_v42 }
 0x3e9   : > { %15773 = vpow2.f32 %v2548_v39  ;;  %v2492_v17 = vsub.f32 %v17651_v21, %v2450_v30 }
 0x3ea   : > { %v17795_v49 = vpop.eup %15767 }
 0x3eb   : > { %v2550_v51 = vmul.f32 1.442695, %v2492_v17  ;;  %v2628_v22 = vsel %vm2369_vm4, %v17795_v49, 0.0 }
 0x3ec   : > { %v2453_v1 = vpop.xlane.xlu1 %2452  ;;  %2629 = vadd.xlane.f32.xlu0 %v2628_v22 }
 0x3ed   : > { %15775 = vpow2.f32 %v2550_v51  ;;  %v2493_v37 = vsub.f32 %v17656_v56, %v2453_v1 }
 0x3ee   : > { %v17800_v24 = vpop.eup %15769 }
 0x3ef   : > { %v2552_v8 = vmul.f32 1.442695, %v2493_v37  ;;  %v2631_v41 = vsel %vm2369_vm4, %v17800_v24, 0.0 }
 0x3f0   : > { %v2456_v13 = vpop.xlane.xlu0 %2455  ;;  %2632 = vadd.xlane.f32.xlu1 %v2631_v41 }
 0x3f1   : > { %15777 = vpow2.f32 %v2552_v8  ;;  %v2494_v21 = vsub.f32 %v17661_v27, %v2456_v13 }
 0x3f2   : > { %v17805_v47 = vpop.eup %15771 }
 0x3f3   : > { %v2554_v6 = vmul.f32 1.442695, %v2494_v21  ;;  %v2634_v3 = vsel %vm2369_vm4, %v17805_v47, 0.0 }
 0x3f4   : > { %2635 = vadd.xlane.f32.xlu0 %v2634_v3  ;;  %v2459_v48 = vpop.xlane.xlu1 %2458 }
 0x3f5   : > { %15779 = vpow2.f32 %v2554_v6  ;;  %v2495_v56 = vsub.f32 %v17666_v63, %v2459_v48 }
 0x3f6   : > { %v17810_v39 = vpop.eup %15773 }
 0x3f7   : > { %v2556_v42 = vmul.f32 1.442695, %v2495_v56  ;;  %v2637_v30 = vsel %vm2369_vm4, %v17810_v39, 0.0 }
 0x3f8   : > { %v2462_v17 = vpop.xlane.xlu0 %2461  ;;  %2638 = vadd.xlane.f32.xlu1 %v2637_v30 }
 0x3f9   : > { %15781 = vpow2.f32 %v2556_v42  ;;  %v2496_v27 = vsub.f32 %v17671_v29, %v2462_v17 }
 0x3fa   : > { %v17815_v51 = vpop.eup %15775 }
 0x3fb   : > { %v2558_v22 = vmul.f32 1.442695, %v2496_v27  ;;  %v2640_v1 = vsel %vm2369_vm4, %v17815_v51, 0.0 }
 0x3fc   : > { %2641 = vadd.xlane.f32.xlu0 %v2640_v1  ;;  %v2465_v3 = vpop.xlane.xlu1 %2464 }
 0x3fd   : > { %15783 = vpow2.f32 %v2558_v22  ;;  %v2497_v30 = vsub.f32 %v17676_v36, %v2465_v3 }
 0x3fe   : > { %v17819_v63 = vpop.eup %15777 }
 0x3ff   : > { %v2643_v37 = vsel %vm2369_vm4, %v17819_v63, 0.0  ;;  %v2560_v27 = vmul.f32 1.442695, %v2497_v30 }
 0x400   : > { %2644 = vadd.xlane.f32.xlu1 %v2643_v37 }
 0x402   : > { %v17823_v8 = vpop.eup %15779 }
 0x403   : > { %v2646_v41 = vsel %vm2369_vm4, %v17823_v8, 0.0 }
 0x404   : > { %2647 = vadd.xlane.f32.xlu0 %v2646_v41 }
 0x406   : > { %v17827_v29 = vpop.eup %15781 }
 0x407   : > { %v2649_v13 = vsel %vm2369_vm4, %v17827_v29, 0.0 }
 0x408   : > { %2650 = vadd.xlane.f32.xlu1 %v2649_v13 }
 0x40a   : > { %v17831_v21 = vpop.eup %15783 }
 0x40b   : > { %v2652_v6 = vsel %vm2369_vm4, %v17831_v21, 0.0 }
 0x40c   : > { %2653 = vadd.xlane.f32.xlu0 %v2652_v6 }
 0x419   : > { %3499 = vrot.lane.b32.xlu1 %v17216_v38, %s16703_s2 }
 0x41d   : > { %v2564_v48 = vpop.xlane.xlu0 %2563  ;;  %3443 = vrot.lane.b32.xlu1 %v17214_v61, %s16703_s2 }
 0x41e   : > { %15785 = vrcp.f32 %v2564_v48 }
 0x421   : > { %v2567_v56 = vpop.xlane.xlu1 %2566 }
 0x422   : > { %15787 = vrcp.f32 %v2567_v56  ;;  %3446 = vrot.lane.b32.xlu0 %v17193_v14, %s16703_s2 }
 0x425   : > { %v2570_v42 = vpop.xlane.xlu0 %2569 }
 0x426   : > { %3496 = vrot.lane.b32.xlu0 %v17237_v23, %s16703_s2  ;;  %15789 = vrcp.f32 %v2570_v42 }
 0x429   : > { %v2573_v17 = vpop.xlane.xlu1 %2572 }
 0x42a   : > { %15791 = vrcp.f32 %v2573_v17  ;;  %3549 = vrot.lane.b32.xlu0 %v17260_v53, %s16703_s2 }
 0x42b   : > { %v15786_v22 = vpop.eup %15785  ;;  %15793 = vpow2.f32 %v2560_v27 }
 0x42c   : > { %v2690_v41 = vmul.f32 %v15786_v22, %v17685_v46 }
 0x42d   : > { %v2576_v1 = vpop.xlane.xlu0 %2575 }
 0x42e   : > { %3602 = vrot.lane.b32.xlu0 %v17283_v10, %s16703_s2  ;;  %15795 = vrcp.f32 %v2576_v1 }
 0x42f   : > { %v15788_v37 = vpop.eup %15787 }
 0x430   : > { %v2691_v13 = vmul.f32 %v15788_v37, %v17690_v52 }
 0x431   : > { %v2579_v36 = vpop.xlane.xlu1 %2578 }
 0x432   : > { %15797 = vrcp.f32 %v2579_v36  ;;  %3655 = vrot.lane.b32.xlu0 %v17306_v57, %s16703_s2  ;;  %v2722_v6 = vpack.c.bf16 %v2691_v13, %v2690_v41 }
 0x433   : > { %v15790_v3 = vpop.eup %15789 }
 0x434   : > { %14345 = vmatmul.mubr.msk.bf16.vlgmr.msra.gmra.mxu0 %vm2369_vm4, %v2722_v6  ;;  %v2692_v52 = vmul.f32 %v15790_v3, %v17695_v28 }
 0x435   : > { %14355 = vmatpush3.bf16.msra.mxu0 %v17230_v18  ;;  %v2582_v48 = vpop.xlane.xlu0 %2581  ;;  %14356 = vmatprep.mubr.msk.bf16.mxu0 %vm16701_vm0, %v22017_v55 }
 0x436   : > { %3708 = vrot.lane.b32.xlu0 %v17329_v44, %s16703_s2  ;;  %14366 = vmatprep.subr.bf16.mxu0 %v22017_v55  ;;  %15799 = vrcp.f32 %v2582_v48 }
 0x437   : > { %v15792_v46 = vpop.eup %15791 }
 0x438   : > { %v2693_v56 = vmul.f32 %v15792_v46, %v17700_v54  ;;  %v17863_v17 = vpop.eup %15793 }
 0x439   : > { %v2585_v42 = vpop.xlane.xlu1 %2584  ;;  %v2655_v54 = vsel %vm2369_vm4, %v17863_v17, 0.0 }
 0x43a   : > { %15801 = vrcp.f32 %v2585_v42  ;;  %3761 = vrot.lane.b32.xlu0 %v17352_v11, %s16703_s2  ;;  %v2723_v30 = vpack.c.bf16 %v2693_v56, %v2692_v52 }
 0x43b   : > { %v15796_v27 = vpop.eup %15795 }
 0x43c   : > { %14351 = vmatmul.mubr.msk.bf16.vlgmr.msra.gmra.mxu1 %vm2369_vm4, %v2723_v30  ;;  %v2694_v1 = vmul.f32 %v15796_v27, %v17705_v2  ;;  %v22026_v27 = vld [vmem:[#allocation40_spill] sm:$0xff] }
 0x43d   : > { %14361 = vmatpush3.bf16.msra.mxu1 %v17223_v4  ;;  %v2588_v22 = vpop.xlane.xlu0 %2587  ;;  %14362 = vmatprep.mubr.msk.bf16.mxu1 %vm16701_vm0, %v22017_v55 }
 0x43e   : > { %3814 = vrot.lane.b32.xlu0 %v17373_v62, %s16703_s2  ;;  %14372 = vmatprep.subr.bf16.mxu1 %v22017_v55  ;;  %15803 = vrcp.f32 %v2588_v22  ;;  %v22027_v22 = vld [vmem:[#allocation17_spill] sm:$0xff] }
 0x43f   : > { %v15798_v28 = vpop.eup %15797 }
 0x440   : > { %v2695_v37 = vmul.f32 %v15798_v28, %v17710_v12 }
 0x441   : > { %2656 = vadd.xlane.f32.xlu1 %v2655_v54  ;;  %v2591_v41 = vpop.xlane.xlu1 %2590 }
 0x442   : > { %15805 = vrcp.f32 %v2591_v41  ;;  %3867 = vrot.lane.b32.xlu0 %v17388_v26, %s16703_s2  ;;  %v2724_v13 = vpack.c.bf16 %v2695_v37, %v2694_v1  ;;  %v22028_v1 = vld [vmem:[#allocation22_spill] sm:$0xff] }
 0x443   : > { %v15800_v36 = vpop.eup %15799 }
 0x444   : > { %14357 = vmatmul.mubr.msk.bf16.vlgmr.msra.gmra.mxu0 %vm2369_vm4, %v2724_v13  ;;  %v2696_v12 = vmul.f32 %v15800_v36, %v17715_v34 }
 0x445   : > { %14367 = vmatpush3.bf16.msra.mxu0 %v17253_v0  ;;  %v2594_v6 = vpop.xlane.xlu0 %2593  ;;  %14368 = vmatprep.mubr.msk.bf16.mxu0 %vm16701_vm0, %v22017_v55 }
 0x446   : > { %3920 = vrot.lane.b32.xlu0 %v17403_v32, %s16703_s2  ;;  %14378 = vmatprep.subr.bf16.mxu0 %v22017_v55  ;;  %15807 = vrcp.f32 %v2594_v6 }
 0x447   : > { %v15802_v2 = vpop.eup %15801 }
 0x448   : > { %v2697_v3 = vmul.f32 %v15802_v2, %v17720_v58  ;;  %v22031_v2 = vld [vmem:[#allocation44_spill] sm:$0xff] }
 0x449   : > { %v2597_v48 = vpop.xlane.xlu1 %2596 }
 0x44a   : > { %15809 = vrcp.f32 %v2597_v48  ;;  %3973 = vrot.lane.b32.xlu0 %v17418_v20, %s16703_s2  ;;  %v2725_v46 = vpack.c.bf16 %v2697_v3, %v2696_v12  ;;  %v22032_v12 = vld [vmem:[#allocation23_spill] sm:$0xff] }
 0x44b   : > { %v15804_v52 = vpop.eup %15803 }
 0x44c   : > { %14363 = vmatmul.mubr.msk.bf16.vlgmr.msra.gmra.mxu1 %vm2369_vm4, %v2725_v46  ;;  %v2698_v58 = vmul.f32 %v15804_v52, %v17725_v59  ;;  %v22029_v59 = vld [vmem:[#allocation42_spill] sm:$0xff]  ;;  %v22033_v46 = vld [vmem:[#allocation21_spill] sm:$0xff] }
 0x44d   : > { %14373 = vmatpush3.bf16.msra.mxu1 %v17246_v33  ;;  %v2600_v56 = vpop.xlane.xlu0 %2599  ;;  %14374 = vmatprep.mubr.msk.bf16.mxu1 %vm16701_vm0, %v22017_v55 }
 0x44e   : > { %4026 = vrot.lane.b32.xlu0 %v17433_v43, %s16703_s2  ;;  %14384 = vmatprep.subr.bf16.mxu1 %v22017_v55  ;;  %15811 = vrcp.f32 %v2600_v56 }
 0x44f   : > { %v15806_v34 = vpop.eup %15805 }
 0x450   : > { %v2699_v42 = vmul.f32 %v15806_v34, %v17730_v50  ;;  %v22030_v50 = vld [vmem:[#allocation20_spill] sm:$0xff] }
 0x451   : > { %v2603_v30 = vpop.xlane.xlu1 %2602 }
 0x452   : > { %15813 = vrcp.f32 %v2603_v30  ;;  %4079 = vrot.lane.b32.xlu0 %v22026_v27, %s16703_s2  ;;  %3552 = vrot.lane.b32.xlu1 %v22027_v22, %s16703_s2  ;;  %v2726_v28 = vpack.c.bf16 %v2699_v42, %v2698_v58  ;;  %v22036_v30 = vld [vmem:[#allocation29_spill] sm:$0xff] }
 0x453   : > { %v15808_v54 = vpop.eup %15807 }
 0x454   : > { %14369 = vmatmul.mubr.msk.bf16.vlgmr.msra.gmra.mxu0 %vm2369_vm4, %v2726_v28  ;;  %v2700_v13 = vmul.f32 %v15808_v54, %v17735_v60  ;;  %v22034_v60 = vld [vmem:[#allocation46_spill] sm:$0xff] }
 0x455   : > { %14379 = vmatpush3.bf16.msra.mxu0 %v22028_v1  ;;  %v2606_v37 = vpop.xlane.xlu0 %2605  ;;  %14380 = vmatprep.mubr.msk.bf16.mxu0 %vm16701_vm0, %v22017_v55 }
 0x456   : > { %4132 = vrot.lane.b32.xlu0 %v22029_v59, %s16703_s2  ;;  %3605 = vrot.lane.b32.xlu1 %v22030_v50, %s16703_s2  ;;  %15815 = vrcp.f32 %v2606_v37  ;;  %v22037_v37 = vld [vmem:[#allocation25_spill] sm:$0xff] }
 0x457   : > { %v15810_v41 = vpop.eup %15809  ;;  %14390 = vmatprep.subr.bf16.mxu0 %v22017_v55 }
 0x458   : > { %v2701_v36 = vmul.f32 %v15810_v41, %v17740_v9  ;;  %v22035_v9 = vld [vmem:[#allocation26_spill] sm:$0xff] }
 0x459   : > { %v2609_v6 = vpop.xlane.xlu1 %2608 }
 0x45a   : > { %15817 = vrcp.f32 %v2609_v6  ;;  %4185 = vrot.lane.b32.xlu0 %v22031_v2, %s16703_s2  ;;  %3658 = vrot.lane.b32.xlu1 %v22032_v12, %s16703_s2  ;;  %v2727_v3 = vpack.c.bf16 %v2701_v36, %v2700_v13 }
 0x45b   : > { %v15812_v48 = vpop.eup %15811 }
 0x45c   : > { %14375 = vmatmul.mubr.msk.bf16.vlgmr.msra.gmra.mxu1 %vm2369_vm4, %v2727_v3  ;;  %v2702_v34 = vmul.f32 %v15812_v48, %v17745_v31  ;;  %v22038_v31 = vld [vmem:[#allocation32_spill] sm:$0xff]  ;;  %v22039_v3 = vld [vmem:[#allocation35_spill] sm:$0xff] }
 0x45d   : > { %14385 = vmatpush3.bf16.msra.mxu1 %v22033_v46  ;;  %v2612_v52 = vpop.xlane.xlu0 %2611  ;;  %14386 = vmatprep.mubr.msk.bf16.mxu1 %vm16701_vm0, %v22017_v55 }
 0x45e   : > { %4723 = vrot.lane.b32.xlu0 %v22034_v60, %s16703_s2  ;;  %3711 = vrot.lane.b32.xlu1 %v22035_v9, %s16703_s2  ;;  %15819 = vrcp.f32 %v2612_v52 }
 0x45f   : > { %v15814_v56 = vpop.eup %15813  ;;  %14396 = vmatprep.subr.bf16.mxu1 %v22017_v55 }
 0x460   : > { %v2703_v58 = vmul.f32 %v15814_v56, %v17750_v45  ;;  %v22040_v56 = vld [vmem:[#allocation24_spill] sm:$0xff] }
 0x461   : > { %v2615_v42 = vpop.xlane.xlu1 %2614 }
 0x462   : > { %15821 = vrcp.f32 %v2615_v42  ;;  %4819 = vrot.lane.b32.xlu0 %v17230_v18, %s16703_s2  ;;  %3764 = vrot.lane.b32.xlu1 %v22036_v30, %s16703_s2  ;;  %v2728_v28 = vpack.c.bf16 %v2703_v58, %v2702_v34 }
 0x463   : > { %v15816_v54 = vpop.eup %15815 }
 0x464   : > { %14381 = vmatmul.mubr.msk.bf16.vlgmr.msra.gmra.mxu0 %vm2369_vm4, %v2728_v28  ;;  %v2704_v13 = vmul.f32 %v15816_v54, %v17755_v7  ;;  %v22041_v7 = vld [vmem:[#allocation36_spill] sm:$0xff]  ;;  %v22042_v54 = vld [vmem:[#allocation31_spill] sm:$0xff] }
 0x465   : > { %14391 = vmatpush3.bf16.msra.mxu0 %v22037_v37  ;;  %v2618_v41 = vpop.xlane.xlu0 %2617  ;;  %14392 = vmatprep.mubr.msk.bf16.mxu0 %vm16701_vm0, %v22017_v55 }
 0x466   : > { %4915 = vrot.lane.b32.xlu0 %v17253_v0, %s16703_s2  ;;  %3817 = vrot.lane.b32.xlu1 %v22038_v31, %s16703_s2  ;;  %15823 = vrcp.f32 %v2618_v41  ;;  %v22043_v41 = vld [vmem:[#allocation37_spill] sm:$0xff] }
 0x467   : > { %v15818_v45 = vpop.eup %15817  ;;  %14402 = vmatprep.subr.bf16.mxu0 %v22017_v55 }
 0x468   : > { %v2705_v36 = vmul.f32 %v15818_v45, %v17760_v15 }
 0x469   : > { %v2621_v6 = vpop.xlane.xlu1 %2620 }
 0x46a   : > { %15825 = vrcp.f32 %v2621_v6  ;;  %5011 = vrot.lane.b32.xlu0 %v22028_v1, %s16703_s2  ;;  %3870 = vrot.lane.b32.xlu1 %v22039_v3, %s16703_s2  ;;  %v2729_v48 = vpack.c.bf16 %v2705_v36, %v2704_v13  ;;  %v22044_v36 = vld [vmem:[#allocation28_spill] sm:$0xff] }
 0x46b   : > { %v15820_v52 = vpop.eup %15819 }
 0x46c   : > { %14387 = vmatmul.mubr.msk.bf16.vlgmr.msra.gmra.mxu1 %vm2369_vm4, %v2729_v48  ;;  %v2706_v58 = vmul.f32 %v15820_v52, %v17765_v25  ;;  %v22045_v25 = vld [vmem:[#allocation38_spill] sm:$0xff] }
 0x46d   : > { %14397 = vmatpush3.bf16.msra.mxu1 %v22040_v56  ;;  %v2624_v34 = vpop.xlane.xlu0 %2623  ;;  %14398 = vmatprep.mubr.msk.bf16.mxu1 %vm16701_vm0, %v22017_v55 }
 0x46e   : > { %5107 = vrot.lane.b32.xlu0 %v22037_v37, %s16703_s2  ;;  %3923 = vrot.lane.b32.xlu1 %v22041_v7, %s16703_s2  ;;  %15827 = vrcp.f32 %v2624_v34 }
 0x46f   : > { %v15822_v15 = vpop.eup %15821  ;;  %14408 = vmatprep.subr.bf16.mxu1 %v22017_v55 }
 0x470   : > { %v2707_v42 = vmul.f32 %v15822_v15, %v17770_v16  ;;  %v22046_v15 = vld [vmem:[#allocation39_spill] sm:$0xff] }
 0x471   : > { %v2627_v28 = vpop.xlane.xlu1 %2626 }
 0x472   : > { %15829 = vrcp.f32 %v2627_v28  ;;  %5299 = vrot.lane.b32.xlu0 %v22042_v54, %s16703_s2  ;;  %3976 = vrot.lane.b32.xlu1 %v22043_v41, %s16703_s2  ;;  %v2730_v45 = vpack.c.bf16 %v2707_v42, %v2706_v58  ;;  %v22047_v28 = vld [vmem:[#allocation27_spill] sm:$0xff] }
 0x473   : > { %v15824_v13 = vpop.eup %15823 }
 0x474   : > { %14393 = vmatmul.mubr.msk.bf16.vlgmr.msra.gmra.mxu0 %vm2369_vm4, %v2730_v45  ;;  %v2708_v48 = vmul.f32 %v15824_v13, %v17775_v19 }
 0x475   : > { %14403 = vmatpush3.bf16.msra.mxu0 %v22044_v36  ;;  %v2630_v6 = vpop.xlane.xlu0 %2629  ;;  %14404 = vmatprep.mubr.msk.bf16.mxu0 %vm16701_vm0, %v22017_v55 }
 0x476   : > { %4029 = vrot.lane.b32.xlu1 %v22045_v25, %s16703_s2  ;;  %14414 = vmatprep.subr.bf16.mxu0 %v22017_v55  ;;  %15831 = vrcp.f32 %v2630_v6  ;;  %v22048_v6 = vld [vmem:[#allocation41_spill] sm:$0xff] }
 0x477   : > { %v15826_v16 = vpop.eup %15825 }
 0x478   : > { %v2709_v52 = vmul.f32 %v15826_v16, %v17780_v40 }
 0x479   : > { %v2633_v34 = vpop.xlane.xlu1 %2632 }
 0x47a   : > { %15833 = vrcp.f32 %v2633_v34  ;;  %4082 = vrot.lane.b32.xlu1 %v22046_v15, %s16703_s2  ;;  %v2731_v58 = vpack.c.bf16 %v2709_v52, %v2708_v48  ;;  %v22049_v48 = vld [vmem:[#allocation43_spill] sm:$0xff] }
 0x47b   : > { %v15828_v42 = vpop.eup %15827 }
 0x47c   : > { %14399 = vmatmul.mubr.msk.bf16.vlgmr.msra.gmra.mxu1 %vm2369_vm4, %v2731_v58  ;;  %v2710_v40 = vmul.f32 %v15828_v42, %v17785_v5 }
 0x47d   : > { %14409 = vmatpush3.bf16.msra.mxu1 %v22047_v28  ;;  %v2636_v45 = vpop.xlane.xlu0 %2635  ;;  %14410 = vmatprep.mubr.msk.bf16.mxu1 %vm16701_vm0, %v22017_v55 }
 0x47e   : > { %4135 = vrot.lane.b32.xlu1 %v22048_v6, %s16703_s2  ;;  %14420 = vmatprep.subr.bf16.mxu1 %v22017_v55  ;;  %15835 = vrcp.f32 %v2636_v45  ;;  %v22050_v45 = vld [vmem:[#allocation45_spill] sm:$0xff] }
 0x47f   : > { %v15830_v19 = vpop.eup %15829 }
 0x480   : > { %v2711_v13 = vmul.f32 %v15830_v19, %v17790_v35 }
 0x481   : > { %v2639_v16 = vpop.xlane.xlu1 %2638 }
 0x482   : > { %15837 = vrcp.f32 %v2639_v16  ;;  %4188 = vrot.lane.b32.xlu1 %v22049_v48, %s16703_s2  ;;  %v2732_v52 = vpack.c.bf16 %v2711_v13, %v2710_v40  ;;  %v22051_v40 = vld [vmem:[#allocation47_spill] sm:$0xff] }
 0x483   : > { %v15832_v34 = vpop.eup %15831 }
 0x484   : > { %14405 = vmatmul.mubr.msk.bf16.vlgmr.msra.gmra.mxu0 %vm2369_vm4, %v2732_v52  ;;  %v2712_v35 = vmul.f32 %v15832_v34, %v17795_v49  ;;  %v22052_v52 = vld [vmem:[#allocation30_spill] sm:$0xff] }
 0x485   : > { %14415 = vmatpush3.bf16.msra.mxu0 %v22042_v54  ;;  %v2642_v58 = vpop.xlane.xlu0 %2641  ;;  %14416 = vmatprep.mubr.msk.bf16.mxu0 %vm16701_vm0, %v22017_v55 }
 0x486   : > { %4241 = vrot.lane.b32.xlu1 %v22050_v45, %s16703_s2  ;;  %14426 = vmatprep.subr.bf16.mxu0 %v22017_v55  ;;  %15839 = vrcp.f32 %v2642_v58  ;;  %v22053_v58 = vld [vmem:[#allocation48_spill] sm:$0xff] }
 0x487   : > { %v15834_v5 = vpop.eup %15833 }
 0x488   : > { %v2713_v42 = vmul.f32 %v15834_v5, %v17800_v24 }
 0x489   : > { %v2645_v19 = vpop.xlane.xlu1 %2644 }
 0x48a   : > { %15841 = vrcp.f32 %v2645_v19  ;;  %4238 = vrot.lane.b32.xlu1 %v22051_v40, %s16703_s2  ;;  %v2733_v13 = vpack.c.bf16 %v2713_v42, %v2712_v35  ;;  %v22054_v19 = vld [vmem:[#allocation34_spill] sm:$0xff] }
 0x48b   : > { %v15836_v16 = vpop.eup %15835 }
 0x48c   : > { %14411 = vmatmul.mubr.msk.bf16.vlgmr.msra.gmra.mxu1 %vm2369_vm4, %v2733_v13  ;;  %v2714_v24 = vmul.f32 %v15836_v16, %v17805_v47 }
 0x48d   : > { %14421 = vmatpush3.bf16.msra.mxu1 %v22052_v52  ;;  %v2648_v45 = vpop.xlane.xlu0 %2647  ;;  %14422 = vmatprep.mubr.msk.bf16.mxu1 %vm16701_vm0, %v22017_v55 }
 0x48e   : > { %4771 = vrot.lane.b32.xlu1 %v22053_v58, %s16703_s2  ;;  %14432 = vmatprep.subr.bf16.mxu1 %v22017_v55  ;;  %15843 = vrcp.f32 %v2648_v45 }
 0x48f   : > { %v15838_v49 = vpop.eup %15837 }
 0x490   : > { %v2715_v34 = vmul.f32 %v15838_v49, %v17810_v39 }
 0x491   : > { %v2651_v5 = vpop.xlane.xlu1 %2650 }
 0x492   : > { %15845 = vrcp.f32 %v2651_v5  ;;  %4867 = vrot.lane.b32.xlu1 %v17223_v4, %s16703_s2  ;;  %v2734_v35 = vpack.c.bf16 %v2715_v34, %v2714_v24  ;;  %v22055_v24 = vld [vmem:[#allocation33_spill] sm:$0xff] }
 0x493   : > { %v15840_v42 = vpop.eup %15839 }
 0x494   : > { %14417 = vmatmul.mubr.msk.bf16.vlgmr.msra.gmra.mxu0 %vm2369_vm4, %v2734_v35  ;;  %v2716_v39 = vmul.f32 %v15840_v42, %v17815_v51 }
 0x495   : > { %14427 = vmatpush3.bf16.msra.mxu0 %v22054_v19  ;;  %14428 = vmatprep.mubr.msk.bf16.mxu0 %vm16701_vm0, %v22017_v55  ;;  %v2654_v16 = vpop.xlane.xlu0 %2653 }
 0x496   : > { %4963 = vrot.lane.b32.xlu1 %v17246_v33, %s16703_s2  ;;  %14438 = vmatprep.subr.bf16.mxu0 %v22017_v55  ;;  %15847 = vrcp.f32 %v2654_v16 }
 0x497   : > { %v15842_v47 = vpop.eup %15841 }
 0x498   : > { %v2717_v45 = vmul.f32 %v15842_v47, %v17819_v63  ;;  %v3500_v47 = vpop.permute.xlu1 %3499 }
 0x499   : > { %v3447_v5 = vpop.permute.xlu0 %3446 }
 0x49a   : > { %5059 = vrot.lane.b32.xlu1 %v22033_v46, %s16703_s2  ;;  %v2735_v13 = vpack.c.bf16 %v2717_v45, %v2716_v39  ;;  %v3452_v42 = vsel %vm1552_vm1, %v3447_v5, 0 }
 0x49b   : > { %v15844_v49 = vpop.eup %15843 }
 0x49c   : > { %14423 = vmatmul.mubr.msk.bf16.vlgmr.msra.gmra.mxu1 %vm2369_vm4, %v2735_v13  ;;  %v2718_v63 = vmul.f32 %v15844_v49, %v17823_v8  ;;  %v3444_v8 = vpop.permute.xlu1 %3443 }
 0x49d   : > { %14433 = vmatpush3.bf16.msra.mxu1 %v22055_v24  ;;  %14434 = vmatprep.mubr.msk.bf16.mxu1 %vm16701_vm0, %v22017_v55 }
 0x49e   : > { %5155 = vrot.lane.b32.xlu1 %v22040_v56, %s16703_s2  ;;  %14444 = vmatprep.subr.bf16.mxu1 %v22017_v55  ;;  %v3505_v56 = vsel %vm1552_vm1, %v3500_v47, 0 }
 0x49f   : > { %v15846_v51 = vpop.eup %15845 }
 0x4a0   : > { %v2719_v34 = vmul.f32 %v15846_v51, %v17827_v29  ;;  %v3497_v29 = vpop.permute.xlu0 %3496 }
 0x4a2   : > { %5203 = vrot.lane.b32.xlu1 %v22044_v36, %s16703_s2  ;;  %v2736_v35 = vpack.c.bf16 %v2719_v34, %v2718_v63 }
 0x4a4   : > { %14429 = vmatmul.mubr.msk.bf16.vlgmr.msra.gmra.mxu0 %vm2369_vm4, %v2736_v35  ;;  %v3550_v39 = vpop.permute.xlu0 %3549 }
 0x4a5   : > { %14439 = vmatpush3.bf16.xpose.msra.mxu0 %v3452_v42  ;;  %14440 = vmatprep.mubr.msk.bf16.mxu0 %vm16701_vm0, %v22017_v55  ;;  %v15848_v42 = vpop.eup %15847 }
 0x4a6   : > { %5251 = vrot.lane.b32.xlu1 %v22047_v28, %s16703_s2  ;;  %14450 = vmatprep.subr.bf16.mxu0 %v22017_v55 }
 0x4a8   : > { %v3603_v45 = vpop.permute.xlu0 %3602 }
 0x4aa   : > { %5347 = vrot.lane.b32.xlu1 %v22052_v52, %s16703_s2 }
 0x4ac   : > { %14441 = vmatmul.mubr.msk.bf16.vlgmr.msra.gmra.mxu0 %vm1552_vm1, %v3444_v8  ;;  %v3656_v13 = vpop.permute.xlu0 %3655 }
 0x4ad   : > { %14452 = vmatprep.mubr.msk.bf16.mxu0 %vm16701_vm0, %v22017_v55 }
 0x4b0   : > { %v18040_v51 = vpop.permute.xlu0 %3708 }
 0x4b4   : > { %v3762_v5 = vpop.permute.xlu0 %3761 }
 0x4b8   : > { %v18044_v52 = vpop.permute.xlu0 %3814 }
 0x4bc   : > { %v3868_v46 = vpop.permute.xlu0 %3867 }
 0x4ca   : > { %v2657_v49 = vpop.xlane.xlu1 %2656 }
 0x4cb   : > { %15849 = vrcp.f32 %v2657_v49  ;;  %v2720_v49 = vmul.f32 %v15848_v42, %v17831_v21 }
 0x4ce   : > { %v3553_v63 = vpop.permute.xlu1 %3552 }
 0x4cf   : > { %v3558_v34 = vsel %vm1552_vm1, %v3553_v63, 0 }
 0x4d0   : > { %14451 = vmatpush3.bf16.xpose.msra.mxu0 %v3558_v34 }
 0x4d1   : > { %14462 = vmatprep.subr.bf16.mxu0 %v22017_v55 }
 0x4d2   : > { %v3606_v35 = vpop.permute.xlu1 %3605 }
 0x4d6   : > { %v3659_v8 = vpop.permute.xlu1 %3658 }
 0x4d7   : > { %v3664_v28 = vsel %vm1552_vm1, %v3659_v8, 0  ;;  %14453 = vmatmul.mubr.msk.bf16.vlgmr.msra.gmra.mxu0 %vm1552_vm1, %v3550_v39 }
 0x4d8   : > { %v15850_v16 = vpop.eup %15849  ;;  %14463 = vmatpush3.bf16.xpose.msra.mxu0 %v3664_v28  ;;  %14464 = vmatprep.mubr.msk.bf16.mxu0 %vm16701_vm0, %v22017_v55 }
 0x4d9   : > { %v2721_v63 = vmul.f32 %v15850_v16, %v17863_v17  ;;  %14474 = vmatprep.subr.bf16.mxu0 %v22017_v55  ;;  %v18063_v17 = vpop.permute.xlu0 %3920 }
 0x4da   : > { %v3712_v34 = vpop.permute.xlu1 %3711 }
 0x4db   : > { %v2737_v36 = vpack.c.bf16 %v2721_v63, %v2720_v49 }
 0x4dd   : > { %14435 = vmatmul.mubr.msk.bf16.vlgmr.msra.gmra.mxu1 %vm2369_vm4, %v2737_v36 }
 0x4de   : > { %14445 = vmatpush3.bf16.xpose.msra.mxu1 %v3505_v56  ;;  %v3765_v39 = vpop.permute.xlu1 %3764  ;;  %14446 = vmatprep.mubr.msk.bf16.mxu1 %vm16701_vm0, %v22017_v55  ;;  %v3611_v56 = vsel %vm1552_vm1, %v3606_v35, 0 }
 0x4df   : > { %v3770_v28 = vsel %vm1552_vm1, %v3765_v39, 0  ;;  %14465 = vmatmul.mubr.msk.bf16.vlgmr.msra.gmra.mxu0 %vm1552_vm1, %v3656_v13  ;;  %14456 = vmatprep.subr.bf16.mxu1 %v22017_v55  ;;  %v3974_v13 = vpop.permute.xlu0 %3973 }
 0x4e0   : > { %14475 = vmatpush3.bf16.xpose.msra.mxu0 %v3770_v28  ;;  %14476 = vmatprep.mubr.msk.bf16.mxu0 %vm16701_vm0, %v22017_v55 }
 0x4e1   : > { %14486 = vmatprep.subr.bf16.mxu0 %v22017_v55 }
 0x4e2   : > { %v3818_v21 = vpop.permute.xlu1 %3817 }
 0x4e3   : > { %v3823_v63 = vsel %vm1552_vm1, %v3818_v21, 0 }
 0x4e5   : > { %14447 = vmatmul.mubr.msk.bf16.vlgmr.msra.gmra.mxu1 %vm1552_vm1, %v3497_v29  ;;  %v3717_v29 = vsel %vm1552_vm1, %v3712_v34, 0 }
 0x4e6   : > { %14457 = vmatpush3.bf16.xpose.msra.mxu1 %v3611_v56  ;;  %v3871_v36 = vpop.permute.xlu1 %3870  ;;  %14458 = vmatprep.mubr.msk.bf16.mxu1 %vm16701_vm0, %v22017_v55 }
 0x4e7   : > { %v3876_v47 = vsel %vm1552_vm1, %v3871_v36, 0  ;;  %14477 = vmatmul.mubr.msk.bf16.vlgmr.msra.gmra.mxu0 %vm1552_vm1, %v3762_v5  ;;  %14468 = vmatprep.subr.bf16.mxu1 %v22017_v55  ;;  %v4027_v5 = vpop.permute.xlu0 %4026 }
 0x4e8   : > { %14487 = vmatpush3.bf16.xpose.msra.mxu0 %v3876_v47  ;;  %14488 = vmatprep.mubr.msk.bf16.mxu0 %vm16701_vm0, %v22017_v55 }
 0x4e9   : > { %14498 = vmatprep.subr.bf16.mxu0 %v22017_v55 }
 0x4ea   : > { %v3924_v35 = vpop.permute.xlu1 %3923 }
 0x4eb   : > { %v4080_v49 = vpop.permute.xlu0 %4079  ;;  %v3929_v47 = vsel %vm1552_vm1, %v3924_v35, 0 }
 0x4ed   : > { %14459 = vmatmul.mubr.msk.bf16.vlgmr.msra.gmra.mxu1 %vm1552_vm1, %v3603_v45 }
 0x4ee   : > { %14469 = vmatpush3.bf16.xpose.msra.mxu1 %v3717_v29  ;;  %v3977_v42 = vpop.permute.xlu1 %3976  ;;  %14470 = vmatprep.mubr.msk.bf16.mxu1 %vm16701_vm0, %v22017_v55 }
 0x4ef   : > { %v3982_v8 = vsel %vm1552_vm1, %v3977_v42, 0  ;;  %14489 = vmatmul.mubr.msk.bf16.vlgmr.msra.gmra.mxu0 %vm1552_vm1, %v3868_v46  ;;  %14480 = vmatprep.subr.bf16.mxu1 %v22017_v55  ;;  %v4133_v56 = vpop.permute.xlu0 %4132 }
 0x4f0   : > { %14499 = vmatpush3.bf16.xpose.msra.mxu0 %v3982_v8  ;;  %14500 = vmatprep.mubr.msk.bf16.mxu0 %vm16701_vm0, %v22017_v55 }
 0x4f1   : > { %14510 = vmatprep.subr.bf16.mxu0 %v22017_v55 }
 0x4f2   : > { %v4030_v16 = vpop.permute.xlu1 %4029 }
 0x4f3   : > { %v4186_v35 = vpop.permute.xlu0 %4185 }
 0x4f4   : > { %v18085_v45 = vpop.f32.mrf.mxu0 }
 0x4f5   : > { %22056 = vst [vmem:[#allocation17_spill] sm:$0xff] %v18085_v45  ;;  %14471 = vmatmul.mubr.msk.bf16.vlgmr.msra.gmra.mxu1 %vm1552_vm1, %v18040_v51 }
 0x4f6   : > { %14481 = vmatpush3.bf16.xpose.msra.mxu1 %v3823_v63  ;;  %v4083_v34 = vpop.permute.xlu1 %4082  ;;  %v14346_v46 = vpop.f32.mrf.mxu0  ;;  %14482 = vmatprep.mubr.msk.bf16.mxu1 %vm16701_vm0, %v22017_v55 }
 0x4f7   : > { %v4088_v39 = vsel %vm1552_vm1, %v4083_v34, 0  ;;  %14501 = vmatmul.mubr.msk.bf16.vlgmr.msra.gmra.mxu0 %vm1552_vm1, %v3974_v13  ;;  %14492 = vmatprep.subr.bf16.mxu1 %v22017_v55  ;;  %v4035_v34 = vsel %vm1552_vm1, %v4030_v16, 0  ;;  %v4724_v46 = vpop.permute.xlu0 %4723 }
 0x4f8   : > { %v18095_v28 = vpop.f32.mrf.mxu0  ;;  %14511 = vmatpush3.bf16.xpose.msra.mxu0 %v4088_v39  ;;  %14512 = vmatprep.mubr.msk.bf16.mxu0 %vm16701_vm0, %v22017_v55 }
 0x4f9   : > { %22057 = vst [vmem:[#allocation20_spill] sm:$0xff] %v18095_v28  ;;  %14522 = vmatprep.subr.bf16.mxu0 %v22017_v55 }
 0x4fa   : > { %v4136_v51 = vpop.permute.xlu1 %4135  ;;  %v14347_v21 = vpop.f32.mrf.mxu0 }
 0x4fb   : > { %v4141_v21 = vsel %vm1552_vm1, %v4136_v51, 0 }
 0x4fc   : > { %v18100_v36 = vpop.f32.mrf.mxu1 }
 0x4fd   : > { %22058 = vst [vmem:[#allocation51_spill] sm:$0xff] %v18100_v36  ;;  %14483 = vmatmul.mubr.msk.bf16.vlgmr.msra.gmra.mxu1 %vm1552_vm1, %v18044_v52 }
 0x4fe   : > { %14493 = vmatpush3.bf16.xpose.msra.mxu1 %v3929_v47  ;;  %v14352_v13 = vpop.f32.mrf.mxu1  ;;  %v4189_v29 = vpop.permute.xlu1 %4188  ;;  %14494 = vmatprep.mubr.msk.bf16.mxu1 %vm16701_vm0, %v22017_v55 }
 0x4ff   : > { %v4194_v42 = vsel %vm1552_vm1, %v4189_v29, 0  ;;  %14513 = vmatmul.mubr.msk.bf16.vlgmr.msra.gmra.mxu0 %vm1552_vm1, %v4080_v49  ;;  %14504 = vmatprep.subr.bf16.mxu1 %v22017_v55 }
 0x500   : > { %v18110_v8 = vpop.f32.mrf.mxu1  ;;  %14523 = vmatpush3.bf16.xpose.msra.mxu0 %v4194_v42  ;;  %14524 = vmatprep.mubr.msk.bf16.mxu0 %vm16701_vm0, %v22017_v55 }
 0x501   : > { %22059 = vst [vmem:[#allocation52_spill] sm:$0xff] %v18110_v8  ;;  %14534 = vmatprep.subr.bf16.mxu0 %v22017_v55 }
 0x502   : > { %v14353_v52 = vpop.f32.mrf.mxu1  ;;  %v4242_v29 = vpop.permute.xlu1 %4241 }
 0x503   : > { %v4247_v52 = vsel %vm1552_vm1, %v4242_v29, 0 }
 0x504   : > { %v18115_v63 = vpop.f32.mrf.mxu0 }
 0x505   : > { %22060 = vst [vmem:[#allocation53_spill] sm:$0xff] %v18115_v63  ;;  %14495 = vmatmul.mubr.msk.bf16.vlgmr.msra.gmra.mxu1 %vm1552_vm1, %v18063_v17 }
 0x506   : > { %14505 = vmatpush3.bf16.xpose.msra.mxu1 %v4035_v34  ;;  %v14358_v49 = vpop.f32.mrf.mxu0  ;;  %14506 = vmatprep.mubr.msk.bf16.mxu1 %vm16701_vm0, %v22017_v55 }
 0x507   : > { %14525 = vmatmul.mubr.msk.bf16.vlgmr.msra.gmra.mxu0 %vm1552_vm1, %v4186_v35  ;;  %14516 = vmatprep.subr.bf16.mxu1 %v22017_v55 }
 0x508   : > { %v18124_v39 = vpop.f32.mrf.mxu0  ;;  %14535 = vmatpush3.bf16.msra.mxu0 %v4724_v46  ;;  %14536 = vmatprep.mubr.msk.bf16.mxu0 %vm16701_vm0, %v22017_v55 }
 0x509   : > { %22061 = vst [vmem:[#allocation54_spill] sm:$0xff] %v18124_v39  ;;  %14546 = vmatprep.subr.bf16.mxu0 %v22017_v55 }
 0x50a   : > { %v14359_v16 = vpop.f32.mrf.mxu0 }
 0x50c   : > { %v18129_v17 = vpop.f32.mrf.mxu1 }
 0x50d   : > { %22062 = vst [vmem:[#allocation55_spill] sm:$0xff] %v18129_v17  ;;  %14507 = vmatmul.mubr.msk.bf16.vlgmr.msra.gmra.mxu1 %vm1552_vm1, %v4027_v5  ;;  %v4239_v5 = vpop.permute.xlu1 %4238 }
 0x50e   : > { %14517 = vmatpush3.bf16.xpose.msra.mxu1 %v4141_v21  ;;  %v14364_v47 = vpop.f32.mrf.mxu1  ;;  %14518 = vmatprep.mubr.msk.bf16.mxu1 %vm16701_vm0, %v22017_v55 }
 0x50f   : > { %14528 = vmatprep.subr.bf16.mxu1 %v22017_v55 }
 0x510   : > { %v18136_v13 = vpop.f32.mrf.mxu1 }
 0x511   : > { %22063 = vst [vmem:[#allocation56_spill] sm:$0xff] %v18136_v13  ;;  %v4772_v16 = vpop.permute.xlu1 %4771 }
 0x512   : > { %v14365_v42 = vpop.f32.mrf.mxu1 }
 0x514   : > { %v18138_v35 = vpop.f32.mrf.mxu0 }
 0x515   : > { %22064 = vst [vmem:[#allocation57_spill] sm:$0xff] %v18138_v35  ;;  %14519 = vmatmul.mubr.msk.bf16.vlgmr.msra.gmra.mxu1 %vm1552_vm1, %v4133_v56 }
 0x516   : > { %14529 = vmatpush3.bf16.xpose.msra.mxu1 %v4247_v52  ;;  %v14370_v51 = vpop.f32.mrf.mxu0  ;;  %14530 = vmatprep.mubr.msk.bf16.mxu1 %vm16701_vm0, %v22017_v55 }
 0x517   : > { %14540 = vmatprep.subr.bf16.mxu1 %v22017_v55 }
 0x518   : > { %v18145_v34 = vpop.f32.mrf.mxu0 }
 0x519   : > { %22065 = vst [vmem:[#allocation58_spill] sm:$0xff] %v18145_v34 }
 0x51a   : > { %v14371_v49 = vpop.f32.mrf.mxu0 }
 0x51c   : > { %v18147_v46 = vpop.f32.mrf.mxu1 }
 0x51d   : > { %22066 = vst [vmem:[#allocation59_spill] sm:$0xff] %v18147_v46  ;;  %14531 = vmatmul.mubr.msk.bf16.vlgmr.msra.gmra.mxu1 %vm1552_vm1, %v4239_v5 }
 0x51e   : > { %14541 = vmatpush3.bf16.msra.mxu1 %v4772_v16  ;;  %v14376_v21 = vpop.f32.mrf.mxu1  ;;  %14542 = vmatprep.mubr.msk.bf16.mxu1 %vm16701_vm0, %v22017_v55 }
 0x51f   : > { %14552 = vmatprep.subr.bf16.mxu1 %v22017_v55 }
 0x520   : > { %v18153_v56 = vpop.f32.mrf.mxu1 }
 0x521   : > { %22067 = vst [vmem:[#allocation60_spill] sm:$0xff] %v18153_v56 }
 0x522   : > { %v14377_v47 = vpop.f32.mrf.mxu1 }
 0x524   : > { %v18155_v29 = vpop.f32.mrf.mxu0 }
 0x525   : > { %22068 = vst [vmem:[#allocation61_spill] sm:$0xff] %v18155_v29 }
 0x526   : > { %v14382_v42 = vpop.f32.mrf.mxu0 }
 0x528   : > { %v18157_v52 = vpop.f32.mrf.mxu0 }
 0x529   : > { %22069 = vst [vmem:[#allocation62_spill] sm:$0xff] %v18157_v52 }
 0x52a   : > { %v14383_v51 = vpop.f32.mrf.mxu0 }
 0x52c   : > { %v18159_v49 = vpop.f32.mrf.mxu1 }
 0x52d   : > { %22070 = vst [vmem:[#allocation63_spill] sm:$0xff] %v18159_v49 }
 0x52e   : > { %v14388_v46 = vpop.f32.mrf.mxu1 }
 0x530   : > { %v18161_v5 = vpop.f32.mrf.mxu1 }
 0x531   : > { %22071 = vst [vmem:[#allocation64_spill] sm:$0xff] %v18161_v5 }
 0x532   : > { %v14389_v16 = vpop.f32.mrf.mxu1 }
 0x534   : > { %v18163_v21 = vpop.f32.mrf.mxu0 }
 0x535   : > { %22072 = vst [vmem:[#allocation65_spill] sm:$0xff] %v18163_v21 }
 0x536   : > { %v14394_v17 = vpop.f32.mrf.mxu0 }
 0x538   : > { %v18165_v13 = vpop.f32.mrf.mxu0 }
 0x539   : > { %22073 = vst [vmem:[#allocation66_spill] sm:$0xff] %v18165_v13 }
 0x53a   : > { %v14395_v36 = vpop.f32.mrf.mxu0 }
 0x53c   : > { %v18167_v56 = vpop.f32.mrf.mxu1 }
 0x53d   : > { %22074 = vst [vmem:[#allocation67_spill] sm:$0xff] %v18167_v56 }
 0x53e   : > { %v14400_v47 = vpop.f32.mrf.mxu1 }
 0x540   : > { %v18169_v8 = vpop.f32.mrf.mxu1 }
 0x541   : > { %22075 = vst [vmem:[#allocation68_spill] sm:$0xff] %v18169_v8 }
 0x542   : > { %v14401_v42 = vpop.f32.mrf.mxu1 }
 0x544   : > { %v18171_v45 = vpop.f32.mrf.mxu0 }
 0x545   : > { %22076 = vst [vmem:[#allocation69_spill] sm:$0xff] %v18171_v45 }
 0x546   : > { %v14406_v51 = vpop.f32.mrf.mxu0 }
 0x548   : > { %v18173_v49 = vpop.f32.mrf.mxu0 }
 0x549   : > { %22077 = vst [vmem:[#allocation70_spill] sm:$0xff] %v18173_v49 }
 0x54a   : > { %v14407_v46 = vpop.f32.mrf.mxu0 }
 0x54c   : > { %v18175_v5 = vpop.f32.mrf.mxu1 }
 0x54d   : > { %22078 = vst [vmem:[#allocation71_spill] sm:$0xff] %v18175_v5 }
 0x54e   : > { %v14412_v16 = vpop.f32.mrf.mxu1 }
 0x550   : > { %v18177_v21 = vpop.f32.mrf.mxu1 }
 0x551   : > { %22079 = vst [vmem:[#allocation72_spill] sm:$0xff] %v18177_v21 }
 0x552   : > { %v14413_v17 = vpop.f32.mrf.mxu1 }
 0x554   : > { %v18179_v13 = vpop.f32.mrf.mxu0 }
 0x555   : > { %22080 = vst [vmem:[#allocation73_spill] sm:$0xff] %v18179_v13  ;;  %v22086_v13 = vld [vmem:[#allocation49_spill] sm:$0xff] }
 0x556   : > { %v14418_v36 = vpop.f32.mrf.mxu0 }
 0x558   : > { %v18181_v56 = vpop.f32.mrf.mxu0 }
 0x559   : > { %22081 = vst [vmem:[#allocation74_spill] sm:$0xff] %v18181_v56 }
 0x55a   : > { %v14419_v47 = vpop.f32.mrf.mxu0 }
 0x55c   : > { %v18183_v8 = vpop.f32.mrf.mxu1 }
 0x55d   : > { %22082 = vst [vmem:[#allocation75_spill] sm:$0xff] %v18183_v8 }
 0x55e   : > { %v14424_v42 = vpop.f32.mrf.mxu1 }
 0x560   : > { %v18185_v45 = vpop.f32.mrf.mxu1 }
 0x561   : > { %22083 = vst [vmem:[#allocation76_spill] sm:$0xff] %v18185_v45 }
 0x562   : > { %v14425_v51 = vpop.f32.mrf.mxu1 }
 0x563   : > { %v22087_v51 = vld [vmem:[#allocation50_spill] sm:$0xff] }
 0x564   : > { %v18187_v49 = vpop.f32.mrf.mxu0 }
 0x565   : > { %22084 = vst [vmem:[#allocation77_spill] sm:$0xff] %v18187_v49 }
 0x566   : > { %v14430_v46 = vpop.f32.mrf.mxu0 }
 0x568   : > { %v18189_v5 = vpop.f32.mrf.mxu0 }
 0x569   : > { %22085 = vst [vmem:[#allocation78_spill] sm:$0xff] %v18189_v5 }
 0x56a   : > { %v14431_v16 = vpop.f32.mrf.mxu0 }
 0x56c   : > { %v3488_v21 = vpop.f32.mrf.mxu0 }
 0x56d   : > { %v4290_v17 = vmul.f32 0.17677669, %v3488_v21 }
 0x56e   : > { %v14442_v28 = vpop.f32.mrf.mxu0 }
 0x56f   : > { %v18192_v36 = vadd.f32 %v4290_v17, %v22086_v13 }
 0x570   : > { %v3491_v56 = vpop.f32.mrf.mxu0 }
 0x571   : > { %v4291_v47 = vmul.f32 0.17677669, %v3491_v56  ;;  %v4354_v42 = vsel %vm2369_vm4, %v18192_v36, -inf }
 0x572   : > { %4355 = vmax.xlane.f32.xlu0 %v4354_v42  ;;  %v14443_v8 = vpop.f32.mrf.mxu0 }
 0x573   : > { %v18197_v45 = vadd.f32 %v4291_v47, %v22087_v51 }
 0x575   : > { %v4357_v46 = vsel %vm2369_vm4, %v18197_v45, -inf }
 0x576   : > { %4358 = vmax.xlane.f32.xlu1 %v4357_v46 }
 0x597   : > { %v3594_v16 = vpop.f32.mrf.mxu0 }
 0x599   : > { %v14454_v21 = vpop.f32.mrf.mxu0 }
 0x59b   : > { %v3597_v28 = vpop.f32.mrf.mxu0 }
 0x59c   : > { %v4295_v49 = vmul.f32 0.17677669, %v3597_v28  ;;  %v4294_v28 = vmul.f32 0.17677669, %v3594_v16 }
 0x59d   : > { %v18201_v17 = vpop.f32.mrf.mxu1  ;;  %v14455_v5 = vpop.f32.mrf.mxu0 }
 0x59e   : > { %22088 = vst [vmem:[#allocation79_spill] sm:$0xff] %v18201_v17  ;;  %v18204_v56 = vadd.f32 %v4295_v49, %v22087_v51  ;;  %v18214_v33 = vadd.f32 %v4294_v28, %v22086_v13 }
 0x59f   : > { %v14436_v29 = vpop.f32.mrf.mxu1  ;;  %v3700_v42 = vpop.f32.mrf.mxu0 }
 0x5a0   : > { %v4369_v8 = vsel %vm2369_vm4, %v18204_v56, -inf }
 0x5a1   : > { %v18208_v47 = vpop.f32.mrf.mxu1  ;;  %4370 = vmax.xlane.f32.xlu1 %v4369_v8  ;;  %v14466_v52 = vpop.f32.mrf.mxu0 }
 0x5a2   : > { %22089 = vst [vmem:[#allocation80_spill] sm:$0xff] %v18208_v47  ;;  %v4298_v47 = vmul.f32 0.17677669, %v3700_v42 }
 0x5a3   : > { %v14437_v46 = vpop.f32.mrf.mxu1  ;;  %v3703_v35 = vpop.f32.mrf.mxu0 }
 0x5a4   : > { %v4299_v40 = vmul.f32 0.17677669, %v3703_v35 }
 0x5a5   : > { %v3541_v21 = vpop.f32.mrf.mxu1  ;;  %v14467_v34 = vpop.f32.mrf.mxu0 }
 0x5a6   : > { %v4292_v63 = vmul.f32 0.17677669, %v3541_v21 }
 0x5a7   : > { %v14448_v17 = vpop.f32.mrf.mxu1  ;;  %v3806_v5 = vpop.f32.mrf.mxu0 }
 0x5a8   : > { %v18211_v49 = vadd.f32 %v4292_v63, %v22086_v13  ;;  %v4366_v63 = vsel %vm2369_vm4, %v18214_v33, -inf }
 0x5a9   : > { %v3544_v29 = vpop.f32.mrf.mxu1  ;;  %v14478_v39 = vpop.f32.mrf.mxu0 }
 0x5aa   : > { %v4293_v4 = vmul.f32 0.17677669, %v3544_v29  ;;  %v4360_v52 = vsel %vm2369_vm4, %v18211_v49, -inf }
 0x5ab   : > { %v14449_v8 = vpop.f32.mrf.mxu1  ;;  %4361 = vmax.xlane.f32.xlu0 %v4360_v52  ;;  %v3809_v46 = vpop.f32.mrf.mxu0 }
 0x5ac   : > { %v18219_v17 = vadd.f32 %v4293_v4, %v22087_v51  ;;  %v4303_v15 = vmul.f32 0.17677669, %v3809_v46 }
 0x5ad   : > { %v3647_v34 = vpop.f32.mrf.mxu1  ;;  %v14479_v16 = vpop.f32.mrf.mxu0 }
 0x5ae   : > { %v4296_v21 = vmul.f32 0.17677669, %v3647_v34  ;;  %v4363_v16 = vsel %vm2369_vm4, %v18219_v17, -inf  ;;  %v18255_v46 = vadd.f32 %v4303_v15, %v22087_v51 }
 0x5af   : > { %v14460_v39 = vpop.f32.mrf.mxu1  ;;  %4367 = vmax.xlane.f32.xlu0 %v4366_v63  ;;  %v3912_v28 = vpop.f32.mrf.mxu0  ;;  %v18232_v63 = vadd.f32 %v4298_v47, %v22086_v13 }
 0x5b0   : > { %v18224_v8 = vadd.f32 %v4296_v21, %v22086_v13  ;;  %v4393_v1 = vsel %vm2369_vm4, %v18255_v46, -inf }
 0x5b1   : > { %v3650_v29 = vpop.f32.mrf.mxu1  ;;  %v14490_v58 = vpop.f32.mrf.mxu0 }
 0x5b2   : > { %v4297_v52 = vmul.f32 0.17677669, %v3650_v29  ;;  %v18235_v58 = vadd.f32 %v4299_v40, %v22087_v51  ;;  %v4372_v21 = vsel %vm2369_vm4, %v18224_v8, -inf }
 0x5b3   : > { %v14461_v4 = vpop.f32.mrf.mxu1  ;;  %4364 = vmax.xlane.f32.xlu0 %v4363_v16  ;;  %v3915_v34 = vpop.f32.mrf.mxu0 }
 0x5b4   : > { %v18229_v48 = vadd.f32 %v4297_v52, %v22087_v51  ;;  %v4302_v4 = vmul.f32 0.17677669, %v3806_v5  ;;  %v4381_v54 = vsel %vm2369_vm4, %v18235_v58, -inf  ;;  %v4307_v41 = vmul.f32 0.17677669, %v3915_v34 }
 0x5b5   : > { %v3753_v42 = vpop.f32.mrf.mxu1  ;;  %v14491_v39 = vpop.f32.mrf.mxu0 }
 0x5b6   : > { %v4300_v35 = vmul.f32 0.17677669, %v3753_v42  ;;  %v4375_v29 = vsel %vm2369_vm4, %v18229_v48, -inf  ;;  %v4378_v39 = vsel %vm2369_vm4, %v18232_v63, -inf  ;;  %v18252_v5 = vadd.f32 %v4302_v4, %v22086_v13 }
 0x5b7   : > { %v14472_v16 = vpop.f32.mrf.mxu1  ;;  %4373 = vmax.xlane.f32.xlu0 %v4372_v21  ;;  %4376 = vmax.xlane.f32.xlu1 %v4375_v29  ;;  %v4018_v52 = vpop.f32.mrf.mxu0  ;;  %v18275_v34 = vadd.f32 %v4307_v41, %v22087_v51 }
 0x5b8   : > { %v18244_v40 = vadd.f32 %v4300_v35, %v22086_v13 }
 0x5b9   : > { %v3756_v6 = vpop.f32.mrf.mxu1  ;;  %v14502_v47 = vpop.f32.mrf.mxu0  ;;  %v4405_v18 = vsel %vm2369_vm4, %v18275_v34, -inf }
 0x5ba   : > { %v4301_v42 = vmul.f32 0.17677669, %v3756_v6  ;;  %v4384_v6 = vsel %vm2369_vm4, %v18244_v40, -inf }
 0x5bb   : > { %v14473_v25 = vpop.f32.mrf.mxu1  ;;  %4379 = vmax.xlane.f32.xlu0 %v4378_v39  ;;  %4382 = vmax.xlane.f32.xlu1 %v4381_v54  ;;  %v4021_v21 = vpop.f32.mrf.mxu0 }
 0x5bc   : > { %v18249_v29 = vadd.f32 %v4301_v42, %v22087_v51  ;;  %v4306_v42 = vmul.f32 0.17677669, %v3912_v28  ;;  %v4311_v3 = vmul.f32 0.17677669, %v4021_v21 }
 0x5bd   : > { %v3859_v16 = vpop.f32.mrf.mxu1  ;;  %v14503_v47 = vpop.f32.mrf.mxu0 }
 0x5be   : > { %v4304_v35 = vmul.f32 0.17677669, %v3859_v16  ;;  %v4387_v25 = vsel %vm2369_vm4, %v18249_v29, -inf  ;;  %v4390_v47 = vsel %vm2369_vm4, %v18252_v5, -inf  ;;  %v18272_v28 = vadd.f32 %v4306_v42, %v22086_v13 }
 0x5bf   : > { %v14484_v54 = vpop.f32.mrf.mxu1  ;;  %4385 = vmax.xlane.f32.xlu0 %v4384_v6  ;;  %4388 = vmax.xlane.f32.xlu1 %v4387_v25  ;;  %v4124_v39 = vpop.f32.mrf.mxu0  ;;  %v18295_v21 = vadd.f32 %v4311_v3, %v22087_v51 }
 0x5c0   : > { %v18264_v15 = vadd.f32 %v4304_v35, %v22086_v13 }
 0x5c1   : > { %v3862_v37 = vpop.f32.mrf.mxu1  ;;  %v14514_v4 = vpop.f32.mrf.mxu0 }
 0x5c2   : > { %v4305_v16 = vmul.f32 0.17677669, %v3862_v37  ;;  %v4396_v37 = vsel %vm2369_vm4, %v18264_v15, -inf }
 0x5c3   : > { %v14485_v7 = vpop.f32.mrf.mxu1  ;;  %4391 = vmax.xlane.f32.xlu0 %v4390_v47  ;;  %4394 = vmax.xlane.f32.xlu1 %v4393_v1  ;;  %v4127_v6 = vpop.f32.mrf.mxu0 }
 0x5c4   : > { %v18269_v25 = vadd.f32 %v4305_v16, %v22087_v51  ;;  %v4310_v16 = vmul.f32 0.17677669, %v4018_v52  ;;  %v4315_v60 = vmul.f32 0.17677669, %v4127_v6 }
 0x5c5   : > { %v3965_v54 = vpop.f32.mrf.mxu1  ;;  %v14515_v4 = vpop.f32.mrf.mxu0 }
 0x5c6   : > { %v4308_v35 = vmul.f32 0.17677669, %v3965_v54  ;;  %v4399_v7 = vsel %vm2369_vm4, %v18269_v25, -inf  ;;  %v4402_v4 = vsel %vm2369_vm4, %v18272_v28, -inf  ;;  %v18292_v52 = vadd.f32 %v4310_v16, %v22086_v13 }
 0x5c7   : > { %v14496_v1 = vpop.f32.mrf.mxu1  ;;  %4397 = vmax.xlane.f32.xlu0 %v4396_v37  ;;  %4400 = vmax.xlane.f32.xlu1 %v4399_v7  ;;  %v4230_v47 = vpop.f32.mrf.mxu0 }
 0x5c8   : > { %v18284_v41 = vadd.f32 %v4308_v35, %v22086_v13  ;;  %v4414_v16 = vsel %vm2369_vm4, %v18292_v52, -inf }
 0x5c9   : > { %v3968_v0 = vpop.f32.mrf.mxu1  ;;  %v14526_v42 = vpop.f32.mrf.mxu0 }
 0x5ca   : > { %v4309_v54 = vmul.f32 0.17677669, %v3968_v0  ;;  %v4408_v0 = vsel %vm2369_vm4, %v18284_v41, -inf }
 0x5cb   : > { %v14497_v31 = vpop.f32.mrf.mxu1  ;;  %4403 = vmax.xlane.f32.xlu0 %v4402_v4  ;;  %4406 = vmax.xlane.f32.xlu1 %v4405_v18  ;;  %v4233_v37 = vpop.f32.mrf.mxu0  ;;  %v4314_v4 = vmul.f32 0.17677669, %v4124_v39 }
 0x5cc   : > { %v18289_v7 = vadd.f32 %v4309_v54, %v22087_v51  ;;  %v4319_v2 = vmul.f32 0.17677669, %v4233_v37 }
 0x5cd   : > { %v4071_v1 = vpop.f32.mrf.mxu1  ;;  %v14527_v42 = vpop.f32.mrf.mxu0  ;;  %v18312_v39 = vadd.f32 %v4314_v4, %v22086_v13 }
 0x5ce   : > { %v4312_v35 = vmul.f32 0.17677669, %v4071_v1  ;;  %v4411_v31 = vsel %vm2369_vm4, %v18289_v7, -inf  ;;  %v4417_v1 = vsel %vm2369_vm4, %v18295_v21, -inf  ;;  %v18339_v37 = vadd.f32 %v4319_v2, %v22087_v51 }
 0x5cf   : > { %v14508_v18 = vpop.f32.mrf.mxu1  ;;  %4409 = vmax.xlane.f32.xlu0 %v4408_v0  ;;  %4412 = vmax.xlane.f32.xlu1 %v4411_v31  ;;  %v18315_v31 = vadd.f32 %v4315_v60, %v22087_v51  ;;  %v4426_v4 = vsel %vm2369_vm4, %v18312_v39, -inf }
 0x5d0   : > { %v18304_v42 = vadd.f32 %v4312_v35, %v22086_v13  ;;  %v4441_v2 = vsel %vm2369_vm4, %v18339_v37, -inf }
 0x5d1   : > { %v4074_v54 = vpop.f32.mrf.mxu1  ;;  %v4429_v9 = vsel %vm2369_vm4, %v18315_v31, -inf }
 0x5d2   : > { %v4313_v3 = vmul.f32 0.17677669, %v4074_v54  ;;  %v4420_v35 = vsel %vm2369_vm4, %v18304_v42, -inf }
 0x5d3   : > { %v14509_v30 = vpop.f32.mrf.mxu1  ;;  %4415 = vmax.xlane.f32.xlu0 %v4414_v16  ;;  %4418 = vmax.xlane.f32.xlu1 %v4417_v1  ;;  %v18321_v16 = vpop.permute.xlu1 %4867 }
 0x5d4   : > { %v18309_v18 = vadd.f32 %v4313_v3, %v22087_v51  ;;  %22090 = vst [vmem:[#allocation81_spill] sm:$0xff] %v18321_v16  ;;  %v4318_v3 = vmul.f32 0.17677669, %v4230_v47 }
 0x5d5   : > { %v4177_v0 = vpop.f32.mrf.mxu1 }
 0x5d6   : > { %v4316_v6 = vmul.f32 0.17677669, %v4177_v0  ;;  %v4423_v54 = vsel %vm2369_vm4, %v18309_v18, -inf  ;;  %v18334_v47 = vadd.f32 %v4318_v3, %v22086_v13 }
 0x5d7   : > { %v14520_v30 = vpop.f32.mrf.mxu1  ;;  %4421 = vmax.xlane.f32.xlu0 %v4420_v35  ;;  %4424 = vmax.xlane.f32.xlu1 %v4423_v54 }
 0x5d8   : > { %v18326_v60 = vadd.f32 %v4316_v6, %v22086_v13  ;;  %v18336_v30 = vpop.permute.xlu1 %4963 }
 0x5d9   : > { %v4180_v1 = vpop.f32.mrf.mxu1  ;;  %22091 = vst [vmem:[#allocation82_spill] sm:$0xff] %v18336_v30 }
 0x5da   : > { %v4317_v0 = vmul.f32 0.17677669, %v4180_v1  ;;  %v4432_v1 = vsel %vm2369_vm4, %v18326_v60, -inf }
 0x5db   : > { %v14521_v59 = vpop.f32.mrf.mxu1  ;;  %4427 = vmax.xlane.f32.xlu0 %v4426_v4  ;;  %4430 = vmax.xlane.f32.xlu1 %v4429_v9 }
 0x5dc   : > { %v18331_v35 = vadd.f32 %v4317_v0, %v22087_v51  ;;  %v4438_v0 = vsel %vm2369_vm4, %v18334_v47, -inf  ;;  %v18354_v16 = vpop.permute.xlu1 %5059 }
 0x5dd   : > { %v4283_v54 = vpop.f32.mrf.mxu1  ;;  %22092 = vst [vmem:[#allocation83_spill] sm:$0xff] %v18354_v16 }
 0x5de   : > { %v4320_v6 = vmul.f32 0.17677669, %v4283_v54  ;;  %v4435_v59 = vsel %vm2369_vm4, %v18331_v35, -inf  ;;  %v18352_v54 = vpop.permute.xlu0 %4819 }
 0x5df   : > { %v14532_v9 = vpop.f32.mrf.mxu1  ;;  %4433 = vmax.xlane.f32.xlu0 %v4432_v1  ;;  %4436 = vmax.xlane.f32.xlu1 %v4435_v59 }
 0x5e0   : > { %v18346_v3 = vadd.f32 %v4320_v6, %v22086_v13  ;;  %v18360_v6 = vpop.permute.xlu1 %5155 }
 0x5e1   : > { %v4286_v4 = vpop.f32.mrf.mxu1  ;;  %22094 = vst [vmem:[#allocation85_spill] sm:$0xff] %v18360_v6 }
 0x5e2   : > { %v4444_v1 = vsel %vm2369_vm4, %v18346_v3, -inf  ;;  %v18358_v59 = vpop.permute.xlu0 %4915 }
 0x5e3   : > { %v14533_v30 = vpop.f32.mrf.mxu1  ;;  %4439 = vmax.xlane.f32.xlu0 %v4438_v0  ;;  %4442 = vmax.xlane.f32.xlu1 %v4441_v2  ;;  %22093 = vst [vmem:[#allocation84_spill] sm:$0xff] %v18358_v59 }
 0x5e4   : > { %v18364_v13 = vpop.permute.xlu1 %5203 }
 0x5e5   : > { %22096 = vst [vmem:[#allocation87_spill] sm:$0xff] %v18364_v13 }
 0x5e6   : > { %v18362_v9 = vpop.permute.xlu0 %5011 }
 0x5e7   : > { %4445 = vmax.xlane.f32.xlu0 %v4444_v1  ;;  %22095 = vst [vmem:[#allocation86_spill] sm:$0xff] %v18362_v9 }
 0x5e8   : > { %v18370_v0 = vpop.permute.xlu1 %5251 }
 0x5e9   : > { %22098 = vst [vmem:[#allocation89_spill] sm:$0xff] %v18370_v0 }
 0x5ea   : > { %v18368_v30 = vpop.permute.xlu0 %5107 }
 0x5eb   : > { %22097 = vst [vmem:[#allocation88_spill] sm:$0xff] %v18368_v30 }
 0x5ec   : > { %v18374_v16 = vpop.permute.xlu1 %5347 }
 0x5ed   : > { %22100 = vst [vmem:[#allocation91_spill] sm:$0xff] %v18374_v16 }
 0x5ee   : > { %v18372_v2 = vpop.permute.xlu0 %5299 }
 0x5ef   : > { %22099 = vst [vmem:[#allocation90_spill] sm:$0xff] %v18372_v2 }
 0x5f4   : > { %5443 = vrot.lane.b32.xlu1 %v22055_v24, %s16703_s2  ;;  %v4321_v24 = vmul.f32 0.17677669, %v4286_v4 }
 0x5f6   : > { %v18381_v0 = vadd.f32 %v4321_v24, %v22087_v51 }
 0x5f8   : > { %v4447_v16 = vsel %vm2369_vm4, %v18381_v0, -inf }
 0x5fb   : > { %v4356_v1 = vpop.xlane.xlu0 %4355 }
 0x5fc   : > { %v4450_v9 = vsub.f32 %v18192_v36, %v4356_v1 }
 0x5fd   : > { %5395 = vrot.lane.b32.xlu0 %v22054_v19, %s16703_s2 }
 0x5fe   : > { %v4482_v59 = vmul.f32 1.442695, %v4450_v9 }
 0x5ff   : > { %v4359_v6 = vpop.xlane.xlu1 %4358 }
 0x600   : > { %v4451_v13 = vsub.f32 %v18197_v45, %v4359_v6  ;;  %15851 = vpow2.f32 %v4482_v59 }
 0x602   : > { %v4484_v12 = vmul.f32 1.442695, %v4451_v13 }
 0x604   : > { %15853 = vpow2.f32 %v4484_v12 }
 0x60d   : > { %v18383_v2 = vpop.eup %15851 }
 0x60e   : > { %v4546_v36 = vsel %vm2369_vm4, %v18383_v2, 0.0 }
 0x611   : > { %v18387_v19 = vpop.eup %15853 }
 0x612   : > { %v4549_v45 = vsel %vm2369_vm4, %v18387_v19, 0.0 }
 0x618   : > { %4448 = vmax.xlane.f32.xlu1 %v4447_v16 }
 0x61c   : > { %4547 = vadd.xlane.f32.xlu0 %v4546_v36  ;;  %4550 = vadd.xlane.f32.xlu1 %v4549_v45 }
 0x62a   : > { %v4371_v4 = vpop.xlane.xlu1 %4370 }
 0x62b   : > { %v4455_v9 = vsub.f32 %v18204_v56, %v4371_v4 }
 0x62d   : > { %v4492_v30 = vmul.f32 1.442695, %v4455_v9 }
 0x634   : > { %v4362_v12 = vpop.xlane.xlu0 %4361 }
 0x635   : > { %v4452_v24 = vsub.f32 %v18211_v49, %v4362_v12 }
 0x637   : > { %v4486_v13 = vmul.f32 1.442695, %v4452_v24 }
 0x638   : > { %v4368_v59 = vpop.xlane.xlu0 %4367 }
 0x639   : > { %15855 = vpow2.f32 %v4486_v13  ;;  %v4454_v6 = vsub.f32 %v18214_v33, %v4368_v59 }
 0x63b   : > { %v4490_v16 = vmul.f32 1.442695, %v4454_v6 }
 0x63c   : > { %v4365_v1 = vpop.xlane.xlu0 %4364 }
 0x63d   : > { %15857 = vpow2.f32 %v4490_v16  ;;  %v4453_v51 = vsub.f32 %v18219_v17, %v4365_v1 }
 0x63f   : > { %v4488_v27 = vmul.f32 1.442695, %v4453_v51 }
 0x640   : > { %v4374_v36 = vpop.xlane.xlu0 %4373  ;;  %v4377_v45 = vpop.xlane.xlu1 %4376 }
 0x641   : > { %15859 = vpow2.f32 %v4488_v27  ;;  %v4456_v49 = vsub.f32 %v18224_v8, %v4374_v36  ;;  %v4457_v12 = vsub.f32 %v18229_v48, %v4377_v45 }
 0x642   : > { %15861 = vpow2.f32 %v4492_v30 }
 0x643   : > { %v4494_v24 = vmul.f32 1.442695, %v4456_v49  ;;  %v4496_v13 = vmul.f32 1.442695, %v4457_v12 }
 0x644   : > { %v4380_v33 = vpop.xlane.xlu0 %4379  ;;  %v4383_v59 = vpop.xlane.xlu1 %4382 }
 0x645   : > { %15863 = vpow2.f32 %v4494_v24  ;;  %v4458_v56 = vsub.f32 %v18232_v63, %v4380_v33  ;;  %v4459_v4 = vsub.f32 %v18235_v58, %v4383_v59 }
 0x646   : > { %v18401_v17 = vpop.eup %15855  ;;  %15865 = vpow2.f32 %v4496_v13 }
 0x647   : > { %v4498_v51 = vmul.f32 1.442695, %v4458_v56  ;;  %v4500_v6 = vmul.f32 1.442695, %v4459_v4  ;;  %v4552_v27 = vsel %vm2369_vm4, %v18401_v17, 0.0 }
 0x648   : > { %v4386_v8 = vpop.xlane.xlu0 %4385  ;;  %v4389_v48 = vpop.xlane.xlu1 %4388  ;;  %4553 = vadd.xlane.f32.xlu0 %v4552_v27 }
 0x649   : > { %15867 = vpow2.f32 %v4498_v51  ;;  %v4460_v30 = vsub.f32 %v18244_v40, %v4386_v8  ;;  %v4461_v9 = vsub.f32 %v18249_v29, %v4389_v48 }
 0x64a   : > { %v18407_v16 = vpop.eup %15857  ;;  %15869 = vpow2.f32 %v4500_v6 }
 0x64b   : > { %v4502_v63 = vmul.f32 1.442695, %v4460_v30  ;;  %v4504_v58 = vmul.f32 1.442695, %v4461_v9  ;;  %v4558_v1 = vsel %vm2369_vm4, %v18407_v16, 0.0 }
 0x64c   : > { %v4392_v36 = vpop.xlane.xlu0 %4391  ;;  %v4395_v45 = vpop.xlane.xlu1 %4394  ;;  %4559 = vadd.xlane.f32.xlu0 %v4558_v1 }
 0x64d   : > { %15871 = vpow2.f32 %v4502_v63  ;;  %v4462_v49 = vsub.f32 %v18252_v5, %v4392_v36  ;;  %v4463_v12 = vsub.f32 %v18255_v46, %v4395_v45 }
 0x64e   : > { %v18413_v24 = vpop.eup %15859  ;;  %15873 = vpow2.f32 %v4504_v58 }
 0x64f   : > { %v4506_v40 = vmul.f32 1.442695, %v4462_v49  ;;  %v4508_v29 = vmul.f32 1.442695, %v4463_v12  ;;  %v4555_v13 = vsel %vm2369_vm4, %v18413_v24, 0.0  ;;  %v18417_v33 = vpop.eup %15861 }
 0x650   : > { %v4398_v59 = vpop.xlane.xlu0 %4397  ;;  %v4401_v56 = vpop.xlane.xlu1 %4400  ;;  %4556 = vadd.xlane.f32.xlu1 %v4555_v13  ;;  %v4561_v27 = vsel %vm2369_vm4, %v18417_v33, 0.0 }
 0x651   : > { %15875 = vpow2.f32 %v4506_v40  ;;  %v4464_v4 = vsub.f32 %v18264_v15, %v4398_v59  ;;  %v4465_v5 = vsub.f32 %v18269_v25, %v4401_v56 }
 0x652   : > { %v18420_v51 = vpop.eup %15863  ;;  %15877 = vpow2.f32 %v4508_v29 }
 0x653   : > { %v4510_v46 = vmul.f32 1.442695, %v4464_v4  ;;  %v4564_v6 = vsel %vm2369_vm4, %v18420_v51, 0.0  ;;  %v18427_v8 = vpop.eup %15865  ;;  %v4512_v63 = vmul.f32 1.442695, %v4465_v5 }
 0x654   : > { %v4404_v48 = vpop.xlane.xlu0 %4403  ;;  %v4407_v30 = vpop.xlane.xlu1 %4406  ;;  %4565 = vadd.xlane.f32.xlu0 %v4564_v6  ;;  %4562 = vadd.xlane.f32.xlu1 %v4561_v27  ;;  %v4567_v45 = vsel %vm2369_vm4, %v18427_v8, 0.0 }
 0x655   : > { %15879 = vpow2.f32 %v4510_v46  ;;  %v4466_v15 = vsub.f32 %v18272_v28, %v4404_v48  ;;  %v4467_v9 = vsub.f32 %v18275_v34, %v4407_v30 }
 0x656   : > { %v18431_v25 = vpop.eup %15867 }
 0x657   : > { %v4514_v58 = vmul.f32 1.442695, %v4466_v15  ;;  %v4516_v1 = vmul.f32 1.442695, %v4467_v9  ;;  %v4570_v36 = vsel %vm2369_vm4, %v18431_v25, 0.0  ;;  %v18437_v49 = vpop.eup %15869 }
 0x658   : > { %v4410_v12 = vpop.xlane.xlu0 %4409  ;;  %v4413_v40 = vpop.xlane.xlu1 %4412  ;;  %4571 = vadd.xlane.f32.xlu0 %v4570_v36  ;;  %4568 = vadd.xlane.f32.xlu1 %v4567_v45  ;;  %v4573_v56 = vsel %vm2369_vm4, %v18437_v49, 0.0 }
 0x659   : > { %15881 = vpow2.f32 %v4514_v58  ;;  %v4468_v28 = vsub.f32 %v18284_v41, %v4410_v12  ;;  %v4469_v29 = vsub.f32 %v18289_v7, %v4413_v40 }
 0x65a   : > { %v18440_v34 = vpop.eup %15871  ;;  %15883 = vpow2.f32 %v4516_v1 }
 0x65b   : > { %15885 = vpow2.f32 %v4512_v63  ;;  %v4518_v13 = vmul.f32 1.442695, %v4468_v28  ;;  %v4576_v59 = vsel %vm2369_vm4, %v18440_v34, 0.0  ;;  %v18447_v4 = vpop.eup %15873  ;;  %v4520_v27 = vmul.f32 1.442695, %v4469_v29 }
 0x65c   : > { %v4416_v5 = vpop.xlane.xlu0 %4415  ;;  %v4419_v46 = vpop.xlane.xlu1 %4418  ;;  %4577 = vadd.xlane.f32.xlu0 %v4576_v59  ;;  %4574 = vadd.xlane.f32.xlu1 %v4573_v56  ;;  %v4579_v9 = vsel %vm2369_vm4, %v18447_v4, 0.0 }
 0x65d   : > { %15887 = vpow2.f32 %v4518_v13  ;;  %v4470_v41 = vsub.f32 %v18292_v52, %v4416_v5  ;;  %v4471_v6 = vsub.f32 %v18295_v21, %v4419_v46 }
 0x65e   : > { %v18451_v7 = vpop.eup %15875 }
 0x65f   : > { %v4522_v48 = vmul.f32 1.442695, %v4470_v41  ;;  %v4524_v30 = vmul.f32 1.442695, %v4471_v6  ;;  %v4582_v15 = vsel %vm2369_vm4, %v18451_v7, 0.0  ;;  %v18457_v63 = vpop.eup %15877 }
 0x660   : > { %v4422_v58 = vpop.xlane.xlu0 %4421  ;;  %v4425_v1 = vpop.xlane.xlu1 %4424  ;;  %4583 = vadd.xlane.f32.xlu0 %v4582_v15  ;;  %4580 = vadd.xlane.f32.xlu1 %v4579_v9  ;;  %v4585_v40 = vsel %vm2369_vm4, %v18457_v63, 0.0 }
 0x661   : > { %15889 = vpow2.f32 %v4522_v48  ;;  %v4472_v52 = vsub.f32 %v18304_v42, %v4422_v58  ;;  %v4473_v36 = vsub.f32 %v18309_v18, %v4425_v1 }
 0x662   : > { %v18460_v21 = vpop.eup %15879  ;;  %15891 = vpow2.f32 %v4524_v30 }
 0x663   : > { %15893 = vpow2.f32 %v4520_v27  ;;  %v4526_v45 = vmul.f32 1.442695, %v4472_v52  ;;  %v4588_v12 = vsel %vm2369_vm4, %v18460_v21, 0.0  ;;  %v4528_v18 = vmul.f32 1.442695, %v4473_v36 }
 0x664   : > { %v4428_v28 = vpop.xlane.xlu0 %4427  ;;  %v4431_v29 = vpop.xlane.xlu1 %4430  ;;  %4589 = vadd.xlane.f32.xlu0 %v4588_v12  ;;  %4586 = vadd.xlane.f32.xlu1 %v4585_v40 }
 0x665   : > { %15895 = vpow2.f32 %v4526_v45  ;;  %v4474_v42 = vsub.f32 %v18312_v39, %v4428_v28  ;;  %v4475_v13 = vsub.f32 %v18315_v31, %v4431_v29 }
 0x666   : > { %v18469_v59 = vpop.eup %15881 }
 0x667   : > { %v18471_v56 = vpop.eup %15883  ;;  %v4530_v5 = vmul.f32 1.442695, %v4474_v42  ;;  %v4532_v46 = vmul.f32 1.442695, %v4475_v13  ;;  %v4594_v41 = vsel %vm2369_vm4, %v18469_v59, 0.0 }
 0x668   : > { %v18475_v6 = vpop.eup %15885  ;;  %v4434_v27 = vpop.xlane.xlu0 %4433  ;;  %v4597_v30 = vsel %vm2369_vm4, %v18471_v56, 0.0  ;;  %4595 = vadd.xlane.f32.xlu1 %v4594_v41 }
 0x669   : > { %v4437_v48 = vpop.xlane.xlu1 %4436  ;;  %15897 = vpow2.f32 %v4530_v5  ;;  %v4476_v39 = vsub.f32 %v18326_v60, %v4434_v27  ;;  %4598 = vadd.xlane.f32.xlu0 %v4597_v30  ;;  %v4591_v1 = vsel %vm2369_vm4, %v18475_v6, 0.0 }
 0x66a   : > { %v18480_v31 = vpop.eup %15887  ;;  %15899 = vpow2.f32 %v4532_v46  ;;  %v4477_v15 = vsub.f32 %v18331_v35, %v4437_v48 }
 0x66b   : > { %15901 = vpow2.f32 %v4528_v18  ;;  %v4534_v9 = vmul.f32 1.442695, %v4476_v39  ;;  %v4600_v58 = vsel %vm2369_vm4, %v18480_v31, 0.0 }
 0x66c   : > { %v4440_v52 = vpop.xlane.xlu0 %4439  ;;  %4592 = vadd.xlane.f32.xlu1 %v4591_v1  ;;  %v4536_v35 = vmul.f32 1.442695, %v4477_v15 }
 0x66d   : > { %v4443_v36 = vpop.xlane.xlu1 %4442  ;;  %15903 = vpow2.f32 %v4534_v9  ;;  %4601 = vadd.xlane.f32.xlu0 %v4600_v58  ;;  %v4478_v60 = vsub.f32 %v18334_v47, %v4440_v52 }
 0x66e   : > { %v4479_v45 = vsub.f32 %v18339_v37, %v4443_v36  ;;  %v18489_v12 = vpop.eup %15889 }
 0x66f   : > { %v18491_v40 = vpop.eup %15891  ;;  %v4538_v28 = vmul.f32 1.442695, %v4478_v60  ;;  %v4606_v42 = vsel %vm2369_vm4, %v18489_v12, 0.0 }
 0x670   : > { %v4540_v29 = vmul.f32 1.442695, %v4479_v45  ;;  %v18495_v13 = vpop.eup %15893  ;;  %v4609_v18 = vsel %vm2369_vm4, %v18491_v40, 0.0  ;;  %v4446_v5 = vpop.xlane.xlu0 %4445  ;;  %4607 = vadd.xlane.f32.xlu1 %v4606_v42 }
 0x671   : > { %15905 = vpow2.f32 %v4538_v28  ;;  %4610 = vadd.xlane.f32.xlu0 %v4609_v18  ;;  %v4480_v47 = vsub.f32 %v18346_v3, %v4446_v5  ;;  %v4603_v27 = vsel %vm2369_vm4, %v18495_v13, 0.0  ;;  %v18542_v18 = vpop.permute.xlu1 %5443 }
 0x672   : > { %v18500_v37 = vpop.eup %15895  ;;  %15907 = vpow2.f32 %v4540_v29 }
 0x673   : > { %15909 = vpow2.f32 %v4536_v35  ;;  %v4542_v46 = vmul.f32 1.442695, %v4480_v47  ;;  %v4612_v41 = vsel %vm2369_vm4, %v18500_v37, 0.0 }
 0x674   : > { %4604 = vadd.xlane.f32.xlu1 %v4603_v27  ;;  %v18546_v5 = vpop.permute.xlu0 %5395 }
 0x675   : > { %15911 = vpow2.f32 %v4542_v46  ;;  %4613 = vadd.xlane.f32.xlu0 %v4612_v41 }
 0x676   : > { %v18506_v48 = vpop.eup %15897 }
 0x677   : > { %v18508_v30 = vpop.eup %15899  ;;  %v4618_v3 = vsel %vm2369_vm4, %v18506_v48, 0.0 }
 0x678   : > { %v18512_v39 = vpop.eup %15901  ;;  %v4621_v15 = vsel %vm2369_vm4, %v18508_v30, 0.0  ;;  %4619 = vadd.xlane.f32.xlu1 %v4618_v3 }
 0x679   : > { %4622 = vadd.xlane.f32.xlu0 %v4621_v15  ;;  %v4615_v1 = vsel %vm2369_vm4, %v18512_v39, 0.0 }
 0x67a   : > { %v18516_v9 = vpop.eup %15903 }
 0x67b   : > { %v4624_v58 = vsel %vm2369_vm4, %v18516_v9, 0.0 }
 0x67c   : > { %4616 = vadd.xlane.f32.xlu1 %v4615_v1 }
 0x67d   : > { %4625 = vadd.xlane.f32.xlu0 %v4624_v58 }
 0x67e   : > { %v18522_v52 = vpop.eup %15905 }
 0x67f   : > { %v18524_v36 = vpop.eup %15907  ;;  %v4630_v60 = vsel %vm2369_vm4, %v18522_v52, 0.0 }
 0x680   : > { %v18528_v45 = vpop.eup %15909  ;;  %4631 = vadd.xlane.f32.xlu1 %v4630_v60  ;;  %v4633_v35 = vsel %vm2369_vm4, %v18524_v36, 0.0 }
 0x681   : > { %4634 = vadd.xlane.f32.xlu0 %v4633_v35  ;;  %v4627_v29 = vsel %vm2369_vm4, %v18528_v45, 0.0 }
 0x682   : > { %v18532_v28 = vpop.eup %15911 }
 0x683   : > { %v4636_v42 = vsel %vm2369_vm4, %v18532_v28, 0.0 }
 0x684   : > { %4628 = vadd.xlane.f32.xlu1 %v4627_v29 }
 0x685   : > { %4637 = vadd.xlane.f32.xlu0 %v4636_v42  ;;  %v22103_v42 = vld [vmem:[#allocation42_spill] sm:$0xff] }
 0x695   : > { %5543 = vrot.lane.b32.xlu1 %v17216_v38, %s16704_s26 }
 0x69b   : > { %5492 = vrot.lane.b32.xlu0 %v17193_v14, %s16704_s26 }
 0x69f   : > { %5490 = vrot.lane.b32.xlu0 %v17214_v61, %s16704_s26 }
 0x6a1   : > { %v4449_v47 = vpop.xlane.xlu1 %4448 }
 0x6a2   : > { %v4481_v46 = vsub.f32 %v18381_v0, %v4449_v47  ;;  %v22104_v47 = vld [vmem:[#allocation26_spill] sm:$0xff] }
 0x6a3   : > { %5541 = vrot.lane.b32.xlu0 %v17237_v23, %s16704_s26 }
 0x6a4   : > { %v4544_v41 = vmul.f32 1.442695, %v4481_v46  ;;  %v22105_v46 = vld [vmem:[#allocation44_spill] sm:$0xff] }
 0x6a5   : > { %v4548_v27 = vpop.xlane.xlu0 %4547  ;;  %v4551_v3 = vpop.xlane.xlu1 %4550 }
 0x6a6   : > { %15913 = vpow2.f32 %v4544_v41 }
 0x6a7   : > { %15915 = vrcp.f32 %v4548_v27  ;;  %5592 = vrot.lane.b32.xlu0 %v17260_v53, %s16704_s26 }
 0x6a8   : > { %15917 = vrcp.f32 %v4551_v3  ;;  %v22106_v3 = vld [vmem:[#allocation29_spill] sm:$0xff] }
 0x6ab   : > { %5643 = vrot.lane.b32.xlu0 %v17283_v10, %s16704_s26 }
 0x6af   : > { %5694 = vrot.lane.b32.xlu0 %v17306_v57, %s16704_s26 }
 0x6b3   : > { %v18557_v15 = vpop.eup %15913  ;;  %5745 = vrot.lane.b32.xlu0 %v17329_v44, %s16704_s26 }
 0x6b4   : > { %v15916_v0 = vpop.eup %15915  ;;  %v4639_v29 = vsel %vm2369_vm4, %v18557_v15, 0.0 }
 0x6b5   : > { %v15918_v58 = vpop.eup %15917  ;;  %v4674_v1 = vmul.f32 %v15916_v0, %v18383_v2  ;;  %v22107_v0 = vld [vmem:[#allocation46_spill] sm:$0xff] }
 0x6b6   : > { %v4675_v60 = vmul.f32 %v15918_v58, %v18387_v19  ;;  %v22101_v19 = vld [vmem:[#allocation40_spill] sm:$0xff] }
 0x6b7   : > { %5796 = vrot.lane.b32.xlu0 %v17352_v11, %s16704_s26 }
 0x6b8   : > { %v4706_v35 = vpack.c.bf16 %v4675_v60, %v4674_v1  ;;  %v22108_v60 = vld [vmem:[#allocation32_spill] sm:$0xff] }
 0x6b9   : > { %4640 = vadd.xlane.f32.xlu1 %v4639_v29 }
 0x6ba   : > { %14537 = vmatmul.mubr.msk.bf16.vlgmr.msra.gmra.mxu0 %vm2369_vm4, %v4706_v35  ;;  %v22109_v35 = vld [vmem:[#allocation16_spill] sm:$0xff] }
 0x6bb   : > { %14547 = vmatpush3.bf16.msra.mxu0 %v18352_v54  ;;  %5847 = vrot.lane.b32.xlu0 %v17373_v62, %s16704_s26  ;;  %v22102_v54 = vld [vmem:[#allocation23_spill] sm:$0xff] }
 0x6bc   : > { %14548 = vmatprep.mubr.msk.bf16.mxu0 %vm16701_vm0, %v22017_v55  ;;  %14558 = vmatprep.subr.bf16.mxu0 %v22017_v55 }
 0x6bf   : > { %5898 = vrot.lane.b32.xlu0 %v17388_v26, %s16704_s26 }
 0x6c3   : > { %5949 = vrot.lane.b32.xlu0 %v17403_v32, %s16704_s26 }
 0x6c7   : > { %6000 = vrot.lane.b32.xlu0 %v17418_v20, %s16704_s26 }
 0x6ca   : > { %5594 = vrot.lane.b32.xlu1 %v22027_v22, %s16704_s26 }
 0x6cb   : > { %6051 = vrot.lane.b32.xlu0 %v17433_v43, %s16704_s26 }
 0x6ce   : > { %5645 = vrot.lane.b32.xlu1 %v22030_v50, %s16704_s26 }
 0x6cf   : > { %6102 = vrot.lane.b32.xlu0 %v22101_v19, %s16704_s26 }
 0x6d1   : > { %v4554_v2 = vpop.xlane.xlu0 %4553 }
 0x6d2   : > { %5696 = vrot.lane.b32.xlu1 %v22102_v54, %s16704_s26  ;;  %15919 = vrcp.f32 %v4554_v2 }
 0x6d3   : > { %6153 = vrot.lane.b32.xlu0 %v22103_v42, %s16704_s26 }
 0x6d5   : > { %v4560_v41 = vpop.xlane.xlu0 %4559 }
 0x6d6   : > { %5747 = vrot.lane.b32.xlu1 %v22104_v47, %s16704_s26 }
 0x6d7   : > { %6204 = vrot.lane.b32.xlu0 %v22105_v46, %s16704_s26 }
 0x6d9   : > { %v4557_v27 = vpop.xlane.xlu1 %4556 }
 0x6da   : > { %15921 = vrcp.f32 %v4557_v27  ;;  %5798 = vrot.lane.b32.xlu1 %v22106_v3, %s16704_s26  ;;  %v22110_v27 = vld [vmem:[#allocation35_spill] sm:$0xff] }
 0x6db   : > { %6738 = vrot.lane.b32.xlu0 %v22107_v0, %s16704_s26  ;;  %15923 = vrcp.f32 %v4560_v41  ;;  %v22111_v3 = vld [vmem:[#allocation19_spill] sm:$0xff] }
 0x6dd   : > { %v4566_v58 = vpop.xlane.xlu0 %4565  ;;  %v4563_v1 = vpop.xlane.xlu1 %4562 }
 0x6de   : > { %5849 = vrot.lane.b32.xlu1 %v22108_v60, %s16704_s26  ;;  %15925 = vrcp.f32 %v4563_v1  ;;  %v22112_v60 = vld [vmem:[#allocation36_spill] sm:$0xff] }
 0x6df   : > { %6832 = vrot.lane.b32.xlu0 %v22109_v35, %s16704_s26  ;;  %15927 = vrcp.f32 %v4566_v58  ;;  %v15920_v41 = vpop.eup %15919  ;;  %v22113_v58 = vld [vmem:[#allocation22_spill] sm:$0xff] }
 0x6e0   : > { %v4676_v35 = vmul.f32 %v15920_v41, %v18401_v17 }
 0x6e1   : > { %v4572_v29 = vpop.xlane.xlu0 %4571  ;;  %v4569_v2 = vpop.xlane.xlu1 %4568 }
 0x6e2   : > { %5900 = vrot.lane.b32.xlu1 %v22110_v27, %s16704_s26  ;;  %15929 = vrcp.f32 %v4569_v2 }
 0x6e3   : > { %6926 = vrot.lane.b32.xlu0 %v22111_v3, %s16704_s26  ;;  %15931 = vrcp.f32 %v4572_v29  ;;  %v22114_v29 = vld [vmem:[#allocation37_spill] sm:$0xff] }
 0x6e5   : > { %v4578_v0 = vpop.xlane.xlu0 %4577  ;;  %v4575_v46 = vpop.xlane.xlu1 %4574 }
 0x6e6   : > { %5951 = vrot.lane.b32.xlu1 %v22112_v60, %s16704_s26  ;;  %15933 = vrcp.f32 %v4575_v46  ;;  %v22115_v60 = vld [vmem:[#allocation25_spill] sm:$0xff] }
 0x6e7   : > { %v15922_v1 = vpop.eup %15921  ;;  %7020 = vrot.lane.b32.xlu0 %v22113_v58, %s16704_s26  ;;  %15935 = vrcp.f32 %v4578_v0 }
 0x6e8   : > { %v4677_v27 = vmul.f32 %v15922_v1, %v18413_v24  ;;  %v15924_v3 = vpop.eup %15923  ;;  %v22116_v24 = vld [vmem:[#allocation81_spill] sm:$0xff] }
 0x6e9   : > { %v4584_v2 = vpop.xlane.xlu0 %4583  ;;  %v4581_v47 = vpop.xlane.xlu1 %4580  ;;  %v4678_v58 = vmul.f32 %v15924_v3, %v18407_v16 }
 0x6ea   : > { %6002 = vrot.lane.b32.xlu1 %v22114_v29, %s16704_s26  ;;  %v4707_v42 = vpack.c.bf16 %v4677_v27, %v4676_v35  ;;  %15937 = vrcp.f32 %v4581_v47  ;;  %v22117_v47 = vld [vmem:[#allocation38_spill] sm:$0xff] }
 0x6eb   : > { %7114 = vrot.lane.b32.xlu0 %v22115_v60, %s16704_s26  ;;  %v15926_v46 = vpop.eup %15925  ;;  %15939 = vrcp.f32 %v4584_v2 }
 0x6ec   : > { %14543 = vmatmul.mubr.msk.bf16.vlgmr.msra.gmra.mxu1 %vm2369_vm4, %v4707_v42  ;;  %v4679_v17 = vmul.f32 %v15926_v46, %v18417_v33  ;;  %v15928_v35 = vpop.eup %15927  ;;  %v22118_v42 = vld [vmem:[#allocation31_spill] sm:$0xff]  ;;  %v22119_v46 = vld [vmem:[#allocation84_spill] sm:$0xff] }
 0x6ed   : > { %14553 = vmatpush3.bf16.msra.mxu1 %v22116_v24  ;;  %v4590_v0 = vpop.xlane.xlu0 %4589  ;;  %v4587_v41 = vpop.xlane.xlu1 %4586  ;;  %14554 = vmatprep.mubr.msk.bf16.mxu1 %vm16701_vm0, %v22017_v55  ;;  %v4680_v3 = vmul.f32 %v15928_v35, %v18420_v51 }
 0x6ee   : > { %6053 = vrot.lane.b32.xlu1 %v22117_v47, %s16704_s26  ;;  %14564 = vmatprep.subr.bf16.mxu1 %v22017_v55  ;;  %15941 = vrcp.f32 %v4587_v41  ;;  %v4708_v16 = vpack.c.bf16 %v4679_v17, %v4678_v58  ;;  %v22120_v47 = vld [vmem:[#allocation39_spill] sm:$0xff] }
 0x6ef   : > { %7302 = vrot.lane.b32.xlu0 %v22118_v42, %s16704_s26  ;;  %v15930_v33 = vpop.eup %15929 }
 0x6f0   : > { %v4681_v27 = vmul.f32 %v15930_v33, %v18427_v8  ;;  %14549 = vmatmul.mubr.msk.bf16.vlgmr.msra.gmra.mxu0 %vm2369_vm4, %v4708_v16  ;;  %v15932_v2 = vpop.eup %15931  ;;  %v22121_v16 = vld [vmem:[#allocation82_spill] sm:$0xff] }
 0x6f1   : > { %v4596_v1 = vpop.xlane.xlu1 %4595  ;;  %14559 = vmatpush3.bf16.msra.mxu0 %v22119_v46  ;;  %14560 = vmatprep.mubr.msk.bf16.mxu0 %vm16701_vm0, %v22017_v55  ;;  %v4682_v8 = vmul.f32 %v15932_v2, %v18431_v25  ;;  %v22123_v46 = vld [vmem:[#allocation86_spill] sm:$0xff] }
 0x6f2   : > { %v4599_v24 = vpop.xlane.xlu0 %4598  ;;  %15943 = vrcp.f32 %v4596_v1  ;;  %6104 = vrot.lane.b32.xlu1 %v22120_v47, %s16704_s26  ;;  %v4709_v41 = vpack.c.bf16 %v4681_v27, %v4680_v3  ;;  %14570 = vmatprep.subr.bf16.mxu0 %v22017_v55  ;;  %v22122_v3 = vld [vmem:[#allocation41_spill] sm:$0xff] }
 0x6f3   : > { %15945 = vrcp.f32 %v4599_v24  ;;  %v15934_v51 = vpop.eup %15933 }
 0x6f4   : > { %15947 = vrcp.f32 %v4590_v0  ;;  %v4683_v58 = vmul.f32 %v15934_v51, %v18437_v49  ;;  %14555 = vmatmul.mubr.msk.bf16.vlgmr.msra.gmra.mxu1 %vm2369_vm4, %v4709_v41  ;;  %v15936_v35 = vpop.eup %15935  ;;  %v22124_v41 = vld [vmem:[#allocation43_spill] sm:$0xff] }
 0x6f5   : > { %v4593_v17 = vpop.xlane.xlu1 %4592  ;;  %14565 = vmatpush3.bf16.msra.mxu1 %v22121_v16  ;;  %14566 = vmatprep.mubr.msk.bf16.mxu1 %vm16701_vm0, %v22017_v55  ;;  %v4684_v49 = vmul.f32 %v15936_v35, %v18440_v34  ;;  %v22126_v16 = vld [vmem:[#allocation45_spill] sm:$0xff] }
 0x6f6   : > { %v4602_v33 = vpop.xlane.xlu0 %4601  ;;  %15949 = vrcp.f32 %v4593_v17  ;;  %6155 = vrot.lane.b32.xlu1 %v22122_v3, %s16704_s26  ;;  %v4710_v27 = vpack.c.bf16 %v4683_v58, %v4682_v8  ;;  %14576 = vmatprep.subr.bf16.mxu1 %v22017_v55  ;;  %v22125_v17 = vld [vmem:[#allocation83_spill] sm:$0xff] }
 0x6f7   : > { %v15938_v25 = vpop.eup %15937 }
 0x6f8   : > { %v4685_v0 = vmul.f32 %v15938_v25, %v18447_v4  ;;  %14561 = vmatmul.mubr.msk.bf16.vlgmr.msra.gmra.mxu0 %vm2369_vm4, %v4710_v27  ;;  %v15940_v2 = vpop.eup %15939 }
 0x6f9   : > { %v4608_v1 = vpop.xlane.xlu1 %4607  ;;  %14571 = vmatpush3.bf16.msra.mxu0 %v22123_v46  ;;  %14572 = vmatprep.mubr.msk.bf16.mxu0 %vm16701_vm0, %v22017_v55  ;;  %v4686_v4 = vmul.f32 %v15940_v2, %v18451_v7 }
 0x6fa   : > { %v4611_v24 = vpop.xlane.xlu0 %4610  ;;  %15951 = vrcp.f32 %v4608_v1  ;;  %6206 = vrot.lane.b32.xlu1 %v22124_v41, %s16704_s26  ;;  %v4711_v51 = vpack.c.bf16 %v4685_v0, %v4684_v49  ;;  %14582 = vmatprep.subr.bf16.mxu0 %v22017_v55  ;;  %v22127_v49 = vld [vmem:[#allocation88_spill] sm:$0xff]  ;;  %v22128_v1 = vld [vmem:[#allocation47_spill] sm:$0xff] }
 0x6fb   : > { %15953 = vrcp.f32 %v4611_v24  ;;  %v15942_v34 = vpop.eup %15941 }
 0x6fc   : > { %15955 = vrcp.f32 %v4602_v33  ;;  %v4687_v8 = vmul.f32 %v15942_v34, %v18457_v63  ;;  %14567 = vmatmul.mubr.msk.bf16.vlgmr.msra.gmra.mxu1 %vm2369_vm4, %v4711_v51 }
 0x6fd   : > { %v4605_v58 = vpop.xlane.xlu1 %4604  ;;  %14577 = vmatpush3.bf16.msra.mxu1 %v22125_v17  ;;  %14578 = vmatprep.mubr.msk.bf16.mxu1 %vm16701_vm0, %v22017_v55 }
 0x6fe   : > { %v4614_v35 = vpop.xlane.xlu0 %4613  ;;  %15957 = vrcp.f32 %v4605_v58  ;;  %6257 = vrot.lane.b32.xlu1 %v22126_v16, %s16704_s26  ;;  %v4712_v25 = vpack.c.bf16 %v4687_v8, %v4686_v4  ;;  %14588 = vmatprep.subr.bf16.mxu1 %v22017_v55  ;;  %v22129_v58 = vld [vmem:[#allocation48_spill] sm:$0xff] }
 0x6ff   : > { %v15944_v27 = vpop.eup %15943 }
 0x700   : > { %v15946_v7 = vpop.eup %15945  ;;  %14573 = vmatmul.mubr.msk.bf16.vlgmr.msra.gmra.mxu0 %vm2369_vm4, %v4712_v25  ;;  %v4690_v24 = vmul.f32 %v15944_v27, %v18469_v59 }
 0x701   : > { %v15948_v33 = vpop.eup %15947  ;;  %v4620_v63 = vpop.xlane.xlu1 %4619  ;;  %14583 = vmatpush3.bf16.msra.mxu0 %v22127_v49  ;;  %v4691_v46 = vmul.f32 %v15946_v7, %v18471_v56  ;;  %14584 = vmatprep.mubr.msk.bf16.mxu0 %vm16701_vm0, %v22017_v55  ;;  %v22130_v7 = vld [vmem:[#allocation85_spill] sm:$0xff] }
 0x702   : > { %v4623_v0 = vpop.xlane.xlu0 %4622  ;;  %15959 = vrcp.f32 %v4620_v63  ;;  %6255 = vrot.lane.b32.xlu1 %v22128_v1, %s16704_s26  ;;  %14594 = vmatprep.subr.bf16.mxu0 %v22017_v55  ;;  %v4688_v51 = vmul.f32 %v15948_v33, %v18460_v21  ;;  %v22132_v33 = vld [vmem:[#allocation15_spill] sm:$0xff] }
 0x703   : > { %v15950_v2 = vpop.eup %15949  ;;  %15961 = vrcp.f32 %v4623_v0  ;;  %v4714_v59 = vpack.c.bf16 %v4691_v46, %v4690_v24 }
 0x704   : > { %v4689_v34 = vmul.f32 %v15950_v2, %v18475_v6  ;;  %15963 = vrcp.f32 %v4614_v35  ;;  %v22131_v6 = vld [vmem:[#allocation87_spill] sm:$0xff] }
 0x705   : > { %v4617_v4 = vpop.xlane.xlu1 %4616 }
 0x706   : > { %v4626_v8 = vpop.xlane.xlu0 %4625  ;;  %15965 = vrcp.f32 %v4617_v4  ;;  %6785 = vrot.lane.b32.xlu1 %v22129_v58, %s16704_s26  ;;  %v4713_v56 = vpack.c.bf16 %v4689_v34, %v4688_v51 }
 0x707   : > { %v15952_v17 = vpop.eup %15951 }
 0x708   : > { %v15954_v27 = vpop.eup %15953  ;;  %14579 = vmatmul.mubr.msk.bf16.vlgmr.msra.gmra.mxu1 %vm2369_vm4, %v4713_v56  ;;  %14585 = vmatmul.mubr.msk.bf16.vlgmr.msra.gmra.mxu0 %vm2369_vm4, %v4714_v59  ;;  %v4694_v0 = vmul.f32 %v15952_v17, %v18489_v12  ;;  %v22133_v12 = vld [vmem:[#allocation18_spill] sm:$0xff] }
 0x709   : > { %v15956_v25 = vpop.eup %15955  ;;  %14589 = vmatpush3.bf16.msra.mxu1 %v22130_v7  ;;  %v4632_v21 = vpop.xlane.xlu1 %4631  ;;  %14595 = vmatpush3.bf16.msra.mxu0 %v22131_v6  ;;  %v4695_v49 = vmul.f32 %v15954_v27, %v18491_v40 }
 0x70a   : > { %v4635_v35 = vpop.xlane.xlu0 %4634  ;;  %15967 = vrcp.f32 %v4632_v21  ;;  %6879 = vrot.lane.b32.xlu1 %v22132_v33, %s16704_s26  ;;  %14590 = vmatprep.mubr.msk.bf16.mxu1 %vm16701_vm0, %v22017_v55  ;;  %v4692_v2 = vmul.f32 %v15956_v25, %v18480_v31  ;;  %v22134_v31 = vld [vmem:[#allocation89_spill] sm:$0xff]  ;;  %v22137_v21 = vld [vmem:[#allocation24_spill] sm:$0xff] }
 0x70b   : > { %v15958_v63 = vpop.eup %15957  ;;  %15969 = vrcp.f32 %v4635_v35  ;;  %14596 = vmatprep.mubr.msk.bf16.mxu0 %vm16701_vm0, %v22017_v55  ;;  %14600 = vmatprep.subr.bf16.mxu1 %v22017_v55  ;;  %v4716_v34 = vpack.c.bf16 %v4695_v49, %v4694_v0 }
 0x70c   : > { %v4693_v46 = vmul.f32 %v15958_v63, %v18495_v13  ;;  %15971 = vrcp.f32 %v4626_v8  ;;  %14606 = vmatprep.subr.bf16.mxu0 %v22017_v55  ;;  %v22135_v13 = vld [vmem:[#allocation90_spill] sm:$0xff]  ;;  %v22136_v8 = vld [vmem:[#allocation21_spill] sm:$0xff] }
 0x70d   : > { %v4629_v24 = vpop.xlane.xlu1 %4628 }
 0x70e   : > { %15973 = vrcp.f32 %v4629_v24  ;;  %6973 = vrot.lane.b32.xlu1 %v22133_v12, %s16704_s26  ;;  %v4715_v40 = vpack.c.bf16 %v4693_v46, %v4692_v2  ;;  %v4638_v63 = vpop.xlane.xlu0 %4637 }
 0x70f   : > { %v15960_v51 = vpop.eup %15959  ;;  %15975 = vrcp.f32 %v4638_v63 }
 0x710   : > { %v15962_v4 = vpop.eup %15961  ;;  %14591 = vmatmul.mubr.msk.bf16.vlgmr.msra.gmra.mxu1 %vm2369_vm4, %v4715_v40  ;;  %14597 = vmatmul.mubr.msk.bf16.vlgmr.msra.gmra.mxu0 %vm2369_vm4, %v4716_v34  ;;  %v4698_v27 = vmul.f32 %v15960_v51, %v18506_v48  ;;  %v22140_v51 = vld [vmem:[#allocation27_spill] sm:$0xff] }
 0x711   : > { %v15964_v56 = vpop.eup %15963  ;;  %14601 = vmatpush3.bf16.msra.mxu1 %v22134_v31  ;;  %14607 = vmatpush3.bf16.msra.mxu0 %v22135_v13  ;;  %v4699_v59 = vmul.f32 %v15962_v4, %v18508_v30  ;;  %v5544_v13 = vpop.permute.xlu1 %5543 }
 0x712   : > { %7067 = vrot.lane.b32.xlu1 %v22136_v8, %s16704_s26  ;;  %14602 = vmatprep.mubr.msk.bf16.mxu1 %vm16701_vm0, %v22017_v55  ;;  %v4696_v25 = vmul.f32 %v15964_v56, %v18500_v37  ;;  %v22138_v37 = vld [vmem:[#allocation91_spill] sm:$0xff] }
 0x713   : > { %v15966_v17 = vpop.eup %15965  ;;  %14608 = vmatprep.mubr.msk.bf16.mxu0 %vm16701_vm0, %v22017_v55  ;;  %14612 = vmatprep.subr.bf16.mxu1 %v22017_v55  ;;  %v4718_v48 = vpack.c.bf16 %v4699_v59, %v4698_v27 }
 0x714   : > { %v4697_v7 = vmul.f32 %v15966_v17, %v18512_v39  ;;  %14618 = vmatprep.subr.bf16.mxu0 %v22017_v55  ;;  %v22139_v39 = vld [vmem:[#allocation28_spill] sm:$0xff] }
 0x716   : > { %7161 = vrot.lane.b32.xlu1 %v22137_v21, %s16704_s26  ;;  %v4717_v30 = vpack.c.bf16 %v4697_v7, %v4696_v25 }
 0x717   : > { %v15968_v6 = vpop.eup %15967 }
 0x718   : > { %v15970_v35 = vpop.eup %15969  ;;  %14603 = vmatmul.mubr.msk.bf16.vlgmr.msra.gmra.mxu1 %vm2369_vm4, %v4717_v30  ;;  %14609 = vmatmul.mubr.msk.bf16.vlgmr.msra.gmra.mxu0 %vm2369_vm4, %v4718_v48  ;;  %v4702_v46 = vmul.f32 %v15968_v6, %v18522_v52 }
 0x719   : > { %v15972_v49 = vpop.eup %15971  ;;  %14613 = vmatpush3.bf16.msra.mxu1 %v22138_v37  ;;  %14619 = vmatpush3.bf16.msra.mxu0 %v18546_v5  ;;  %v4703_v2 = vmul.f32 %v15970_v35, %v18524_v36  ;;  %v5493_v5 = vpop.permute.xlu0 %5492 }
 0x71a   : > { %7208 = vrot.lane.b32.xlu1 %v22139_v39, %s16704_s26  ;;  %14614 = vmatprep.mubr.msk.bf16.mxu1 %vm16701_vm0, %v22017_v55  ;;  %v4700_v24 = vmul.f32 %v15972_v49, %v18516_v9  ;;  %v5498_v34 = vsel %vm1552_vm1, %v5493_v5, 0  ;;  %v22141_v9 = vld [vmem:[#allocation30_spill] sm:$0xff] }
 0x71b   : > { %v15974_v0 = vpop.eup %15973  ;;  %14620 = vmatprep.mubr.msk.bf16.mxu0 %vm16701_vm0, %v22017_v55  ;;  %14624 = vmatprep.subr.bf16.mxu1 %v22017_v55  ;;  %v4720_v52 = vpack.c.bf16 %v4703_v2, %v4702_v46 }
 0x71c   : > { %v4701_v40 = vmul.f32 %v15974_v0, %v18528_v45  ;;  %14630 = vmatprep.subr.bf16.mxu0 %v22017_v55  ;;  %v15976_v6 = vpop.eup %15975 }
 0x71d   : > { %v5491_v45 = vpop.permute.xlu0 %5490  ;;  %v4704_v37 = vmul.f32 %v15976_v6, %v18532_v28 }
 0x71e   : > { %7255 = vrot.lane.b32.xlu1 %v22140_v51, %s16704_s26  ;;  %v4719_v36 = vpack.c.bf16 %v4701_v40, %v4700_v24  ;;  %v5549_v24 = vsel %vm1552_vm1, %v5544_v13, 0 }
 0x720   : > { %14615 = vmatmul.mubr.msk.bf16.vlgmr.msra.gmra.mxu1 %vm2369_vm4, %v4719_v36  ;;  %14621 = vmatmul.mubr.msk.bf16.vlgmr.msra.gmra.mxu0 %vm2369_vm4, %v4720_v52 }
 0x721   : > { %14625 = vmatpush3.bf16.msra.mxu1 %v18542_v18  ;;  %14631 = vmatpush3.bf16.xpose.msra.mxu0 %v5498_v34  ;;  %v5542_v18 = vpop.permute.xlu0 %5541 }
 0x722   : > { %7349 = vrot.lane.b32.xlu1 %v22141_v9, %s16704_s26  ;;  %14632 = vmatprep.mubr.msk.bf16.mxu0 %vm16701_vm0, %v22017_v55 }
 0x723   : > { %14642 = vmatprep.subr.bf16.mxu0 %v22017_v55  ;;  %14626 = vmatprep.mubr.msk.bf16.mxu1 %vm16701_vm0, %v22017_v55 }
 0x724   : > { %14636 = vmatprep.subr.bf16.mxu1 %v22017_v55 }
 0x725   : > { %v5593_v4 = vpop.permute.xlu0 %5592 }
 0x728   : > { %14633 = vmatmul.mubr.msk.bf16.vlgmr.msra.gmra.mxu0 %vm1552_vm1, %v5491_v45 }
 0x729   : > { %14644 = vmatprep.mubr.msk.bf16.mxu0 %vm16701_vm0, %v22017_v55  ;;  %v5644_v56 = vpop.permute.xlu0 %5643 }
 0x72d   : > { %v5695_v31 = vpop.permute.xlu0 %5694 }
 0x731   : > { %v18747_v59 = vpop.permute.xlu0 %5745 }
 0x735   : > { %v5797_v7 = vpop.permute.xlu0 %5796 }
 0x739   : > { %v18751_v35 = vpop.permute.xlu0 %5847 }
 0x73d   : > { %v5899_v40 = vpop.permute.xlu0 %5898 }
 0x742   : > { %v4641_v17 = vpop.xlane.xlu1 %4640 }
 0x743   : > { %15977 = vrcp.f32 %v4641_v17 }
 0x746   : > { %v5595_v27 = vpop.permute.xlu1 %5594 }
 0x747   : > { %v5600_v25 = vsel %vm1552_vm1, %v5595_v27, 0 }
 0x748   : > { %14643 = vmatpush3.bf16.xpose.msra.mxu0 %v5600_v25 }
 0x749   : > { %14654 = vmatprep.subr.bf16.mxu0 %v22017_v55 }
 0x74a   : > { %v5646_v30 = vpop.permute.xlu1 %5645 }
 0x74b   : > { %v5651_v52 = vsel %vm1552_vm1, %v5646_v30, 0 }
 0x74e   : > { %v5697_v48 = vpop.permute.xlu1 %5696 }
 0x74f   : > { %v5702_v49 = vsel %vm1552_vm1, %v5697_v48, 0  ;;  %14645 = vmatmul.mubr.msk.bf16.vlgmr.msra.gmra.mxu0 %vm1552_vm1, %v5593_v4 }
 0x750   : > { %v15978_v63 = vpop.eup %15977  ;;  %14655 = vmatpush3.bf16.xpose.msra.mxu0 %v5702_v49  ;;  %14656 = vmatprep.mubr.msk.bf16.mxu0 %vm16701_vm0, %v22017_v55 }
 0x751   : > { %v4705_v0 = vmul.f32 %v15978_v63, %v18557_v15  ;;  %14666 = vmatprep.subr.bf16.mxu0 %v22017_v55  ;;  %v5950_v15 = vpop.permute.xlu0 %5949 }
 0x752   : > { %v5748_v2 = vpop.permute.xlu1 %5747 }
 0x753   : > { %v4721_v46 = vpack.c.bf16 %v4705_v0, %v4704_v37 }
 0x755   : > { %14627 = vmatmul.mubr.msk.bf16.vlgmr.msra.gmra.mxu1 %vm2369_vm4, %v4721_v46  ;;  %v6001_v4 = vpop.permute.xlu0 %6000 }
 0x756   : > { %14637 = vmatpush3.bf16.xpose.msra.mxu1 %v5549_v24  ;;  %v5799_v5 = vpop.permute.xlu1 %5798  ;;  %14638 = vmatprep.mubr.msk.bf16.mxu1 %vm16701_vm0, %v22017_v55 }
 0x757   : > { %v5804_v36 = vsel %vm1552_vm1, %v5799_v5, 0  ;;  %14657 = vmatmul.mubr.msk.bf16.vlgmr.msra.gmra.mxu0 %vm1552_vm1, %v5695_v31  ;;  %14648 = vmatprep.subr.bf16.mxu1 %v22017_v55 }
 0x758   : > { %14667 = vmatpush3.bf16.xpose.msra.mxu0 %v5804_v36  ;;  %14668 = vmatprep.mubr.msk.bf16.mxu0 %vm16701_vm0, %v22017_v55 }
 0x759   : > { %14678 = vmatprep.subr.bf16.mxu0 %v22017_v55  ;;  %v6052_v17 = vpop.permute.xlu0 %6051 }
 0x75a   : > { %v5850_v28 = vpop.permute.xlu1 %5849 }
 0x75d   : > { %14639 = vmatmul.mubr.msk.bf16.vlgmr.msra.gmra.mxu1 %vm1552_vm1, %v5542_v18  ;;  %v5753_v18 = vsel %vm1552_vm1, %v5748_v2, 0 }
 0x75e   : > { %14649 = vmatpush3.bf16.xpose.msra.mxu1 %v5651_v52  ;;  %v5901_v34 = vpop.permute.xlu1 %5900  ;;  %14650 = vmatprep.mubr.msk.bf16.mxu1 %vm16701_vm0, %v22017_v55 }
 0x75f   : > { %v5906_v45 = vsel %vm1552_vm1, %v5901_v34, 0  ;;  %14669 = vmatmul.mubr.msk.bf16.vlgmr.msra.gmra.mxu0 %vm1552_vm1, %v5797_v7  ;;  %14660 = vmatprep.subr.bf16.mxu1 %v22017_v55  ;;  %v5855_v7 = vsel %vm1552_vm1, %v5850_v28, 0 }
 0x760   : > { %14679 = vmatpush3.bf16.xpose.msra.mxu0 %v5906_v45  ;;  %14680 = vmatprep.mubr.msk.bf16.mxu0 %vm16701_vm0, %v22017_v55 }
 0x761   : > { %14690 = vmatprep.subr.bf16.mxu0 %v22017_v55 }
 0x762   : > { %v5952_v31 = vpop.permute.xlu1 %5951 }
 0x765   : > { %14651 = vmatmul.mubr.msk.bf16.vlgmr.msra.gmra.mxu1 %vm1552_vm1, %v5644_v56  ;;  %v6103_v56 = vpop.permute.xlu0 %6102 }
 0x766   : > { %14661 = vmatpush3.bf16.xpose.msra.mxu1 %v5753_v18  ;;  %v6003_v13 = vpop.permute.xlu1 %6002  ;;  %14662 = vmatprep.mubr.msk.bf16.mxu1 %vm16701_vm0, %v22017_v55 }
 0x767   : > { %v6008_v27 = vsel %vm1552_vm1, %v6003_v13, 0  ;;  %14681 = vmatmul.mubr.msk.bf16.vlgmr.msra.gmra.mxu0 %vm1552_vm1, %v5899_v40  ;;  %14672 = vmatprep.subr.bf16.mxu1 %v22017_v55 }
 0x768   : > { %14691 = vmatpush3.bf16.xpose.msra.mxu0 %v6008_v27  ;;  %14692 = vmatprep.mubr.msk.bf16.mxu0 %vm16701_vm0, %v22017_v55 }
 0x769   : > { %14702 = vmatprep.subr.bf16.mxu0 %v22017_v55  ;;  %v6154_v49 = vpop.permute.xlu0 %6153 }
 0x76a   : > { %v6054_v25 = vpop.permute.xlu1 %6053 }
 0x76b   : > { %v6059_v46 = vsel %vm1552_vm1, %v6054_v25, 0 }
 0x76d   : > { %14663 = vmatmul.mubr.msk.bf16.vlgmr.msra.gmra.mxu1 %vm1552_vm1, %v18747_v59  ;;  %v5957_v59 = vsel %vm1552_vm1, %v5952_v31, 0  ;;  %v6205_v0 = vpop.permute.xlu0 %6204 }
 0x76e   : > { %14673 = vmatpush3.bf16.xpose.msra.mxu1 %v5855_v7  ;;  %v6105_v30 = vpop.permute.xlu1 %6104  ;;  %14674 = vmatprep.mubr.msk.bf16.mxu1 %vm16701_vm0, %v22017_v55 }
 0x76f   : > { %v6110_v6 = vsel %vm1552_vm1, %v6105_v30, 0  ;;  %14693 = vmatmul.mubr.msk.bf16.vlgmr.msra.gmra.mxu0 %vm1552_vm1, %v6001_v4  ;;  %14684 = vmatprep.subr.bf16.mxu1 %v22017_v55 }
 0x770   : > { %14703 = vmatpush3.bf16.xpose.msra.mxu0 %v6110_v6  ;;  %14704 = vmatprep.mubr.msk.bf16.mxu0 %vm16701_vm0, %v22017_v55 }
 0x771   : > { %14714 = vmatprep.subr.bf16.mxu0 %v22017_v55  ;;  %v6739_v40 = vpop.permute.xlu0 %6738 }
 0x772   : > { %v6156_v48 = vpop.permute.xlu1 %6155 }
 0x773   : > { %v6161_v28 = vsel %vm1552_vm1, %v6156_v48, 0 }
 0x775   : > { %14675 = vmatmul.mubr.msk.bf16.vlgmr.msra.gmra.mxu1 %vm1552_vm1, %v18751_v35 }
 0x776   : > { %14685 = vmatpush3.bf16.xpose.msra.mxu1 %v5957_v59  ;;  %v6207_v63 = vpop.permute.xlu1 %6206  ;;  %14686 = vmatprep.mubr.msk.bf16.mxu1 %vm16701_vm0, %v22017_v55 }
 0x777   : > { %v6212_v37 = vsel %vm1552_vm1, %v6207_v63, 0  ;;  %14705 = vmatmul.mubr.msk.bf16.vlgmr.msra.gmra.mxu0 %vm1552_vm1, %v6103_v56  ;;  %14696 = vmatprep.subr.bf16.mxu1 %v22017_v55 }
 0x778   : > { %14715 = vmatpush3.bf16.xpose.msra.mxu0 %v6212_v37  ;;  %14716 = vmatprep.mubr.msk.bf16.mxu0 %vm16701_vm0, %v22017_v55 }
 0x779   : > { %14726 = vmatprep.subr.bf16.mxu0 %v22017_v55 }
 0x77a   : > { %v18812_v2 = vpop.f32.mrf.mxu0 }
 0x77b   : > { %22142 = vst [vmem:[#allocation81_spill] sm:$0xff] %v18812_v2 }
 0x77c   : > { %v14538_v35 = vpop.f32.mrf.mxu0 }
 0x77d   : > { %14687 = vmatmul.mubr.msk.bf16.vlgmr.msra.gmra.mxu1 %vm1552_vm1, %v5950_v15  ;;  %v6258_v15 = vpop.permute.xlu1 %6257 }
 0x77e   : > { %v18816_v24 = vpop.f32.mrf.mxu0  ;;  %14697 = vmatpush3.bf16.xpose.msra.mxu1 %v6059_v46  ;;  %14698 = vmatprep.mubr.msk.bf16.mxu1 %vm16701_vm0, %v22017_v55  ;;  %v6263_v52 = vsel %vm1552_vm1, %v6258_v15, 0 }
 0x77f   : > { %22143 = vst [vmem:[#allocation84_spill] sm:$0xff] %v18816_v24  ;;  %14717 = vmatmul.mubr.msk.bf16.vlgmr.msra.gmra.mxu0 %vm1552_vm1, %v6205_v0  ;;  %14708 = vmatprep.subr.bf16.mxu1 %v22017_v55 }
 0x780   : > { %v14539_v36 = vpop.f32.mrf.mxu0  ;;  %14727 = vmatpush3.bf16.msra.mxu0 %v6739_v40  ;;  %14728 = vmatprep.mubr.msk.bf16.mxu0 %vm16701_vm0, %v22017_v55 }
 0x781   : > { %14738 = vmatprep.subr.bf16.mxu0 %v22017_v55  ;;  %v6256_v34 = vpop.permute.xlu1 %6255 }
 0x785   : > { %14699 = vmatmul.mubr.msk.bf16.vlgmr.msra.gmra.mxu1 %vm1552_vm1, %v6052_v17  ;;  %v6786_v45 = vpop.permute.xlu1 %6785 }
 0x786   : > { %14709 = vmatpush3.bf16.xpose.msra.mxu1 %v6161_v28  ;;  %14710 = vmatprep.mubr.msk.bf16.mxu1 %vm16701_vm0, %v22017_v55 }
 0x787   : > { %14720 = vmatprep.subr.bf16.mxu1 %v22017_v55 }
 0x789   : > { %v19064_v47 = vpop.permute.xlu1 %6879 }
 0x78a   : > { %22176 = vst [vmem:[#allocation113_spill] sm:$0xff] %v19064_v47  ;;  %v19088_v47 = vpop.permute.xlu0 %6832 }
 0x78d   : > { %14711 = vmatmul.mubr.msk.bf16.vlgmr.msra.gmra.mxu1 %vm1552_vm1, %v6154_v49 }
 0x78e   : > { %14721 = vmatpush3.bf16.xpose.msra.mxu1 %v6263_v52  ;;  %14722 = vmatprep.mubr.msk.bf16.mxu1 %vm16701_vm0, %v22017_v55 }
 0x78f   : > { %14732 = vmatprep.subr.bf16.mxu1 %v22017_v55 }
 0x795   : > { %14723 = vmatmul.mubr.msk.bf16.vlgmr.msra.gmra.mxu1 %vm1552_vm1, %v6256_v34 }
 0x796   : > { %14733 = vmatpush3.bf16.msra.mxu1 %v6786_v45  ;;  %14734 = vmatprep.mubr.msk.bf16.mxu1 %vm16701_vm0, %v22017_v55 }
 0x797   : > { %14744 = vmatprep.subr.bf16.mxu1 %v22017_v55 }
 0x7ac   : > { %v18841_v4 = vpop.f32.mrf.mxu1 }
 0x7ad   : > { %22144 = vst [vmem:[#allocation82_spill] sm:$0xff] %v18841_v4 }
 0x7ae   : > { %v14544_v31 = vpop.f32.mrf.mxu1 }
 0x7b0   : > { %v18843_v18 = vpop.f32.mrf.mxu1  ;;  %v18847_v17 = vpop.f32.mrf.mxu0 }
 0x7b1   : > { %22145 = vst [vmem:[#allocation86_spill] sm:$0xff] %v18843_v18  ;;  %22146 = vst [vmem:[#allocation83_spill] sm:$0xff] %v18847_v17 }
 0x7b2   : > { %v14545_v27 = vpop.f32.mrf.mxu1  ;;  %v14550_v25 = vpop.f32.mrf.mxu0 }
 0x7b4   : > { %v18849_v56 = vpop.f32.mrf.mxu0  ;;  %v18851_v7 = vpop.f32.mrf.mxu1 }
 0x7b5   : > { %22147 = vst [vmem:[#allocation88_spill] sm:$0xff] %v18849_v56  ;;  %22148 = vst [vmem:[#allocation85_spill] sm:$0xff] %v18851_v7 }
 0x7b6   : > { %v14551_v6 = vpop.f32.mrf.mxu0  ;;  %v14556_v48 = vpop.f32.mrf.mxu1 }
 0x7b8   : > { %v18855_v49 = vpop.f32.mrf.mxu1  ;;  %v18857_v59 = vpop.f32.mrf.mxu0 }
 0x7b9   : > { %22149 = vst [vmem:[#allocation87_spill] sm:$0xff] %v18855_v49  ;;  %22150 = vst [vmem:[#allocation89_spill] sm:$0xff] %v18857_v59 }
 0x7ba   : > { %v14557_v37 = vpop.f32.mrf.mxu1  ;;  %v14562_v0 = vpop.f32.mrf.mxu0 }
 0x7bc   : > { %v18861_v35 = vpop.f32.mrf.mxu0  ;;  %v18863_v46 = vpop.f32.mrf.mxu1 }
 0x7bd   : > { %22151 = vst [vmem:[#allocation90_spill] sm:$0xff] %v18861_v35  ;;  %22152 = vst [vmem:[#allocation91_spill] sm:$0xff] %v18863_v46 }
 0x7be   : > { %v14563_v36 = vpop.f32.mrf.mxu0  ;;  %v14568_v28 = vpop.f32.mrf.mxu1 }
 0x7c0   : > { %v18867_v15 = vpop.f32.mrf.mxu1  ;;  %v18869_v52 = vpop.f32.mrf.mxu0 }
 0x7c1   : > { %22153 = vst [vmem:[#allocation92_spill] sm:$0xff] %v18867_v15  ;;  %22154 = vst [vmem:[#allocation93_spill] sm:$0xff] %v18869_v52 }
 0x7c2   : > { %v14569_v45 = vpop.f32.mrf.mxu1  ;;  %v14574_v31 = vpop.f32.mrf.mxu0 }
 0x7c4   : > { %v18873_v27 = vpop.f32.mrf.mxu0 }
 0x7c5   : > { %22155 = vst [vmem:[#allocation94_spill] sm:$0xff] %v18873_v27 }
 0x7c6   : > { %v14575_v6 = vpop.f32.mrf.mxu0 }
 0x7c8   : > { %v18877_v48 = vpop.f32.mrf.mxu1  ;;  %v18879_v37 = vpop.f32.mrf.mxu0 }
 0x7c9   : > { %22156 = vst [vmem:[#allocation95_spill] sm:$0xff] %v18877_v48  ;;  %22157 = vst [vmem:[#allocation96_spill] sm:$0xff] %v18879_v37 }
 0x7ca   : > { %v14580_v0 = vpop.f32.mrf.mxu1  ;;  %v14586_v36 = vpop.f32.mrf.mxu0 }
 0x7cc   : > { %v18881_v28 = vpop.f32.mrf.mxu1  ;;  %v18885_v34 = vpop.f32.mrf.mxu0 }
 0x7cd   : > { %22158 = vst [vmem:[#allocation97_spill] sm:$0xff] %v18881_v28  ;;  %22159 = vst [vmem:[#allocation98_spill] sm:$0xff] %v18885_v34 }
 0x7ce   : > { %v14581_v31 = vpop.f32.mrf.mxu1  ;;  %v14587_v30 = vpop.f32.mrf.mxu0 }
 0x7d0   : > { %v18889_v25 = vpop.f32.mrf.mxu1  ;;  %v18891_v6 = vpop.f32.mrf.mxu0 }
 0x7d1   : > { %22160 = vst [vmem:[#allocation99_spill] sm:$0xff] %v18889_v25  ;;  %22161 = vst [vmem:[#allocation100_spill] sm:$0xff] %v18891_v6 }
 0x7d2   : > { %v14592_v63 = vpop.f32.mrf.mxu1  ;;  %v14598_v5 = vpop.f32.mrf.mxu0 }
 0x7d4   : > { %v18893_v0 = vpop.f32.mrf.mxu1  ;;  %v18897_v13 = vpop.f32.mrf.mxu0 }
 0x7d5   : > { %22162 = vst [vmem:[#allocation101_spill] sm:$0xff] %v18893_v0  ;;  %22163 = vst [vmem:[#allocation102_spill] sm:$0xff] %v18897_v13 }
 0x7d6   : > { %v14593_v52 = vpop.f32.mrf.mxu1  ;;  %v14599_v45 = vpop.f32.mrf.mxu0 }
 0x7d8   : > { %v18901_v31 = vpop.f32.mrf.mxu1  ;;  %v18903_v30 = vpop.f32.mrf.mxu0 }
 0x7d9   : > { %22164 = vst [vmem:[#allocation103_spill] sm:$0xff] %v18901_v31  ;;  %22165 = vst [vmem:[#allocation104_spill] sm:$0xff] %v18903_v30 }
 0x7da   : > { %v14604_v37 = vpop.f32.mrf.mxu1  ;;  %v14610_v34 = vpop.f32.mrf.mxu0 }
 0x7dc   : > { %v18905_v63 = vpop.f32.mrf.mxu1  ;;  %v18909_v27 = vpop.f32.mrf.mxu0 }
 0x7dd   : > { %22166 = vst [vmem:[#allocation105_spill] sm:$0xff] %v18905_v63  ;;  %22167 = vst [vmem:[#allocation106_spill] sm:$0xff] %v18909_v27  ;;  %v22172_v27 = vld [vmem:[#allocation49_spill] sm:$0xff] }
 0x7de   : > { %v14605_v25 = vpop.f32.mrf.mxu1  ;;  %v14611_v40 = vpop.f32.mrf.mxu0 }
 0x7e0   : > { %v18913_v52 = vpop.f32.mrf.mxu1  ;;  %v18915_v45 = vpop.f32.mrf.mxu0 }
 0x7e1   : > { %22168 = vst [vmem:[#allocation107_spill] sm:$0xff] %v18913_v52  ;;  %22169 = vst [vmem:[#allocation108_spill] sm:$0xff] %v18915_v45  ;;  %v22173_v52 = vld [vmem:[#allocation50_spill] sm:$0xff] }
 0x7e2   : > { %v14616_v6 = vpop.f32.mrf.mxu1  ;;  %v14622_v13 = vpop.f32.mrf.mxu0 }
 0x7e4   : > { %v18917_v37 = vpop.f32.mrf.mxu1  ;;  %v18921_v0 = vpop.f32.mrf.mxu0 }
 0x7e5   : > { %22170 = vst [vmem:[#allocation109_spill] sm:$0xff] %v18917_v37  ;;  %22171 = vst [vmem:[#allocation110_spill] sm:$0xff] %v18921_v0 }
 0x7e6   : > { %v14617_v31 = vpop.f32.mrf.mxu1  ;;  %v14623_v36 = vpop.f32.mrf.mxu0 }
 0x7e8   : > { %v5534_v25 = vpop.f32.mrf.mxu0 }
 0x7e9   : > { %v6306_v40 = vmul.f32 0.17677669, %v5534_v25 }
 0x7ea   : > { %v14634_v30 = vpop.f32.mrf.mxu0 }
 0x7eb   : > { %v18926_v63 = vadd.f32 %v6306_v40, %v22172_v27 }
 0x7ec   : > { %v5537_v6 = vpop.f32.mrf.mxu0 }
 0x7ed   : > { %v6307_v13 = vmul.f32 0.17677669, %v5537_v6  ;;  %v6370_v48 = vsel %vm2369_vm4, %v18926_v63, -inf }
 0x7ee   : > { %6371 = vmax.xlane.f32.xlu0 %v6370_v48  ;;  %v14635_v34 = vpop.f32.mrf.mxu0 }
 0x7ef   : > { %v18931_v37 = vadd.f32 %v6307_v13, %v22173_v52 }
 0x7f1   : > { %v6373_v31 = vsel %vm2369_vm4, %v18931_v37, -inf }
 0x7f2   : > { %6374 = vmax.xlane.f32.xlu1 %v6373_v31 }
 0x80f   : > { %v5636_v36 = vpop.f32.mrf.mxu0 }
 0x811   : > { %v14646_v25 = vpop.f32.mrf.mxu0 }
 0x813   : > { %v5639_v30 = vpop.f32.mrf.mxu0 }
 0x814   : > { %v6311_v5 = vmul.f32 0.17677669, %v5639_v30 }
 0x815   : > { %v18935_v40 = vpop.f32.mrf.mxu1  ;;  %v14647_v45 = vpop.f32.mrf.mxu0 }
 0x816   : > { %22174 = vst [vmem:[#allocation111_spill] sm:$0xff] %v18935_v40  ;;  %v18938_v6 = vadd.f32 %v6311_v5, %v22173_v52  ;;  %v6310_v45 = vmul.f32 0.17677669, %v5636_v36 }
 0x817   : > { %v14628_v0 = vpop.f32.mrf.mxu1  ;;  %v5738_v48 = vpop.f32.mrf.mxu0 }
 0x818   : > { %v6385_v34 = vsel %vm2369_vm4, %v18938_v6, -inf  ;;  %v18950_v7 = vadd.f32 %v6310_v45, %v22172_v27  ;;  %v6314_v40 = vmul.f32 0.17677669, %v5738_v48 }
 0x819   : > { %v18942_v13 = vpop.f32.mrf.mxu1  ;;  %6386 = vmax.xlane.f32.xlu1 %v6385_v34  ;;  %v14658_v28 = vpop.f32.mrf.mxu0 }
 0x81a   : > { %22175 = vst [vmem:[#allocation112_spill] sm:$0xff] %v18942_v13 }
 0x81b   : > { %v14629_v25 = vpop.f32.mrf.mxu1  ;;  %v5741_v30 = vpop.f32.mrf.mxu0 }
 0x81c   : > { %v6315_v49 = vmul.f32 0.17677669, %v5741_v30 }
 0x81d   : > { %v5585_v59 = vpop.f32.mrf.mxu1  ;;  %v14659_v35 = vpop.f32.mrf.mxu0 }
 0x81e   : > { %v6308_v46 = vmul.f32 0.17677669, %v5585_v59 }
 0x81f   : > { %v14640_v5 = vpop.f32.mrf.mxu1  ;;  %v5840_v15 = vpop.f32.mrf.mxu0 }
 0x820   : > { %v18947_v0 = vadd.f32 %v6308_v46, %v22172_v27  ;;  %v6382_v46 = vsel %vm2369_vm4, %v18950_v7, -inf }
 0x821   : > { %v5588_v17 = vpop.f32.mrf.mxu1  ;;  %v14670_v56 = vpop.f32.mrf.mxu0 }
 0x822   : > { %v6309_v28 = vmul.f32 0.17677669, %v5588_v17  ;;  %v6376_v34 = vsel %vm2369_vm4, %v18947_v0, -inf }
 0x823   : > { %v14641_v25 = vpop.f32.mrf.mxu1  ;;  %6377 = vmax.xlane.f32.xlu0 %v6376_v34  ;;  %v5843_v31 = vpop.f32.mrf.mxu0 }
 0x824   : > { %v18955_v59 = vadd.f32 %v6309_v28, %v22173_v52  ;;  %v6319_v4 = vmul.f32 0.17677669, %v5843_v31 }
 0x825   : > { %v5687_v35 = vpop.f32.mrf.mxu1  ;;  %v14671_v36 = vpop.f32.mrf.mxu0 }
 0x826   : > { %v6312_v5 = vmul.f32 0.17677669, %v5687_v35  ;;  %v6379_v36 = vsel %vm2369_vm4, %v18955_v59, -inf  ;;  %v18991_v31 = vadd.f32 %v6319_v4, %v22173_v52 }
 0x827   : > { %v14652_v56 = vpop.f32.mrf.mxu1  ;;  %6383 = vmax.xlane.f32.xlu0 %v6382_v46  ;;  %v5942_v45 = vpop.f32.mrf.mxu0  ;;  %v18968_v46 = vadd.f32 %v6314_v40, %v22172_v27 }
 0x828   : > { %v18960_v25 = vadd.f32 %v6312_v5, %v22172_v27  ;;  %v6409_v39 = vsel %vm2369_vm4, %v18991_v31, -inf }
 0x829   : > { %v5690_v17 = vpop.f32.mrf.mxu1  ;;  %v14682_v13 = vpop.f32.mrf.mxu0 }
 0x82a   : > { %v6313_v34 = vmul.f32 0.17677669, %v5690_v17  ;;  %v18971_v13 = vadd.f32 %v6315_v49, %v22173_v52  ;;  %v6388_v5 = vsel %vm2369_vm4, %v18960_v25, -inf }
 0x82b   : > { %v14653_v28 = vpop.f32.mrf.mxu1  ;;  %6380 = vmax.xlane.f32.xlu0 %v6379_v36  ;;  %v5945_v35 = vpop.f32.mrf.mxu0 }
 0x82c   : > { %v18965_v2 = vadd.f32 %v6313_v34, %v22173_v52  ;;  %v6318_v28 = vmul.f32 0.17677669, %v5840_v15  ;;  %v6397_v18 = vsel %vm2369_vm4, %v18971_v13, -inf  ;;  %v6323_v51 = vmul.f32 0.17677669, %v5945_v35 }
 0x82d   : > { %v5789_v48 = vpop.f32.mrf.mxu1  ;;  %v14683_v56 = vpop.f32.mrf.mxu0 }
 0x82e   : > { %v6316_v30 = vmul.f32 0.17677669, %v5789_v48  ;;  %v6391_v17 = vsel %vm2369_vm4, %v18965_v2, -inf  ;;  %v6394_v56 = vsel %vm2369_vm4, %v18968_v46, -inf  ;;  %v18988_v15 = vadd.f32 %v6318_v28, %v22172_v27 }
 0x82f   : > { %v14664_v36 = vpop.f32.mrf.mxu1  ;;  %6389 = vmax.xlane.f32.xlu0 %v6388_v5  ;;  %6392 = vmax.xlane.f32.xlu1 %v6391_v17  ;;  %v6044_v34 = vpop.f32.mrf.mxu0  ;;  %v19011_v35 = vadd.f32 %v6323_v51, %v22173_v52 }
 0x830   : > { %v18980_v49 = vadd.f32 %v6316_v30, %v22172_v27 }
 0x831   : > { %v5792_v24 = vpop.f32.mrf.mxu1  ;;  %v14694_v40 = vpop.f32.mrf.mxu0  ;;  %v6421_v33 = vsel %vm2369_vm4, %v19011_v35, -inf }
 0x832   : > { %v6317_v48 = vmul.f32 0.17677669, %v5792_v24  ;;  %v6400_v24 = vsel %vm2369_vm4, %v18980_v49, -inf }
 0x833   : > { %v14665_v42 = vpop.f32.mrf.mxu1  ;;  %6395 = vmax.xlane.f32.xlu0 %v6394_v56  ;;  %6398 = vmax.xlane.f32.xlu1 %v6397_v18  ;;  %v6047_v5 = vpop.f32.mrf.mxu0 }
 0x834   : > { %v18985_v17 = vadd.f32 %v6317_v48, %v22173_v52  ;;  %v6322_v48 = vmul.f32 0.17677669, %v5942_v45  ;;  %v6327_v12 = vmul.f32 0.17677669, %v6047_v5 }
 0x835   : > { %v5891_v36 = vpop.f32.mrf.mxu1  ;;  %v14695_v40 = vpop.f32.mrf.mxu0 }
 0x836   : > { %v6320_v30 = vmul.f32 0.17677669, %v5891_v36  ;;  %v6403_v42 = vsel %vm2369_vm4, %v18985_v17, -inf  ;;  %v6406_v40 = vsel %vm2369_vm4, %v18988_v15, -inf  ;;  %v19008_v45 = vadd.f32 %v6322_v48, %v22172_v27 }
 0x837   : > { %v14676_v18 = vpop.f32.mrf.mxu1  ;;  %6401 = vmax.xlane.f32.xlu0 %v6400_v24  ;;  %6404 = vmax.xlane.f32.xlu1 %v6403_v42  ;;  %v6146_v56 = vpop.f32.mrf.mxu0  ;;  %v19031_v5 = vadd.f32 %v6327_v12, %v22173_v52 }
 0x838   : > { %v19000_v4 = vadd.f32 %v6320_v30, %v22172_v27 }
 0x839   : > { %v5894_v9 = vpop.f32.mrf.mxu1  ;;  %v14706_v28 = vpop.f32.mrf.mxu0 }
 0x83a   : > { %v6321_v36 = vmul.f32 0.17677669, %v5894_v9  ;;  %v6412_v9 = vsel %vm2369_vm4, %v19000_v4, -inf }
 0x83b   : > { %v14677_v21 = vpop.f32.mrf.mxu1  ;;  %6407 = vmax.xlane.f32.xlu0 %v6406_v40  ;;  %6410 = vmax.xlane.f32.xlu1 %v6409_v39  ;;  %v6149_v24 = vpop.f32.mrf.mxu0 }
 0x83c   : > { %v19005_v42 = vadd.f32 %v6321_v36, %v22173_v52  ;;  %v6326_v36 = vmul.f32 0.17677669, %v6044_v34  ;;  %v6331_v1 = vmul.f32 0.17677669, %v6149_v24 }
 0x83d   : > { %v5993_v18 = vpop.f32.mrf.mxu1  ;;  %v14707_v28 = vpop.f32.mrf.mxu0 }
 0x83e   : > { %v6324_v30 = vmul.f32 0.17677669, %v5993_v18  ;;  %v6415_v21 = vsel %vm2369_vm4, %v19005_v42, -inf  ;;  %v6418_v28 = vsel %vm2369_vm4, %v19008_v45, -inf  ;;  %v19028_v34 = vadd.f32 %v6326_v36, %v22172_v27 }
 0x83f   : > { %v14688_v39 = vpop.f32.mrf.mxu1  ;;  %6413 = vmax.xlane.f32.xlu0 %v6412_v9  ;;  %6416 = vmax.xlane.f32.xlu1 %v6415_v21  ;;  %v6248_v40 = vpop.f32.mrf.mxu0 }
 0x840   : > { %v19020_v51 = vadd.f32 %v6324_v30, %v22172_v27  ;;  %v6430_v36 = vsel %vm2369_vm4, %v19028_v34, -inf }
 0x841   : > { %v5996_v8 = vpop.f32.mrf.mxu1  ;;  %v14718_v48 = vpop.f32.mrf.mxu0 }
 0x842   : > { %v6325_v18 = vmul.f32 0.17677669, %v5996_v8  ;;  %v6424_v8 = vsel %vm2369_vm4, %v19020_v51, -inf }
 0x843   : > { %v14689_v58 = vpop.f32.mrf.mxu1  ;;  %6419 = vmax.xlane.f32.xlu0 %v6418_v28  ;;  %6422 = vmax.xlane.f32.xlu1 %v6421_v33  ;;  %v6251_v9 = vpop.f32.mrf.mxu0  ;;  %v6330_v28 = vmul.f32 0.17677669, %v6146_v56 }
 0x844   : > { %v19025_v21 = vadd.f32 %v6325_v18, %v22173_v52 }
 0x845   : > { %v6095_v39 = vpop.f32.mrf.mxu1  ;;  %v14719_v48 = vpop.f32.mrf.mxu0  ;;  %v19048_v56 = vadd.f32 %v6330_v28, %v22172_v27 }
 0x846   : > { %v6328_v30 = vmul.f32 0.17677669, %v6095_v39  ;;  %v6427_v58 = vsel %vm2369_vm4, %v19025_v21, -inf  ;;  %v6433_v39 = vsel %vm2369_vm4, %v19031_v5, -inf }
 0x847   : > { %v14700_v33 = vpop.f32.mrf.mxu1  ;;  %6425 = vmax.xlane.f32.xlu0 %v6424_v8  ;;  %6428 = vmax.xlane.f32.xlu1 %v6427_v58  ;;  %v19051_v58 = vadd.f32 %v6331_v1, %v22173_v52  ;;  %v6442_v28 = vsel %vm2369_vm4, %v19048_v56, -inf }
 0x848   : > { %v19040_v48 = vadd.f32 %v6328_v30, %v22172_v27 }
 0x849   : > { %v6098_v18 = vpop.f32.mrf.mxu1 }
 0x84a   : > { %v6329_v12 = vmul.f32 0.17677669, %v6098_v18  ;;  %v6436_v30 = vsel %vm2369_vm4, %v19040_v48, -inf }
 0x84b   : > { %v14701_v16 = vpop.f32.mrf.mxu1  ;;  %6431 = vmax.xlane.f32.xlu0 %v6430_v36  ;;  %6434 = vmax.xlane.f32.xlu1 %v6433_v39  ;;  %v6334_v36 = vmul.f32 0.17677669, %v6248_v40  ;;  %v6335_v39 = vmul.f32 0.17677669, %v6251_v9 }
 0x84c   : > { %v19045_v33 = vadd.f32 %v6329_v12, %v22173_v52 }
 0x84d   : > { %v6197_v8 = vpop.f32.mrf.mxu1  ;;  %v19070_v40 = vadd.f32 %v6334_v36, %v22172_v27  ;;  %v19073_v9 = vadd.f32 %v6335_v39, %v22173_v52 }
 0x84e   : > { %v6332_v24 = vmul.f32 0.17677669, %v6197_v8  ;;  %v6439_v18 = vsel %vm2369_vm4, %v19045_v33, -inf  ;;  %v6445_v8 = vsel %vm2369_vm4, %v19051_v58, -inf }
 0x84f   : > { %v14712_v16 = vpop.f32.mrf.mxu1  ;;  %6437 = vmax.xlane.f32.xlu0 %v6436_v30  ;;  %6440 = vmax.xlane.f32.xlu1 %v6439_v18  ;;  %v6454_v39 = vsel %vm2369_vm4, %v19070_v40, -inf }
 0x850   : > { %v19060_v41 = vadd.f32 %v6332_v24, %v22172_v27 }
 0x851   : > { %v6200_v12 = vpop.f32.mrf.mxu1 }
 0x852   : > { %v6333_v1 = vmul.f32 0.17677669, %v6200_v12  ;;  %v6448_v16 = vsel %vm2369_vm4, %v19060_v41, -inf }
 0x853   : > { %v14713_v3 = vpop.f32.mrf.mxu1  ;;  %6443 = vmax.xlane.f32.xlu0 %v6442_v28  ;;  %6446 = vmax.xlane.f32.xlu1 %v6445_v8  ;;  %v6457_v8 = vsel %vm2369_vm4, %v19073_v9, -inf }
 0x854   : > { %v19067_v30 = vadd.f32 %v6333_v1, %v22173_v52  ;;  %v19079_v1 = vpop.permute.xlu1 %6973 }
 0x855   : > { %v6299_v18 = vpop.f32.mrf.mxu1  ;;  %22177 = vst [vmem:[#allocation114_spill] sm:$0xff] %v19079_v1 }
 0x856   : > { %v6336_v24 = vmul.f32 0.17677669, %v6299_v18  ;;  %v6451_v3 = vsel %vm2369_vm4, %v19067_v30, -inf }
 0x857   : > { %v14724_v12 = vpop.f32.mrf.mxu1  ;;  %6449 = vmax.xlane.f32.xlu0 %v6448_v16  ;;  %6452 = vmax.xlane.f32.xlu1 %v6451_v3 }
 0x858   : > { %v19082_v36 = vadd.f32 %v6336_v24, %v22172_v27  ;;  %v19092_v3 = vpop.permute.xlu1 %7067  ;;  %v19094_v12 = vpop.permute.xlu0 %6926 }
 0x859   : > { %v6302_v28 = vpop.f32.mrf.mxu1  ;;  %22178 = vst [vmem:[#allocation115_spill] sm:$0xff] %v19092_v3  ;;  %22179 = vst [vmem:[#allocation116_spill] sm:$0xff] %v19094_v12 }
 0x85a   : > { %v6460_v16 = vsel %vm2369_vm4, %v19082_v36, -inf }
 0x85b   : > { %v14725_v18 = vpop.f32.mrf.mxu1  ;;  %6455 = vmax.xlane.f32.xlu0 %v6454_v39  ;;  %6458 = vmax.xlane.f32.xlu1 %v6457_v8 }
 0x85c   : > { %v19096_v24 = vpop.permute.xlu1 %7161  ;;  %v19098_v27 = vpop.permute.xlu0 %7020  ;;  %v22183_v18 = vld [vmem:[#allocation33_spill] sm:$0xff] }
 0x85d   : > { %22180 = vst [vmem:[#allocation117_spill] sm:$0xff] %v19096_v24  ;;  %22181 = vst [vmem:[#allocation118_spill] sm:$0xff] %v19098_v27 }
 0x85f   : > { %6461 = vmax.xlane.f32.xlu0 %v6460_v16  ;;  %v22187_v16 = vld [vmem:[#allocation34_spill] sm:$0xff] }
 0x860   : > { %v19100_v1 = vpop.permute.xlu1 %7208  ;;  %v19104_v39 = vpop.permute.xlu0 %7114 }
 0x861   : > { %22182 = vst [vmem:[#allocation119_spill] sm:$0xff] %v19100_v1  ;;  %22184 = vst [vmem:[#allocation120_spill] sm:$0xff] %v19104_v39 }
 0x864   : > { %v19106_v8 = vpop.permute.xlu1 %7255  ;;  %v19108_v60 = vpop.permute.xlu0 %7302 }
 0x865   : > { %22185 = vst [vmem:[#allocation121_spill] sm:$0xff] %v19106_v8  ;;  %22186 = vst [vmem:[#allocation122_spill] sm:$0xff] %v19108_v60 }
 0x868   : > { %v19112_v3 = vpop.permute.xlu1 %7349 }
 0x869   : > { %22188 = vst [vmem:[#allocation123_spill] sm:$0xff] %v19112_v3 }
 0x86c   : > { %7443 = vrot.lane.b32.xlu1 %v22183_v18, %s16704_s26  ;;  %v6337_v18 = vmul.f32 0.17677669, %v6302_v28 }
 0x86e   : > { %v19117_v8 = vadd.f32 %v6337_v18, %v22173_v52 }
 0x875   : > { %7396 = vrot.lane.b32.xlu0 %v22187_v16, %s16704_s26  ;;  %v6463_v16 = vsel %vm2369_vm4, %v19117_v8, -inf }
 0x877   : > { %v6372_v12 = vpop.xlane.xlu0 %6371 }
 0x878   : > { %v6466_v24 = vsub.f32 %v18926_v63, %v6372_v12 }
 0x87a   : > { %v6498_v29 = vmul.f32 1.442695, %v6466_v24 }
 0x87b   : > { %v6375_v27 = vpop.xlane.xlu1 %6374 }
 0x87c   : > { %v6467_v1 = vsub.f32 %v18931_v37, %v6375_v27  ;;  %15979 = vpow2.f32 %v6498_v29 }
 0x87e   : > { %v6500_v54 = vmul.f32 1.442695, %v6467_v1 }
 0x880   : > { %15981 = vpow2.f32 %v6500_v54 }
 0x889   : > { %v19119_v60 = vpop.eup %15979 }
 0x88a   : > { %v6562_v63 = vsel %vm2369_vm4, %v19119_v60, 0.0 }
 0x88d   : > { %v19123_v3 = vpop.eup %15981 }
 0x88e   : > { %v6565_v27 = vsel %vm2369_vm4, %v19123_v3, 0.0 }
 0x890   : > { %6464 = vmax.xlane.f32.xlu1 %v6463_v16 }
 0x894   : > { %6563 = vadd.xlane.f32.xlu0 %v6562_v63  ;;  %6566 = vadd.xlane.f32.xlu1 %v6565_v27 }
 0x8a2   : > { %v6387_v28 = vpop.xlane.xlu1 %6386 }
 0x8a3   : > { %v6471_v24 = vsub.f32 %v18938_v6, %v6387_v28 }
 0x8a5   : > { %v6508_v39 = vmul.f32 1.442695, %v6471_v24 }
 0x8ac   : > { %v6378_v54 = vpop.xlane.xlu0 %6377 }
 0x8ad   : > { %v6468_v29 = vsub.f32 %v18947_v0, %v6378_v54 }
 0x8af   : > { %v6502_v37 = vmul.f32 1.442695, %v6468_v29 }
 0x8b0   : > { %v6384_v1 = vpop.xlane.xlu0 %6383 }
 0x8b1   : > { %15983 = vpow2.f32 %v6502_v37  ;;  %v6470_v12 = vsub.f32 %v18950_v7, %v6384_v1 }
 0x8b3   : > { %v6506_v18 = vmul.f32 1.442695, %v6470_v12 }
 0x8b4   : > { %v6381_v16 = vpop.xlane.xlu0 %6380 }
 0x8b5   : > { %15985 = vpow2.f32 %v6506_v18  ;;  %v6469_v52 = vsub.f32 %v18955_v59, %v6381_v16 }
 0x8b7   : > { %v6504_v19 = vmul.f32 1.442695, %v6469_v52 }
 0x8b8   : > { %v6390_v63 = vpop.xlane.xlu0 %6389  ;;  %v6393_v27 = vpop.xlane.xlu1 %6392 }
 0x8b9   : > { %15987 = vpow2.f32 %v6504_v19  ;;  %v6472_v0 = vsub.f32 %v18960_v25, %v6390_v63  ;;  %v6473_v54 = vsub.f32 %v18965_v2, %v6393_v27 }
 0x8ba   : > { %15989 = vpow2.f32 %v6508_v39 }
 0x8bb   : > { %v6510_v29 = vmul.f32 1.442695, %v6472_v0  ;;  %v6512_v37 = vmul.f32 1.442695, %v6473_v54 }
 0x8bc   : > { %v6396_v7 = vpop.xlane.xlu0 %6395  ;;  %v6399_v1 = vpop.xlane.xlu1 %6398 }
 0x8bd   : > { %15991 = vpow2.f32 %v6510_v29  ;;  %v6474_v6 = vsub.f32 %v18968_v46, %v6396_v7  ;;  %v6475_v28 = vsub.f32 %v18971_v13, %v6399_v1 }
 0x8be   : > { %v19137_v59 = vpop.eup %15983  ;;  %15993 = vpow2.f32 %v6512_v37 }
 0x8bf   : > { %v6514_v52 = vmul.f32 1.442695, %v6474_v6  ;;  %v6516_v12 = vmul.f32 1.442695, %v6475_v28  ;;  %v6568_v19 = vsel %vm2369_vm4, %v19137_v59, 0.0 }
 0x8c0   : > { %v6402_v25 = vpop.xlane.xlu0 %6401  ;;  %v6405_v2 = vpop.xlane.xlu1 %6404  ;;  %6569 = vadd.xlane.f32.xlu0 %v6568_v19 }
 0x8c1   : > { %15995 = vpow2.f32 %v6514_v52  ;;  %v6476_v39 = vsub.f32 %v18980_v49, %v6402_v25  ;;  %v6477_v24 = vsub.f32 %v18985_v17, %v6405_v2 }
 0x8c2   : > { %v19143_v18 = vpop.eup %15985  ;;  %15997 = vpow2.f32 %v6516_v12 }
 0x8c3   : > { %v6518_v46 = vmul.f32 1.442695, %v6476_v39  ;;  %v6520_v13 = vmul.f32 1.442695, %v6477_v24  ;;  %v6574_v16 = vsel %vm2369_vm4, %v19143_v18, 0.0 }
 0x8c4   : > { %v6408_v63 = vpop.xlane.xlu0 %6407  ;;  %v6411_v27 = vpop.xlane.xlu1 %6410  ;;  %6575 = vadd.xlane.f32.xlu0 %v6574_v16 }
 0x8c5   : > { %15999 = vpow2.f32 %v6518_v46  ;;  %v6478_v0 = vsub.f32 %v18988_v15, %v6408_v63  ;;  %v6479_v54 = vsub.f32 %v18991_v31, %v6411_v27 }
 0x8c6   : > { %v19149_v29 = vpop.eup %15987  ;;  %16001 = vpow2.f32 %v6520_v13 }
 0x8c7   : > { %v6522_v49 = vmul.f32 1.442695, %v6478_v0  ;;  %v6524_v17 = vmul.f32 1.442695, %v6479_v54  ;;  %v6571_v37 = vsel %vm2369_vm4, %v19149_v29, 0.0  ;;  %v19153_v7 = vpop.eup %15989 }
 0x8c8   : > { %v6414_v1 = vpop.xlane.xlu0 %6413  ;;  %v6417_v6 = vpop.xlane.xlu1 %6416  ;;  %6572 = vadd.xlane.f32.xlu1 %v6571_v37  ;;  %v6577_v19 = vsel %vm2369_vm4, %v19153_v7, 0.0 }
 0x8c9   : > { %16003 = vpow2.f32 %v6522_v49  ;;  %v6480_v28 = vsub.f32 %v19000_v4, %v6414_v1  ;;  %v6481_v15 = vsub.f32 %v19005_v42, %v6417_v6 }
 0x8ca   : > { %v19156_v52 = vpop.eup %15991  ;;  %16005 = vpow2.f32 %v6524_v17 }
 0x8cb   : > { %v6526_v31 = vmul.f32 1.442695, %v6480_v28  ;;  %v6580_v12 = vsel %vm2369_vm4, %v19156_v52, 0.0  ;;  %v19163_v25 = vpop.eup %15993  ;;  %v6528_v46 = vmul.f32 1.442695, %v6481_v15 }
 0x8cc   : > { %v6420_v2 = vpop.xlane.xlu0 %6419  ;;  %v6423_v39 = vpop.xlane.xlu1 %6422  ;;  %6581 = vadd.xlane.f32.xlu0 %v6580_v12  ;;  %6578 = vadd.xlane.f32.xlu1 %v6577_v19  ;;  %v6583_v27 = vsel %vm2369_vm4, %v19163_v25, 0.0 }
 0x8cd   : > { %16007 = vpow2.f32 %v6526_v31  ;;  %v6482_v4 = vsub.f32 %v19008_v45, %v6420_v2  ;;  %v6483_v24 = vsub.f32 %v19011_v35, %v6423_v39 }
 0x8ce   : > { %v19167_v42 = vpop.eup %15995 }
 0x8cf   : > { %v6530_v13 = vmul.f32 1.442695, %v6482_v4  ;;  %v6532_v16 = vmul.f32 1.442695, %v6483_v24  ;;  %v6586_v63 = vsel %vm2369_vm4, %v19167_v42, 0.0  ;;  %v19173_v0 = vpop.eup %15997 }
 0x8d0   : > { %v6426_v54 = vpop.xlane.xlu0 %6425  ;;  %v6429_v49 = vpop.xlane.xlu1 %6428  ;;  %6587 = vadd.xlane.f32.xlu0 %v6586_v63  ;;  %6584 = vadd.xlane.f32.xlu1 %v6583_v27  ;;  %v6589_v6 = vsel %vm2369_vm4, %v19173_v0, 0.0 }
 0x8d1   : > { %16009 = vpow2.f32 %v6530_v13  ;;  %v6484_v45 = vsub.f32 %v19020_v51, %v6426_v54  ;;  %v6485_v17 = vsub.f32 %v19025_v21, %v6429_v49 }
 0x8d2   : > { %v19176_v35 = vpop.eup %15999  ;;  %16011 = vpow2.f32 %v6532_v16 }
 0x8d3   : > { %16013 = vpow2.f32 %v6528_v46  ;;  %v6534_v37 = vmul.f32 1.442695, %v6484_v45  ;;  %v6592_v1 = vsel %vm2369_vm4, %v19176_v35, 0.0  ;;  %v19183_v28 = vpop.eup %16001  ;;  %v6536_v19 = vmul.f32 1.442695, %v6485_v17 }
 0x8d4   : > { %v6432_v15 = vpop.xlane.xlu0 %6431  ;;  %v6435_v31 = vpop.xlane.xlu1 %6434  ;;  %6593 = vadd.xlane.f32.xlu0 %v6592_v1  ;;  %6590 = vadd.xlane.f32.xlu1 %v6589_v6  ;;  %v6595_v24 = vsel %vm2369_vm4, %v19183_v28, 0.0 }
 0x8d5   : > { %16015 = vpow2.f32 %v6534_v37  ;;  %v6486_v51 = vsub.f32 %v19028_v34, %v6432_v15  ;;  %v6487_v12 = vsub.f32 %v19031_v5, %v6435_v31 }
 0x8d6   : > { %v19187_v21 = vpop.eup %16003 }
 0x8d7   : > { %v6538_v2 = vmul.f32 1.442695, %v6486_v51  ;;  %v6540_v39 = vmul.f32 1.442695, %v6487_v12  ;;  %v6598_v4 = vsel %vm2369_vm4, %v19187_v21, 0.0  ;;  %v19193_v46 = vpop.eup %16005 }
 0x8d8   : > { %v6438_v13 = vpop.xlane.xlu0 %6437  ;;  %v6441_v16 = vpop.xlane.xlu1 %6440  ;;  %6599 = vadd.xlane.f32.xlu0 %v6598_v4  ;;  %6596 = vadd.xlane.f32.xlu1 %v6595_v24  ;;  %v6601_v49 = vsel %vm2369_vm4, %v19193_v46, 0.0 }
 0x8d9   : > { %16017 = vpow2.f32 %v6538_v2  ;;  %v6488_v34 = vsub.f32 %v19040_v48, %v6438_v13  ;;  %v6489_v63 = vsub.f32 %v19045_v33, %v6441_v16 }
 0x8da   : > { %v19196_v5 = vpop.eup %16007  ;;  %16019 = vpow2.f32 %v6540_v39 }
 0x8db   : > { %16021 = vpow2.f32 %v6536_v19  ;;  %v6542_v27 = vmul.f32 1.442695, %v6488_v34  ;;  %v6604_v54 = vsel %vm2369_vm4, %v19196_v5, 0.0  ;;  %v6544_v33 = vmul.f32 1.442695, %v6489_v63 }
 0x8dc   : > { %v6444_v45 = vpop.xlane.xlu0 %6443  ;;  %v6447_v17 = vpop.xlane.xlu1 %6446  ;;  %6605 = vadd.xlane.f32.xlu0 %v6604_v54  ;;  %6602 = vadd.xlane.f32.xlu1 %v6601_v49 }
 0x8dd   : > { %16023 = vpow2.f32 %v6542_v27  ;;  %v6490_v48 = vsub.f32 %v19048_v56, %v6444_v45  ;;  %v6491_v37 = vsub.f32 %v19051_v58, %v6447_v17 }
 0x8de   : > { %v19205_v1 = vpop.eup %16009 }
 0x8df   : > { %v19207_v6 = vpop.eup %16011  ;;  %v6546_v15 = vmul.f32 1.442695, %v6490_v48  ;;  %v6548_v31 = vmul.f32 1.442695, %v6491_v37  ;;  %v6610_v51 = vsel %vm2369_vm4, %v19205_v1, 0.0 }
 0x8e0   : > { %v19211_v12 = vpop.eup %16013  ;;  %v6450_v19 = vpop.xlane.xlu0 %6449  ;;  %v6613_v39 = vsel %vm2369_vm4, %v19207_v6, 0.0  ;;  %6611 = vadd.xlane.f32.xlu1 %v6610_v51 }
 0x8e1   : > { %v6453_v2 = vpop.xlane.xlu1 %6452  ;;  %16025 = vpow2.f32 %v6546_v15  ;;  %v6492_v56 = vsub.f32 %v19060_v41, %v6450_v19  ;;  %6614 = vadd.xlane.f32.xlu0 %v6613_v39  ;;  %v6607_v16 = vsel %vm2369_vm4, %v19211_v12, 0.0 }
 0x8e2   : > { %v19216_v58 = vpop.eup %16015  ;;  %16027 = vpow2.f32 %v6548_v31  ;;  %v6493_v4 = vsub.f32 %v19067_v30, %v6453_v2 }
 0x8e3   : > { %16029 = vpow2.f32 %v6544_v33  ;;  %v6550_v24 = vmul.f32 1.442695, %v6492_v56  ;;  %v6616_v13 = vsel %vm2369_vm4, %v19216_v58, 0.0 }
 0x8e4   : > { %v6456_v34 = vpop.xlane.xlu0 %6455  ;;  %6608 = vadd.xlane.f32.xlu1 %v6607_v16  ;;  %v6552_v30 = vmul.f32 1.442695, %v6493_v4 }
 0x8e5   : > { %v6459_v63 = vpop.xlane.xlu1 %6458  ;;  %16031 = vpow2.f32 %v6550_v24  ;;  %6617 = vadd.xlane.f32.xlu0 %v6616_v13  ;;  %v6494_v41 = vsub.f32 %v19070_v40, %v6456_v34 }
 0x8e6   : > { %v6495_v27 = vsub.f32 %v19073_v9, %v6459_v63  ;;  %v19225_v54 = vpop.eup %16017 }
 0x8e7   : > { %v19227_v49 = vpop.eup %16019  ;;  %v6554_v45 = vmul.f32 1.442695, %v6494_v41  ;;  %v6622_v48 = vsel %vm2369_vm4, %v19225_v54, 0.0 }
 0x8e8   : > { %v6556_v17 = vmul.f32 1.442695, %v6495_v27  ;;  %v19231_v37 = vpop.eup %16021  ;;  %v6625_v33 = vsel %vm2369_vm4, %v19227_v49, 0.0  ;;  %v6462_v15 = vpop.xlane.xlu0 %6461  ;;  %6623 = vadd.xlane.f32.xlu1 %v6622_v48 }
 0x8e9   : > { %16033 = vpow2.f32 %v6554_v45  ;;  %6626 = vadd.xlane.f32.xlu0 %v6625_v33  ;;  %v6496_v40 = vsub.f32 %v19082_v36, %v6462_v15  ;;  %v6619_v19 = vsel %vm2369_vm4, %v19231_v37, 0.0  ;;  %v19278_v33 = vpop.permute.xlu1 %7443 }
 0x8ea   : > { %v19236_v9 = vpop.eup %16023  ;;  %16035 = vpow2.f32 %v6556_v17 }
 0x8eb   : > { %16037 = vpow2.f32 %v6552_v30  ;;  %v6558_v31 = vmul.f32 1.442695, %v6496_v40  ;;  %v6628_v51 = vsel %vm2369_vm4, %v19236_v9, 0.0 }
 0x8ec   : > { %6620 = vadd.xlane.f32.xlu1 %v6619_v19  ;;  %v19282_v15 = vpop.permute.xlu0 %7396 }
 0x8ed   : > { %16039 = vpow2.f32 %v6558_v31  ;;  %6629 = vadd.xlane.f32.xlu0 %v6628_v51 }
 0x8ee   : > { %v19242_v2 = vpop.eup %16025 }
 0x8ef   : > { %v19244_v39 = vpop.eup %16027  ;;  %v6634_v36 = vsel %vm2369_vm4, %v19242_v2, 0.0 }
 0x8f0   : > { %v19248_v56 = vpop.eup %16029  ;;  %v6637_v4 = vsel %vm2369_vm4, %v19244_v39, 0.0  ;;  %6635 = vadd.xlane.f32.xlu1 %v6634_v36 }
 0x8f1   : > { %6638 = vadd.xlane.f32.xlu0 %v6637_v4  ;;  %v6631_v16 = vsel %vm2369_vm4, %v19248_v56, 0.0  ;;  %v22197_v4 = vld [vmem:[#allocation16_spill] sm:$0xff] }
 0x8f2   : > { %v19252_v24 = vpop.eup %16031 }
 0x8f3   : > { %v6640_v13 = vsel %vm2369_vm4, %v19252_v24, 0.0 }
 0x8f4   : > { %6632 = vadd.xlane.f32.xlu1 %v6631_v16 }
 0x8f5   : > { %6641 = vadd.xlane.f32.xlu0 %v6640_v13 }
 0x8f6   : > { %v19258_v34 = vpop.eup %16033 }
 0x8f7   : > { %v19260_v63 = vpop.eup %16035  ;;  %v6646_v41 = vsel %vm2369_vm4, %v19258_v34, 0.0 }
 0x8f8   : > { %v19264_v27 = vpop.eup %16037  ;;  %6647 = vadd.xlane.f32.xlu1 %v6646_v41  ;;  %v6649_v30 = vsel %vm2369_vm4, %v19260_v63, 0.0  ;;  %v22198_v41 = vld [vmem:[#allocation35_spill] sm:$0xff] }
 0x8f9   : > { %6650 = vadd.xlane.f32.xlu0 %v6649_v30  ;;  %v6643_v17 = vsel %vm2369_vm4, %v19264_v27, 0.0  ;;  %v22199_v30 = vld [vmem:[#allocation19_spill] sm:$0xff] }
 0x8fa   : > { %v19268_v45 = vpop.eup %16039 }
 0x8fb   : > { %v6652_v48 = vsel %vm2369_vm4, %v19268_v45, 0.0 }
 0x8fc   : > { %6644 = vadd.xlane.f32.xlu1 %v6643_v17 }
 0x8fd   : > { %6653 = vadd.xlane.f32.xlu0 %v6652_v48 }
 0x90d   : > { %7543 = vrot.lane.b32.xlu1 %v17216_v38, %s21957_s27 }
 0x913   : > { %7492 = vrot.lane.b32.xlu0 %v17193_v14, %s21957_s27 }
 0x917   : > { %7490 = vrot.lane.b32.xlu0 %v17214_v61, %s21957_s27 }
 0x919   : > { %v6465_v40 = vpop.xlane.xlu1 %6464 }
 0x91a   : > { %v6497_v31 = vsub.f32 %v19117_v8, %v6465_v40 }
 0x91b   : > { %7541 = vrot.lane.b32.xlu0 %v17237_v23, %s21957_s27 }
 0x91c   : > { %v6560_v51 = vmul.f32 1.442695, %v6497_v31  ;;  %v22200_v31 = vld [vmem:[#allocation36_spill] sm:$0xff] }
 0x91d   : > { %v6564_v19 = vpop.xlane.xlu0 %6563  ;;  %v6567_v36 = vpop.xlane.xlu1 %6566 }
 0x91e   : > { %16041 = vpow2.f32 %v6560_v51 }
 0x91f   : > { %16043 = vrcp.f32 %v6564_v19  ;;  %7592 = vrot.lane.b32.xlu0 %v17260_v53, %s21957_s27  ;;  %v22201_v19 = vld [vmem:[#allocation22_spill] sm:$0xff] }
 0x920   : > { %16045 = vrcp.f32 %v6567_v36 }
 0x923   : > { %7643 = vrot.lane.b32.xlu0 %v17283_v10, %s21957_s27 }
 0x927   : > { %7694 = vrot.lane.b32.xlu0 %v17306_v57, %s21957_s27  ;;  %v22189_v57 = vld [vmem:[#allocation40_spill] sm:$0xff] }
 0x92b   : > { %v19293_v14 = vpop.eup %16041  ;;  %7745 = vrot.lane.b32.xlu0 %v17329_v44, %s21957_s27  ;;  %v22190_v44 = vld [vmem:[#allocation23_spill] sm:$0xff] }
 0x92c   : > { %v16044_v61 = vpop.eup %16043  ;;  %v6655_v10 = vsel %vm2369_vm4, %v19293_v14, 0.0 }
 0x92d   : > { %v16046_v38 = vpop.eup %16045  ;;  %v6690_v23 = vmul.f32 %v16044_v61, %v19119_v60 }
 0x92e   : > { %v6691_v8 = vmul.f32 %v16046_v38, %v19123_v3  ;;  %v22196_v3 = vld [vmem:[#allocation32_spill] sm:$0xff] }
 0x92f   : > { %7796 = vrot.lane.b32.xlu0 %v17352_v11, %s21957_s27 }
 0x930   : > { %v6722_v53 = vpack.c.bf16 %v6691_v8, %v6690_v23 }
 0x931   : > { %6656 = vadd.xlane.f32.xlu1 %v6655_v10 }
 0x932   : > { %14729 = vmatmul.mubr.msk.bf16.vlgmr.msra.gmra.mxu0 %vm2369_vm4, %v6722_v53  ;;  %v22202_v53 = vld [vmem:[#allocation37_spill] sm:$0xff] }
 0x933   : > { %14739 = vmatpush3.bf16.msra.mxu0 %v19088_v47  ;;  %7847 = vrot.lane.b32.xlu0 %v17373_v62, %s21957_s27  ;;  %v22191_v62 = vld [vmem:[#allocation42_spill] sm:$0xff] }
 0x934   : > { %14740 = vmatprep.mubr.msk.bf16.mxu0 %vm16701_vm0, %v22017_v55  ;;  %14750 = vmatprep.subr.bf16.mxu0 %v22017_v55 }
 0x937   : > { %7898 = vrot.lane.b32.xlu0 %v17388_v26, %s21957_s27  ;;  %v22192_v26 = vld [vmem:[#allocation26_spill] sm:$0xff] }
 0x93b   : > { %7949 = vrot.lane.b32.xlu0 %v17403_v32, %s21957_s27  ;;  %v22193_v32 = vld [vmem:[#allocation44_spill] sm:$0xff] }
 0x93f   : > { %8000 = vrot.lane.b32.xlu0 %v17418_v20, %s21957_s27 }
 0x942   : > { %7594 = vrot.lane.b32.xlu1 %v22027_v22, %s21957_s27  ;;  %v22194_v22 = vld [vmem:[#allocation29_spill] sm:$0xff] }
 0x943   : > { %8051 = vrot.lane.b32.xlu0 %v17433_v43, %s21957_s27 }
 0x946   : > { %7645 = vrot.lane.b32.xlu1 %v22030_v50, %s21957_s27  ;;  %v22195_v50 = vld [vmem:[#allocation46_spill] sm:$0xff] }
 0x947   : > { %8102 = vrot.lane.b32.xlu0 %v22189_v57, %s21957_s27  ;;  %v22203_v57 = vld [vmem:[#allocation25_spill] sm:$0xff] }
 0x949   : > { %v6570_v11 = vpop.xlane.xlu0 %6569 }
 0x94a   : > { %7696 = vrot.lane.b32.xlu1 %v22190_v44, %s21957_s27  ;;  %16047 = vrcp.f32 %v6570_v11 }
 0x94b   : > { %8153 = vrot.lane.b32.xlu0 %v22191_v62, %s21957_s27 }
 0x94d   : > { %v6576_v20 = vpop.xlane.xlu0 %6575 }
 0x94e   : > { %7747 = vrot.lane.b32.xlu1 %v22192_v26, %s21957_s27 }
 0x94f   : > { %8204 = vrot.lane.b32.xlu0 %v22193_v32, %s21957_s27 }
 0x951   : > { %v6573_v43 = vpop.xlane.xlu1 %6572 }
 0x952   : > { %16049 = vrcp.f32 %v6573_v43  ;;  %7798 = vrot.lane.b32.xlu1 %v22194_v22, %s21957_s27 }
 0x953   : > { %8738 = vrot.lane.b32.xlu0 %v22195_v50, %s21957_s27  ;;  %16051 = vrcp.f32 %v6576_v20  ;;  %v22205_v20 = vld [vmem:[#allocation38_spill] sm:$0xff] }
 0x955   : > { %v6582_v60 = vpop.xlane.xlu0 %6581  ;;  %v6579_v47 = vpop.xlane.xlu1 %6578 }
 0x956   : > { %7849 = vrot.lane.b32.xlu1 %v22196_v3, %s21957_s27  ;;  %16053 = vrcp.f32 %v6579_v47  ;;  %v22206_v47 = vld [vmem:[#allocation116_spill] sm:$0xff] }
 0x957   : > { %8832 = vrot.lane.b32.xlu0 %v22197_v4, %s21957_s27  ;;  %16055 = vrcp.f32 %v6582_v60  ;;  %v16048_v17 = vpop.eup %16047  ;;  %v22207_v4 = vld [vmem:[#allocation39_spill] sm:$0xff] }
 0x958   : > { %v6692_v36 = vmul.f32 %v16048_v17, %v19137_v59  ;;  %v22208_v17 = vld [vmem:[#allocation114_spill] sm:$0xff] }
 0x959   : > { %v6588_v13 = vpop.xlane.xlu0 %6587  ;;  %v6585_v16 = vpop.xlane.xlu1 %6584 }
 0x95a   : > { %7900 = vrot.lane.b32.xlu1 %v22198_v41, %s21957_s27  ;;  %16057 = vrcp.f32 %v6585_v16 }
 0x95b   : > { %8926 = vrot.lane.b32.xlu0 %v22199_v30, %s21957_s27  ;;  %16059 = vrcp.f32 %v6588_v13 }
 0x95d   : > { %v6594_v48 = vpop.xlane.xlu0 %6593  ;;  %v6591_v40 = vpop.xlane.xlu1 %6590 }
 0x95e   : > { %7951 = vrot.lane.b32.xlu1 %v22200_v31, %s21957_s27  ;;  %16061 = vrcp.f32 %v6591_v40  ;;  %v22209_v40 = vld [vmem:[#allocation41_spill] sm:$0xff] }
 0x95f   : > { %v16050_v51 = vpop.eup %16049  ;;  %9020 = vrot.lane.b32.xlu0 %v22201_v19, %s21957_s27  ;;  %16063 = vrcp.f32 %v6594_v48 }
 0x960   : > { %v6693_v61 = vmul.f32 %v16050_v51, %v19149_v29  ;;  %v16052_v8 = vpop.eup %16051  ;;  %v22204_v29 = vld [vmem:[#allocation113_spill] sm:$0xff] }
 0x961   : > { %v6600_v38 = vpop.xlane.xlu0 %6599  ;;  %v6597_v23 = vpop.xlane.xlu1 %6596  ;;  %v6694_v11 = vmul.f32 %v16052_v8, %v19143_v18 }
 0x962   : > { %8002 = vrot.lane.b32.xlu1 %v22202_v53, %s21957_s27  ;;  %v6723_v10 = vpack.c.bf16 %v6693_v61, %v6692_v36  ;;  %16065 = vrcp.f32 %v6597_v23  ;;  %v22210_v61 = vld [vmem:[#allocation118_spill] sm:$0xff]  ;;  %v22211_v23 = vld [vmem:[#allocation43_spill] sm:$0xff] }
 0x963   : > { %9114 = vrot.lane.b32.xlu0 %v22203_v57, %s21957_s27  ;;  %v16054_v44 = vpop.eup %16053  ;;  %16067 = vrcp.f32 %v6600_v38  ;;  %v22212_v57 = vld [vmem:[#allocation115_spill] sm:$0xff] }
 0x964   : > { %14735 = vmatmul.mubr.msk.bf16.vlgmr.msra.gmra.mxu1 %vm2369_vm4, %v6723_v10  ;;  %v6695_v59 = vmul.f32 %v16054_v44, %v19153_v7  ;;  %v16056_v32 = vpop.eup %16055 }
 0x965   : > { %14745 = vmatpush3.bf16.msra.mxu1 %v22204_v29  ;;  %v6606_v62 = vpop.xlane.xlu0 %6605  ;;  %v6603_v26 = vpop.xlane.xlu1 %6602  ;;  %14746 = vmatprep.mubr.msk.bf16.mxu1 %vm16701_vm0, %v22017_v55  ;;  %v6696_v18 = vmul.f32 %v16056_v32, %v19156_v52 }
 0x966   : > { %8053 = vrot.lane.b32.xlu1 %v22205_v20, %s21957_s27  ;;  %14756 = vmatprep.subr.bf16.mxu1 %v22017_v55  ;;  %16069 = vrcp.f32 %v6603_v26  ;;  %v6724_v43 = vpack.c.bf16 %v6695_v59, %v6694_v11  ;;  %v22213_v11 = vld [vmem:[#allocation45_spill] sm:$0xff]  ;;  %v22214_v26 = vld [vmem:[#allocation120_spill] sm:$0xff]  ;;  %v22215_v20 = vld [vmem:[#allocation47_spill] sm:$0xff] }
 0x967   : > { %v16058_v22 = vpop.eup %16057 }
 0x968   : > { %v6697_v7 = vmul.f32 %v16058_v22, %v19163_v25  ;;  %14741 = vmatmul.mubr.msk.bf16.vlgmr.msra.gmra.mxu0 %vm2369_vm4, %v6724_v43  ;;  %v16060_v60 = vpop.eup %16059 }
 0x969   : > { %v6612_v50 = vpop.xlane.xlu1 %6611  ;;  %14751 = vmatpush3.bf16.msra.mxu0 %v22206_v47  ;;  %14752 = vmatprep.mubr.msk.bf16.mxu0 %vm16701_vm0, %v22017_v55  ;;  %v6698_v25 = vmul.f32 %v16060_v60, %v19167_v42 }
 0x96a   : > { %v6615_v3 = vpop.xlane.xlu0 %6614  ;;  %16071 = vrcp.f32 %v6612_v50  ;;  %8104 = vrot.lane.b32.xlu1 %v22207_v4, %s21957_s27  ;;  %v6725_v13 = vpack.c.bf16 %v6697_v7, %v6696_v18  ;;  %14762 = vmatprep.subr.bf16.mxu0 %v22017_v55 }
 0x96b   : > { %16073 = vrcp.f32 %v6615_v3  ;;  %v16062_v52 = vpop.eup %16061  ;;  %v22216_v3 = vld [vmem:[#allocation48_spill] sm:$0xff] }
 0x96c   : > { %16075 = vrcp.f32 %v6606_v62  ;;  %v6699_v16 = vmul.f32 %v16062_v52, %v19173_v0  ;;  %14747 = vmatmul.mubr.msk.bf16.vlgmr.msra.gmra.mxu1 %vm2369_vm4, %v6725_v13  ;;  %v16064_v30 = vpop.eup %16063 }
 0x96d   : > { %v6609_v41 = vpop.xlane.xlu1 %6608  ;;  %14757 = vmatpush3.bf16.msra.mxu1 %v22208_v17  ;;  %14758 = vmatprep.mubr.msk.bf16.mxu1 %vm16701_vm0, %v22017_v55  ;;  %v6700_v0 = vmul.f32 %v16064_v30, %v19176_v35 }
 0x96e   : > { %v6618_v48 = vpop.xlane.xlu0 %6617  ;;  %16077 = vrcp.f32 %v6609_v41  ;;  %8155 = vrot.lane.b32.xlu1 %v22209_v40, %s21957_s27  ;;  %v6726_v31 = vpack.c.bf16 %v6699_v16, %v6698_v25  ;;  %14768 = vmatprep.subr.bf16.mxu1 %v22017_v55  ;;  %v22217_v25 = vld [vmem:[#allocation117_spill] sm:$0xff]  ;;  %v22219_v41 = vld [vmem:[#allocation15_spill] sm:$0xff] }
 0x96f   : > { %v16066_v42 = vpop.eup %16065 }
 0x970   : > { %v6701_v51 = vmul.f32 %v16066_v42, %v19183_v28  ;;  %14753 = vmatmul.mubr.msk.bf16.vlgmr.msra.gmra.mxu0 %vm2369_vm4, %v6726_v31  ;;  %v16068_v36 = vpop.eup %16067 }
 0x971   : > { %v6624_v19 = vpop.xlane.xlu1 %6623  ;;  %14763 = vmatpush3.bf16.msra.mxu0 %v22210_v61  ;;  %14764 = vmatprep.mubr.msk.bf16.mxu0 %vm16701_vm0, %v22017_v55  ;;  %v6702_v28 = vmul.f32 %v16068_v36, %v19187_v21  ;;  %v22223_v61 = vld [vmem:[#allocation21_spill] sm:$0xff] }
 0x972   : > { %v6627_v38 = vpop.xlane.xlu0 %6626  ;;  %16079 = vrcp.f32 %v6624_v19  ;;  %8206 = vrot.lane.b32.xlu1 %v22211_v23, %s21957_s27  ;;  %v6727_v8 = vpack.c.bf16 %v6701_v51, %v6700_v0  ;;  %14774 = vmatprep.subr.bf16.mxu0 %v22017_v55 }
 0x973   : > { %16081 = vrcp.f32 %v6627_v38  ;;  %v16070_v35 = vpop.eup %16069 }
 0x974   : > { %16083 = vrcp.f32 %v6618_v48  ;;  %v6703_v53 = vmul.f32 %v16070_v35, %v19193_v46  ;;  %14759 = vmatmul.mubr.msk.bf16.vlgmr.msra.gmra.mxu1 %vm2369_vm4, %v6727_v8 }
 0x975   : > { %v6621_v10 = vpop.xlane.xlu1 %6620  ;;  %14769 = vmatpush3.bf16.msra.mxu1 %v22212_v57  ;;  %14770 = vmatprep.mubr.msk.bf16.mxu1 %vm16701_vm0, %v22017_v55 }
 0x976   : > { %v6630_v44 = vpop.xlane.xlu0 %6629  ;;  %16085 = vrcp.f32 %v6621_v10  ;;  %8257 = vrot.lane.b32.xlu1 %v22213_v11, %s21957_s27  ;;  %v6728_v29 = vpack.c.bf16 %v6703_v53, %v6702_v28  ;;  %14780 = vmatprep.subr.bf16.mxu1 %v22017_v55  ;;  %v22224_v53 = vld [vmem:[#allocation24_spill] sm:$0xff] }
 0x977   : > { %v16072_v59 = vpop.eup %16071 }
 0x978   : > { %v16074_v21 = vpop.eup %16073  ;;  %14765 = vmatmul.mubr.msk.bf16.vlgmr.msra.gmra.mxu0 %vm2369_vm4, %v6728_v29  ;;  %v6706_v18 = vmul.f32 %v16072_v59, %v19205_v1 }
 0x979   : > { %v16076_v62 = vpop.eup %16075  ;;  %v6636_v46 = vpop.xlane.xlu1 %6635  ;;  %14775 = vmatpush3.bf16.msra.mxu0 %v22214_v26  ;;  %v6707_v22 = vmul.f32 %v16074_v21, %v19207_v6  ;;  %14776 = vmatprep.mubr.msk.bf16.mxu0 %vm16701_vm0, %v22017_v55  ;;  %v22227_v26 = vld [vmem:[#allocation27_spill] sm:$0xff] }
 0x97a   : > { %v6639_v32 = vpop.xlane.xlu0 %6638  ;;  %16087 = vrcp.f32 %v6636_v46  ;;  %8255 = vrot.lane.b32.xlu1 %v22215_v20, %s21957_s27  ;;  %14786 = vmatprep.subr.bf16.mxu0 %v22017_v55  ;;  %v6704_v7 = vmul.f32 %v16076_v62, %v19196_v5 }
 0x97b   : > { %v16078_v43 = vpop.eup %16077  ;;  %16089 = vrcp.f32 %v6639_v32  ;;  %v6730_v1 = vpack.c.bf16 %v6707_v22, %v6706_v18 }
 0x97c   : > { %v6705_v50 = vmul.f32 %v16078_v43, %v19211_v12  ;;  %16091 = vrcp.f32 %v6630_v44  ;;  %v22218_v12 = vld [vmem:[#allocation119_spill] sm:$0xff] }
 0x97d   : > { %v6633_v60 = vpop.xlane.xlu1 %6632 }
 0x97e   : > { %v6642_v47 = vpop.xlane.xlu0 %6641  ;;  %16093 = vrcp.f32 %v6633_v60  ;;  %8785 = vrot.lane.b32.xlu1 %v22216_v3, %s21957_s27  ;;  %v6729_v6 = vpack.c.bf16 %v6705_v50, %v6704_v7 }
 0x97f   : > { %v16080_v4 = vpop.eup %16079 }
 0x980   : > { %v16082_v13 = vpop.eup %16081  ;;  %14771 = vmatmul.mubr.msk.bf16.vlgmr.msra.gmra.mxu1 %vm2369_vm4, %v6729_v6  ;;  %14777 = vmatmul.mubr.msk.bf16.vlgmr.msra.gmra.mxu0 %vm2369_vm4, %v6730_v1  ;;  %v6710_v48 = vmul.f32 %v16080_v4, %v19225_v54  ;;  %v22220_v54 = vld [vmem:[#allocation18_spill] sm:$0xff] }
 0x981   : > { %v16084_v52 = vpop.eup %16083  ;;  %14781 = vmatpush3.bf16.msra.mxu1 %v22217_v25  ;;  %v6648_v5 = vpop.xlane.xlu1 %6647  ;;  %14787 = vmatpush3.bf16.msra.mxu0 %v22218_v12  ;;  %v6711_v17 = vmul.f32 %v16082_v13, %v19227_v49 }
 0x982   : > { %v6651_v16 = vpop.xlane.xlu0 %6650  ;;  %16095 = vrcp.f32 %v6648_v5  ;;  %8879 = vrot.lane.b32.xlu1 %v22219_v41, %s21957_s27  ;;  %14782 = vmatprep.mubr.msk.bf16.mxu1 %vm16701_vm0, %v22017_v55  ;;  %v6708_v40 = vmul.f32 %v16084_v52, %v19216_v58  ;;  %v22221_v58 = vld [vmem:[#allocation121_spill] sm:$0xff] }
 0x983   : > { %v16086_v30 = vpop.eup %16085  ;;  %16097 = vrcp.f32 %v6651_v16  ;;  %14788 = vmatprep.mubr.msk.bf16.mxu0 %vm16701_vm0, %v22017_v55  ;;  %14792 = vmatprep.subr.bf16.mxu1 %v22017_v55  ;;  %v6732_v51 = vpack.c.bf16 %v6711_v17, %v6710_v48 }
 0x984   : > { %v6709_v31 = vmul.f32 %v16086_v30, %v19231_v37  ;;  %16099 = vrcp.f32 %v6642_v47  ;;  %14798 = vmatprep.subr.bf16.mxu0 %v22017_v55  ;;  %v22222_v37 = vld [vmem:[#allocation122_spill] sm:$0xff] }
 0x985   : > { %v6645_v42 = vpop.xlane.xlu1 %6644 }
 0x986   : > { %16101 = vrcp.f32 %v6645_v42  ;;  %8973 = vrot.lane.b32.xlu1 %v22220_v54, %s21957_s27  ;;  %v6731_v49 = vpack.c.bf16 %v6709_v31, %v6708_v40  ;;  %v6654_v44 = vpop.xlane.xlu0 %6653 }
 0x987   : > { %v16088_v0 = vpop.eup %16087  ;;  %16103 = vrcp.f32 %v6654_v44 }
 0x988   : > { %v16090_v19 = vpop.eup %16089  ;;  %14783 = vmatmul.mubr.msk.bf16.vlgmr.msra.gmra.mxu1 %vm2369_vm4, %v6731_v49  ;;  %14789 = vmatmul.mubr.msk.bf16.vlgmr.msra.gmra.mxu0 %vm2369_vm4, %v6732_v51  ;;  %v6714_v8 = vmul.f32 %v16088_v0, %v19242_v2 }
 0x989   : > { %v16092_v36 = vpop.eup %16091  ;;  %14793 = vmatpush3.bf16.msra.mxu1 %v22221_v58  ;;  %14799 = vmatpush3.bf16.msra.mxu0 %v22222_v37  ;;  %v6715_v23 = vmul.f32 %v16090_v19, %v19244_v39  ;;  %v7544_v22 = vpop.permute.xlu1 %7543 }
 0x98a   : > { %9067 = vrot.lane.b32.xlu1 %v22223_v61, %s21957_s27  ;;  %14794 = vmatprep.mubr.msk.bf16.mxu1 %vm16701_vm0, %v22017_v55  ;;  %v6712_v35 = vmul.f32 %v16092_v36, %v19236_v9  ;;  %v22225_v9 = vld [vmem:[#allocation123_spill] sm:$0xff]  ;;  %v7549_v41 = vsel %vm1552_vm1, %v7544_v22, 0 }
 0x98b   : > { %v16094_v38 = vpop.eup %16093  ;;  %14800 = vmatprep.mubr.msk.bf16.mxu0 %vm16701_vm0, %v22017_v55  ;;  %14804 = vmatprep.subr.bf16.mxu1 %v22017_v55  ;;  %v6734_v2 = vpack.c.bf16 %v6715_v23, %v6714_v8 }
 0x98c   : > { %v6713_v28 = vmul.f32 %v16094_v38, %v19248_v56  ;;  %14810 = vmatprep.subr.bf16.mxu0 %v22017_v55  ;;  %v22226_v56 = vld [vmem:[#allocation28_spill] sm:$0xff] }
 0x98e   : > { %9161 = vrot.lane.b32.xlu1 %v22224_v53, %s21957_s27  ;;  %v6733_v39 = vpack.c.bf16 %v6713_v28, %v6712_v35 }
 0x98f   : > { %v16096_v10 = vpop.eup %16095 }
 0x990   : > { %v16098_v57 = vpop.eup %16097  ;;  %14795 = vmatmul.mubr.msk.bf16.vlgmr.msra.gmra.mxu1 %vm2369_vm4, %v6733_v39  ;;  %14801 = vmatmul.mubr.msk.bf16.vlgmr.msra.gmra.mxu0 %vm2369_vm4, %v6734_v2  ;;  %v6718_v21 = vmul.f32 %v16096_v10, %v19258_v34 }
 0x991   : > { %v16100_v11 = vpop.eup %16099  ;;  %14805 = vmatpush3.bf16.msra.mxu1 %v22225_v9  ;;  %14811 = vmatpush3.bf16.msra.mxu0 %v19282_v15  ;;  %v6719_v29 = vmul.f32 %v16098_v57, %v19260_v63  ;;  %v7493_v15 = vpop.permute.xlu0 %7492 }
 0x992   : > { %9208 = vrot.lane.b32.xlu1 %v22226_v56, %s21957_s27  ;;  %14806 = vmatprep.mubr.msk.bf16.mxu1 %vm16701_vm0, %v22017_v55  ;;  %v6716_v62 = vmul.f32 %v16100_v11, %v19252_v24  ;;  %v7498_v32 = vsel %vm1552_vm1, %v7493_v15, 0 }
 0x993   : > { %v16102_v59 = vpop.eup %16101  ;;  %14812 = vmatprep.mubr.msk.bf16.mxu0 %vm16701_vm0, %v22017_v55  ;;  %14816 = vmatprep.subr.bf16.mxu1 %v22017_v55  ;;  %v6736_v34 = vpack.c.bf16 %v6719_v29, %v6718_v21 }
 0x994   : > { %v6717_v46 = vmul.f32 %v16102_v59, %v19264_v27  ;;  %14822 = vmatprep.subr.bf16.mxu0 %v22017_v55  ;;  %v16104_v6 = vpop.eup %16103 }
 0x995   : > { %v7491_v24 = vpop.permute.xlu0 %7490  ;;  %v6720_v25 = vmul.f32 %v16104_v6, %v19268_v45 }
 0x996   : > { %9255 = vrot.lane.b32.xlu1 %v22227_v26, %s21957_s27  ;;  %v6735_v63 = vpack.c.bf16 %v6717_v46, %v6716_v62 }
 0x998   : > { %14807 = vmatmul.mubr.msk.bf16.vlgmr.msra.gmra.mxu1 %vm2369_vm4, %v6735_v63  ;;  %14813 = vmatmul.mubr.msk.bf16.vlgmr.msra.gmra.mxu0 %vm2369_vm4, %v6736_v34 }
 0x999   : > { %14817 = vmatpush3.bf16.msra.mxu1 %v19278_v33  ;;  %14823 = vmatpush3.bf16.xpose.msra.mxu0 %v7498_v32  ;;  %v7542_v27 = vpop.permute.xlu0 %7541 }
 0x99a   : > { %14824 = vmatprep.mubr.msk.bf16.mxu0 %vm16701_vm0, %v22017_v55  ;;  %14834 = vmatprep.subr.bf16.mxu0 %v22017_v55 }
 0x99b   : > { %14818 = vmatprep.mubr.msk.bf16.mxu1 %vm16701_vm0, %v22017_v55  ;;  %14828 = vmatprep.subr.bf16.mxu1 %v22017_v55 }
 0x99d   : > { %v7593_v20 = vpop.permute.xlu0 %7592 }
 0x9a0   : > { %14825 = vmatmul.mubr.msk.bf16.vlgmr.msra.gmra.mxu0 %vm1552_vm1, %v7491_v24 }
 0x9a1   : > { %14836 = vmatprep.mubr.msk.bf16.mxu0 %vm16701_vm0, %v22017_v55  ;;  %v7644_v33 = vpop.permute.xlu0 %7643 }
 0x9a5   : > { %v7695_v43 = vpop.permute.xlu0 %7694 }
 0x9a9   : > { %v19479_v7 = vpop.permute.xlu0 %7745 }
 0x9ad   : > { %v7797_v47 = vpop.permute.xlu0 %7796 }
 0x9b1   : > { %v19483_v1 = vpop.permute.xlu0 %7847 }
 0x9b5   : > { %v7899_v30 = vpop.permute.xlu0 %7898 }
 0x9ba   : > { %v6657_v18 = vpop.xlane.xlu1 %6656 }
 0x9bb   : > { %16105 = vrcp.f32 %v6657_v18 }
 0x9be   : > { %v7595_v50 = vpop.permute.xlu1 %7594 }
 0x9bf   : > { %v7600_v60 = vsel %vm1552_vm1, %v7595_v50, 0 }
 0x9c0   : > { %14835 = vmatpush3.bf16.xpose.msra.mxu0 %v7600_v60 }
 0x9c1   : > { %14846 = vmatprep.subr.bf16.mxu0 %v22017_v55 }
 0x9c2   : > { %v7646_v3 = vpop.permute.xlu1 %7645 }
 0x9c3   : > { %v7651_v40 = vsel %vm1552_vm1, %v7646_v3, 0 }
 0x9c6   : > { %v7697_v4 = vpop.permute.xlu1 %7696 }
 0x9c7   : > { %v7702_v13 = vsel %vm1552_vm1, %v7697_v4, 0  ;;  %14837 = vmatmul.mubr.msk.bf16.vlgmr.msra.gmra.mxu0 %vm1552_vm1, %v7593_v20 }
 0x9c8   : > { %v16106_v52 = vpop.eup %16105  ;;  %14847 = vmatpush3.bf16.xpose.msra.mxu0 %v7702_v13  ;;  %14848 = vmatprep.mubr.msk.bf16.mxu0 %vm16701_vm0, %v22017_v55 }
 0x9c9   : > { %v6721_v5 = vmul.f32 %v16106_v52, %v19293_v14  ;;  %14858 = vmatprep.subr.bf16.mxu0 %v22017_v55  ;;  %v7950_v14 = vpop.permute.xlu0 %7949 }
 0x9ca   : > { %v7748_v12 = vpop.permute.xlu1 %7747 }
 0x9cb   : > { %v6737_v16 = vpack.c.bf16 %v6721_v5, %v6720_v25  ;;  %v7753_v0 = vsel %vm1552_vm1, %v7748_v12, 0 }
 0x9cd   : > { %14819 = vmatmul.mubr.msk.bf16.vlgmr.msra.gmra.mxu1 %vm2369_vm4, %v6737_v16  ;;  %v8001_v54 = vpop.permute.xlu0 %8000 }
 0x9ce   : > { %14829 = vmatpush3.bf16.xpose.msra.mxu1 %v7549_v41  ;;  %v7799_v17 = vpop.permute.xlu1 %7798  ;;  %14830 = vmatprep.mubr.msk.bf16.mxu1 %vm16701_vm0, %v22017_v55 }
 0x9cf   : > { %v7804_v48 = vsel %vm1552_vm1, %v7799_v17, 0  ;;  %14849 = vmatmul.mubr.msk.bf16.vlgmr.msra.gmra.mxu0 %vm1552_vm1, %v7695_v43  ;;  %14840 = vmatprep.subr.bf16.mxu1 %v22017_v55 }
 0x9d0   : > { %14859 = vmatpush3.bf16.xpose.msra.mxu0 %v7804_v48  ;;  %14860 = vmatprep.mubr.msk.bf16.mxu0 %vm16701_vm0, %v22017_v55 }
 0x9d1   : > { %14870 = vmatprep.subr.bf16.mxu0 %v22017_v55  ;;  %v8052_v19 = vpop.permute.xlu0 %8051 }
 0x9d2   : > { %v7850_v45 = vpop.permute.xlu1 %7849 }
 0x9d3   : > { %v7855_v61 = vsel %vm1552_vm1, %v7850_v45, 0 }
 0x9d5   : > { %14831 = vmatmul.mubr.msk.bf16.vlgmr.msra.gmra.mxu1 %vm1552_vm1, %v7542_v27  ;;  %v8103_v37 = vpop.permute.xlu0 %8102 }
 0x9d6   : > { %14841 = vmatpush3.bf16.xpose.msra.mxu1 %v7651_v40  ;;  %v7901_v31 = vpop.permute.xlu1 %7900  ;;  %14842 = vmatprep.mubr.msk.bf16.mxu1 %vm16701_vm0, %v22017_v55 }
 0x9d7   : > { %v7906_v42 = vsel %vm1552_vm1, %v7901_v31, 0  ;;  %14861 = vmatmul.mubr.msk.bf16.vlgmr.msra.gmra.mxu0 %vm1552_vm1, %v7797_v47  ;;  %14852 = vmatprep.subr.bf16.mxu1 %v22017_v55 }
 0x9d8   : > { %14871 = vmatpush3.bf16.xpose.msra.mxu0 %v7906_v42  ;;  %14872 = vmatprep.mubr.msk.bf16.mxu0 %vm16701_vm0, %v22017_v55 }
 0x9d9   : > { %14882 = vmatprep.subr.bf16.mxu0 %v22017_v55  ;;  %v8154_v35 = vpop.permute.xlu0 %8153 }
 0x9da   : > { %v7952_v49 = vpop.permute.xlu1 %7951 }
 0x9db   : > { %v7957_v28 = vsel %vm1552_vm1, %v7952_v49, 0 }
 0x9dd   : > { %14843 = vmatmul.mubr.msk.bf16.vlgmr.msra.gmra.mxu1 %vm1552_vm1, %v7644_v33  ;;  %v8205_v10 = vpop.permute.xlu0 %8204 }
 0x9de   : > { %14853 = vmatpush3.bf16.xpose.msra.mxu1 %v7753_v0  ;;  %v8003_v51 = vpop.permute.xlu1 %8002  ;;  %14854 = vmatprep.mubr.msk.bf16.mxu1 %vm16701_vm0, %v22017_v55 }
 0x9df   : > { %v8008_v36 = vsel %vm1552_vm1, %v8003_v51, 0  ;;  %14873 = vmatmul.mubr.msk.bf16.vlgmr.msra.gmra.mxu0 %vm1552_vm1, %v7899_v30  ;;  %14864 = vmatprep.subr.bf16.mxu1 %v22017_v55 }
 0x9e0   : > { %14883 = vmatpush3.bf16.xpose.msra.mxu0 %v8008_v36  ;;  %14884 = vmatprep.mubr.msk.bf16.mxu0 %vm16701_vm0, %v22017_v55 }
 0x9e1   : > { %14894 = vmatprep.subr.bf16.mxu0 %v22017_v55  ;;  %v8739_v9 = vpop.permute.xlu0 %8738 }
 0x9e2   : > { %v8054_v58 = vpop.permute.xlu1 %8053 }
 0x9e3   : > { %v8059_v44 = vsel %vm1552_vm1, %v8054_v58, 0 }
 0x9e5   : > { %14855 = vmatmul.mubr.msk.bf16.vlgmr.msra.gmra.mxu1 %vm1552_vm1, %v19479_v7 }
 0x9e6   : > { %14865 = vmatpush3.bf16.xpose.msra.mxu1 %v7855_v61  ;;  %v8105_v38 = vpop.permute.xlu1 %8104  ;;  %14866 = vmatprep.mubr.msk.bf16.mxu1 %vm16701_vm0, %v22017_v55 }
 0x9e7   : > { %v8110_v23 = vsel %vm1552_vm1, %v8105_v38, 0  ;;  %14885 = vmatmul.mubr.msk.bf16.vlgmr.msra.gmra.mxu0 %vm1552_vm1, %v8001_v54  ;;  %14876 = vmatprep.subr.bf16.mxu1 %v22017_v55 }
 0x9e8   : > { %14895 = vmatpush3.bf16.xpose.msra.mxu0 %v8110_v23  ;;  %14896 = vmatprep.mubr.msk.bf16.mxu0 %vm16701_vm0, %v22017_v55 }
 0x9e9   : > { %14906 = vmatprep.subr.bf16.mxu0 %v22017_v55 }
 0x9ea   : > { %v8156_v8 = vpop.permute.xlu1 %8155 }
 0x9eb   : > { %v8161_v29 = vsel %vm1552_vm1, %v8156_v8, 0 }
 0x9ed   : > { %14867 = vmatmul.mubr.msk.bf16.vlgmr.msra.gmra.mxu1 %vm1552_vm1, %v19483_v1 }
 0x9ee   : > { %14877 = vmatpush3.bf16.xpose.msra.mxu1 %v7957_v28  ;;  %v8207_v53 = vpop.permute.xlu1 %8206  ;;  %14878 = vmatprep.mubr.msk.bf16.mxu1 %vm16701_vm0, %v22017_v55 }
 0x9ef   : > { %v8212_v39 = vsel %vm1552_vm1, %v8207_v53, 0  ;;  %14897 = vmatmul.mubr.msk.bf16.vlgmr.msra.gmra.mxu0 %vm1552_vm1, %v8103_v37  ;;  %14888 = vmatprep.subr.bf16.mxu1 %v22017_v55 }
 0x9f0   : > { %14907 = vmatpush3.bf16.xpose.msra.mxu0 %v8212_v39  ;;  %14908 = vmatprep.mubr.msk.bf16.mxu0 %vm16701_vm0, %v22017_v55 }
 0x9f1   : > { %14918 = vmatprep.subr.bf16.mxu0 %v22017_v55 }
 0x9f2   : > { %v19544_v2 = vpop.f32.mrf.mxu0  ;;  %v8258_v21 = vpop.permute.xlu1 %8257 }
 0x9f3   : > { %v8263_v62 = vsel %vm1552_vm1, %v8258_v21, 0 }
 0x9f4   : > { %v14730_v57 = vpop.f32.mrf.mxu0 }
 0x9f5   : > { %14879 = vmatmul.mubr.msk.bf16.vlgmr.msra.gmra.mxu1 %vm1552_vm1, %v7950_v14 }
 0x9f6   : > { %v19548_v11 = vpop.f32.mrf.mxu0  ;;  %14889 = vmatpush3.bf16.xpose.msra.mxu1 %v8059_v44  ;;  %14890 = vmatprep.mubr.msk.bf16.mxu1 %vm16701_vm0, %v22017_v55  ;;  %v8256_v46 = vpop.permute.xlu1 %8255 }
 0x9f7   : > { %14909 = vmatmul.mubr.msk.bf16.vlgmr.msra.gmra.mxu0 %vm1552_vm1, %v8205_v10  ;;  %14900 = vmatprep.subr.bf16.mxu1 %v22017_v55 }
 0x9f8   : > { %v14731_v59 = vpop.f32.mrf.mxu0  ;;  %14919 = vmatpush3.bf16.msra.mxu0 %v8739_v9  ;;  %14920 = vmatprep.mubr.msk.bf16.mxu0 %vm16701_vm0, %v22017_v55 }
 0x9f9   : > { %14930 = vmatprep.subr.bf16.mxu0 %v22017_v55 }
 0x9fa   : > { %v8786_v15 = vpop.permute.xlu1 %8785 }
 0x9fd   : > { %14891 = vmatmul.mubr.msk.bf16.vlgmr.msra.gmra.mxu1 %vm1552_vm1, %v8052_v19 }
 0x9fe   : > { %14901 = vmatpush3.bf16.xpose.msra.mxu1 %v8161_v29  ;;  %14902 = vmatprep.mubr.msk.bf16.mxu1 %vm16701_vm0, %v22017_v55 }
 0x9ff   : > { %14912 = vmatprep.subr.bf16.mxu1 %v22017_v55 }
 0xa05   : > { %14903 = vmatmul.mubr.msk.bf16.vlgmr.msra.gmra.mxu1 %vm1552_vm1, %v8154_v35 }
 0xa06   : > { %14913 = vmatpush3.bf16.xpose.msra.mxu1 %v8263_v62  ;;  %14914 = vmatprep.mubr.msk.bf16.mxu1 %vm16701_vm0, %v22017_v55 }
 0xa07   : > { %14924 = vmatprep.subr.bf16.mxu1 %v22017_v55 }
 0xa0d   : > { %14915 = vmatmul.mubr.msk.bf16.vlgmr.msra.gmra.mxu1 %vm1552_vm1, %v8256_v46 }
 0xa0e   : > { %14925 = vmatpush3.bf16.msra.mxu1 %v8786_v15  ;;  %14926 = vmatprep.mubr.msk.bf16.mxu1 %vm16701_vm0, %v22017_v55 }
 0xa0f   : > { %14936 = vmatprep.subr.bf16.mxu1 %v22017_v55 }
 0xa24   : > { %v19573_v26 = vpop.f32.mrf.mxu1 }
 0xa26   : > { %v14736_v63 = vpop.f32.mrf.mxu1 }
 0xa28   : > { %v19575_v34 = vpop.f32.mrf.mxu1  ;;  %v19579_v24 = vpop.f32.mrf.mxu0 }
 0xa2a   : > { %v14737_v27 = vpop.f32.mrf.mxu1  ;;  %v14742_v20 = vpop.f32.mrf.mxu0 }
 0xa2c   : > { %v19581_v33 = vpop.f32.mrf.mxu0  ;;  %v19583_v43 = vpop.f32.mrf.mxu1 }
 0xa2e   : > { %v14743_v18 = vpop.f32.mrf.mxu0  ;;  %v14748_v7 = vpop.f32.mrf.mxu1 }
 0xa30   : > { %v19587_v50 = vpop.f32.mrf.mxu1  ;;  %v19589_v60 = vpop.f32.mrf.mxu0 }
 0xa32   : > { %v14749_v3 = vpop.f32.mrf.mxu1  ;;  %v14754_v6 = vpop.f32.mrf.mxu0 }
 0xa34   : > { %v19593_v4 = vpop.f32.mrf.mxu0  ;;  %v19595_v1 = vpop.f32.mrf.mxu1 }
 0xa36   : > { %v14755_v52 = vpop.f32.mrf.mxu0  ;;  %v14760_v25 = vpop.f32.mrf.mxu1 }
 0xa38   : > { %v19599_v5 = vpop.f32.mrf.mxu1  ;;  %v19601_v12 = vpop.f32.mrf.mxu0 }
 0xa3a   : > { %v14761_v41 = vpop.f32.mrf.mxu1  ;;  %v14766_v30 = vpop.f32.mrf.mxu0 }
 0xa3c   : > { %v19605_v17 = vpop.f32.mrf.mxu0 }
 0xa3e   : > { %v14767_v45 = vpop.f32.mrf.mxu0 }
 0xa40   : > { %v19609_v14 = vpop.f32.mrf.mxu1  ;;  %v19611_v40 = vpop.f32.mrf.mxu0 }
 0xa41   : > { %22228 = vst [vmem:[#allocation40_spill] sm:$0xff] %v19611_v40 }
 0xa42   : > { %v14772_v31 = vpop.f32.mrf.mxu1  ;;  %v14778_v42 = vpop.f32.mrf.mxu0 }
 0xa43   : > { %v22242_v42 = vld [vmem:[#allocation49_spill] sm:$0xff] }
 0xa44   : > { %v19613_v54 = vpop.f32.mrf.mxu1  ;;  %v19617_v0 = vpop.f32.mrf.mxu0 }
 0xa45   : > { %22229 = vst [vmem:[#allocation23_spill] sm:$0xff] %v19617_v0 }
 0xa46   : > { %v14773_v19 = vpop.f32.mrf.mxu1  ;;  %v14779_v36 = vpop.f32.mrf.mxu0 }
 0xa48   : > { %v19621_v58 = vpop.f32.mrf.mxu1  ;;  %v19623_v37 = vpop.f32.mrf.mxu0 }
 0xa49   : > { %22230 = vst [vmem:[#allocation42_spill] sm:$0xff] %v19621_v58  ;;  %22231 = vst [vmem:[#allocation26_spill] sm:$0xff] %v19623_v37 }
 0xa4a   : > { %v14784_v61 = vpop.f32.mrf.mxu1  ;;  %v14790_v38 = vpop.f32.mrf.mxu0 }
 0xa4c   : > { %v19625_v23 = vpop.f32.mrf.mxu1  ;;  %v19629_v35 = vpop.f32.mrf.mxu0 }
 0xa4d   : > { %22232 = vst [vmem:[#allocation44_spill] sm:$0xff] %v19625_v23  ;;  %22233 = vst [vmem:[#allocation29_spill] sm:$0xff] %v19629_v35 }
 0xa4e   : > { %v14785_v53 = vpop.f32.mrf.mxu1  ;;  %v14791_v39 = vpop.f32.mrf.mxu0 }
 0xa4f   : > { %v22243_v39 = vld [vmem:[#allocation50_spill] sm:$0xff] }
 0xa50   : > { %v19633_v10 = vpop.f32.mrf.mxu1  ;;  %v19635_v57 = vpop.f32.mrf.mxu0 }
 0xa51   : > { %22234 = vst [vmem:[#allocation46_spill] sm:$0xff] %v19633_v10  ;;  %22235 = vst [vmem:[#allocation32_spill] sm:$0xff] %v19635_v57 }
 0xa52   : > { %v14796_v44 = vpop.f32.mrf.mxu1  ;;  %v14802_v9 = vpop.f32.mrf.mxu0 }
 0xa54   : > { %v19637_v59 = vpop.f32.mrf.mxu1  ;;  %v19641_v21 = vpop.f32.mrf.mxu0 }
 0xa55   : > { %22236 = vst [vmem:[#allocation16_spill] sm:$0xff] %v19637_v59  ;;  %22237 = vst [vmem:[#allocation35_spill] sm:$0xff] %v19641_v21 }
 0xa56   : > { %v14797_v46 = vpop.f32.mrf.mxu1  ;;  %v14803_v15 = vpop.f32.mrf.mxu0 }
 0xa58   : > { %v19645_v63 = vpop.f32.mrf.mxu1  ;;  %v19647_v27 = vpop.f32.mrf.mxu0 }
 0xa59   : > { %22238 = vst [vmem:[#allocation19_spill] sm:$0xff] %v19645_v63  ;;  %22239 = vst [vmem:[#allocation36_spill] sm:$0xff] %v19647_v27 }
 0xa5a   : > { %v14808_v20 = vpop.f32.mrf.mxu1  ;;  %v14814_v18 = vpop.f32.mrf.mxu0 }
 0xa5c   : > { %v19649_v7 = vpop.f32.mrf.mxu1  ;;  %v19653_v6 = vpop.f32.mrf.mxu0 }
 0xa5d   : > { %22240 = vst [vmem:[#allocation22_spill] sm:$0xff] %v19649_v7  ;;  %22241 = vst [vmem:[#allocation37_spill] sm:$0xff] %v19653_v6 }
 0xa5e   : > { %v14809_v25 = vpop.f32.mrf.mxu1  ;;  %v14815_v41 = vpop.f32.mrf.mxu0 }
 0xa60   : > { %v7534_v30 = vpop.f32.mrf.mxu0 }
 0xa61   : > { %v8306_v45 = vmul.f32 0.17677669, %v7534_v30 }
 0xa62   : > { %v14826_v31 = vpop.f32.mrf.mxu0 }
 0xa63   : > { %v19658_v19 = vadd.f32 %v8306_v45, %v22242_v42 }
 0xa64   : > { %v7537_v36 = vpop.f32.mrf.mxu0 }
 0xa65   : > { %v8307_v61 = vmul.f32 0.17677669, %v7537_v36  ;;  %v8370_v38 = vsel %vm2369_vm4, %v19658_v19, -inf }
 0xa66   : > { %8371 = vmax.xlane.f32.xlu0 %v8370_v38  ;;  %v14827_v53 = vpop.f32.mrf.mxu0 }
 0xa67   : > { %v19663_v44 = vadd.f32 %v8307_v61, %v22243_v39 }
 0xa69   : > { %v8373_v9 = vsel %vm2369_vm4, %v19663_v44, -inf }
 0xa6a   : > { %8374 = vmax.xlane.f32.xlu1 %v8373_v9 }
 0xa87   : > { %v7636_v46 = vpop.f32.mrf.mxu0 }
 0xa89   : > { %v14838_v15 = vpop.f32.mrf.mxu0 }
 0xa8b   : > { %v7639_v20 = vpop.f32.mrf.mxu0 }
 0xa8c   : > { %v8311_v18 = vmul.f32 0.17677669, %v7639_v20 }
 0xa8d   : > { %v19667_v25 = vpop.f32.mrf.mxu1  ;;  %v14839_v41 = vpop.f32.mrf.mxu0 }
 0xa8e   : > { %22244 = vst [vmem:[#allocation25_spill] sm:$0xff] %v19667_v25  ;;  %v19670_v30 = vadd.f32 %v8311_v18, %v22243_v39  ;;  %v8310_v41 = vmul.f32 0.17677669, %v7636_v46 }
 0xa8f   : > { %v14820_v45 = vpop.f32.mrf.mxu1  ;;  %v7738_v31 = vpop.f32.mrf.mxu0 }
 0xa90   : > { %v8385_v36 = vsel %vm2369_vm4, %v19670_v30, -inf  ;;  %v19682_v8 = vadd.f32 %v8310_v41, %v22242_v42  ;;  %v8314_v51 = vmul.f32 0.17677669, %v7738_v31 }
 0xa91   : > { %v19674_v61 = vpop.f32.mrf.mxu1  ;;  %8386 = vmax.xlane.f32.xlu1 %v8385_v36  ;;  %v14850_v38 = vpop.f32.mrf.mxu0 }
 0xa92   : > { %22245 = vst [vmem:[#allocation113_spill] sm:$0xff] %v19674_v61 }
 0xa93   : > { %v14821_v9 = vpop.f32.mrf.mxu1  ;;  %v7741_v15 = vpop.f32.mrf.mxu0 }
 0xa94   : > { %v8315_v49 = vmul.f32 0.17677669, %v7741_v15 }
 0xa95   : > { %v7585_v20 = vpop.f32.mrf.mxu1  ;;  %v14851_v52 = vpop.f32.mrf.mxu0 }
 0xa96   : > { %v8308_v3 = vmul.f32 0.17677669, %v7585_v20 }
 0xa97   : > { %v14832_v18 = vpop.f32.mrf.mxu1  ;;  %v7840_v62 = vpop.f32.mrf.mxu0 }
 0xa98   : > { %v19679_v45 = vadd.f32 %v8308_v3, %v22242_v42  ;;  %v8382_v3 = vsel %vm2369_vm4, %v19682_v8, -inf }
 0xa99   : > { %v7588_v29 = vpop.f32.mrf.mxu1  ;;  %v14862_v28 = vpop.f32.mrf.mxu0 }
 0xa9a   : > { %v8309_v36 = vmul.f32 0.17677669, %v7588_v29  ;;  %v8376_v38 = vsel %vm2369_vm4, %v19679_v45, -inf }
 0xa9b   : > { %v14833_v9 = vpop.f32.mrf.mxu1  ;;  %8377 = vmax.xlane.f32.xlu0 %v8376_v38  ;;  %v7843_v53 = vpop.f32.mrf.mxu0 }
 0xa9c   : > { %v19687_v20 = vadd.f32 %v8309_v36, %v22243_v39  ;;  %v8319_v22 = vmul.f32 0.17677669, %v7843_v53 }
 0xa9d   : > { %v7687_v52 = vpop.f32.mrf.mxu1  ;;  %v14863_v46 = vpop.f32.mrf.mxu0 }
 0xa9e   : > { %v8312_v18 = vmul.f32 0.17677669, %v7687_v52  ;;  %v8379_v46 = vsel %vm2369_vm4, %v19687_v20, -inf  ;;  %v19723_v53 = vadd.f32 %v8319_v22, %v22243_v39 }
 0xa9f   : > { %v14844_v28 = vpop.f32.mrf.mxu1  ;;  %8383 = vmax.xlane.f32.xlu0 %v8382_v3  ;;  %v7942_v41 = vpop.f32.mrf.mxu0  ;;  %v19700_v3 = vadd.f32 %v8314_v51, %v22242_v42 }
 0xaa0   : > { %v19692_v9 = vadd.f32 %v8312_v18, %v22242_v42  ;;  %v8409_v61 = vsel %vm2369_vm4, %v19723_v53, -inf }
 0xaa1   : > { %v7690_v29 = vpop.f32.mrf.mxu1  ;;  %v14874_v48 = vpop.f32.mrf.mxu0 }
 0xaa2   : > { %v8313_v38 = vmul.f32 0.17677669, %v7690_v29  ;;  %v19703_v48 = vadd.f32 %v8315_v49, %v22243_v39  ;;  %v8388_v18 = vsel %vm2369_vm4, %v19692_v9, -inf }
 0xaa3   : > { %v14845_v36 = vpop.f32.mrf.mxu1  ;;  %8380 = vmax.xlane.f32.xlu0 %v8379_v46  ;;  %v7945_v52 = vpop.f32.mrf.mxu0 }
 0xaa4   : > { %v19697_v13 = vadd.f32 %v8313_v38, %v22243_v39  ;;  %v8318_v36 = vmul.f32 0.17677669, %v7840_v62  ;;  %v8397_v47 = vsel %vm2369_vm4, %v19703_v48, -inf  ;;  %v8323_v25 = vmul.f32 0.17677669, %v7945_v52 }
 0xaa5   : > { %v7789_v31 = vpop.f32.mrf.mxu1  ;;  %v14875_v28 = vpop.f32.mrf.mxu0 }
 0xaa6   : > { %v8316_v15 = vmul.f32 0.17677669, %v7789_v31  ;;  %v8391_v29 = vsel %vm2369_vm4, %v19697_v13, -inf  ;;  %v8394_v28 = vsel %vm2369_vm4, %v19700_v3, -inf  ;;  %v19720_v62 = vadd.f32 %v8318_v36, %v22242_v42 }
 0xaa7   : > { %v14856_v46 = vpop.f32.mrf.mxu1  ;;  %8389 = vmax.xlane.f32.xlu0 %v8388_v18  ;;  %8392 = vmax.xlane.f32.xlu1 %v8391_v29  ;;  %v8044_v38 = vpop.f32.mrf.mxu0  ;;  %v19743_v52 = vadd.f32 %v8323_v25, %v22243_v39 }
 0xaa8   : > { %v19712_v49 = vadd.f32 %v8316_v15, %v22242_v42 }
 0xaa9   : > { %v7792_v16 = vpop.f32.mrf.mxu1  ;;  %v14886_v51 = vpop.f32.mrf.mxu0  ;;  %v8421_v7 = vsel %vm2369_vm4, %v19743_v52, -inf }
 0xaaa   : > { %v8317_v31 = vmul.f32 0.17677669, %v7792_v16  ;;  %v8400_v16 = vsel %vm2369_vm4, %v19712_v49, -inf }
 0xaab   : > { %v14857_v56 = vpop.f32.mrf.mxu1  ;;  %8395 = vmax.xlane.f32.xlu0 %v8394_v28  ;;  %8398 = vmax.xlane.f32.xlu1 %v8397_v47  ;;  %v8047_v18 = vpop.f32.mrf.mxu0 }
 0xaac   : > { %v19717_v29 = vadd.f32 %v8317_v31, %v22243_v39  ;;  %v8322_v31 = vmul.f32 0.17677669, %v7942_v41  ;;  %v8327_v63 = vmul.f32 0.17677669, %v8047_v18 }
 0xaad   : > { %v7891_v46 = vpop.f32.mrf.mxu1  ;;  %v14887_v51 = vpop.f32.mrf.mxu0 }
 0xaae   : > { %v8320_v15 = vmul.f32 0.17677669, %v7891_v46  ;;  %v8403_v56 = vsel %vm2369_vm4, %v19717_v29, -inf  ;;  %v8406_v51 = vsel %vm2369_vm4, %v19720_v62, -inf  ;;  %v19740_v41 = vadd.f32 %v8322_v31, %v22242_v42 }
 0xaaf   : > { %v14868_v47 = vpop.f32.mrf.mxu1  ;;  %8401 = vmax.xlane.f32.xlu0 %v8400_v16  ;;  %8404 = vmax.xlane.f32.xlu1 %v8403_v56  ;;  %v8146_v28 = vpop.f32.mrf.mxu0  ;;  %v19763_v18 = vadd.f32 %v8327_v63, %v22243_v39 }
 0xab0   : > { %v19732_v22 = vadd.f32 %v8320_v15, %v22242_v42 }
 0xab1   : > { %v7894_v32 = vpop.f32.mrf.mxu1  ;;  %v14898_v36 = vpop.f32.mrf.mxu0 }
 0xab2   : > { %v8321_v46 = vmul.f32 0.17677669, %v7894_v32  ;;  %v8412_v32 = vsel %vm2369_vm4, %v19732_v22, -inf }
 0xab3   : > { %v14869_v27 = vpop.f32.mrf.mxu1  ;;  %8407 = vmax.xlane.f32.xlu0 %v8406_v51  ;;  %8410 = vmax.xlane.f32.xlu1 %v8409_v61  ;;  %v8149_v16 = vpop.f32.mrf.mxu0 }
 0xab4   : > { %v19737_v56 = vadd.f32 %v8321_v46, %v22243_v39  ;;  %v8326_v46 = vmul.f32 0.17677669, %v8044_v38  ;;  %v8331_v21 = vmul.f32 0.17677669, %v8149_v16 }
 0xab5   : > { %v7993_v47 = vpop.f32.mrf.mxu1  ;;  %v14899_v36 = vpop.f32.mrf.mxu0 }
 0xab6   : > { %v8324_v15 = vmul.f32 0.17677669, %v7993_v47  ;;  %v8415_v27 = vsel %vm2369_vm4, %v19737_v56, -inf  ;;  %v8418_v36 = vsel %vm2369_vm4, %v19740_v41, -inf  ;;  %v19760_v38 = vadd.f32 %v8326_v46, %v22242_v42 }
 0xab7   : > { %v14880_v61 = vpop.f32.mrf.mxu1  ;;  %8413 = vmax.xlane.f32.xlu0 %v8412_v32  ;;  %8416 = vmax.xlane.f32.xlu1 %v8415_v27  ;;  %v8248_v51 = vpop.f32.mrf.mxu0 }
 0xab8   : > { %v19752_v25 = vadd.f32 %v8324_v15, %v22242_v42  ;;  %v8430_v46 = vsel %vm2369_vm4, %v19760_v38, -inf }
 0xab9   : > { %v7996_v6 = vpop.f32.mrf.mxu1  ;;  %v14910_v31 = vpop.f32.mrf.mxu0 }
 0xaba   : > { %v8325_v47 = vmul.f32 0.17677669, %v7996_v6  ;;  %v8424_v6 = vsel %vm2369_vm4, %v19752_v25, -inf }
 0xabb   : > { %v14881_v57 = vpop.f32.mrf.mxu1  ;;  %8419 = vmax.xlane.f32.xlu0 %v8418_v36  ;;  %8422 = vmax.xlane.f32.xlu1 %v8421_v7  ;;  %v8251_v32 = vpop.f32.mrf.mxu0  ;;  %v8330_v36 = vmul.f32 0.17677669, %v8146_v28 }
 0xabc   : > { %v19757_v27 = vadd.f32 %v8325_v47, %v22243_v39 }
 0xabd   : > { %v8095_v61 = vpop.f32.mrf.mxu1  ;;  %v14911_v31 = vpop.f32.mrf.mxu0  ;;  %v19780_v28 = vadd.f32 %v8330_v36, %v22242_v42 }
 0xabe   : > { %v8328_v15 = vmul.f32 0.17677669, %v8095_v61  ;;  %v8427_v57 = vsel %vm2369_vm4, %v19757_v27, -inf  ;;  %v8433_v61 = vsel %vm2369_vm4, %v19763_v18, -inf }
 0xabf   : > { %v14892_v7 = vpop.f32.mrf.mxu1  ;;  %8425 = vmax.xlane.f32.xlu0 %v8424_v6  ;;  %8428 = vmax.xlane.f32.xlu1 %v8427_v57  ;;  %v19783_v57 = vadd.f32 %v8331_v21, %v22243_v39  ;;  %v8442_v36 = vsel %vm2369_vm4, %v19780_v28, -inf }
 0xac0   : > { %v19772_v31 = vadd.f32 %v8328_v15, %v22242_v42 }
 0xac1   : > { %v8098_v47 = vpop.f32.mrf.mxu1 }
 0xac2   : > { %v8329_v63 = vmul.f32 0.17677669, %v8098_v47  ;;  %v8436_v15 = vsel %vm2369_vm4, %v19772_v31, -inf }
 0xac3   : > { %v14893_v10 = vpop.f32.mrf.mxu1  ;;  %8431 = vmax.xlane.f32.xlu0 %v8430_v46  ;;  %8434 = vmax.xlane.f32.xlu1 %v8433_v61  ;;  %v8334_v46 = vmul.f32 0.17677669, %v8248_v51  ;;  %v8335_v61 = vmul.f32 0.17677669, %v8251_v32 }
 0xac4   : > { %v19777_v7 = vadd.f32 %v8329_v63, %v22243_v39 }
 0xac5   : > { %v8197_v6 = vpop.f32.mrf.mxu1  ;;  %v19800_v51 = vadd.f32 %v8334_v46, %v22242_v42 }
 0xac6   : > { %v8332_v16 = vmul.f32 0.17677669, %v8197_v6  ;;  %v8439_v47 = vsel %vm2369_vm4, %v19777_v7, -inf  ;;  %v8445_v6 = vsel %vm2369_vm4, %v19783_v57, -inf }
 0xac7   : > { %v14904_v10 = vpop.f32.mrf.mxu1  ;;  %8437 = vmax.xlane.f32.xlu0 %v8436_v15  ;;  %8440 = vmax.xlane.f32.xlu1 %v8439_v47  ;;  %v19803_v47 = vadd.f32 %v8335_v61, %v22243_v39  ;;  %v8454_v61 = vsel %vm2369_vm4, %v19800_v51, -inf }
 0xac8   : > { %v19792_v59 = vadd.f32 %v8332_v16, %v22242_v42 }
 0xac9   : > { %v8200_v63 = vpop.f32.mrf.mxu1 }
 0xaca   : > { %v8333_v21 = vmul.f32 0.17677669, %v8200_v63  ;;  %v8448_v16 = vsel %vm2369_vm4, %v19792_v59, -inf }
 0xacb   : > { %v14905_v37 = vpop.f32.mrf.mxu1  ;;  %8443 = vmax.xlane.f32.xlu0 %v8442_v36  ;;  %8446 = vmax.xlane.f32.xlu1 %v8445_v6 }
 0xacc   : > { %v19797_v10 = vadd.f32 %v8333_v21, %v22243_v39  ;;  %v19809_v21 = vpop.permute.xlu1 %8879 }
 0xacd   : > { %v8299_v15 = vpop.f32.mrf.mxu1  ;;  %22246 = vst [vmem:[#allocation38_spill] sm:$0xff] %v19809_v21 }
 0xace   : > { %v8336_v32 = vmul.f32 0.17677669, %v8299_v15  ;;  %v8451_v63 = vsel %vm2369_vm4, %v19797_v10, -inf  ;;  %v8457_v15 = vsel %vm2369_vm4, %v19803_v47, -inf }
 0xacf   : > { %v14916_v37 = vpop.f32.mrf.mxu1  ;;  %8449 = vmax.xlane.f32.xlu0 %v8448_v16  ;;  %8452 = vmax.xlane.f32.xlu1 %v8451_v63  ;;  %v19827_v63 = vpop.permute.xlu0 %8832 }
 0xad0   : > { %v19812_v46 = vadd.f32 %v8336_v32, %v22242_v42  ;;  %v19825_v32 = vpop.permute.xlu1 %8973 }
 0xad1   : > { %v8302_v36 = vpop.f32.mrf.mxu1  ;;  %22247 = vst [vmem:[#allocation116_spill] sm:$0xff] %v19825_v32 }
 0xad2   : > { %v8337_v6 = vmul.f32 0.17677669, %v8302_v36  ;;  %v8460_v16 = vsel %vm2369_vm4, %v19812_v46, -inf }
 0xad3   : > { %v14917_v35 = vpop.f32.mrf.mxu1  ;;  %8455 = vmax.xlane.f32.xlu0 %v8454_v61  ;;  %8458 = vmax.xlane.f32.xlu1 %v8457_v15 }
 0xad4   : > { %v19819_v37 = vadd.f32 %v8337_v6, %v22243_v39  ;;  %v19829_v36 = vpop.permute.xlu1 %9067  ;;  %v19831_v35 = vpop.permute.xlu0 %8926  ;;  %v22252_v6 = vld [vmem:[#allocation30_spill] sm:$0xff] }
 0xad5   : > { %22248 = vst [vmem:[#allocation39_spill] sm:$0xff] %v19829_v36  ;;  %22249 = vst [vmem:[#allocation114_spill] sm:$0xff] %v19831_v35 }
 0xad6   : > { %v8463_v42 = vsel %vm2369_vm4, %v19819_v37, -inf }
 0xad7   : > { %8461 = vmax.xlane.f32.xlu0 %v8460_v16  ;;  %8464 = vmax.xlane.f32.xlu1 %v8463_v42  ;;  %v22255_v16 = vld [vmem:[#allocation31_spill] sm:$0xff] }
 0xad8   : > { %v19833_v61 = vpop.permute.xlu1 %9161  ;;  %v19835_v39 = vpop.permute.xlu0 %9020 }
 0xad9   : > { %22250 = vst [vmem:[#allocation41_spill] sm:$0xff] %v19833_v61  ;;  %22251 = vst [vmem:[#allocation118_spill] sm:$0xff] %v19835_v39 }
 0xadc   : > { %v19839_v15 = vpop.permute.xlu1 %9208  ;;  %v19841_v58 = vpop.permute.xlu0 %9114 }
 0xadd   : > { %22253 = vst [vmem:[#allocation43_spill] sm:$0xff] %v19839_v15  ;;  %22254 = vst [vmem:[#allocation115_spill] sm:$0xff] %v19841_v58 }
 0xae0   : > { %v19845_v42 = vpop.permute.xlu1 %9255 }
 0xae1   : > { %22256 = vst [vmem:[#allocation45_spill] sm:$0xff] %v19845_v42 }
 0xae8   : > { %9349 = vrot.lane.b32.xlu1 %v22252_v6, %s21957_s27 }
 0xaed   : > { %9302 = vrot.lane.b32.xlu0 %v22255_v16, %s21957_s27 }
 0xaef   : > { %v8372_v23 = vpop.xlane.xlu0 %8371 }
 0xaf0   : > { %v8466_v40 = vsub.f32 %v19658_v19, %v8372_v23 }
 0xaf2   : > { %v8498_v36 = vmul.f32 1.442695, %v8466_v40 }
 0xaf3   : > { %v8375_v0 = vpop.xlane.xlu1 %8374 }
 0xaf4   : > { %v8467_v61 = vsub.f32 %v19663_v44, %v8375_v0  ;;  %16107 = vpow2.f32 %v8498_v36 }
 0xaf6   : > { %v8500_v39 = vmul.f32 1.442695, %v8467_v61 }
 0xaf8   : > { %16109 = vpow2.f32 %v8500_v39 }
 0xb01   : > { %v19849_v6 = vpop.eup %16107 }
 0xb02   : > { %v8562_v58 = vsel %vm2369_vm4, %v19849_v6, 0.0 }
 0xb05   : > { %v19851_v15 = vpop.eup %16109 }
 0xb06   : > { %v8565_v16 = vsel %vm2369_vm4, %v19851_v15, 0.0 }
 0xb0c   : > { %8563 = vadd.xlane.f32.xlu0 %v8562_v58  ;;  %8566 = vadd.xlane.f32.xlu1 %v8565_v16 }
 0xb1a   : > { %v8387_v40 = vpop.xlane.xlu1 %8386 }
 0xb1b   : > { %v8471_v61 = vsub.f32 %v19670_v30, %v8387_v40 }
 0xb1d   : > { %v8508_v35 = vmul.f32 1.442695, %v8471_v61 }
 0xb24   : > { %v8378_v23 = vpop.xlane.xlu0 %8377 }
 0xb25   : > { %v8468_v19 = vsub.f32 %v19679_v45, %v8378_v23 }
 0xb27   : > { %v8502_v0 = vmul.f32 1.442695, %v8468_v19 }
 0xb28   : > { %v8384_v44 = vpop.xlane.xlu0 %8383 }
 0xb29   : > { %16111 = vpow2.f32 %v8502_v0  ;;  %v8470_v36 = vsub.f32 %v19682_v8, %v8384_v44 }
 0xb2b   : > { %v8506_v39 = vmul.f32 1.442695, %v8470_v36 }
 0xb2c   : > { %v8381_v42 = vpop.xlane.xlu0 %8380 }
 0xb2d   : > { %16113 = vpow2.f32 %v8506_v39  ;;  %v8469_v32 = vsub.f32 %v19687_v20, %v8381_v42 }
 0xb2f   : > { %v8504_v21 = vmul.f32 1.442695, %v8469_v32 }
 0xb30   : > { %v8390_v58 = vpop.xlane.xlu0 %8389  ;;  %v8393_v16 = vpop.xlane.xlu1 %8392 }
 0xb31   : > { %16115 = vpow2.f32 %v8504_v21  ;;  %v8472_v45 = vsub.f32 %v19692_v9, %v8390_v58  ;;  %v8473_v23 = vsub.f32 %v19697_v13, %v8393_v16 }
 0xb32   : > { %16117 = vpow2.f32 %v8508_v35 }
 0xb33   : > { %v8510_v19 = vmul.f32 1.442695, %v8472_v45  ;;  %v8512_v0 = vmul.f32 1.442695, %v8473_v23 }
 0xb34   : > { %v8396_v8 = vpop.xlane.xlu0 %8395  ;;  %v8399_v44 = vpop.xlane.xlu1 %8398 }
 0xb35   : > { %16119 = vpow2.f32 %v8510_v19  ;;  %v8474_v30 = vsub.f32 %v19700_v3, %v8396_v8  ;;  %v8475_v40 = vsub.f32 %v19703_v48, %v8399_v44 }
 0xb36   : > { %v19865_v20 = vpop.eup %16111  ;;  %16121 = vpow2.f32 %v8512_v0 }
 0xb37   : > { %v8514_v32 = vmul.f32 1.442695, %v8474_v30  ;;  %v8516_v42 = vmul.f32 1.442695, %v8475_v40  ;;  %v8568_v9 = vsel %vm2369_vm4, %v19865_v20, 0.0 }
 0xb38   : > { %v8402_v21 = vpop.xlane.xlu0 %8401  ;;  %v8405_v13 = vpop.xlane.xlu1 %8404  ;;  %8569 = vadd.xlane.f32.xlu0 %v8568_v9 }
 0xb39   : > { %16123 = vpow2.f32 %v8514_v32  ;;  %v8476_v35 = vsub.f32 %v19712_v49, %v8402_v21  ;;  %v8477_v36 = vsub.f32 %v19717_v29, %v8405_v13 }
 0xb3a   : > { %v19871_v61 = vpop.eup %16113  ;;  %16125 = vpow2.f32 %v8516_v42 }
 0xb3b   : > { %v8518_v3 = vmul.f32 1.442695, %v8476_v35  ;;  %v8520_v48 = vmul.f32 1.442695, %v8477_v36  ;;  %v8574_v39 = vsel %vm2369_vm4, %v19871_v61, 0.0 }
 0xb3c   : > { %v8408_v58 = vpop.xlane.xlu0 %8407  ;;  %v8411_v16 = vpop.xlane.xlu1 %8410  ;;  %8575 = vadd.xlane.f32.xlu0 %v8574_v39 }
 0xb3d   : > { %16127 = vpow2.f32 %v8518_v3  ;;  %v8478_v45 = vsub.f32 %v19720_v62, %v8408_v58  ;;  %v8479_v23 = vsub.f32 %v19723_v53, %v8411_v16 }
 0xb3e   : > { %v19877_v19 = vpop.eup %16115  ;;  %16129 = vpow2.f32 %v8520_v48 }
 0xb3f   : > { %v8522_v49 = vmul.f32 1.442695, %v8478_v45  ;;  %v8524_v29 = vmul.f32 1.442695, %v8479_v23  ;;  %v8571_v0 = vsel %vm2369_vm4, %v19877_v19, 0.0  ;;  %v19881_v8 = vpop.eup %16117 }
 0xb40   : > { %v8414_v44 = vpop.xlane.xlu0 %8413  ;;  %v8417_v30 = vpop.xlane.xlu1 %8416  ;;  %8572 = vadd.xlane.f32.xlu1 %v8571_v0  ;;  %v8577_v9 = vsel %vm2369_vm4, %v19881_v8, 0.0 }
 0xb41   : > { %16131 = vpow2.f32 %v8522_v49  ;;  %v8480_v40 = vsub.f32 %v19732_v22, %v8414_v44  ;;  %v8481_v62 = vsub.f32 %v19737_v56, %v8417_v30 }
 0xb42   : > { %v19884_v32 = vpop.eup %16119  ;;  %16133 = vpow2.f32 %v8524_v29 }
 0xb43   : > { %v8526_v53 = vmul.f32 1.442695, %v8480_v40  ;;  %v8580_v42 = vsel %vm2369_vm4, %v19884_v32, 0.0  ;;  %v19891_v21 = vpop.eup %16121  ;;  %v8528_v3 = vmul.f32 1.442695, %v8481_v62 }
 0xb44   : > { %v8420_v13 = vpop.xlane.xlu0 %8419  ;;  %v8423_v35 = vpop.xlane.xlu1 %8422  ;;  %8581 = vadd.xlane.f32.xlu0 %v8580_v42  ;;  %8578 = vadd.xlane.f32.xlu1 %v8577_v9  ;;  %v8583_v16 = vsel %vm2369_vm4, %v19891_v21, 0.0 }
 0xb45   : > { %16135 = vpow2.f32 %v8526_v53  ;;  %v8482_v22 = vsub.f32 %v19740_v41, %v8420_v13  ;;  %v8483_v36 = vsub.f32 %v19743_v52, %v8423_v35 }
 0xb46   : > { %v19895_v56 = vpop.eup %16123 }
 0xb47   : > { %v8530_v48 = vmul.f32 1.442695, %v8482_v22  ;;  %v8532_v39 = vmul.f32 1.442695, %v8483_v36  ;;  %v8586_v58 = vsel %vm2369_vm4, %v19895_v56, 0.0  ;;  %v19901_v45 = vpop.eup %16125 }
 0xb48   : > { %v8426_v23 = vpop.xlane.xlu0 %8425  ;;  %v8429_v49 = vpop.xlane.xlu1 %8428  ;;  %8587 = vadd.xlane.f32.xlu0 %v8586_v58  ;;  %8584 = vadd.xlane.f32.xlu1 %v8583_v16  ;;  %v8589_v30 = vsel %vm2369_vm4, %v19901_v45, 0.0 }
 0xb49   : > { %16137 = vpow2.f32 %v8530_v48  ;;  %v8484_v41 = vsub.f32 %v19752_v25, %v8426_v23  ;;  %v8485_v52 = vsub.f32 %v19757_v27, %v8429_v49 }
 0xb4a   : > { %v19905_v29 = vpop.eup %16127  ;;  %16139 = vpow2.f32 %v8532_v39 }
 0xb4b   : > { %16141 = vpow2.f32 %v8528_v3  ;;  %v8534_v0 = vmul.f32 1.442695, %v8484_v41  ;;  %v8592_v44 = vsel %vm2369_vm4, %v19905_v29, 0.0  ;;  %v19911_v40 = vpop.eup %16129  ;;  %v8536_v62 = vmul.f32 1.442695, %v8485_v52 }
 0xb4c   : > { %v8432_v53 = vpop.xlane.xlu0 %8431  ;;  %v8435_v42 = vpop.xlane.xlu1 %8434  ;;  %8593 = vadd.xlane.f32.xlu0 %v8592_v44  ;;  %8590 = vadd.xlane.f32.xlu1 %v8589_v30  ;;  %v8595_v36 = vsel %vm2369_vm4, %v19911_v40, 0.0 }
 0xb4d   : > { %16143 = vpow2.f32 %v8534_v0  ;;  %v8486_v25 = vsub.f32 %v19760_v38, %v8432_v53  ;;  %v8487_v27 = vsub.f32 %v19763_v18, %v8435_v42 }
 0xb4e   : > { %v19915_v9 = vpop.eup %16131  ;;  %16145 = vpow2.f32 %v8536_v62 }
 0xb4f   : > { %v8538_v13 = vmul.f32 1.442695, %v8486_v25  ;;  %v8540_v35 = vmul.f32 1.442695, %v8487_v27  ;;  %v8598_v22 = vsel %vm2369_vm4, %v19915_v9, 0.0  ;;  %v19921_v3 = vpop.eup %16133 }
 0xb50   : > { %v8438_v48 = vpop.xlane.xlu0 %8437  ;;  %v8441_v39 = vpop.xlane.xlu1 %8440  ;;  %8599 = vadd.xlane.f32.xlu0 %v8598_v22  ;;  %8596 = vadd.xlane.f32.xlu1 %v8595_v36  ;;  %v8601_v49 = vsel %vm2369_vm4, %v19921_v3, 0.0 }
 0xb51   : > { %16147 = vpow2.f32 %v8538_v13  ;;  %v8488_v38 = vsub.f32 %v19772_v31, %v8438_v48  ;;  %v8489_v58 = vsub.f32 %v19777_v7, %v8441_v39 }
 0xb52   : > { %v19924_v18 = vpop.eup %16135  ;;  %16149 = vpow2.f32 %v8540_v35 }
 0xb53   : > { %v8542_v16 = vmul.f32 1.442695, %v8488_v38  ;;  %v8604_v23 = vsel %vm2369_vm4, %v19924_v18, 0.0  ;;  %v8544_v30 = vmul.f32 1.442695, %v8489_v58 }
 0xb54   : > { %v8444_v41 = vpop.xlane.xlu0 %8443  ;;  %v8447_v52 = vpop.xlane.xlu1 %8446  ;;  %8605 = vadd.xlane.f32.xlu0 %v8604_v23  ;;  %8602 = vadd.xlane.f32.xlu1 %v8601_v49 }
 0xb55   : > { %16151 = vpow2.f32 %v8542_v16  ;;  %v8490_v0 = vsub.f32 %v19780_v28, %v8444_v41  ;;  %v8491_v31 = vsub.f32 %v19783_v57, %v8447_v52 }
 0xb56   : > { %v19933_v44 = vpop.eup %16137 }
 0xb57   : > { %v19935_v7 = vpop.eup %16139  ;;  %v8546_v62 = vmul.f32 1.442695, %v8490_v0  ;;  %v8548_v53 = vmul.f32 1.442695, %v8491_v31  ;;  %v8610_v42 = vsel %vm2369_vm4, %v19933_v44, 0.0 }
 0xb58   : > { %v19939_v25 = vpop.eup %16141  ;;  %v8450_v27 = vpop.xlane.xlu0 %8449  ;;  %v8613_v35 = vsel %vm2369_vm4, %v19935_v7, 0.0  ;;  %8611 = vadd.xlane.f32.xlu1 %v8610_v42 }
 0xb59   : > { %v8453_v13 = vpop.xlane.xlu1 %8452  ;;  %16153 = vpow2.f32 %v8546_v62  ;;  %v8492_v28 = vsub.f32 %v19792_v59, %v8450_v27  ;;  %8614 = vadd.xlane.f32.xlu0 %v8613_v35  ;;  %v8607_v39 = vsel %vm2369_vm4, %v19939_v25, 0.0 }
 0xb5a   : > { %v19944_v57 = vpop.eup %16143  ;;  %16155 = vpow2.f32 %v8548_v53  ;;  %v8493_v22 = vsub.f32 %v19797_v10, %v8453_v13 }
 0xb5b   : > { %16157 = vpow2.f32 %v8544_v30  ;;  %v8550_v36 = vmul.f32 1.442695, %v8492_v28  ;;  %v8616_v48 = vsel %vm2369_vm4, %v19944_v57, 0.0  ;;  %v19951_v16 = vpop.eup %16145 }
 0xb5c   : > { %v8456_v38 = vpop.xlane.xlu0 %8455  ;;  %8608 = vadd.xlane.f32.xlu1 %v8607_v39  ;;  %v8552_v49 = vmul.f32 1.442695, %v8493_v22  ;;  %v8619_v27 = vsel %vm2369_vm4, %v19951_v16, 0.0 }
 0xb5d   : > { %v8459_v58 = vpop.xlane.xlu1 %8458  ;;  %16159 = vpow2.f32 %v8550_v36  ;;  %8617 = vadd.xlane.f32.xlu0 %v8616_v48  ;;  %v8494_v59 = vsub.f32 %v19800_v51, %v8456_v38 }
 0xb5e   : > { %v8495_v23 = vsub.f32 %v19803_v47, %v8459_v58  ;;  %v19955_v10 = vpop.eup %16147 }
 0xb5f   : > { %v19957_v41 = vpop.eup %16149  ;;  %v8554_v52 = vmul.f32 1.442695, %v8494_v59  ;;  %v8622_v31 = vsel %vm2369_vm4, %v19955_v10, 0.0 }
 0xb60   : > { %v8556_v0 = vmul.f32 1.442695, %v8495_v23  ;;  %v8625_v30 = vsel %vm2369_vm4, %v19957_v41, 0.0  ;;  %v8462_v62 = vpop.xlane.xlu0 %8461  ;;  %8623 = vadd.xlane.f32.xlu1 %v8622_v31 }
 0xb61   : > { %v8465_v53 = vpop.xlane.xlu1 %8464  ;;  %16161 = vpow2.f32 %v8554_v52  ;;  %8626 = vadd.xlane.f32.xlu0 %v8625_v30  ;;  %v8496_v51 = vsub.f32 %v19812_v46, %v8462_v62 }
 0xb62   : > { %v8497_v47 = vsub.f32 %v19819_v37, %v8465_v53  ;;  %v19965_v42 = vpop.eup %16151  ;;  %16163 = vpow2.f32 %v8556_v0 }
 0xb63   : > { %16165 = vpow2.f32 %v8552_v49  ;;  %v8558_v13 = vmul.f32 1.442695, %v8496_v51  ;;  %v8628_v28 = vsel %vm2369_vm4, %v19965_v42, 0.0 }
 0xb64   : > { %v8560_v35 = vmul.f32 1.442695, %v8497_v47  ;;  %8620 = vadd.xlane.f32.xlu1 %v8619_v27  ;;  %v22257_v47 = vld [vmem:[#allocation33_spill] sm:$0xff]  ;;  %v22258_v27 = vld [vmem:[#allocation34_spill] sm:$0xff] }
 0xb65   : > { %16167 = vpow2.f32 %v8558_v13  ;;  %8629 = vadd.xlane.f32.xlu0 %v8628_v28  ;;  %v22259_v13 = vld [vmem:[#allocation86_spill] sm:$0xff] }
 0xb66   : > { %v19971_v22 = vpop.eup %16153  ;;  %16169 = vpow2.f32 %v8560_v35  ;;  %v22260_v35 = vld [vmem:[#allocation82_spill] sm:$0xff] }
 0xb67   : > { %v19973_v46 = vpop.eup %16155  ;;  %v8634_v37 = vsel %vm2369_vm4, %v19971_v22, 0.0  ;;  %v22261_v28 = vpack.i.bf16 %v22259_v13, %v22260_v35  ;;  %v22270_v35 = vld [vmem:[#allocation88_spill] sm:$0xff] }
 0xb68   : > { %v19977_v36 = vpop.eup %16157  ;;  %v8637_v48 = vsel %vm2369_vm4, %v19973_v46, 0.0  ;;  %8635 = vadd.xlane.f32.xlu1 %v8634_v37  ;;  %v22262_v37 = vld [vmem:[#allocation84_spill] sm:$0xff] }
 0xb69   : > { %8638 = vadd.xlane.f32.xlu0 %v8637_v48  ;;  %v8631_v58 = vsel %vm2369_vm4, %v19977_v36, 0.0  ;;  %v22263_v48 = vld [vmem:[#allocation81_spill] sm:$0xff] }
 0xb6a   : > { %v19981_v39 = vpop.eup %16159 }
 0xb6b   : > { %v8640_v38 = vsel %vm2369_vm4, %v19981_v39, 0.0 }
 0xb6c   : > { %8632 = vadd.xlane.f32.xlu1 %v8631_v58  ;;  %v20019_v58 = vpop.permute.xlu0 %9302 }
 0xb6d   : > { %8641 = vadd.xlane.f32.xlu0 %v8640_v38  ;;  %v22264_v38 = vpack.i.bf16 %v22262_v37, %v22263_v48 }
 0xb6e   : > { %v19987_v59 = vpop.eup %16161 }
 0xb6f   : > { %v19989_v23 = vpop.eup %16163  ;;  %v8646_v49 = vsel %vm2369_vm4, %v19987_v59, 0.0 }
 0xb70   : > { %v19993_v52 = vpop.eup %16165  ;;  %8647 = vadd.xlane.f32.xlu1 %v8646_v49  ;;  %v8649_v0 = vsel %vm2369_vm4, %v19989_v23, 0.0  ;;  %v20021_v49 = vpop.permute.xlu1 %9349 }
 0xb71   : > { %8650 = vadd.xlane.f32.xlu0 %v8649_v0  ;;  %v8643_v30 = vsel %vm2369_vm4, %v19993_v52, 0.0  ;;  %v22265_v0 = vpack.i.bf16 %v19575_v34, %v19573_v26  ;;  %v22273_v26 = vpack.i.bf16 %v19587_v50, %v19583_v43  ;;  %v22276_v34 = vld [vmem:[#allocation91_spill] sm:$0xff]  ;;  %v22281_v43 = vpack.i.bf16 %v19599_v5, %v19595_v1  ;;  %v22287_v1 = vld [vmem:[#allocation93_spill] sm:$0xff] }
 0xb72   : > { %v19997_v31 = vpop.eup %16167 }
 0xb73   : > { %v8652_v62 = vsel %vm2369_vm4, %v19997_v31, 0.0  ;;  %v20003_v53 = vpop.eup %16169 }
 0xb74   : > { %8644 = vadd.xlane.f32.xlu1 %v8643_v30  ;;  %v8655_v51 = vsel %vm2369_vm4, %v20003_v53, 0.0  ;;  %v22266_v30 = vpack.i.bf16 %v19548_v11, %v19544_v2  ;;  %v22274_v2 = vpack.i.bf16 %v19581_v33, %v19579_v24  ;;  %v22275_v11 = vld [vmem:[#allocation92_spill] sm:$0xff]  ;;  %v22282_v24 = vpack.i.bf16 %v19593_v4, %v19589_v60 }
 0xb75   : > { %8653 = vadd.xlane.f32.xlu0 %v8652_v62  ;;  %v22277_v48 = vpack.i.bf16 %v22275_v11, %v22276_v34  ;;  %v22289_v60 = vpack.i.bf16 %v19613_v54, %v19609_v14  ;;  %v22290_v4 = vpack.i.bf16 %v19605_v17, %v19601_v12  ;;  %v22294_v14 = vld [vmem:[#allocation98_spill] sm:$0xff]  ;;  %v22295_v54 = vld [vmem:[#allocation96_spill] sm:$0xff] }
 0xb78   : > { %8656 = vadd.xlane.f32.xlu1 %v8655_v51  ;;  %v22267_v51 = vld [vmem:[#allocation87_spill] sm:$0xff] }
 0xb89   : > { %9443 = vrot.lane.b32.xlu1 %v22257_v47, %s21957_s27  ;;  %v22268_v47 = vld [vmem:[#allocation85_spill] sm:$0xff] }
 0xb8b   : > { %9396 = vrot.lane.b32.xlu0 %v22258_v27, %s21957_s27  ;;  %v22269_v27 = vpack.i.bf16 %v22267_v51, %v22268_v47  ;;  %v22283_v47 = vld [vmem:[#allocation97_spill] sm:$0xff] }
 0xb8d   : > { %15249 = vrot.lane.b32.xlu1 %v22261_v28, %s21957_s27  ;;  %v22271_v28 = vld [vmem:[#allocation83_spill] sm:$0xff] }
 0xb8e   : > { %v22272_v37 = vpack.i.bf16 %v22270_v35, %v22271_v28  ;;  %v22286_v35 = vld [vmem:[#allocation94_spill] sm:$0xff] }
 0xb8f   : > { %15244 = vrot.lane.b32.xlu0 %v22264_v38, %s21957_s27  ;;  %v22278_v38 = vld [vmem:[#allocation90_spill] sm:$0xff]  ;;  %v22288_v5 = vpack.i.bf16 %v22286_v35, %v22287_v1 }
 0xb90   : > { %v22297_v1 = vld [vmem:[#allocation38_spill] sm:$0xff] }
 0xb91   : > { %15259 = vrot.lane.b32.xlu1 %v22265_v0, %s16704_s26  ;;  %v22279_v0 = vld [vmem:[#allocation89_spill] sm:$0xff] }
 0xb93   : > { %15254 = vrot.lane.b32.xlu0 %v22266_v30, %s16704_s26  ;;  %v22280_v30 = vpack.i.bf16 %v22278_v38, %v22279_v0 }
 0xb95   : > { %v8564_v62 = vpop.xlane.xlu0 %8563  ;;  %15269 = vrot.lane.b32.xlu1 %v22269_v27, %s21957_s27  ;;  %v8567_v13 = vpop.xlane.xlu1 %8566  ;;  %v22284_v27 = vld [vmem:[#allocation95_spill] sm:$0xff] }
 0xb96   : > { %16171 = vrcp.f32 %v8564_v62 }
 0xb97   : > { %16173 = vrcp.f32 %v8567_v13  ;;  %15264 = vrot.lane.b32.xlu0 %v22272_v37, %s21957_s27  ;;  %v22285_v13 = vpack.i.bf16 %v22283_v47, %v22284_v27 }
 0xb99   : > { %15279 = vrot.lane.b32.xlu1 %v22273_v26, %s16704_s26  ;;  %v22296_v26 = vpack.i.bf16 %v22294_v14, %v22295_v54 }
 0xb9b   : > { %15274 = vrot.lane.b32.xlu0 %v22274_v2, %s16704_s26 }
 0xb9d   : > { %15289 = vrot.lane.b32.xlu1 %v22277_v48, %s21957_s27 }
 0xb9f   : > { %15284 = vrot.lane.b32.xlu0 %v22280_v30, %s21957_s27 }
 0xba1   : > { %15299 = vrot.lane.b32.xlu1 %v22281_v43, %s16704_s26 }
 0xba3   : > { %v16172_v50 = vpop.eup %16171  ;;  %15294 = vrot.lane.b32.xlu0 %v22282_v24, %s16704_s26 }
 0xba4   : > { %v16174_v33 = vpop.eup %16173  ;;  %v8690_v62 = vmul.f32 %v16172_v50, %v19849_v6  ;;  %v22292_v6 = vld [vmem:[#allocation99_spill] sm:$0xff] }
 0xba5   : > { %v8691_v51 = vmul.f32 %v16174_v33, %v19851_v15  ;;  %15309 = vrot.lane.b32.xlu1 %v22285_v13, %s21957_s27  ;;  %v22291_v15 = vld [vmem:[#allocation101_spill] sm:$0xff] }
 0xba6   : > { %v22293_v37 = vpack.i.bf16 %v22291_v15, %v22292_v6  ;;  %v22298_v6 = vld [vmem:[#allocation114_spill] sm:$0xff] }
 0xba7   : > { %15304 = vrot.lane.b32.xlu0 %v22288_v5, %s21957_s27  ;;  %v8722_v28 = vpack.c.bf16 %v8691_v51, %v8690_v62 }
 0xba9   : > { %14921 = vmatmul.mubr.msk.bf16.vlgmr.msra.gmra.mxu0 %vm2369_vm4, %v8722_v28  ;;  %15319 = vrot.lane.b32.xlu1 %v22289_v60, %s16704_s26 }
 0xbaa   : > { %14931 = vmatpush3.bf16.msra.mxu0 %v19827_v63  ;;  %14932 = vmatprep.mubr.msk.bf16.mxu0 %vm16701_vm0, %v22017_v55 }
 0xbab   : > { %15314 = vrot.lane.b32.xlu0 %v22290_v4, %s16704_s26  ;;  %14942 = vmatprep.subr.bf16.mxu0 %v22017_v55 }
 0xbad   : > { %15329 = vrot.lane.b32.xlu1 %v22293_v37, %s21957_s27 }
 0xbaf   : > { %15324 = vrot.lane.b32.xlu0 %v22296_v26, %s21957_s27  ;;  %s22320_s27 = smov 32  }
 0xbc1   : > { %v8570_v63 = vpop.xlane.xlu0 %8569 }
 0xbc2   : > { %16175 = vrcp.f32 %v8570_v63 }
 0xbc5   : > { %v8576_v2 = vpop.xlane.xlu0 %8575 }
 0xbc9   : > { %v8573_v11 = vpop.xlane.xlu1 %8572 }
 0xbca   : > { %16177 = vrcp.f32 %v8573_v11 }
 0xbcb   : > { %16179 = vrcp.f32 %v8576_v2  ;;  %v22299_v2 = vld [vmem:[#allocation116_spill] sm:$0xff] }
 0xbcd   : > { %v8582_v12 = vpop.xlane.xlu0 %8581  ;;  %v8579_v17 = vpop.xlane.xlu1 %8578 }
 0xbce   : > { %16181 = vrcp.f32 %v8579_v17 }
 0xbcf   : > { %16183 = vrcp.f32 %v8582_v12  ;;  %v16176_v38 = vpop.eup %16175 }
 0xbd0   : > { %v8692_v50 = vmul.f32 %v16176_v38, %v19865_v20  ;;  %v22300_v38 = vld [vmem:[#allocation118_spill] sm:$0xff] }
 0xbd1   : > { %v8588_v34 = vpop.xlane.xlu0 %8587  ;;  %v8585_v48 = vpop.xlane.xlu1 %8584 }
 0xbd2   : > { %16185 = vrcp.f32 %v8585_v48 }
 0xbd3   : > { %16187 = vrcp.f32 %v8588_v34 }
 0xbd5   : > { %v8594_v0 = vpop.xlane.xlu0 %8593  ;;  %v8591_v30 = vpop.xlane.xlu1 %8590 }
 0xbd6   : > { %16189 = vrcp.f32 %v8591_v30 }
 0xbd7   : > { %v16178_v43 = vpop.eup %16177  ;;  %16191 = vrcp.f32 %v8594_v0 }
 0xbd8   : > { %v8693_v24 = vmul.f32 %v16178_v43, %v19877_v19  ;;  %v16180_v51 = vpop.eup %16179 }
 0xbd9   : > { %v8600_v33 = vpop.xlane.xlu0 %8599  ;;  %v8597_v62 = vpop.xlane.xlu1 %8596  ;;  %v8694_v13 = vmul.f32 %v16180_v51, %v19871_v61 }
 0xbda   : > { %v8723_v47 = vpack.c.bf16 %v8693_v24, %v8692_v50  ;;  %16193 = vrcp.f32 %v8597_v62  ;;  %v22301_v24 = vld [vmem:[#allocation39_spill] sm:$0xff] }
 0xbdb   : > { %v16182_v27 = vpop.eup %16181  ;;  %16195 = vrcp.f32 %v8600_v33 }
 0xbdc   : > { %14927 = vmatmul.mubr.msk.bf16.vlgmr.msra.gmra.mxu1 %vm2369_vm4, %v8723_v47  ;;  %v8695_v35 = vmul.f32 %v16182_v27, %v19881_v8  ;;  %v16184_v19 = vpop.eup %16183 }
 0xbdd   : > { %14937 = vmatpush3.bf16.msra.mxu1 %v22297_v1  ;;  %v8606_v5 = vpop.xlane.xlu0 %8605  ;;  %v8603_v20 = vpop.xlane.xlu1 %8602  ;;  %14938 = vmatprep.mubr.msk.bf16.mxu1 %vm16701_vm0, %v22017_v55  ;;  %v8696_v4 = vmul.f32 %v16184_v19, %v19884_v32 }
 0xbde   : > { %14948 = vmatprep.subr.bf16.mxu1 %v22017_v55  ;;  %16197 = vrcp.f32 %v8603_v20  ;;  %v8724_v28 = vpack.c.bf16 %v8695_v35, %v8694_v13 }
 0xbdf   : > { %v16186_v60 = vpop.eup %16185 }
 0xbe0   : > { %v8697_v61 = vmul.f32 %v16186_v60, %v19891_v21  ;;  %14933 = vmatmul.mubr.msk.bf16.vlgmr.msra.gmra.mxu0 %vm2369_vm4, %v8724_v28  ;;  %v16188_v15 = vpop.eup %16187 }
 0xbe1   : > { %v8612_v8 = vpop.xlane.xlu1 %8611  ;;  %14943 = vmatpush3.bf16.msra.mxu0 %v22298_v6  ;;  %14944 = vmatprep.mubr.msk.bf16.mxu0 %vm16701_vm0, %v22017_v55  ;;  %v8698_v32 = vmul.f32 %v16188_v15, %v19895_v56 }
 0xbe2   : > { %v8615_v37 = vpop.xlane.xlu0 %8614  ;;  %16199 = vrcp.f32 %v8612_v8  ;;  %v8725_v14 = vpack.c.bf16 %v8697_v61, %v8696_v4  ;;  %14954 = vmatprep.subr.bf16.mxu0 %v22017_v55 }
 0xbe3   : > { %16201 = vrcp.f32 %v8615_v37  ;;  %v16190_v54 = vpop.eup %16189  ;;  %v22304_v37 = vld [vmem:[#allocation43_spill] sm:$0xff] }
 0xbe4   : > { %16203 = vrcp.f32 %v8606_v5  ;;  %v8699_v21 = vmul.f32 %v16190_v54, %v19901_v45  ;;  %14939 = vmatmul.mubr.msk.bf16.vlgmr.msra.gmra.mxu1 %vm2369_vm4, %v8725_v14  ;;  %v16192_v63 = vpop.eup %16191 }
 0xbe5   : > { %v8609_v26 = vpop.xlane.xlu1 %8608  ;;  %14949 = vmatpush3.bf16.msra.mxu1 %v22299_v2  ;;  %14950 = vmatprep.mubr.msk.bf16.mxu1 %vm16701_vm0, %v22017_v55  ;;  %v8700_v34 = vmul.f32 %v16192_v63, %v19905_v29 }
 0xbe6   : > { %v8618_v11 = vpop.xlane.xlu0 %8617  ;;  %16205 = vrcp.f32 %v8609_v26  ;;  %v8726_v12 = vpack.c.bf16 %v8699_v21, %v8698_v32  ;;  %14960 = vmatprep.subr.bf16.mxu1 %v22017_v55 }
 0xbe7   : > { %v16194_v17 = vpop.eup %16193 }
 0xbe8   : > { %v8701_v56 = vmul.f32 %v16194_v17, %v19911_v40  ;;  %14945 = vmatmul.mubr.msk.bf16.vlgmr.msra.gmra.mxu0 %vm2369_vm4, %v8726_v12  ;;  %v16196_v48 = vpop.eup %16195  ;;  %v22305_v17 = vld [vmem:[#allocation45_spill] sm:$0xff] }
 0xbe9   : > { %v8624_v45 = vpop.xlane.xlu1 %8623  ;;  %14955 = vmatpush3.bf16.msra.mxu0 %v22300_v38  ;;  %14956 = vmatprep.mubr.msk.bf16.mxu0 %vm16701_vm0, %v22017_v55  ;;  %v8702_v29 = vmul.f32 %v16196_v48, %v19915_v9 }
 0xbea   : > { %v8627_v0 = vpop.xlane.xlu0 %8626  ;;  %16207 = vrcp.f32 %v8624_v45  ;;  %v8727_v30 = vpack.c.bf16 %v8701_v56, %v8700_v34  ;;  %14966 = vmatprep.subr.bf16.mxu0 %v22017_v55 }
 0xbeb   : > { %16209 = vrcp.f32 %v8627_v0  ;;  %v16198_v43 = vpop.eup %16197 }
 0xbec   : > { %16211 = vrcp.f32 %v8618_v11  ;;  %v8703_v40 = vmul.f32 %v16198_v43, %v19921_v3  ;;  %14951 = vmatmul.mubr.msk.bf16.vlgmr.msra.gmra.mxu1 %vm2369_vm4, %v8727_v30  ;;  %v22302_v3 = vld [vmem:[#allocation115_spill] sm:$0xff] }
 0xbed   : > { %v8621_v50 = vpop.xlane.xlu1 %8620  ;;  %14961 = vmatpush3.bf16.msra.mxu1 %v22301_v24  ;;  %14962 = vmatprep.mubr.msk.bf16.mxu1 %vm16701_vm0, %v22017_v55 }
 0xbee   : > { %v8630_v33 = vpop.xlane.xlu0 %8629  ;;  %16213 = vrcp.f32 %v8621_v50  ;;  %v8728_v51 = vpack.c.bf16 %v8703_v40, %v8702_v29  ;;  %14972 = vmatprep.subr.bf16.mxu1 %v22017_v55 }
 0xbef   : > { %v16200_v62 = vpop.eup %16199 }
 0xbf0   : > { %v16202_v47 = vpop.eup %16201  ;;  %14957 = vmatmul.mubr.msk.bf16.vlgmr.msra.gmra.mxu0 %vm2369_vm4, %v8728_v51  ;;  %v8706_v5 = vmul.f32 %v16200_v62, %v19933_v44  ;;  %v22303_v44 = vld [vmem:[#allocation41_spill] sm:$0xff] }
 0xbf1   : > { %v16204_v27 = vpop.eup %16203  ;;  %v8636_v9 = vpop.xlane.xlu1 %8635  ;;  %14967 = vmatpush3.bf16.msra.mxu0 %v22302_v3  ;;  %14968 = vmatprep.mubr.msk.bf16.mxu0 %vm16701_vm0, %v22017_v55  ;;  %v8707_v1 = vmul.f32 %v16202_v47, %v19935_v7 }
 0xbf2   : > { %v8639_v13 = vpop.xlane.xlu0 %8638  ;;  %16215 = vrcp.f32 %v8636_v9  ;;  %14978 = vmatprep.subr.bf16.mxu0 %v22017_v55  ;;  %v8704_v20 = vmul.f32 %v16204_v27, %v19924_v18 }
 0xbf3   : > { %v16206_v35 = vpop.eup %16205  ;;  %16217 = vrcp.f32 %v8639_v13  ;;  %v8730_v8 = vpack.c.bf16 %v8707_v1, %v8706_v5  ;;  %v22307_v5 = vld [vmem:[#allocation53_spill] sm:$0xff] }
 0xbf4   : > { %v8705_v19 = vmul.f32 %v16206_v35, %v19939_v25  ;;  %16219 = vrcp.f32 %v8630_v33  ;;  %v22306_v35 = vld [vmem:[#allocation54_spill] sm:$0xff] }
 0xbf5   : > { %v8633_v28 = vpop.xlane.xlu1 %8632 }
 0xbf6   : > { %v8729_v60 = vpack.c.bf16 %v8705_v19, %v8704_v20  ;;  %v8642_v4 = vpop.xlane.xlu0 %8641  ;;  %16221 = vrcp.f32 %v8633_v28 }
 0xbf7   : > { %v16208_v61 = vpop.eup %16207 }
 0xbf8   : > { %v16210_v15 = vpop.eup %16209  ;;  %14963 = vmatmul.mubr.msk.bf16.vlgmr.msra.gmra.mxu1 %vm2369_vm4, %v8729_v60  ;;  %14969 = vmatmul.mubr.msk.bf16.vlgmr.msra.gmra.mxu0 %vm2369_vm4, %v8730_v8  ;;  %v8710_v54 = vmul.f32 %v16208_v61, %v19955_v10 }
 0xbf9   : > { %v16212_v7 = vpop.eup %16211  ;;  %14973 = vmatpush3.bf16.msra.mxu1 %v22303_v44  ;;  %v8648_v6 = vpop.xlane.xlu1 %8647  ;;  %14979 = vmatpush3.bf16.msra.mxu0 %v22304_v37  ;;  %v8711_v14 = vmul.f32 %v16210_v15, %v19957_v41 }
 0xbfa   : > { %v8651_v18 = vpop.xlane.xlu0 %8650  ;;  %16223 = vrcp.f32 %v8648_v6  ;;  %14974 = vmatprep.mubr.msk.bf16.mxu1 %vm16701_vm0, %v22017_v55  ;;  %14980 = vmatprep.mubr.msk.bf16.mxu0 %vm16701_vm0, %v22017_v55  ;;  %v8708_v32 = vmul.f32 %v16212_v7, %v19944_v57  ;;  %v22309_v7 = vld [vmem:[#allocation58_spill] sm:$0xff]  ;;  %v22310_v6 = vld [vmem:[#allocation57_spill] sm:$0xff] }
 0xbfb   : > { %v16214_v25 = vpop.eup %16213  ;;  %16225 = vrcp.f32 %v8651_v18  ;;  %14984 = vmatprep.subr.bf16.mxu1 %v22017_v55  ;;  %14990 = vmatprep.subr.bf16.mxu0 %v22017_v55  ;;  %v8732_v11 = vpack.c.bf16 %v8711_v14, %v8710_v54 }
 0xbfc   : > { %v8709_v21 = vmul.f32 %v16214_v25, %v19951_v16  ;;  %16227 = vrcp.f32 %v8642_v4 }
 0xbfd   : > { %v8645_v26 = vpop.xlane.xlu1 %8644 }
 0xbfe   : > { %v8731_v63 = vpack.c.bf16 %v8709_v21, %v8708_v32  ;;  %v8654_v2 = vpop.xlane.xlu0 %8653  ;;  %16229 = vrcp.f32 %v8645_v26 }
 0xbff   : > { %v16216_v41 = vpop.eup %16215 }
 0xc00   : > { %v16218_v10 = vpop.eup %16217  ;;  %14975 = vmatmul.mubr.msk.bf16.vlgmr.msra.gmra.mxu1 %vm2369_vm4, %v8731_v63  ;;  %14981 = vmatmul.mubr.msk.bf16.vlgmr.msra.gmra.mxu0 %vm2369_vm4, %v8732_v11  ;;  %v8714_v45 = vmul.f32 %v16216_v41, %v19971_v22  ;;  %v22312_v11 = vld [vmem:[#allocation61_spill] sm:$0xff] }
 0xc01   : > { %v16220_v12 = vpop.eup %16219  ;;  %14985 = vmatpush3.bf16.msra.mxu1 %v22305_v17  ;;  %v8657_v57 = vpop.xlane.xlu1 %8656  ;;  %14991 = vmatpush3.bf16.msra.mxu0 %v20019_v58  ;;  %v8715_v56 = vmul.f32 %v16218_v10, %v19973_v46 }
 0xc02   : > { %v9397_v16 = vpop.permute.xlu0 %9396  ;;  %16231 = vrcp.f32 %v8657_v57  ;;  %14986 = vmatprep.mubr.msk.bf16.mxu1 %vm16701_vm0, %v22017_v55  ;;  %14992 = vmatprep.mubr.msk.bf16.mxu0 %vm16701_vm0, %v22017_v55  ;;  %v8712_v48 = vmul.f32 %v16220_v12, %v19965_v42 }
 0xc03   : > { %v16222_v34 = vpop.eup %16221  ;;  %14996 = vmatprep.subr.bf16.mxu1 %v22017_v55  ;;  %16233 = vrcp.f32 %v8654_v2  ;;  %15002 = vmatprep.subr.bf16.mxu0 %v22017_v55  ;;  %v8734_v43 = vpack.c.bf16 %v8715_v56, %v8714_v45  ;;  %v22311_v2 = vld [vmem:[#allocation62_spill] sm:$0xff] }
 0xc04   : > { %v8713_v38 = vmul.f32 %v16222_v34, %v19977_v36  ;;  %v15516_v34 = vld [vmem:[%s22313_s6 + $0x30] sm:$0xff]  }
 0xc05   : > { %v9444_v47 = vpop.permute.xlu1 %9443 }
 0xc06   : > { %v8733_v58 = vpack.c.bf16 %v8713_v38, %v8712_v48  ;;  %v20168_v0 = vpop.permute.xlu0 %15244  ;;  %v15517_v48 = vld [vmem:[%s22313_s6 + $0x28] sm:$0xff]  }
 0xc07   : > { %v16224_v30 = vpop.eup %16223 }
 0xc08   : > { %v16226_v46 = vpop.eup %16225  ;;  %14987 = vmatmul.mubr.msk.bf16.vlgmr.msra.gmra.mxu1 %vm2369_vm4, %v8733_v58  ;;  %14993 = vmatmul.mubr.msk.bf16.vlgmr.msra.gmra.mxu0 %vm2369_vm4, %v8734_v43  ;;  %v8718_v40 = vmul.f32 %v16224_v30, %v19987_v59  ;;  %v15518_v30 = vld [vmem:[%s22313_s6 + $0x20] sm:$0xff]   ;;  %v22314_v43 = vld [vmem:[#allocation23_spill] sm:$0xff] }
 0xc09   : > { %v16228_v22 = vpop.eup %16227  ;;  %14997 = vmatpush3.bf16.msra.mxu1 %v20021_v49  ;;  %15003 = vmatpush3.bf16.msra.mxu0 %v9397_v16  ;;  %v8719_v29 = vmul.f32 %v16226_v46, %v19989_v23  ;;  %v15515_v16 = vld [vmem:[%s22313_s6 + $0x38] sm:$0xff]   ;;  %v22315_v46 = vld [vmem:[#allocation40_spill] sm:$0xff] }
 0xc0a   : > { %v20173_v42 = vpop.permute.xlu0 %15254  ;;  %14998 = vmatprep.mubr.msk.bf16.mxu1 %vm16701_vm0, %v22017_v55  ;;  %15004 = vmatprep.mubr.msk.bf16.mxu0 %vm16701_vm0, %v22017_v55  ;;  %v8716_v50 = vmul.f32 %v16228_v22, %v19981_v39  ;;  %v22316_v22 = vpack.i.bf16 %v22314_v43, %v22315_v46  ;;  %v22333_v46 = vld [vmem:[#allocation106_spill] sm:$0xff] }
 0xc0b   : > { %v16230_v36 = vpop.eup %16229  ;;  %15008 = vmatprep.subr.bf16.mxu1 %v22017_v55  ;;  %v8736_v51 = vpack.c.bf16 %v8719_v29, %v8718_v40  ;;  %15014 = vmatprep.subr.bf16.mxu0 %v15515_v16  ;;  %v15520_v29 = vld [vmem:[%s22313_s6 + $0x10] sm:$0xff]   ;;  %v15521_v40 = vld [vmem:[%s22313_s6 + $0x8] sm:$0xff]  }
 0xc0c   : > { %v8717_v49 = vmul.f32 %v16230_v36, %v19993_v52  ;;  %v15519_v36 = vld [vmem:[%s22313_s6 + $0x18] sm:$0xff]  }
 0xc0e   : > { %v8735_v24 = vpack.c.bf16 %v8717_v49, %v8716_v50  ;;  %v15265_v33 = vpop.permute.xlu0 %15264  ;;  %v15522_v50 = vld [vmem:[%s22313_s6] sm:$0xff]  }
 0xc0f   : > { %v16232_v62 = vpop.eup %16231  ;;  %v15267_v27 = vunpack.i.h.bf16 %v15265_v33  ;;  %v15266_v9 = vunpack.i.l.bf16 %v15265_v33 }
 0xc10   : > { %14999 = vmatmul.mubr.msk.bf16.vlgmr.msra.gmra.mxu1 %vm2369_vm4, %v8735_v24  ;;  %v16234_v23 = vpop.eup %16233  ;;  %15005 = vmatmul.mubr.msk.bf16.vlgmr.msra.gmra.mxu0 %vm2369_vm4, %v8736_v51  ;;  %v8721_v59 = vmul.f32 %v16232_v62, %v20003_v53 }
 0xc11   : > { %15009 = vmatpush3.bf16.msra.mxu1 %v9444_v47  ;;  %15010 = vmatprep.mubr.msk.bf16.mxu1 %vm16701_vm0, %v22017_v55  ;;  %v8720_v13 = vmul.f32 %v16234_v23, %v19997_v31  ;;  %v9879_v1 = vsel %vm1552_vm1, %v22306_v35, %v15267_v27  ;;  %v9878_v20 = vsel %vm1552_vm1, %v22307_v5, %v15266_v9  ;;  %v22308_v31 = vmov 0  }
 0xc12   : > { %v15275_v3 = vpop.permute.xlu0 %15274  ;;  %15015 = vmatpush3.bf16.msra.mxu0 %v15515_v16 }
 0xc13   : > { %v15277_v39 = vunpack.i.h.bf16 %v15275_v3  ;;  %v15276_v52 = vunpack.i.l.bf16 %v15275_v3  ;;  %v8737_v28 = vpack.c.bf16 %v8721_v59, %v8720_v13  ;;  %15016 = vmatprep.subr.bf16.mxu0 %v15516_v34  ;;  %v22318_v13 = vld [vmem:[#allocation42_spill] sm:$0xff] }
 0xc15   : > { %v20195_v19 = vsel %vm9906_vm5, %v9878_v20, %v15276_v52  ;;  %v20198_v53 = vsel %vm9906_vm5, %v9879_v1, %v15277_v39  ;;  %v22317_v52 = vld [vmem:[#allocation44_spill] sm:$0xff] }
 0xc16   : > { %v15285_v60 = vpop.permute.xlu0 %15284  ;;  %15017 = vmatpush3.bf16.msra.mxu0 %v15516_v34  ;;  %v22319_v35 = vpack.i.bf16 %v22317_v52, %v22318_v13 }
 0xc17   : > { %v15287_v55 = vunpack.i.h.bf16 %v15285_v60  ;;  %v15286_v4 = vunpack.i.l.bf16 %v15285_v60  ;;  %15018 = vmatprep.subr.bf16.mxu0 %v15517_v48 }
 0xc18   : > { %15011 = vmatmul.mubr.msk.bf16.vlgmr.msra.gmra.mxu1 %vm2369_vm4, %v8737_v28 }
 0xc19   : > { %10452 = vmatprep.mubr.bf16.mxu1 %v22308_v31  ;;  %v9883_v44 = vsel %vm1552_vm1, %v22309_v7, %v15287_v55  ;;  %v9882_v37 = vsel %vm1552_vm1, %v22310_v6, %v15286_v4  ;;  %v22321_v55 = vld [vmem:[#allocation102_spill] sm:$0xff]  ;;  %v22322_v4 = vld [vmem:[#allocation100_spill] sm:$0xff] }
 0xc1a   : > { %v15295_v61 = vpop.permute.xlu0 %15294  ;;  %15019 = vmatpush3.bf16.msra.mxu0 %v15517_v48 }
 0xc1b   : > { %v15297_v8 = vunpack.i.h.bf16 %v15295_v61  ;;  %v15296_v15 = vunpack.i.l.bf16 %v15295_v61  ;;  %15020 = vmatprep.subr.bf16.mxu0 %v15518_v30  ;;  %v22323_v61 = vpack.i.bf16 %v22321_v55, %v22322_v4 }
 0xc1d   : > { %v20207_v18 = vsel %vm9906_vm5, %v9882_v37, %v15296_v15  ;;  %v20210_v25 = vsel %vm9906_vm5, %v9883_v44, %v15297_v8  ;;  %v22324_v37 = vld [vmem:[#allocation105_spill] sm:$0xff] }
 0xc1e   : > { %v15305_v14 = vpop.permute.xlu0 %15304  ;;  %15021 = vmatpush3.bf16.msra.mxu0 %v15518_v30 }
 0xc1f   : > { %v15307_v54 = vunpack.i.h.bf16 %v15305_v14  ;;  %v15306_v32 = vunpack.i.l.bf16 %v15305_v14  ;;  %15022 = vmatprep.subr.bf16.mxu0 %v15519_v36  ;;  %v22325_v14 = vld [vmem:[#allocation103_spill] sm:$0xff] }
 0xc21   : > { %v9887_v41 = vsel %vm1552_vm1, %v22311_v2, %v15307_v54  ;;  %v9886_v10 = vsel %vm1552_vm1, %v22312_v11, %v15306_v32  ;;  %v22326_v54 = vpack.i.bf16 %v22324_v37, %v22325_v14  ;;  %v22328_v11 = vld [vmem:[#allocation26_spill] sm:$0xff] }
 0xc22   : > { %v15315_v21 = vpop.permute.xlu0 %15314  ;;  %15023 = vmatpush3.bf16.msra.mxu0 %v15519_v36 }
 0xc23   : > { %v15317_v26 = vunpack.i.h.bf16 %v15315_v21  ;;  %v15316_v63 = vunpack.i.l.bf16 %v15315_v21  ;;  %15024 = vmatprep.subr.bf16.mxu0 %v15520_v29 }
 0xc25   : > { %v20217_v12 = vsel %vm9906_vm5, %v9886_v10, %v15316_v63  ;;  %v20220_v17 = vsel %vm9906_vm5, %v9887_v41, %v15317_v26  ;;  %v22327_v41 = vld [vmem:[#allocation29_spill] sm:$0xff] }
 0xc26   : > { %15025 = vmatpush3.bf16.msra.mxu0 %v15520_v29  ;;  %v22329_v10 = vpack.i.bf16 %v22327_v41, %v22328_v11 }
 0xc27   : > { %15026 = vmatprep.subr.bf16.mxu0 %v15521_v40 }
 0xc2a   : > { %15027 = vmatpush3.bf16.msra.mxu0 %v15521_v40 }
 0xc2b   : > { %15028 = vmatprep.subr.bf16.mxu0 %v15522_v50 }
 0xc2e   : > { %15029 = vmatpush3.bf16.msra.mxu0 %v15522_v50 }
 0xc69   : > { %v8778_v57 = vpop.f32.mrf.mxu0 }
 0xc6b   : > { %v14922_v56 = vpop.f32.mrf.mxu0 }
 0xc6c   : > { %v22330_v56 = vld [vmem:[#allocation16_spill] sm:$0xff] }
 0xc6d   : > { %v8781_v45 = vpop.f32.mrf.mxu0 }
 0xc6e   : > { %v15333_v38 = vpack.i.bf16 %v8781_v45, %v8778_v57  ;;  %v22331_v45 = vld [vmem:[#allocation46_spill] sm:$0xff] }
 0xc6f   : > { %v14923_v58 = vpop.f32.mrf.mxu0  ;;  %v22332_v48 = vpack.i.bf16 %v22330_v56, %v22331_v45  ;;  %v22351_v56 = vld [vmem:[#allocation37_spill] sm:$0xff]  ;;  %v22352_v45 = vld [vmem:[#allocation36_spill] sm:$0xff] }
 0xc70   : > { %15334 = vrot.lane.b32.xlu0 %v15333_v38, %s16703_s2 }
 0xc74   : > { %15339 = vrot.lane.b32.xlu0 %v22316_v22, %s16704_s26  ;;  %v22334_v22 = vld [vmem:[#allocation104_spill] sm:$0xff] }
 0xc75   : > { %v22335_v36 = vpack.i.bf16 %v22333_v46, %v22334_v22 }
 0xc9c   : > { %v8825_v49 = vpop.f32.mrf.mxu1 }
 0xc9e   : > { %v14928_v24 = vpop.f32.mrf.mxu1 }
 0xca0   : > { %v8828_v33 = vpop.f32.mrf.mxu1  ;;  %v8872_v51 = vpop.f32.mrf.mxu0 }
 0xca1   : > { %v15343_v62 = vpack.i.bf16 %v8828_v33, %v8825_v49 }
 0xca2   : > { %v14929_v47 = vpop.f32.mrf.mxu1  ;;  %v14934_v27 = vpop.f32.mrf.mxu0 }
 0xca3   : > { %15344 = vrot.lane.b32.xlu1 %v15343_v62, %s16703_s2 }
 0xca4   : > { %v8875_v9 = vpop.f32.mrf.mxu0  ;;  %v8919_v23 = vpop.f32.mrf.mxu1 }
 0xca5   : > { %v15353_v59 = vpack.i.bf16 %v8875_v9, %v8872_v51  ;;  %v22336_v9 = vld [vmem:[#allocation109_spill] sm:$0xff] }
 0xca6   : > { %v14935_v3 = vpop.f32.mrf.mxu0  ;;  %v14940_v39 = vpop.f32.mrf.mxu1 }
 0xca7   : > { %15349 = vrot.lane.b32.xlu1 %v22319_v35, %s16704_s26  ;;  %15354 = vrot.lane.b32.xlu0 %v15353_v59, %s16703_s2  ;;  %v22339_v3 = vld [vmem:[#allocation35_spill] sm:$0xff]  ;;  %v22340_v39 = vld [vmem:[#allocation32_spill] sm:$0xff] }
 0xca8   : > { %v8922_v1 = vpop.f32.mrf.mxu1  ;;  %v8966_v5 = vpop.f32.mrf.mxu0  ;;  %v22341_v52 = vpack.i.bf16 %v22339_v3, %v22340_v39  ;;  %v15529_v39 = vld [vmem:[%s21798_s8 + $0x78] ss:$12 sps:$4 sm:$0xff]  }
 0xca9   : > { %v15363_v20 = vpack.i.bf16 %v8922_v1, %v8919_v23  ;;  %v22337_v23 = vld [vmem:[#allocation107_spill] sm:$0xff] }
 0xcaa   : > { %v14941_v28 = vpop.f32.mrf.mxu1  ;;  %v14946_v60 = vpop.f32.mrf.mxu0  ;;  %v22338_v59 = vpack.i.bf16 %v22336_v9, %v22337_v23 }
 0xcab   : > { %15364 = vrot.lane.b32.xlu1 %v15363_v20, %s16703_s2  ;;  %15359 = vrot.lane.b32.xlu0 %v22323_v61, %s22320_s27 }
 0xcac   : > { %v8969_v8 = vpop.f32.mrf.mxu0  ;;  %v9013_v15 = vpop.f32.mrf.mxu1 }
 0xcad   : > { %v15373_v7 = vpack.i.bf16 %v8969_v8, %v8966_v5  ;;  %v22342_v8 = vld [vmem:[#allocation22_spill] sm:$0xff] }
 0xcae   : > { %v14947_v44 = vpop.f32.mrf.mxu0  ;;  %v14952_v6 = vpop.f32.mrf.mxu1 }
 0xcaf   : > { %15369 = vrot.lane.b32.xlu1 %v22326_v54, %s22320_s27  ;;  %15374 = vrot.lane.b32.xlu0 %v15373_v7, %s16703_s2  ;;  %v22345_v44 = vld [vmem:[#allocation110_spill] sm:$0xff]  ;;  %v22346_v6 = vld [vmem:[#allocation108_spill] sm:$0xff] }
 0xcb0   : > { %v9016_v32 = vpop.f32.mrf.mxu1  ;;  %v9060_v21 = vpop.f32.mrf.mxu0  ;;  %v22347_v37 = vpack.i.bf16 %v22345_v44, %v22346_v6 }
 0xcb1   : > { %v15383_v26 = vpack.i.bf16 %v9016_v32, %v9013_v15  ;;  %v22343_v15 = vld [vmem:[#allocation19_spill] sm:$0xff] }
 0xcb2   : > { %v14953_v63 = vpop.f32.mrf.mxu1  ;;  %v14958_v2 = vpop.f32.mrf.mxu0  ;;  %v22344_v7 = vpack.i.bf16 %v22342_v8, %v22343_v15 }
 0xcb3   : > { %15384 = vrot.lane.b32.xlu1 %v15383_v26, %s16703_s2  ;;  %15379 = vrot.lane.b32.xlu0 %v22329_v10, %s16704_s26 }
 0xcb4   : > { %v9063_v57 = vpop.f32.mrf.mxu0 }
 0xcb5   : > { %v15393_v16 = vpack.i.bf16 %v9063_v57, %v9060_v21  ;;  %v22348_v57 = vld [vmem:[#allocation112_spill] sm:$0xff] }
 0xcb6   : > { %v14959_v34 = vpop.f32.mrf.mxu0 }
 0xcb7   : > { %15389 = vrot.lane.b32.xlu1 %v22332_v48, %s16704_s26  ;;  %15394 = vrot.lane.b32.xlu0 %v15393_v16, %s16703_s2  ;;  %v22349_v16 = vld [vmem:[#allocation111_spill] sm:$0xff]  ;;  %v22353_v48 = vpack.i.bf16 %v22351_v56, %v22352_v45 }
 0xcb8   : > { %v9107_v38 = vpop.f32.mrf.mxu1  ;;  %v9154_v58 = vpop.f32.mrf.mxu0  ;;  %v22350_v34 = vpack.i.bf16 %v22348_v57, %v22349_v16 }
 0xcba   : > { %v14964_v30 = vpop.f32.mrf.mxu1  ;;  %v14970_v43 = vpop.f32.mrf.mxu0 }
 0xcbb   : > { %15399 = vrot.lane.b32.xlu0 %v22335_v36, %s22320_s27  ;;  %v15523_v36 = vld [vmem:[%s21798_s8 + $0xa8] ss:$12 sps:$4 sm:$0xff]  }
 0xcbc   : > { %v9110_v29 = vpop.f32.mrf.mxu1  ;;  %v9157_v50 = vpop.f32.mrf.mxu0 }
 0xcbd   : > { %v15403_v40 = vpack.i.bf16 %v9110_v29, %v9107_v38  ;;  %v15413_v49 = vpack.i.bf16 %v9157_v50, %v9154_v58  ;;  %v15525_v29 = vld [vmem:[%s21798_s8 + $0xac] ss:$12 sps:$4 sm:$0xff]   ;;  %v15528_v50 = vld [vmem:[%s21798_s8 + $0x94] ss:$12 sps:$4 sm:$0xff]  }
 0xcbe   : > { %v14965_v24 = vpop.f32.mrf.mxu1  ;;  %v14971_v33 = vpop.f32.mrf.mxu0  ;;  %10420 = vmatprep.subr.bf16.mxu1 %v15525_v29 }
 0xcbf   : > { %15404 = vrot.lane.b32.xlu1 %v15403_v40, %s16703_s2  ;;  %15414 = vrot.lane.b32.xlu0 %v15413_v49, %s16703_s2  ;;  %v20325_v49 = vld [vmem:[%s21798_s8 + $0xb0] ss:$12 sps:$4 sm:$0xff]  }
 0xcc0   : > { %v9201_v62 = vpop.f32.mrf.mxu1  ;;  %v9248_v51 = vpop.f32.mrf.mxu0  ;;  %10421 = vmatpush1.bf16.msra.mxu1 %v15523_v36  ;;  %v15526_v33 = vld [vmem:[%s21798_s8 + $0x90] ss:$12 sps:$4 sm:$0xff]   ;;  %15062 = vmatprep.subr.bf16.mxu0 %v20325_v49 }
 0xcc1   : > { %10422 = vmatprep.subr.bf16.mxu1 %v15528_v50 }
 0xcc2   : > { %v14976_v47 = vpop.f32.mrf.mxu1  ;;  %v14982_v27 = vpop.f32.mrf.mxu0 }
 0xcc3   : > { %15409 = vrot.lane.b32.xlu1 %v22338_v59, %s22320_s27  ;;  %15419 = vrot.lane.b32.xlu0 %v22341_v52, %s16704_s26  ;;  %v15531_v27 = vld [vmem:[%s21798_s8 + $0x7c] ss:$12 sps:$4 sm:$0xff]   ;;  %v20338_v59 = vpop.permute.xlu0 %15324  ;;  %v15247_v52 = vunpack.i.h.bf16 %v20168_v0 }
 0xcc4   : > { %v9204_v13 = vpop.f32.mrf.mxu1  ;;  %v9251_v1 = vpop.f32.mrf.mxu0  ;;  %10423 = vmatpush1.bf16.msra.mxu1 %v15526_v33 }
 0xcc5   : > { %v15423_v35 = vpack.i.bf16 %v9204_v13, %v9201_v62  ;;  %v15433_v5 = vpack.i.bf16 %v9251_v1, %v9248_v51  ;;  %v22354_v62 = vld [vmem:[#allocation113_spill] sm:$0xff]  ;;  %v15246_v13 = vunpack.i.l.bf16 %v20168_v0  ;;  %10424 = vmatprep.subr.bf16.mxu1 %v15531_v27  ;;  %v15257_v1 = vunpack.i.h.bf16 %v20173_v42  ;;  %v22357_v0 = vld [vmem:[#allocation20_spill] sm:$0xff] }
 0xcc6   : > { %v14977_v20 = vpop.f32.mrf.mxu1  ;;  %v14983_v28 = vpop.f32.mrf.mxu0  ;;  %v22355_v51 = vld [vmem:[#allocation25_spill] sm:$0xff] }
 0xcc7   : > { %15424 = vrot.lane.b32.xlu1 %v15423_v35, %s16703_s2  ;;  %15434 = vrot.lane.b32.xlu0 %v15433_v5, %s16703_s2  ;;  %v22356_v47 = vpack.i.bf16 %v22354_v62, %v22355_v51  ;;  %v15535_v35 = vld [vmem:[%s21798_s8 + $0x64] ss:$12 sps:$4 sm:$0xff]   ;;  %v15256_v5 = vunpack.i.l.bf16 %v20173_v42  ;;  %v15250_v20 = vpop.permute.xlu1 %15249  ;;  %v15539_v42 = vld [vmem:[%s21798_s8 + $0x4c] ss:$12 sps:$4 sm:$0xff]  }
 0xcc8   : > { %v9295_v60 = vpop.f32.mrf.mxu1  ;;  %v9342_v55 = vpop.f32.mrf.mxu0  ;;  %10425 = vmatpush1.bf16.msra.mxu1 %v15529_v39  ;;  %v15252_v57 = vunpack.i.h.bf16 %v15250_v20  ;;  %v15251_v16 = vunpack.i.l.bf16 %v15250_v20  ;;  %v15536_v62 = vld [vmem:[%s21798_s8 + $0x98] ss:$12 sps:$4 sm:$0xff]  }
 0xcc9   : > { %10426 = vmatprep.subr.bf16.mxu1 %v15535_v35  ;;  %v15540_v35 = vld [vmem:[%s21798_s8 + $0x80] ss:$12 sps:$4 sm:$0xff]  }
 0xcca   : > { %v14988_v4 = vpop.f32.mrf.mxu1  ;;  %v14994_v61 = vpop.f32.mrf.mxu0 }
 0xccb   : > { %15429 = vrot.lane.b32.xlu1 %v22344_v7, %s16704_s26  ;;  %15439 = vrot.lane.b32.xlu0 %v22347_v37, %s22320_s27  ;;  %v22358_v4 = vld [vmem:[#allocation17_spill] sm:$0xff] }
 0xccc   : > { %v9298_v14 = vpop.f32.mrf.mxu1  ;;  %v9345_v32 = vpop.f32.mrf.mxu0  ;;  %v9874_v61 = vsel %vm1552_vm1, %v22358_v4, %v15246_v13 }
 0xccd   : > { %v15443_v54 = vpack.i.bf16 %v9298_v14, %v9295_v60  ;;  %v15453_v21 = vpack.i.bf16 %v9345_v32, %v9342_v55  ;;  %v15533_v60 = vld [vmem:[%s21798_s8 + $0x60] ss:$12 sps:$4 sm:$0xff]   ;;  %v9875_v55 = vsel %vm1552_vm1, %v22357_v0, %v15247_v52  ;;  %v9907_v7 = vsel %vm9906_vm5, %v9874_v61, %v15256_v5  ;;  %v15260_v32 = vpop.permute.xlu1 %15259 }
 0xcce   : > { %v14989_v26 = vpop.f32.mrf.mxu1  ;;  %v14995_v63 = vpop.f32.mrf.mxu0  ;;  %v9908_v44 = vsel %vm9906_vm5, %v9875_v55, %v15257_v1  ;;  %10427 = vmatpush1.bf16.msra.mxu1 %v15533_v60  ;;  %v15261_v56 = vunpack.i.l.bf16 %v15260_v32  ;;  %v22362_v0 = vld [vmem:[#allocation55_spill] sm:$0xff] }
 0xccf   : > { %15444 = vrot.lane.b32.xlu1 %v15443_v54, %s16703_s2  ;;  %15454 = vrot.lane.b32.xlu0 %v15453_v21, %s16703_s2  ;;  %v15537_v54 = vld [vmem:[%s21798_s8 + $0x48] ss:$12 sps:$4 sm:$0xff]  }
 0xcd0   : > { %v9389_v2 = vpop.f32.mrf.mxu1  ;;  %v9436_v41 = vpop.f32.mrf.mxu0  ;;  %10428 = vmatprep.subr.bf16.mxu1 %v15539_v42 }
 0xcd1   : > { %v15270_v21 = vpop.permute.xlu1 %15269 }
 0xcd2   : > { %v15000_v11 = vpop.f32.mrf.mxu1  ;;  %v15006_v10 = vpop.f32.mrf.mxu0  ;;  %10429 = vmatpush1.bf16.msra.mxu1 %v15537_v54  ;;  %v15271_v27 = vunpack.i.l.bf16 %v15270_v21 }
 0xcd3   : > { %15449 = vrot.lane.b32.xlu1 %v22350_v34, %s22320_s27  ;;  %15459 = vrot.lane.b32.xlu0 %v22353_v48, %s16704_s26  ;;  %v15262_v34 = vunpack.i.h.bf16 %v15260_v32  ;;  %v22359_v48 = vld [vmem:[#allocation52_spill] sm:$0xff] }
 0xcd4   : > { %v9392_v38 = vpop.f32.mrf.mxu1  ;;  %v9439_v30 = vpop.f32.mrf.mxu0 }
 0xcd5   : > { %v15463_v58 = vpack.i.bf16 %v9392_v38, %v9389_v2  ;;  %v15473_v43 = vpack.i.bf16 %v9439_v30, %v9436_v41  ;;  %v15280_v26 = vpop.permute.xlu1 %15279  ;;  %v9877_v38 = vsel %vm1552_vm1, %v22359_v48, %v15252_v57 }
 0xcd6   : > { %v15001_v46 = vpop.f32.mrf.mxu1  ;;  %v15007_v22 = vpop.f32.mrf.mxu0  ;;  %v9910_v29 = vsel %vm9906_vm5, %v9877_v38, %v15262_v34  ;;  %v15281_v39 = vunpack.i.l.bf16 %v15280_v26 }
 0xcd7   : > { %15464 = vrot.lane.b32.xlu1 %v15463_v58, %s16703_s2  ;;  %15474 = vrot.lane.b32.xlu0 %v15473_v43, %s16703_s2  ;;  %v22360_v58 = vld [vmem:[#allocation51_spill] sm:$0xff] }
 0xcd8   : > { %v9483_v40 = vpop.f32.mrf.mxu1  ;;  %v9876_v30 = vsel %vm1552_vm1, %v22360_v58, %v15251_v16 }
 0xcd9   : > { %v20368_v63 = vpop.permute.xlu1 %15289  ;;  %v9909_v36 = vsel %vm9906_vm5, %v9876_v30, %v15261_v56  ;;  %v22363_v56 = vld [vmem:[#allocation60_spill] sm:$0xff] }
 0xcda   : > { %v15012_v24 = vpop.f32.mrf.mxu1 }
 0xcdb   : > { %15469 = vrot.lane.b32.xlu1 %v22356_v47, %s16704_s26  ;;  %v15272_v47 = vunpack.i.h.bf16 %v15270_v21  ;;  %s20585_s26 = scalar_lea.vmem [#allocation4], %s21959_s23 }
 0xcdc   : > { %v9486_v9 = vpop.f32.mrf.mxu1  ;;  %s13282_s23 = sshll.u32 %s20585_s26, 4  ;;  %s21620_s23 = int_to_ptr.vmem [resolvable:$true] %s13282_s23 }
 0xcdd   : > { %v15478_v23 = vpack.i.bf16 %v9486_v9, %v9483_v40  ;;  %v20370_v2 = vpop.permute.xlu1 %15299  ;;  %s16607_s30 = scalar_lea.vmem %s21620_s23, 2048 }
 0xcde   : > { %v15013_v3 = vpop.f32.mrf.mxu1  ;;  %v15302_v54 = vunpack.i.h.bf16 %v20370_v2  ;;  %v15301_v32 = vunpack.i.l.bf16 %v20370_v2  ;;  %p16608_p11 = scmp.ne.s32.totalorder %s21620_s23, %s16607_s30 }
 0xcdf   : > { %15479 = vrot.lane.b32.xlu1 %v15478_v23, %s16703_s2  ;;  %v15282_v3 = vunpack.i.h.bf16 %v15280_v26  ;;  %s16706_s2 = smov [#allocation4]  }
 0xce0   : > { %p16609_p12 = pnand %p16608_p11, %p16858_p5  ;;  %s16611_s22 = sshll.u32 %s16706_s2, 4  ;;  %s16612_s22 = int_to_ptr.vmem [resolvable:$false] %s16611_s22 }
 0xce1   : > { %v20372_v41 = vpop.permute.xlu1 %15309  ;;  %s16613_s24 = scalar_lea.vmem %s16612_s22, 4096  ;;  %p16614_p0 = scmp.lt.s32.totalorder %s21620_s23, %s16612_s22 }
 0xce2   : > { %v15335_v28 = vpop.permute.xlu0 %15334  ;;  %p16610_p13 = pneg %p16609_p12  ;;  %p16615_p1 = scmp.lt.s32.totalorder %s16613_s24, %s16607_s30 }
 0xce3   : > { %v15337_v8 = vunpack.i.h.bf16 %v15335_v28  ;;  %v15336_v15 = vunpack.i.l.bf16 %v15335_v28  ;;  %v22361_v28 = vld [vmem:[#allocation56_spill] sm:$0xff] }
 0xce4   : > { %v9881_v60 = vsel %vm1552_vm1, %v22361_v28, %v15272_v47  ;;  %p16616_p2 = por %p16615_p1, %p16614_p0 }
 0xce5   : > { %v9940_v6 = vsel %vm9939_vm6, %v9907_v7, %v15336_v15  ;;  %v9941_v37 = vsel %vm9939_vm6, %v9908_v44, %v15337_v8  ;;  %v20374_v11 = vpop.permute.xlu1 %15319  ;;  %v15292_v44 = vunpack.i.h.bf16 %v20368_v63 }
 0xce6   : > { %v9988_v14 = vpack.c.bf16 %v9941_v37, %v9940_v6  ;;  %v20382_v43 = vpop.permute.xlu0 %15339  ;;  %v15291_v6 = vunpack.i.l.bf16 %v20368_v63  ;;  %p16617_p3 = pnand %p16616_p2, %p16610_p13 }
 0xce7   : > { %v9885_v63 = vsel %vm1552_vm1, %v22363_v56, %v15292_v44  ;;  %v22369_v56 = vld [vmem:[#allocation68_spill] sm:$0xff] }
 0xce8   : > { %15030 = vmatprep.mubr.bf16.mxu0 %v9988_v14 }
 0xce9   : > { %v20376_v10 = vpop.permute.xlu1 %15329 }
 0xd15   : > { %v15345_v45 = vpop.permute.xlu1 %15344 }
 0xd16   : > { %v15347_v46 = vunpack.i.h.bf16 %v15345_v45  ;;  %v15346_v22 = vunpack.i.l.bf16 %v15345_v45  ;;  %v22364_v45 = vld [vmem:[#allocation59_spill] sm:$0xff] }
 0xd17   : > { %v9884_v48 = vsel %vm1552_vm1, %v22364_v45, %v15291_v6  ;;  %v22370_v45 = vld [vmem:[#allocation67_spill] sm:$0xff] }
 0xd18   : > { %v9942_v40 = vsel %vm9939_vm6, %v9909_v36, %v15346_v22  ;;  %v9943_v50 = vsel %vm9939_vm6, %v9910_v29, %v15347_v46  ;;  %v9917_v58 = vsel %vm9906_vm5, %v9884_v48, %v15301_v32 }
 0xd19   : > { %v9989_v24 = vpack.c.bf16 %v9943_v50, %v9942_v40  ;;  %v20388_v33 = vpop.permute.xlu1 %15349  ;;  %v15355_v51 = vpop.permute.xlu0 %15354  ;;  %v15312_v40 = vunpack.i.h.bf16 %v20372_v41  ;;  %v15311_v50 = vunpack.i.l.bf16 %v20372_v41 }
 0xd1a   : > { %v15357_v9 = vunpack.i.h.bf16 %v15355_v51  ;;  %v15356_v23 = vunpack.i.l.bf16 %v15355_v51  ;;  %v15321_v51 = vunpack.i.l.bf16 %v20374_v11 }
 0xd1b   : > { %15031 = vmatmul.mubr.bf16.vlgmr.msra.gmra.mxu0 %v9989_v24  ;;  %v15322_v24 = vunpack.i.h.bf16 %v20374_v11 }
 0xd1c   : > { %15063 = vmatpush3.bf16.msra.mxu0 %v20325_v49  ;;  %v9944_v52 = vsel %vm9939_vm6, %v20195_v19, %v15356_v23  ;;  %v9945_v13 = vsel %vm9939_vm6, %v20198_v53, %v15357_v9  ;;  %v9880_v49 = vsel %vm1552_vm1, %v22362_v0, %v15271_v27  ;;  %v9914_v53 = vsel %vm9906_vm5, %v9881_v60, %v15282_v3  ;;  %v22368_v60 = vld [vmem:[#allocation65_spill] sm:$0xff] }
 0xd1d   : > { %15064 = vmatprep.subr.bf16.mxu0 %v15536_v62  ;;  %v15365_v1 = vpop.permute.xlu1 %15364  ;;  %v20401_v5 = vpop.permute.xlu0 %15359  ;;  %v9990_v20 = vpack.c.bf16 %v9945_v13, %v9944_v52  ;;  %v9913_v4 = vsel %vm9906_vm5, %v9880_v49, %v15281_v39  ;;  %v15326_v23 = vunpack.i.l.bf16 %v20338_v59  ;;  %v15342_v39 = vunpack.i.h.bf16 %v20382_v43  ;;  %v22365_v52 = vld [vmem:[#allocation64_spill] sm:$0xff] }
 0xd1e   : > { %v15367_v55 = vunpack.i.h.bf16 %v15365_v1  ;;  %v15366_v19 = vunpack.i.l.bf16 %v15365_v1  ;;  %v9889_v13 = vsel %vm1552_vm1, %v22365_v52, %v15312_v40  ;;  %v15341_v1 = vunpack.i.l.bf16 %v20382_v43 }
 0xd1f   : > { %15034 = vmatprep.mubr.bf16.mxu0 %v9990_v20  ;;  %v9890_v0 = vsel %vm1552_vm1, %v22368_v60, %v15326_v23  ;;  %v15332_v49 = vunpack.i.h.bf16 %v20376_v10  ;;  %v22374_v60 = vld [vmem:[#allocation72_spill] sm:$0xff] }
 0xd20   : > { %15065 = vmatpush3.bf16.msra.mxu0 %v15536_v62  ;;  %v9946_v61 = vsel %vm9939_vm6, %v9913_v4, %v15366_v19  ;;  %v9947_v8 = vsel %vm9939_vm6, %v9914_v53, %v15367_v55  ;;  %v15327_v62 = vunpack.i.h.bf16 %v20338_v59  ;;  %v9922_v59 = vsel %vm9906_vm5, %v9889_v13, %v15322_v24 }
 0xd21   : > { %15066 = vmatprep.subr.bf16.mxu0 %v15540_v35  ;;  %v9991_v15 = vpack.c.bf16 %v9947_v8, %v9946_v61  ;;  %v20411_v42 = vpop.permute.xlu1 %15369  ;;  %v15375_v7 = vpop.permute.xlu0 %15374  ;;  %v15331_v53 = vunpack.i.l.bf16 %v20376_v10 }
 0xd22   : > { %v15377_v37 = vunpack.i.h.bf16 %v15375_v7  ;;  %v15376_v14 = vunpack.i.l.bf16 %v15375_v7  ;;  %v15352_v7 = vunpack.i.h.bf16 %v20388_v33  ;;  %v15372_v40 = vunpack.i.h.bf16 %v20411_v42 }
 0xd23   : > { %15035 = vmatmul.mubr.bf16.gmra.mxu0 %v9991_v15  ;;  %v9923_v15 = vsel %vm9906_vm5, %v9890_v0, %v15341_v1 }
 0xd24   : > { %v9948_v21 = vsel %vm9939_vm6, %v20207_v18, %v15376_v14  ;;  %v9949_v26 = vsel %vm9939_vm6, %v20210_v25, %v15377_v37  ;;  %15067 = vmatpush3.bf16.msra.mxu0 %v15540_v35  ;;  %v9918_v18 = vsel %vm9906_vm5, %v9885_v63, %v15302_v54  ;;  %v22366_v35 = vld [vmem:[#allocation63_spill] sm:$0xff]  ;;  %v15351_v37 = vunpack.i.l.bf16 %v20388_v33 }
 0xd25   : > { %v15385_v57 = vpop.permute.xlu1 %15384  ;;  %v20421_v16 = vpop.permute.xlu0 %15379  ;;  %v9992_v34 = vpack.c.bf16 %v9949_v26, %v9948_v21  ;;  %v9888_v11 = vsel %vm1552_vm1, %v22366_v35, %v15311_v50  ;;  %v15362_v21 = vunpack.i.h.bf16 %v20401_v5  ;;  %v15361_v26 = vunpack.i.l.bf16 %v20401_v5  ;;  %v22371_v5 = vld [vmem:[#allocation70_spill] sm:$0xff] }
 0xd26   : > { %v15387_v38 = vunpack.i.h.bf16 %v15385_v57  ;;  %v15386_v2 = vunpack.i.l.bf16 %v15385_v57  ;;  %v9893_v63 = vsel %vm1552_vm1, %v22369_v56, %v15332_v49  ;;  %v9892_v33 = vsel %vm1552_vm1, %v22370_v45, %v15331_v53 }
 0xd27   : > { %15038 = vmatprep.mubr.bf16.mxu0 %v9992_v34  ;;  %v15382_v48 = vunpack.i.h.bf16 %v20421_v16  ;;  %v15371_v50 = vunpack.i.l.bf16 %v20411_v42  ;;  %v9897_v0 = vsel %vm1552_vm1, %v22374_v60, %v15372_v40 }
 0xd28   : > { %v9950_v25 = vsel %vm9939_vm6, %v9917_v58, %v15386_v2  ;;  %v9951_v30 = vsel %vm9939_vm6, %v9918_v18, %v15387_v38  ;;  %v15381_v38 = vunpack.i.l.bf16 %v20421_v16  ;;  %v9925_v2 = vsel %vm9906_vm5, %v9892_v33, %v15351_v37 }
 0xd29   : > { %v9993_v46 = vpack.c.bf16 %v9951_v30, %v9950_v25  ;;  %v15395_v22 = vpop.permute.xlu0 %15394  ;;  %v20436_v47 = vpop.permute.xlu1 %15389  ;;  %v9926_v58 = vsel %vm9906_vm5, %v9893_v63, %v15352_v7  ;;  %v9895_v25 = vsel %vm1552_vm1, %v22371_v5, %v15362_v21  ;;  %v22372_v30 = vld [vmem:[#allocation69_spill] sm:$0xff] }
 0xd2a   : > { %v15397_v36 = vunpack.i.h.bf16 %v15395_v22  ;;  %v15396_v29 = vunpack.i.l.bf16 %v15395_v22  ;;  %v15391_v23 = vunpack.i.l.bf16 %v20436_v47  ;;  %v15392_v42 = vunpack.i.h.bf16 %v20436_v47 }
 0xd2b   : > { %15039 = vmatmul.mubr.bf16.gmra.mxu0 %v9993_v46  ;;  %v9894_v46 = vsel %vm1552_vm1, %v22372_v30, %v15361_v26 }
 0xd2c   : > { %v9952_v27 = vsel %vm9939_vm6, %v20217_v12, %v15396_v29  ;;  %v9953_v9 = vsel %vm9939_vm6, %v20220_v17, %v15397_v36  ;;  %v22367_v12 = vld [vmem:[#allocation66_spill] sm:$0xff]  ;;  %v9921_v17 = vsel %vm9906_vm5, %v9888_v11, %v15321_v51  ;;  %v9927_v51 = vsel %vm9906_vm5, %v9894_v46, %v15381_v38 }
 0xd2d   : > { %v20443_v3 = vpop.permute.xlu0 %15399  ;;  %v9994_v41 = vpack.c.bf16 %v9953_v9, %v9952_v27  ;;  %v9891_v20 = vsel %vm1552_vm1, %v22367_v12, %v15327_v62  ;;  %v9928_v62 = vsel %vm9906_vm5, %v9895_v25, %v15382_v48  ;;  %v9930_v47 = vsel %vm9906_vm5, %v9897_v0, %v15392_v42  ;;  %v22382_v0 = vld [vmem:[#allocation79_spill] sm:$0xff] }
 0xd2e   : > { %v9924_v43 = vsel %vm9906_vm5, %v9891_v20, %v15342_v39  ;;  %v15402_v35 = vunpack.i.h.bf16 %v20443_v3  ;;  %v15401_v12 = vunpack.i.l.bf16 %v20443_v3  ;;  %v22373_v20 = vld [vmem:[#allocation71_spill] sm:$0xff] }
 0xd2f   : > { %15042 = vmatprep.mubr.bf16.mxu0 %v9994_v41 }
 0xd31   : > { %v15405_v28 = vpop.permute.xlu1 %15404  ;;  %v15415_v4 = vpop.permute.xlu0 %15414 }
 0xd32   : > { %v15407_v55 = vunpack.i.h.bf16 %v15405_v28  ;;  %v15406_v19 = vunpack.i.l.bf16 %v15405_v28  ;;  %v15417_v61 = vunpack.i.h.bf16 %v15415_v4  ;;  %v15416_v8 = vunpack.i.l.bf16 %v15415_v4 }
 0xd34   : > { %v9954_v44 = vsel %vm9939_vm6, %v9921_v17, %v15406_v19  ;;  %v9955_v6 = vsel %vm9939_vm6, %v9922_v59, %v15407_v55  ;;  %v9956_v32 = vsel %vm9939_vm6, %v9923_v15, %v15416_v8  ;;  %v9957_v10 = vsel %vm9939_vm6, %v9924_v43, %v15417_v61  ;;  %v22375_v19 = vld [vmem:[#allocation74_spill] sm:$0xff]  ;;  %v22376_v61 = vld [vmem:[#allocation73_spill] sm:$0xff] }
 0xd35   : > { %v9995_v14 = vpack.c.bf16 %v9955_v6, %v9954_v44  ;;  %v20465_v54 = vpop.permute.xlu1 %15409  ;;  %v15420_v57 = vpop.permute.xlu0 %15419  ;;  %v9996_v34 = vpack.c.bf16 %v9957_v10, %v9956_v32  ;;  %v9896_v17 = vsel %vm1552_vm1, %v22373_v20, %v15371_v50  ;;  %v9899_v4 = vsel %vm1552_vm1, %v22375_v19, %v15402_v35  ;;  %v22379_v50 = vld [vmem:[#allocation78_spill] sm:$0xff] }
 0xd36   : > { %v15422_v59 = vunpack.i.h.bf16 %v15420_v57  ;;  %v15421_v28 = vunpack.i.l.bf16 %v15420_v57  ;;  %v9929_v49 = vsel %vm9906_vm5, %v9896_v17, %v15391_v23  ;;  %v9898_v8 = vsel %vm1552_vm1, %v22376_v61, %v15401_v12  ;;  %v15543_v61 = vld [vmem:[%s21798_s8 + $0x34] ss:$12 sps:$4 sm:$0xff]  }
 0xd37   : > { %15043 = vmatmul.mubr.bf16.gmra.mxu0 %v9995_v14  ;;  %v15412_v15 = vunpack.i.h.bf16 %v20465_v54  ;;  %v15411_v10 = vunpack.i.l.bf16 %v20465_v54  ;;  %v22378_v54 = vld [vmem:[#allocation75_spill] sm:$0xff]  ;;  %10430 = vmatprep.subr.bf16.mxu1 %v15543_v61 }
 0xd38   : > { %15046 = vmatprep.mubr.bf16.mxu0 %v9996_v34  ;;  %v9932_v6 = vsel %vm9906_vm5, %v9899_v4, %v15422_v59  ;;  %v9931_v37 = vsel %vm9906_vm5, %v9898_v8, %v15421_v28  ;;  %v22381_v28 = vld [vmem:[#allocation80_spill] sm:$0xff] }
 0xd39   : > { %v15425_v18 = vpop.permute.xlu1 %15424  ;;  %v15435_v29 = vpop.permute.xlu0 %15434  ;;  %v9900_v25 = vsel %vm1552_vm1, %v22378_v54, %v15411_v10  ;;  %v15544_v8 = vld [vmem:[%s21798_s8 + $0x68] ss:$12 sps:$4 sm:$0xff]   ;;  %v15553_v10 = vld [vmem:[%s21798_s8 + $0x20] ss:$12 sps:$4 sm:$0xff]  }
 0xd3a   : > { %v15427_v22 = vunpack.i.h.bf16 %v15425_v18  ;;  %v15426_v36 = vunpack.i.l.bf16 %v15425_v18  ;;  %v15437_v16 = vunpack.i.h.bf16 %v15435_v29  ;;  %v15436_v24 = vunpack.i.l.bf16 %v15435_v29  ;;  %v22377_v18 = vld [vmem:[#allocation76_spill] sm:$0xff]  ;;  %15068 = vmatprep.subr.bf16.mxu0 %v15544_v8 }
 0xd3b   : > { %v9901_v5 = vsel %vm1552_vm1, %v22377_v18, %v15412_v15  ;;  %v15541_v15 = vld [vmem:[%s21798_s8 + $0x30] ss:$12 sps:$4 sm:$0xff]   ;;  %15069 = vmatpush3.bf16.msra.mxu0 %v15544_v8 }
 0xd3c   : > { %v9958_v27 = vsel %vm9939_vm6, %v9925_v2, %v15426_v36  ;;  %v9959_v9 = vsel %vm9939_vm6, %v9926_v58, %v15427_v22  ;;  %v9960_v52 = vsel %vm9939_vm6, %v9927_v51, %v15436_v24  ;;  %v9961_v13 = vsel %vm9939_vm6, %v9928_v62, %v15437_v16  ;;  %v22380_v24 = vld [vmem:[#allocation77_spill] sm:$0xff]  ;;  %10431 = vmatpush1.bf16.msra.mxu1 %v15541_v15 }
 0xd3d   : > { %v9997_v41 = vpack.c.bf16 %v9959_v9, %v9958_v27  ;;  %v15430_v39 = vpop.permute.xlu1 %15429  ;;  %v15440_v11 = vpop.permute.xlu0 %15439  ;;  %v9998_v1 = vpack.c.bf16 %v9961_v13, %v9960_v52 }
 0xd3e   : > { %v15432_v56 = vunpack.i.h.bf16 %v15430_v39  ;;  %v15431_v63 = vunpack.i.l.bf16 %v15430_v39  ;;  %v15442_v48 = vunpack.i.h.bf16 %v15440_v11  ;;  %v15441_v38 = vunpack.i.l.bf16 %v15440_v11 }
 0xd3f   : > { %15047 = vmatmul.mubr.bf16.gmra.mxu0 %v9997_v41 }
 0xd40   : > { %15050 = vmatprep.mubr.bf16.mxu0 %v9998_v1  ;;  %v9933_v46 = vsel %vm9906_vm5, %v9900_v25, %v15431_v63  ;;  %v9934_v22 = vsel %vm9906_vm5, %v9901_v5, %v15432_v56  ;;  %v9903_v16 = vsel %vm1552_vm1, %v22379_v50, %v15442_v48  ;;  %v9902_v62 = vsel %vm1552_vm1, %v22380_v24, %v15441_v38  ;;  %v15555_v25 = vld [vmem:[%s21799_s9 + $0x70] ss:$8 sps:$4 sm:$0xff]   ;;  %v15558_v50 = vld [vmem:[%s21799_s9 + $0x60] ss:$8 sps:$4 sm:$0xff]   ;;  %v15563_v24 = vld [vmem:[%s21799_s9 + $0x54] ss:$8 sps:$4 sm:$0xff]  }
 0xd41   : > { %v15445_v55 = vpop.permute.xlu1 %15444  ;;  %v15455_v43 = vpop.permute.xlu0 %15454 }
 0xd42   : > { %v15447_v53 = vunpack.i.h.bf16 %v15445_v55  ;;  %v15446_v3 = vunpack.i.l.bf16 %v15445_v55  ;;  %v15457_v7 = vunpack.i.h.bf16 %v15455_v43  ;;  %v15456_v44 = vunpack.i.l.bf16 %v15455_v43 }
 0xd44   : > { %v9962_v14 = vsel %vm9939_vm6, %v9929_v49, %v15446_v3  ;;  %v9963_v32 = vsel %vm9939_vm6, %v9930_v47, %v15447_v53  ;;  %v9964_v57 = vsel %vm9939_vm6, %v9931_v37, %v15456_v44  ;;  %v9965_v34 = vsel %vm9939_vm6, %v9932_v6, %v15457_v7  ;;  %v15547_v7 = vld [vmem:[%s21798_s8 + $0x1c] ss:$12 sps:$4 sm:$0xff]   ;;  %v15545_v6 = vld [vmem:[%s21798_s8 + $0x18] ss:$12 sps:$4 sm:$0xff]  }
 0xd45   : > { %v9999_v21 = vpack.c.bf16 %v9963_v32, %v9962_v14  ;;  %v15450_v26 = vpop.permute.xlu1 %15449  ;;  %v15460_v45 = vpop.permute.xlu0 %15459  ;;  %v10000_v33 = vpack.c.bf16 %v9965_v34, %v9964_v57  ;;  %v15548_v44 = vld [vmem:[%s21798_s8 + $0x50] ss:$12 sps:$4 sm:$0xff]   ;;  %10432 = vmatprep.subr.bf16.mxu1 %v15547_v7  ;;  %v15552_v14 = vld [vmem:[%s21798_s8 + $0x38] ss:$12 sps:$4 sm:$0xff]   ;;  %v15549_v32 = vld [vmem:[%s21798_s8] ss:$12 sps:$4 sm:$0xff]  }
 0xd46   : > { %v15462_v2 = vunpack.i.h.bf16 %v15460_v45  ;;  %v15461_v58 = vunpack.i.l.bf16 %v15460_v45  ;;  %v15452_v11 = vunpack.i.h.bf16 %v15450_v26  ;;  %v15451_v1 = vunpack.i.l.bf16 %v15450_v26  ;;  %15070 = vmatprep.subr.bf16.mxu0 %v15548_v44  ;;  %10433 = vmatpush1.bf16.msra.mxu1 %v15545_v6  ;;  %v15551_v37 = vld [vmem:[%s21798_s8 + $0x4] ss:$12 sps:$4 sm:$0xff]   ;;  %v15557_v26 = vld [vmem:[%s21799_s9 + $0x74] ss:$8 sps:$4 sm:$0xff]   ;;  %v20580_v57 = vld [vmem:[%s21797_s7] ss:$0 sm:$0xff] }
 0xd47   : > { %15051 = vmatmul.mubr.bf16.gmra.mxu0 %v9999_v21  ;;  %10434 = vmatprep.subr.bf16.mxu1 %v15551_v37  ;;  %v15554_v21 = vld [vmem:[%s21798_s8 + $0x8] ss:$12 sps:$4 sm:$0xff]   ;;  %v15573_v7 = vld [vmem:[%s21799_s9 + $0x10] ss:$8 sps:$4 sm:$0xff]   ;;  %v15578_v6 = vld [vmem:[%s21799_s9 + $0x4] ss:$8 sps:$4 sm:$0xff]  }
 0xd48   : > { %15054 = vmatprep.mubr.bf16.mxu0 %v10000_v33  ;;  %v9936_v9 = vsel %vm9906_vm5, %v9903_v16, %v15462_v2  ;;  %v9935_v23 = vsel %vm9906_vm5, %v9902_v62, %v15461_v58  ;;  %v9905_v60 = vsel %vm1552_vm1, %v22381_v28, %v15452_v11  ;;  %v9904_v49 = vsel %vm1552_vm1, %v22382_v0, %v15451_v1 }
 0xd49   : > { %v15465_v30 = vpop.permute.xlu1 %15464  ;;  %v15475_v40 = vpop.permute.xlu0 %15474  ;;  %15071 = vmatpush3.bf16.msra.mxu0 %v15548_v44 }
 0xd4a   : > { %v15467_v36 = vunpack.i.h.bf16 %v15465_v30  ;;  %v15466_v29 = vunpack.i.l.bf16 %v15465_v30  ;;  %v15477_v51 = vunpack.i.h.bf16 %v15475_v40  ;;  %v15476_v27 = vunpack.i.l.bf16 %v15475_v40  ;;  %15072 = vmatprep.subr.bf16.mxu0 %v15552_v14  ;;  %10435 = vmatpush1.bf16.msra.mxu1 %v15549_v32 }
 0xd4b   : > { %10734 = vmatprep.subr.bf16.mxu1 %v15557_v26 }
 0xd4c   : > { %v9966_v41 = vsel %vm9939_vm6, %v9933_v46, %v15466_v29  ;;  %v9967_v39 = vsel %vm9939_vm6, %v9934_v22, %v15467_v36  ;;  %v9968_v42 = vsel %vm9939_vm6, %v9935_v23, %v15476_v27  ;;  %v9969_v35 = vsel %vm9939_vm6, %v9936_v9, %v15477_v51  ;;  %v15560_v22 = vld [vmem:[%s21799_s9 + $0x64] ss:$8 sps:$4 sm:$0xff]  }
 0xd4d   : > { %v10001_v52 = vpack.c.bf16 %v9967_v39, %v9966_v41  ;;  %v15470_v13 = vpop.permute.xlu1 %15469  ;;  %v10002_v12 = vpack.c.bf16 %v9969_v35, %v9968_v42  ;;  %15073 = vmatpush3.bf16.msra.mxu0 %v15552_v14  ;;  %v15561_v39 = vld [vmem:[%s21799_s9 + $0x50] ss:$8 sps:$4 sm:$0xff]   ;;  %v15566_v42 = vld [vmem:[%s21799_s9 + $0x44] ss:$8 sps:$4 sm:$0xff]  }
 0xd4e   : > { %v15472_v20 = vunpack.i.h.bf16 %v15470_v13  ;;  %v15471_v17 = vunpack.i.l.bf16 %v15470_v13  ;;  %15074 = vmatprep.subr.bf16.mxu0 %v15553_v10 }
 0xd4f   : > { %15055 = vmatmul.mubr.bf16.gmra.mxu0 %v10001_v52 }
 0xd50   : > { %15058 = vmatprep.mubr.bf16.mxu0 %v10002_v12  ;;  %v9937_v19 = vsel %vm9906_vm5, %v9904_v49, %v15471_v17  ;;  %v9938_v4 = vsel %vm9906_vm5, %v9905_v60, %v15472_v20  ;;  %v15564_v12 = vld [vmem:[%s21799_s9 + $0x40] ss:$8 sps:$4 sm:$0xff]   ;;  %v15569_v17 = vld [vmem:[%s21799_s9 + $0x34] ss:$8 sps:$4 sm:$0xff]   ;;  %v15567_v60 = vld [vmem:[%s21799_s9 + $0x30] ss:$8 sps:$4 sm:$0xff]  }
 0xd51   : > { %v15480_v59 = vpop.permute.xlu1 %15479  ;;  %15075 = vmatpush3.bf16.msra.mxu0 %v15553_v10 }
 0xd52   : > { %v15482_v55 = vunpack.i.h.bf16 %v15480_v59  ;;  %v15481_v47 = vunpack.i.l.bf16 %v15480_v59  ;;  %15076 = vmatprep.subr.bf16.mxu0 %v15554_v21 }
 0xd54   : > { %v9970_v53 = vsel %vm9939_vm6, %v9937_v19, %v15481_v47  ;;  %v9971_v3 = vsel %vm9939_vm6, %v9938_v4, %v15482_v55  ;;  %v15572_v55 = vld [vmem:[%s21799_s9 + $0x24] ss:$8 sps:$4 sm:$0xff]  }
 0xd55   : > { %v10003_v43 = vpack.c.bf16 %v9971_v3, %v9970_v53  ;;  %15077 = vmatpush3.bf16.msra.mxu0 %v15554_v21  ;;  %v15570_v53 = vld [vmem:[%s21799_s9 + $0x20] ss:$8 sps:$4 sm:$0xff]  }
 0xd57   : > { %15059 = vmatmul.mubr.bf16.gmra.mxu0 %v10003_v43  ;;  %v15575_v43 = vld [vmem:[%s21799_s9 + $0x14] ss:$8 sps:$4 sm:$0xff]  }
 0xddb   : > { %v15032_v34 = vpop.f32.mrf.mxu0 }
 0xddc   : > { %v10102_v56 = vadd.f32 %v15032_v34, %v20580_v57  ;;  %v15576_v34 = vld [vmem:[%s21799_s9] ss:$8 sps:$4 sm:$0xff]  }
 0xddd   : > { %v10093_v63 = vpop.f32.mrf.mxu0 }
 0xdde   : > { %10221 = vst [vmem:[%s20585_s26 + $0x8] sm:$0xff] %v10102_v56  ;;  %v10094_v45 = vadd.f32 %v20580_v57, %v10093_v63 }
 0xddf   : > { %v15033_v33 = vpop.f32.mrf.mxu0 }
 0xde0   : > { %10220 = vst [vmem:[%s20585_s26] sm:$0xff] %v10094_v45  ;;  %v10105_v48 = vadd.f32 %v15033_v33, %v20580_v57 }
 0xde1   : > { %v10096_v38 = vpop.f32.mrf.mxu0 }
 0xde2   : > { %v10097_v2 = vadd.f32 %v20580_v57, %v10096_v38  ;;  %v10237_v58 = vmax.f32 %v10105_v48, 0.0 }
 0xde3   : > { %v15036_v5 = vpop.f32.mrf.mxu0 }
 0xde4   : > { %v10236_v18 = vmax.f32 %v10097_v2, 0.0  ;;  %v10118_v54 = vadd.f32 %v15036_v5, %v20580_v57 }
 0xde5   : > { %v10109_v46 = vpop.f32.mrf.mxu0 }
 0xde6   : > { %v10284_v30 = vpack.c.bf16 %v10237_v58, %v10236_v18  ;;  %10223 = vst [vmem:[%s20585_s26 + $0x18] sm:$0xff] %v10118_v54  ;;  %v10110_v36 = vadd.f32 %v20580_v57, %v10109_v46 }
 0xde7   : > { %v15037_v29 = vpop.f32.mrf.mxu0 }
 0xde8   : > { %10453 = vmatmul.mubr.bf16.vlgmr.msra.gmra.mxu1 %v10284_v30  ;;  %15078 = vmatprep.mubr.bf16.mxu0 %v10284_v30  ;;  %10222 = vst [vmem:[%s20585_s26 + $0x10] sm:$0xff] %v10110_v36  ;;  %v10121_v40 = vadd.f32 %v15037_v29, %v20580_v57 }
 0xde9   : > { %10462 = vmatprep.mubr.bf16.mxu1 %v22308_v31  ;;  %10735 = vmatpush1.bf16.msra.mxu1 %v15555_v25  ;;  %v10112_v16 = vpop.f32.mrf.mxu0 }
 0xdea   : > { %10736 = vmatprep.subr.bf16.mxu1 %v15560_v22  ;;  %v10113_v62 = vadd.f32 %v20580_v57, %v10112_v16  ;;  %v10239_v27 = vmax.f32 %v10121_v40, 0.0 }
 0xdeb   : > { %v15040_v51 = vpop.f32.mrf.mxu0 }
 0xdec   : > { %v10238_v9 = vmax.f32 %v10113_v62, 0.0  ;;  %v10134_v23 = vadd.f32 %v15040_v51, %v20580_v57 }
 0xded   : > { %10737 = vmatpush1.bf16.msra.mxu1 %v15558_v50  ;;  %v10125_v41 = vpop.f32.mrf.mxu0 }
 0xdee   : > { %10738 = vmatprep.subr.bf16.mxu1 %v15563_v24  ;;  %v10285_v52 = vpack.c.bf16 %v10239_v27, %v10238_v9  ;;  %10225 = vst [vmem:[%s20585_s26 + $0x28] sm:$0xff] %v10134_v23  ;;  %v10126_v13 = vadd.f32 %v20580_v57, %v10125_v41 }
 0xdef   : > { %v15041_v35 = vpop.f32.mrf.mxu0 }
 0xdf0   : > { %10224 = vst [vmem:[%s20585_s26 + $0x20] sm:$0xff] %v10126_v13  ;;  %v10137_v11 = vadd.f32 %v15041_v35, %v20580_v57  ;;  %10463 = vmatmul.mubr.bf16.gmra.mxu1 %v10285_v52  ;;  %15079 = vmatmul.mubr.bf16.vlgmr.msra.gmra.mxu0 %v10285_v52 }
 0xdf1   : > { %v10128_v1 = vpop.f32.mrf.mxu0  ;;  %10472 = vmatprep.mubr.bf16.mxu1 %v22308_v31  ;;  %10739 = vmatpush1.bf16.msra.mxu1 %v15561_v39 }
 0xdf2   : > { %v10129_v20 = vadd.f32 %v20580_v57, %v10128_v1  ;;  %10740 = vmatprep.subr.bf16.mxu1 %v15566_v42  ;;  %v10241_v59 = vmax.f32 %v10137_v11, 0.0 }
 0xdf4   : > { %v10240_v28 = vmax.f32 %v10129_v20, 0.0 }
 0xdf5   : > { %10741 = vmatpush1.bf16.msra.mxu1 %v15564_v12 }
 0xdf6   : > { %v10286_v0 = vpack.c.bf16 %v10241_v59, %v10240_v28  ;;  %10742 = vmatprep.subr.bf16.mxu1 %v15569_v17 }
 0xdf7   : > { %v15044_v49 = vpop.f32.mrf.mxu0 }
 0xdf8   : > { %v10150_v47 = vadd.f32 %v15044_v49, %v20580_v57  ;;  %10473 = vmatmul.mubr.bf16.gmra.mxu1 %v10286_v0  ;;  %15082 = vmatprep.mubr.bf16.mxu0 %v10286_v0  ;;  %v20688_v0 = vld [vmem:[%s16877_s4] sm:$0xff]  ;;  %v20691_v49 = vld [vmem:[%s16877_s4 + $0x8] sm:$0xff] }
 0xdf9   : > { %v10141_v19 = vpop.f32.mrf.mxu0  ;;  %10482 = vmatprep.mubr.bf16.mxu1 %v22308_v31  ;;  %10743 = vmatpush1.bf16.msra.mxu1 %v15567_v60 }
 0xdfa   : > { %10227 = vst [vmem:[%s20585_s26 + $0x38] sm:$0xff] %v10150_v47  ;;  %v10142_v4 = vadd.f32 %v20580_v57, %v10141_v19  ;;  %10744 = vmatprep.subr.bf16.mxu1 %v15572_v55  ;;  %v10646_v55 = vpack.c.bf16 %v20691_v49, %v20688_v0  ;;  %v20700_v47 = vld [vmem:[%s16877_s4 + $0x18] sm:$0xff] }
 0xdfb   : > { %v15045_v3 = vpop.f32.mrf.mxu0 }
 0xdfc   : > { %10226 = vst [vmem:[%s20585_s26 + $0x30] sm:$0xff] %v10142_v4  ;;  %v10153_v61 = vadd.f32 %v15045_v3, %v20580_v57  ;;  %v20706_v4 = vld [vmem:[%s16877_s4 + $0x28] sm:$0xff] }
 0xdfd   : > { %v10144_v8 = vpop.f32.mrf.mxu0  ;;  %10745 = vmatpush1.bf16.msra.mxu1 %v15570_v53  ;;  %v20709_v53 = vld [vmem:[%s16877_s4 + $0x20] sm:$0xff] }
 0xdfe   : > { %v10145_v15 = vadd.f32 %v20580_v57, %v10144_v8  ;;  %10746 = vmatprep.subr.bf16.mxu1 %v15575_v43  ;;  %v10243_v37 = vmax.f32 %v10153_v61, 0.0  ;;  %v10648_v3 = vpack.c.bf16 %v20706_v4, %v20709_v53  ;;  %v20715_v43 = vld [vmem:[%s16877_s4 + $0x38] sm:$0xff]  ;;  %v20718_v61 = vld [vmem:[%s16877_s4 + $0x30] sm:$0xff] }
 0xdff   : > { %v15048_v44 = vpop.f32.mrf.mxu0  ;;  %v10649_v8 = vpack.c.bf16 %v20715_v43, %v20718_v61 }
 0xe00   : > { %v10242_v14 = vmax.f32 %v10145_v15, 0.0  ;;  %v10166_v32 = vadd.f32 %v15048_v44, %v20580_v57  ;;  %v20724_v15 = vld [vmem:[%s16877_s4 + $0x48] sm:$0xff] }
 0xe01   : > { %v10157_v10 = vpop.f32.mrf.mxu0  ;;  %10747 = vmatpush1.bf16.msra.mxu1 %v15573_v7  ;;  %v20727_v7 = vld [vmem:[%s16877_s4 + $0x40] sm:$0xff] }
 0xe02   : > { %v10287_v21 = vpack.c.bf16 %v10243_v37, %v10242_v14  ;;  %10229 = vst [vmem:[%s20585_s26 + $0x48] sm:$0xff] %v10166_v32  ;;  %v10158_v26 = vadd.f32 %v20580_v57, %v10157_v10  ;;  %10748 = vmatprep.subr.bf16.mxu1 %v15578_v6  ;;  %v10650_v44 = vpack.c.bf16 %v20724_v15, %v20727_v7  ;;  %v20733_v6 = vld [vmem:[%s16877_s4 + $0x50] sm:$0xff]  ;;  %v20736_v37 = vld [vmem:[%s16877_s4 + $0x58] sm:$0xff]  ;;  %v20742_v32 = vld [vmem:[%s16877_s4 + $0x60] sm:$0xff] }
 0xe03   : > { %v15049_v56 = vpop.f32.mrf.mxu0  ;;  %v10651_v14 = vpack.c.bf16 %v20736_v37, %v20733_v6  ;;  %v20745_v10 = vld [vmem:[%s16877_s4 + $0x68] sm:$0xff] }
 0xe04   : > { %10228 = vst [vmem:[%s20585_s26 + $0x40] sm:$0xff] %v10158_v26  ;;  %v10169_v63 = vadd.f32 %v15049_v56, %v20580_v57  ;;  %10483 = vmatmul.mubr.bf16.gmra.mxu1 %v10287_v21  ;;  %15083 = vmatmul.mubr.bf16.gmra.mxu0 %v10287_v21  ;;  %v10652_v21 = vpack.c.bf16 %v20745_v10, %v20742_v32  ;;  %v20751_v26 = vld [vmem:[%s16877_s4 + $0x70] sm:$0xff] }
 0xe05   : > { %v10160_v45 = vpop.f32.mrf.mxu0  ;;  %10492 = vmatprep.mubr.bf16.mxu1 %v22308_v31  ;;  %10749 = vmatpush1.bf16.msra.mxu1 %v15576_v34  ;;  %v20754_v34 = vld [vmem:[%s16877_s4 + $0x78] sm:$0xff] }
 0xe06   : > { %v10161_v33 = vadd.f32 %v20580_v57, %v10160_v45  ;;  %v10245_v38 = vmax.f32 %v10169_v63, 0.0  ;;  %v10653_v56 = vpack.c.bf16 %v20754_v34, %v20751_v26  ;;  %v15579_v63 = vld [vmem:[%s21800_s10 + $0x38] sm:$0xff]   ;;  %v15580_v45 = vld [vmem:[%s21800_s10 + $0x30] sm:$0xff]  }
 0xe07   : > { %v15052_v48 = vpop.f32.mrf.mxu0  ;;  %15094 = vmatprep.subr.bf16.mxu0 %v15579_v63 }
 0xe08   : > { %v10244_v2 = vmax.f32 %v10161_v33, 0.0  ;;  %v10182_v58 = vadd.f32 %v15052_v48, %v20580_v57  ;;  %15095 = vmatpush3.bf16.msra.mxu0 %v15579_v63  ;;  %v15581_v33 = vld [vmem:[%s21800_s10 + $0x28] sm:$0xff]   ;;  %v15582_v48 = vld [vmem:[%s21800_s10 + $0x20] sm:$0xff]  }
 0xe09   : > { %v10173_v18 = vpop.f32.mrf.mxu0  ;;  %15096 = vmatprep.subr.bf16.mxu0 %v15580_v45 }
 0xe0a   : > { %v10288_v5 = vpack.c.bf16 %v10245_v38, %v10244_v2  ;;  %10231 = vst [vmem:[%s20585_s26 + $0x58] sm:$0xff] %v10182_v58  ;;  %v10174_v54 = vadd.f32 %v20580_v57, %v10173_v18  ;;  %v15583_v38 = vld [vmem:[%s21800_s10 + $0x18] sm:$0xff]   ;;  %v15584_v2 = vld [vmem:[%s21800_s10 + $0x10] sm:$0xff]   ;;  %v15585_v58 = vld [vmem:[%s21800_s10 + $0x8] sm:$0xff]  }
 0xe0b   : > { %v15053_v25 = vpop.f32.mrf.mxu0  ;;  %v15586_v18 = vld [vmem:[%s21800_s10] sm:$0xff]  }
 0xe0c   : > { %10230 = vst [vmem:[%s20585_s26 + $0x50] sm:$0xff] %v10174_v54  ;;  %v10185_v30 = vadd.f32 %v15053_v25, %v20580_v57  ;;  %10493 = vmatmul.mubr.bf16.gmra.mxu1 %v10288_v5  ;;  %15086 = vmatprep.mubr.bf16.mxu0 %v10288_v5 }
 0xe0d   : > { %v10176_v46 = vpop.f32.mrf.mxu0  ;;  %10502 = vmatprep.mubr.bf16.mxu1 %v22308_v31  ;;  %15097 = vmatpush3.bf16.msra.mxu0 %v15580_v45 }
 0xe0e   : > { %v10177_v22 = vadd.f32 %v20580_v57, %v10176_v46  ;;  %v10247_v29 = vmax.f32 %v10185_v30, 0.0  ;;  %15098 = vmatprep.subr.bf16.mxu0 %v15581_v33 }
 0xe0f   : > { %v15056_v36 = vpop.f32.mrf.mxu0 }
 0xe10   : > { %v10246_v40 = vmax.f32 %v10177_v22, 0.0  ;;  %v10198_v50 = vadd.f32 %v15056_v36, %v20580_v57 }
 0xe11   : > { %v10189_v16 = vpop.f32.mrf.mxu0  ;;  %15099 = vmatpush3.bf16.msra.mxu0 %v15581_v33 }
 0xe12   : > { %v10289_v24 = vpack.c.bf16 %v10247_v29, %v10246_v40  ;;  %10233 = vst [vmem:[%s20585_s26 + $0x68] sm:$0xff] %v10198_v50  ;;  %v10190_v62 = vadd.f32 %v20580_v57, %v10189_v16  ;;  %15100 = vmatprep.subr.bf16.mxu0 %v15582_v48 }
 0xe13   : > { %v15057_v51 = vpop.f32.mrf.mxu0 }
 0xe14   : > { %10232 = vst [vmem:[%s20585_s26 + $0x60] sm:$0xff] %v10190_v62  ;;  %v10201_v27 = vadd.f32 %v15057_v51, %v20580_v57  ;;  %10503 = vmatmul.mubr.bf16.gmra.mxu1 %v10289_v24  ;;  %15087 = vmatmul.mubr.bf16.gmra.mxu0 %v10289_v24 }
 0xe15   : > { %v10192_v9 = vpop.f32.mrf.mxu0  ;;  %10512 = vmatprep.mubr.bf16.mxu1 %v22308_v31  ;;  %15101 = vmatpush3.bf16.msra.mxu0 %v15582_v48 }
 0xe16   : > { %v10193_v23 = vadd.f32 %v20580_v57, %v10192_v9  ;;  %v10249_v39 = vmax.f32 %v10201_v27, 0.0  ;;  %15102 = vmatprep.subr.bf16.mxu0 %v15583_v38 }
 0xe17   : > { %v15060_v41 = vpop.f32.mrf.mxu0 }
 0xe18   : > { %v10248_v52 = vmax.f32 %v10193_v23, 0.0  ;;  %v10214_v13 = vadd.f32 %v15060_v41, %v20580_v57 }
 0xe19   : > { %v10205_v42 = vpop.f32.mrf.mxu0  ;;  %15103 = vmatpush3.bf16.msra.mxu0 %v15583_v38 }
 0xe1a   : > { %v10290_v35 = vpack.c.bf16 %v10249_v39, %v10248_v52  ;;  %10235 = vst [vmem:[%s20585_s26 + $0x78] sm:$0xff] %v10214_v13  ;;  %v10206_v11 = vadd.f32 %v20580_v57, %v10205_v42  ;;  %15104 = vmatprep.subr.bf16.mxu0 %v15584_v2 }
 0xe1b   : > { %v15061_v1 = vpop.f32.mrf.mxu0 }
 0xe1c   : > { %10234 = vst [vmem:[%s20585_s26 + $0x70] sm:$0xff] %v10206_v11  ;;  %v10217_v12 = vadd.f32 %v15061_v1, %v20580_v57  ;;  %10513 = vmatmul.mubr.bf16.gmra.mxu1 %v10290_v35  ;;  %15090 = vmatprep.mubr.bf16.mxu0 %v10290_v35 }
 0xe1d   : > { %v10208_v20 = vpop.f32.mrf.mxu0  ;;  %10522 = vmatprep.mubr.bf16.mxu1 %v22308_v31  ;;  %15105 = vmatpush3.bf16.msra.mxu0 %v15584_v2 }
 0xe1e   : > { %v10209_v17 = vadd.f32 %v20580_v57, %v10208_v20  ;;  %v10251_v59 = vmax.f32 %v10217_v12, 0.0  ;;  %v20697_v57 = vld [vmem:[%s16877_s4 + $0x10] sm:$0xff]  ;;  %15106 = vmatprep.subr.bf16.mxu0 %v15585_v58 }
 0xe1f   : > { %v10647_v19 = vpack.c.bf16 %v20700_v47, %v20697_v57 }
 0xe20   : > { %v10250_v28 = vmax.f32 %v10209_v17, 0.0 }
 0xe21   : > { %15107 = vmatpush3.bf16.msra.mxu0 %v15585_v58 }
 0xe22   : > { %v10291_v60 = vpack.c.bf16 %v10251_v59, %v10250_v28  ;;  %15108 = vmatprep.subr.bf16.mxu0 %v15586_v18 }
 0xe24   : > { %10523 = vmatmul.mubr.bf16.gmra.mxu1 %v10291_v60  ;;  %15091 = vmatmul.mubr.bf16.gmra.mxu0 %v10291_v60 }
 0xe25   : > { %10766 = vmatprep.mubr.bf16.mxu1 %v22308_v31  ;;  %15109 = vmatpush3.bf16.msra.mxu0 %v15586_v18 }
 0xe2c   : > { %10767 = vmatmul.mubr.bf16.vlgmr.msra.gmra.mxu1 %v10646_v55 }
 0xe2d   : > { %10776 = vmatprep.mubr.bf16.mxu1 %v22308_v31 }
 0xe34   : > { %10777 = vmatmul.mubr.bf16.gmra.mxu1 %v10647_v19 }
 0xe35   : > { %10786 = vmatprep.mubr.bf16.mxu1 %v22308_v31 }
 0xe3c   : > { %10787 = vmatmul.mubr.bf16.gmra.mxu1 %v10648_v3 }
 0xe3d   : > { %10796 = vmatprep.mubr.bf16.mxu1 %v22308_v31 }
 0xe44   : > { %10797 = vmatmul.mubr.bf16.gmra.mxu1 %v10649_v8 }
 0xe45   : > { %10806 = vmatprep.mubr.bf16.mxu1 %v22308_v31 }
 0xe4c   : > { %10807 = vmatmul.mubr.bf16.gmra.mxu1 %v10650_v44 }
 0xe4d   : > { %10816 = vmatprep.mubr.bf16.mxu1 %v22308_v31 }
 0xe54   : > { %10817 = vmatmul.mubr.bf16.gmra.mxu1 %v10651_v14 }
 0xe55   : > { %10826 = vmatprep.mubr.bf16.mxu1 %v22308_v31 }
 0xe5c   : > { %10827 = vmatmul.mubr.bf16.gmra.mxu1 %v10652_v21 }
 0xe5d   : > { %10836 = vmatprep.mubr.bf16.mxu1 %v22308_v31 }
 0xe64   : > { %10837 = vmatmul.mubr.bf16.gmra.mxu1 %v10653_v56 }
 0xea8   : > { %v10454_v5 = vpop.f32.mrf.mxu1 }
 0xeaa   : > { %v20782_v54 = vpop.f32.mrf.mxu1 }
 0xeac   : > { %v10458_v25 = vpop.f32.mrf.mxu1 }
 0xeae   : > { %v20784_v30 = vpop.f32.mrf.mxu1 }
 0xeb0   : > { %v10464_v46 = vpop.f32.mrf.mxu1 }
 0xeb2   : > { %v20786_v22 = vpop.f32.mrf.mxu1 }
 0xeb4   : > { %v10468_v36 = vpop.f32.mrf.mxu1 }
 0xeb6   : > { %v20788_v29 = vpop.f32.mrf.mxu1 }
 0xeb8   : > { %v10474_v40 = vpop.f32.mrf.mxu1 }
 0xeba   : > { %v20790_v50 = vpop.f32.mrf.mxu1 }
 0xebc   : > { %v10478_v16 = vpop.f32.mrf.mxu1 }
 0xebe   : > { %v20792_v24 = vpop.f32.mrf.mxu1 }
 0xec4   : > { %v10484_v62 = vpop.f32.mrf.mxu1 }
 0xec6   : > { %v10486_v51 = vpop.f32.mrf.mxu1 }
 0xec8   : > { %v10488_v27 = vpop.f32.mrf.mxu1 }
 0xeca   : > { %v20794_v9 = vpop.f32.mrf.mxu1 }
 0xecc   : > { %v20796_v23 = vpop.f32.mrf.mxu1 }
 0xece   : > { %v20798_v41 = vpop.f32.mrf.mxu1 }
 0xed0   : > { %v20800_v39 = vpop.f32.mrf.mxu1 }
 0xed2   : > { %v20802_v52 = vpop.f32.mrf.mxu1 }
 0xed4   : > { %v20804_v13 = vpop.f32.mrf.mxu1 }
 0xed6   : > { %v20806_v42 = vpop.f32.mrf.mxu1 }
 0xed8   : > { %v20808_v35 = vpop.f32.mrf.mxu1 }
 0xeda   : > { %v20810_v11 = vpop.f32.mrf.mxu1 }
 0xedc   : > { %v20812_v1 = vpop.f32.mrf.mxu1 }
 0xede   : > { %v20814_v12 = vpop.f32.mrf.mxu1 }
 0xee0   : > { %v20816_v20 = vpop.f32.mrf.mxu1 }
 0xee2   : > { %v20818_v17 = vpop.f32.mrf.mxu1 }
 0xee3   : > { %22383 = vst [vmem:[#allocation120_spill] sm:$0xff] %v20818_v17 }
 0xee4   : > { %v20820_v59 = vpop.f32.mrf.mxu1 }
 0xee6   : > { %v20822_v28 = vpop.f32.mrf.mxu1 }
 0xee8   : > { %v20824_v60 = vpop.f32.mrf.mxu1 }
 0xeea   : > { %v20826_v55 = vpop.f32.mrf.mxu1 }
 0xeeb   : > { %22384 = vst [vmem:[#allocation47_spill] sm:$0xff] %v20826_v55 }
 0xeec   : > { %v10768_v19 = vpop.f32.mrf.mxu1 }
 0xeed   : > { %v10847_v3 = vadd.f32 %v10768_v19, %v10454_v5 }
 0xeee   : > { %v20828_v8 = vpop.f32.mrf.mxu1 }
 0xeef   : > { %v13601_v44 = vmul.f32 -1.442695, %v10847_v3 }
 0xef0   : > { %v10772_v14 = vpop.f32.mrf.mxu1 }
 0xef1   : > { %16235 = vpow2.f32 %v13601_v44  ;;  %v10848_v21 = vadd.f32 %v10772_v14, %v10458_v25 }
 0xef2   : > { %v20830_v56 = vpop.f32.mrf.mxu1 }
 0xef3   : > { %v13602_v63 = vmul.f32 -1.442695, %v10848_v21 }
 0xef4   : > { %v10778_v45 = vpop.f32.mrf.mxu1 }
 0xef5   : > { %v10849_v33 = vadd.f32 %v10778_v45, %v10464_v46  ;;  %16237 = vpow2.f32 %v13602_v63 }
 0xef6   : > { %v20832_v48 = vpop.f32.mrf.mxu1 }
 0xef7   : > { %v13603_v38 = vmul.f32 -1.442695, %v10849_v33 }
 0xef8   : > { %v10782_v2 = vpop.f32.mrf.mxu1 }
 0xef9   : > { %v10850_v58 = vadd.f32 %v10782_v2, %v10468_v36  ;;  %16239 = vpow2.f32 %v13603_v38 }
 0xefa   : > { %v20834_v18 = vpop.f32.mrf.mxu1 }
 0xefb   : > { %v13604_v5 = vmul.f32 -1.442695, %v10850_v58 }
 0xefc   : > { %v10788_v19 = vpop.f32.mrf.mxu1 }
 0xefd   : > { %v10851_v3 = vadd.f32 %v10788_v19, %v10474_v40  ;;  %16241 = vpow2.f32 %v13604_v5 }
 0xefe   : > { %v16236_v55 = vpop.eup %16235  ;;  %v20836_v25 = vpop.f32.mrf.mxu1 }
 0xeff   : > { %v13605_v44 = vmul.f32 -1.442695, %v10851_v3  ;;  %v10911_v14 = vadd.f32 1.0, %v16236_v55 }
 0xf00   : > { %v10792_v21 = vpop.f32.mrf.mxu1 }
 0xf01   : > { %v10852_v46 = vadd.f32 %v10792_v21, %v10478_v16  ;;  %16243 = vpow2.f32 %v13605_v44 }
 0xf02   : > { %v20838_v63 = vpop.f32.mrf.mxu1  ;;  %v16238_v45 = vpop.eup %16237  ;;  %16245 = vrcp.f32 %v10911_v14 }
 0xf03   : > { %v10912_v36 = vadd.f32 1.0, %v16238_v45  ;;  %v13606_v33 = vmul.f32 -1.442695, %v10852_v46 }
 0xf04   : > { %v10798_v38 = vpop.f32.mrf.mxu1 }
 0xf05   : > { %v10853_v2 = vadd.f32 %v10798_v38, %v10484_v62  ;;  %16247 = vrcp.f32 %v10912_v36 }
 0xf06   : > { %v10800_v58 = vpop.f32.mrf.mxu1  ;;  %v16240_v40 = vpop.eup %16239  ;;  %16249 = vpow2.f32 %v13606_v33 }
 0xf07   : > { %v20840_v19 = vadd.f32 %v10800_v58, %v10486_v51  ;;  %v10913_v5 = vadd.f32 1.0, %v16240_v40  ;;  %v13607_v3 = vmul.f32 -1.442695, %v10853_v2 }
 0xf08   : > { %v10802_v55 = vpop.f32.mrf.mxu1 }
 0xf09   : > { %v10854_v17 = vadd.f32 %v10802_v55, %v10488_v27  ;;  %16251 = vrcp.f32 %v10913_v5 }
 0xf0a   : > { %v20842_v16 = vpop.f32.mrf.mxu1  ;;  %v16242_v21 = vpop.eup %16241  ;;  %16253 = vpow2.f32 %v13607_v3 }
 0xf0b   : > { %v10914_v44 = vadd.f32 1.0, %v16242_v21  ;;  %v13608_v14 = vmul.f32 -1.442695, %v10854_v17 }
 0xf0c   : > { %v10808_v46 = vpop.f32.mrf.mxu1 }
 0xf0d   : > { %v10855_v62 = vadd.f32 %v10808_v46, %v20796_v23  ;;  %16255 = vrcp.f32 %v10914_v44 }
 0xf0e   : > { %v10810_v45 = vpop.f32.mrf.mxu1  ;;  %v16244_v33 = vpop.eup %16243  ;;  %16257 = vpow2.f32 %v13608_v14 }
 0xf0f   : > { %v13609_v36 = vmul.f32 -1.442695, %v10855_v62  ;;  %v20846_v51 = vadd.f32 %v10810_v45, %v20798_v41  ;;  %v16246_v27 = vpop.eup %16245  ;;  %v10915_v2 = vadd.f32 1.0, %v16244_v33 }
 0xf10   : > { %v10812_v38 = vpop.f32.mrf.mxu1  ;;  %v11094_v23 = vmul.f32 %v20688_v0, %v16246_v27 }
 0xf11   : > { %16259 = vpow2.f32 %v13609_v36  ;;  %v10856_v58 = vadd.f32 %v10812_v38, %v20800_v39 }
 0xf12   : > { %v20849_v40 = vpop.f32.mrf.mxu1  ;;  %v16248_v17 = vpop.eup %16247  ;;  %16261 = vrcp.f32 %v10915_v2 }
 0xf13   : > { %v13610_v5 = vmul.f32 -1.442695, %v10856_v58  ;;  %v11095_v55 = vmul.f32 %v20691_v49, %v16248_v17  ;;  %v16250_v21 = vpop.eup %16249 }
 0xf14   : > { %v10818_v3 = vpop.f32.mrf.mxu1  ;;  %v10916_v44 = vadd.f32 1.0, %v16250_v21 }
 0xf15   : > { %v10857_v41 = vadd.f32 %v10818_v3, %v20804_v13  ;;  %16263 = vpow2.f32 %v13610_v5  ;;  %v11126_v46 = vpack.c.bf16 %v11095_v55, %v11094_v23 }
 0xf16   : > { %v10820_v14 = vpop.f32.mrf.mxu1  ;;  %v16252_v45 = vpop.eup %16251  ;;  %16265 = vrcp.f32 %v10916_v44 }
 0xf17   : > { %v13611_v62 = vmul.f32 -1.442695, %v10857_v41  ;;  %v20855_v39 = vadd.f32 %v10820_v14, %v20806_v42  ;;  %15110 = vmatprep.mubr.bf16.mxu0 %v11126_v46  ;;  %v16254_v33 = vpop.eup %16253  ;;  %v11096_v5 = vmul.f32 %v20697_v57, %v16252_v45 }
 0xf18   : > { %v10822_v36 = vpop.f32.mrf.mxu1  ;;  %v10917_v27 = vadd.f32 1.0, %v16254_v33 }
 0xf19   : > { %v10858_v38 = vadd.f32 %v10822_v36, %v20808_v35  ;;  %16267 = vpow2.f32 %v13611_v62 }
 0xf1a   : > { %v20858_v2 = vpop.f32.mrf.mxu1  ;;  %v16256_v13 = vpop.eup %16255  ;;  %16269 = vrcp.f32 %v10917_v27 }
 0xf1b   : > { %v13612_v58 = vmul.f32 -1.442695, %v10858_v38  ;;  %v11097_v3 = vmul.f32 %v20700_v47, %v16256_v13  ;;  %v16258_v42 = vpop.eup %16257 }
 0xf1c   : > { %v10828_v17 = vpop.f32.mrf.mxu1  ;;  %v10918_v21 = vadd.f32 1.0, %v16258_v42 }
 0xf1d   : > { %v10859_v23 = vadd.f32 %v10828_v17, %v20812_v1  ;;  %16271 = vpow2.f32 %v13612_v58  ;;  %v11127_v35 = vpack.c.bf16 %v11097_v3, %v11096_v5 }
 0xf1e   : > { %v16260_v55 = vpop.eup %16259  ;;  %v10830_v41 = vpop.f32.mrf.mxu1  ;;  %16273 = vrcp.f32 %v10918_v21 }
 0xf1f   : > { %v13613_v44 = vmul.f32 -1.442695, %v10859_v23  ;;  %v10919_v14 = vadd.f32 1.0, %v16260_v55  ;;  %v20864_v46 = vadd.f32 %v10830_v41, %v20814_v12  ;;  %15111 = vmatmul.mubr.bf16.vlgmr.msra.gmra.mxu0 %v11127_v35  ;;  %v16262_v36 = vpop.eup %16261 }
 0xf20   : > { %v10832_v62 = vpop.f32.mrf.mxu1  ;;  %v11098_v12 = vmul.f32 %v20709_v53, %v16262_v36 }
 0xf21   : > { %v10860_v45 = vadd.f32 %v10832_v62, %v20816_v20  ;;  %16275 = vpow2.f32 %v13613_v44 }
 0xf22   : > { %v20867_v33 = vpop.f32.mrf.mxu1  ;;  %v16264_v38 = vpop.eup %16263  ;;  %16277 = vrcp.f32 %v10919_v14 }
 0xf23   : > { %v10920_v1 = vadd.f32 1.0, %v16264_v38  ;;  %v13614_v27 = vmul.f32 -1.442695, %v10860_v45  ;;  %v16266_v58 = vpop.eup %16265 }
 0xf24   : > { %v10838_v13 = vpop.f32.mrf.mxu1  ;;  %v11099_v3 = vmul.f32 %v20706_v4, %v16266_v58 }
 0xf25   : > { %v10861_v17 = vadd.f32 %v10838_v13, %v20820_v59  ;;  %16279 = vrcp.f32 %v10920_v1 }
 0xf26   : > { %v10840_v5 = vpop.f32.mrf.mxu1  ;;  %v16268_v42 = vpop.eup %16267  ;;  %16281 = vpow2.f32 %v13614_v27  ;;  %v11128_v21 = vpack.c.bf16 %v11099_v3, %v11098_v12 }
 0xf27   : > { %v13615_v20 = vmul.f32 -1.442695, %v10861_v17  ;;  %v10921_v23 = vadd.f32 1.0, %v16268_v42  ;;  %v20873_v55 = vadd.f32 %v10840_v5, %v20822_v28  ;;  %v16270_v44 = vpop.eup %16269 }
 0xf28   : > { %v10842_v41 = vpop.f32.mrf.mxu1  ;;  %15114 = vmatprep.mubr.bf16.mxu0 %v11128_v21  ;;  %v11100_v36 = vmul.f32 %v20718_v61, %v16270_v44 }
 0xf29   : > { %v10862_v35 = vadd.f32 %v10842_v41, %v20824_v60  ;;  %16283 = vrcp.f32 %v10921_v23 }
 0xf2a   : > { %v16272_v59 = vpop.eup %16271  ;;  %16285 = vpow2.f32 %v13615_v20 }
 0xf2b   : > { %v10922_v14 = vadd.f32 1.0, %v16272_v59  ;;  %v13616_v62 = vmul.f32 -1.442695, %v10862_v35  ;;  %v16274_v45 = vpop.eup %16273 }
 0xf2c   : > { %v11101_v38 = vmul.f32 %v20715_v43, %v16274_v45 }
 0xf2d   : > { %16287 = vrcp.f32 %v10922_v14 }
 0xf2e   : > { %v16276_v1 = vpop.eup %16275  ;;  %16289 = vpow2.f32 %v13616_v62  ;;  %v11129_v28 = vpack.c.bf16 %v11101_v38, %v11100_v36 }
 0xf2f   : > { %v16278_v27 = vpop.eup %16277  ;;  %v10923_v13 = vadd.f32 1.0, %v16276_v1 }
 0xf30   : > { %15115 = vmatmul.mubr.bf16.gmra.mxu0 %v11129_v28  ;;  %v11102_v58 = vmul.f32 %v20727_v7, %v16278_v27 }
 0xf31   : > { %16291 = vrcp.f32 %v10923_v13 }
 0xf32   : > { %v16280_v60 = vpop.eup %16279 }
 0xf33   : > { %v11103_v17 = vmul.f32 %v20724_v15, %v16280_v60  ;;  %v16282_v5 = vpop.eup %16281 }
 0xf34   : > { %v10924_v12 = vadd.f32 1.0, %v16282_v5 }
 0xf35   : > { %v11130_v3 = vpack.c.bf16 %v11103_v17, %v11102_v58  ;;  %v15080_v17 = vpop.f32.mrf.mxu0 }
 0xf36   : > { %v16284_v42 = vpop.eup %16283  ;;  %16293 = vrcp.f32 %v10924_v12 }
 0xf37   : > { %15118 = vmatprep.mubr.bf16.mxu0 %v11130_v3  ;;  %v16286_v20 = vpop.eup %16285  ;;  %v11104_v41 = vmul.f32 %v20733_v6, %v16284_v42  ;;  %v20887_v5 = vpop.f32.mrf.mxu0 }
 0xf38   : > { %v10925_v23 = vadd.f32 1.0, %v16286_v20  ;;  %v10959_v20 = vadd.f32 %v20828_v8, %v20782_v54 }
 0xf39   : > { %v20889_v12 = vpop.f32.mrf.mxu0 }
 0xf3a   : > { %v16288_v21 = vpop.eup %16287  ;;  %16295 = vrcp.f32 %v10925_v23 }
 0xf3b   : > { %v11105_v35 = vmul.f32 %v20736_v37, %v16288_v21  ;;  %v16290_v44 = vpop.eup %16289  ;;  %v20891_v3 = vpop.f32.mrf.mxu0  ;;  %v10960_v21 = vadd.f32 %v20830_v56, %v20784_v30 }
 0xf3c   : > { %v10926_v59 = vadd.f32 1.0, %v16290_v44  ;;  %v10961_v44 = vadd.f32 %v20832_v48, %v20786_v22 }
 0xf3d   : > { %v11131_v14 = vpack.c.bf16 %v11105_v35, %v11104_v41 }
 0xf3e   : > { %16297 = vrcp.f32 %v10926_v59  ;;  %v16292_v62 = vpop.eup %16291 }
 0xf3f   : > { %15119 = vmatmul.mubr.bf16.gmra.mxu0 %v11131_v14  ;;  %v11106_v36 = vmul.f32 %v20742_v32, %v16292_v62  ;;  %v10962_v62 = vadd.f32 %v20834_v18, %v20788_v29  ;;  %v10964_v29 = vadd.f32 %v20838_v63, %v20792_v24 }
 0xf43   : > { %v16294_v45 = vpop.eup %16293 }
 0xf44   : > { %v11107_v38 = vmul.f32 %v20745_v10, %v16294_v45  ;;  %v20893_v10 = vpop.f32.mrf.mxu0 }
 0xf46   : > { %v11132_v1 = vpack.c.bf16 %v11107_v38, %v11106_v36  ;;  %v20895_v42 = vpop.f32.mrf.mxu0 }
 0xf47   : > { %v16296_v28 = vpop.eup %16295 }
 0xf48   : > { %15122 = vmatprep.mubr.bf16.mxu0 %v11132_v1  ;;  %v11108_v13 = vmul.f32 %v20751_v26, %v16296_v28  ;;  %v20899_v23 = vpop.f32.mrf.mxu0  ;;  %v10963_v1 = vadd.f32 %v20836_v25, %v20790_v50 }
 0xf4a   : > { %v20909_v35 = vpop.f32.mrf.mxu0 }
 0xf4b   : > { %v16298_v27 = vpop.eup %16297 }
 0xf4c   : > { %v11109_v60 = vmul.f32 %v20754_v34, %v16298_v27  ;;  %v20904_v34 = vld [vmem:[%s21801_s11] ss:$0 sm:$0xff]  ;;  %v20914_v54 = vpop.f32.mrf.mxu0  ;;  %v10966_v27 = vadd.f32 %v20842_v16, %v20794_v9 }
 0xf4d   : > { %v10982_v41 = vsub.f32 %v10959_v20, %v20904_v34  ;;  %v10983_v59 = vsub.f32 %v10960_v21, %v20904_v34  ;;  %v10984_v14 = vsub.f32 %v10961_v44, %v20904_v34  ;;  %v10985_v56 = vsub.f32 %v10962_v62, %v20904_v34 }
 0xf4e   : > { %v11133_v58 = vpack.c.bf16 %v11109_v60, %v11108_v13  ;;  %v20919_v36 = vpop.f32.mrf.mxu0  ;;  %v10986_v18 = vsub.f32 %v10963_v1, %v20904_v34  ;;  %v10988_v50 = vsub.f32 %v20840_v19, %v20904_v34  ;;  %v10990_v1 = vsub.f32 %v20846_v51, %v20904_v34 }
 0xf4f   : > { %v13618_v8 = vmul.f32 -1.442695, %v10982_v41  ;;  %v13619_v45 = vmul.f32 -1.442695, %v10983_v59  ;;  %v13620_v30 = vmul.f32 -1.442695, %v10984_v14  ;;  %v10989_v41 = vsub.f32 %v10966_v27, %v20904_v34 }
 0xf50   : > { %15123 = vmatmul.mubr.bf16.gmra.mxu0 %v11133_v58  ;;  %v20922_v38 = vpop.f32.mrf.mxu0  ;;  %v13621_v22 = vmul.f32 -1.442695, %v10985_v56  ;;  %v10987_v58 = vsub.f32 %v10964_v29, %v20904_v34  ;;  %v13622_v21 = vmul.f32 -1.442695, %v10986_v18  ;;  %v13624_v9 = vmul.f32 -1.442695, %v10988_v50 }
 0xf51   : > { %11731 = vmatprep.mubr.bf16.mxu0 %v22308_v31  ;;  %16299 = vpow2.f32 %v13618_v8  ;;  %v13625_v16 = vmul.f32 -1.442695, %v10989_v41 }
 0xf52   : > { %16301 = vpow2.f32 %v13619_v45  ;;  %v20924_v48 = vpop.f32.mrf.mxu0  ;;  %v13623_v24 = vmul.f32 -1.442695, %v10987_v58  ;;  %v10968_v45 = vadd.f32 %v20849_v40, %v20802_v52  ;;  %v10992_v52 = vsub.f32 %v20855_v39, %v20904_v34 }
 0xf53   : > { %16303 = vpow2.f32 %v13620_v30  ;;  %v10970_v58 = vadd.f32 %v20858_v2, %v20810_v11 }
 0xf54   : > { %v20928_v28 = vpop.f32.mrf.mxu0  ;;  %16305 = vpow2.f32 %v13621_v22  ;;  %v10991_v27 = vsub.f32 %v10968_v45, %v20904_v34  ;;  %v13628_v50 = vmul.f32 -1.442695, %v10992_v52 }
 0xf55   : > { %16307 = vpow2.f32 %v13622_v21 }
 0xf56   : > { %v20935_v60 = vpop.f32.mrf.mxu0 }
 0xf58   : > { %v20941_v44 = vpop.f32.mrf.mxu0 }
 0xf5a   : > { %v20943_v8 = vpop.f32.mrf.mxu0 }
 0xf5e   : > { %v16300_v13 = vpop.eup %16299 }
 0xf5f   : > { %v16302_v20 = vpop.eup %16301  ;;  %v11046_v25 = vadd.f32 1.0, %v16300_v13 }
 0xf60   : > { %v16304_v63 = vpop.eup %16303  ;;  %v11047_v59 = vadd.f32 1.0, %v16302_v20  ;;  %v13627_v20 = vmul.f32 -1.442695, %v10991_v27  ;;  %v10994_v27 = vsub.f32 %v20864_v46, %v20904_v34 }
 0xf61   : > { %16309 = vrcp.f32 %v11046_v25  ;;  %v11048_v14 = vadd.f32 1.0, %v16304_v63  ;;  %v16306_v62 = vpop.eup %16305 }
 0xf62   : > { %16311 = vpow2.f32 %v13623_v24  ;;  %v11049_v56 = vadd.f32 1.0, %v16306_v62 }
 0xf63   : > { %16313 = vrcp.f32 %v11047_v59 }
 0xf64   : > { %16315 = vpow2.f32 %v13624_v9 }
 0xf65   : > { %16317 = vpow2.f32 %v13625_v16  ;;  %v10996_v16 = vsub.f32 %v20873_v55, %v20904_v34 }
 0xf66   : > { %16319 = vrcp.f32 %v11048_v14 }
 0xf67   : > { %v13632_v52 = vmul.f32 -1.442695, %v10996_v16 }
 0xfdf   : > { %v15112_v19 = vpop.f32.mrf.mxu0 }
 0xfe0   : > { %v11281_v30 = vadd.f32 %v15112_v19, %v15080_v17  ;;  %v13626_v17 = vmul.f32 -1.442695, %v10990_v1 }
 0xfe1   : > { %v11216_v22 = vpop.f32.mrf.mxu0 }
 0xfe2   : > { %v11279_v29 = vadd.f32 %v11216_v22, %v20887_v5  ;;  %16321 = vtanh.f32 %v11281_v30  ;;  %v16308_v5 = vpop.eup %16307 }
 0xfe3   : > { %v15113_v18 = vpop.f32.mrf.mxu0  ;;  %v16310_v21 = vpop.eup %16309  ;;  %v11050_v24 = vadd.f32 1.0, %v16308_v5 }
 0xfe4   : > { %16323 = vtanh.f32 %v11279_v29  ;;  %v11282_v13 = vadd.f32 %v15113_v18, %v20889_v12  ;;  %v16312_v25 = vpop.eup %16311  ;;  %v10993_v12 = vsub.f32 %v10970_v58, %v20904_v34 }
 0xfe5   : > { %16325 = vrcp.f32 %v11049_v56  ;;  %v11219_v40 = vpop.f32.mrf.mxu0  ;;  %v16314_v41 = vpop.eup %16313  ;;  %v11051_v59 = vadd.f32 1.0, %v16312_v25  ;;  %v22386_v25 = vld [vmem:[#allocation47_spill] sm:$0xff] }
 0xfe6   : > { %v11280_v51 = vadd.f32 %v11219_v40, %v20891_v3  ;;  %16327 = vtanh.f32 %v11282_v13  ;;  %v16316_v39 = vpop.eup %16315  ;;  %v13629_v2 = vmul.f32 -1.442695, %v10993_v12  ;;  %v11311_v3 = vsub.f32 1.0, %v16310_v21  ;;  %v22385_v13 = vld [vmem:[#allocation120_spill] sm:$0xff]  ;;  %v10844_v40 = vpop.f32.mrf.mxu1 }
 0xfe7   : > { %v16318_v63 = vpop.eup %16317  ;;  %v11052_v9 = vadd.f32 1.0, %v16316_v39  ;;  %v11312_v56 = vsub.f32 1.0, %v16314_v41  ;;  %v10972_v55 = vadd.f32 %v20867_v33, %v22385_v13  ;;  %v10974_v33 = vadd.f32 %v10844_v40, %v22386_v25 }
 0xfe8   : > { %16329 = vtanh.f32 %v11280_v51  ;;  %v16320_v11 = vpop.eup %16319  ;;  %v11053_v62 = vadd.f32 1.0, %v16318_v63  ;;  %v11327_v29 = vmul.f32 %v20688_v0, %v11311_v3  ;;  %v13630_v39 = vmul.f32 -1.442695, %v10994_v27 }
 0xfe9   : > { %16331 = vpow2.f32 %v13626_v17  ;;  %v11313_v30 = vsub.f32 1.0, %v16320_v11  ;;  %v11328_v46 = vmul.f32 %v20691_v49, %v11312_v56  ;;  %v10995_v63 = vsub.f32 %v10972_v55, %v20904_v34 }
 0xfea   : > { %16333 = vpow2.f32 %v13627_v20  ;;  %v10997_v16 = vsub.f32 %v10974_v33, %v20904_v34 }
 0xfeb   : > { %16335 = vpow2.f32 %v13628_v50 }
 0xfec   : > { %16337 = vrcp.f32 %v11050_v24  ;;  %v13633_v56 = vmul.f32 -1.442695, %v10997_v16 }
 0xfed   : > { %16339 = vrcp.f32 %v11051_v59 }
 0xfee   : > { %16341 = vpow2.f32 %v13629_v2 }
 0xfef   : > { %v16322_v14 = vpop.eup %16321  ;;  %16343 = vrcp.f32 %v11052_v9 }
 0xff0   : > { %v15116_v45 = vpop.f32.mrf.mxu0  ;;  %16345 = vrcp.f32 %v11053_v62 }
 0xff1   : > { %v16324_v19 = vpop.eup %16323  ;;  %v11285_v1 = vadd.f32 %v15116_v45, %v20893_v10  ;;  %v11345_v10 = vmul.f32 %v16322_v14, %v16320_v11  ;;  %v13631_v14 = vmul.f32 -1.442695, %v10995_v63 }
 0xff2   : > { %v16326_v22 = vpop.eup %16325  ;;  %v11343_v18 = vmul.f32 %v16324_v19, %v16310_v21  ;;  %v11232_v17 = vpop.f32.mrf.mxu0  ;;  %v11329_v21 = vmul.f32 %v20697_v57, %v11313_v30 }
 0xff3   : > { %v16328_v58 = vpop.eup %16327  ;;  %v11283_v51 = vadd.f32 %v11232_v17, %v20895_v42  ;;  %16347 = vtanh.f32 %v11285_v1  ;;  %v11314_v50 = vsub.f32 1.0, %v16326_v22 }
 0xff4   : > { %v20967_v5 = vadd.f32 %v11343_v18, %v11327_v29  ;;  %v15117_v0 = vpop.f32.mrf.mxu0  ;;  %v20976_v57 = vadd.f32 %v11345_v10, %v11329_v21  ;;  %v11346_v2 = vmul.f32 %v16328_v58, %v16326_v22 }
 0xff5   : > { %v16330_v20 = vpop.eup %16329  ;;  %16349 = vtanh.f32 %v11283_v51  ;;  %v11286_v12 = vadd.f32 %v15117_v0, %v20899_v23 }
 0xff6   : > { %11375 = vadd.xlane.f32.xlu0 %v20967_v5  ;;  %v11344_v24 = vmul.f32 %v16330_v20, %v16314_v41  ;;  %v16332_v42 = vpop.eup %16331  ;;  %16351 = vpow2.f32 %v13632_v52  ;;  %v11235_v59 = vpop.f32.mrf.mxu0  ;;  %v11330_v41 = vmul.f32 %v20700_v47, %v11314_v50 }
 0xff7   : > { %v11284_v11 = vadd.f32 %v11235_v59, %v20909_v35  ;;  %v16334_v3 = vpop.eup %16333  ;;  %16353 = vtanh.f32 %v11286_v12  ;;  %v11054_v23 = vadd.f32 1.0, %v16332_v42 }
 0xff8   : > { %v20978_v49 = vadd.f32 %v11344_v24, %v11328_v46  ;;  %v16336_v9 = vpop.eup %16335  ;;  %v11055_v62 = vadd.f32 1.0, %v16334_v3  ;;  %v20984_v19 = vadd.f32 %v11346_v2, %v11330_v41 }
 0xff9   : > { %16355 = vtanh.f32 %v11284_v11  ;;  %v16338_v35 = vpop.eup %16337  ;;  %v11056_v45 = vadd.f32 1.0, %v16336_v9 }
 0xffa   : > { %11379 = vadd.xlane.f32.xlu0 %v20976_v57  ;;  %11377 = vadd.xlane.f32.xlu1 %v20978_v49  ;;  %16357 = vpow2.f32 %v13630_v39  ;;  %v16340_v30 = vpop.eup %16339  ;;  %v11315_v1 = vsub.f32 1.0, %v16338_v35 }
 0xffb   : > { %16359 = vrcp.f32 %v11054_v23  ;;  %v16342_v34 = vpop.eup %16341  ;;  %v11316_v51 = vsub.f32 1.0, %v16340_v30 }
 0xffc   : > { %16361 = vpow2.f32 %v13631_v14  ;;  %v16344_v29 = vpop.eup %16343  ;;  %v11057_v55 = vadd.f32 1.0, %v16342_v34  ;;  %v11331_v58 = vmul.f32 %v20709_v53, %v11315_v1 }
 0xffd   : > { %16363 = vrcp.f32 %v11055_v62  ;;  %v16346_v18 = vpop.eup %16345  ;;  %v11332_v12 = vmul.f32 %v20706_v4, %v11316_v51 }
 0xffe   : > { %11381 = vadd.xlane.f32.xlu0 %v20984_v19  ;;  %16365 = vrcp.f32 %v11056_v45  ;;  %v11318_v24 = vsub.f32 1.0, %v16346_v18 }
 0xfff   : > { %v15120_v22 = vpop.f32.mrf.mxu0  ;;  %16367 = vpow2.f32 %v13633_v56 }
0x1000   : > { %v11289_v47 = vadd.f32 %v15120_v22, %v20914_v54  ;;  %v16348_v13 = vpop.eup %16347  ;;  %v11317_v54 = vsub.f32 1.0, %v16344_v29  ;;  %v11334_v4 = vmul.f32 %v20715_v43, %v11318_v24 }
0x1001   : > { %v11248_v27 = vpop.f32.mrf.mxu0 }
0x1002   : > { %v11287_v52 = vadd.f32 %v11248_v27, %v20919_v36  ;;  %v16350_v40 = vpop.eup %16349  ;;  %16369 = vtanh.f32 %v11289_v47  ;;  %v11349_v36 = vmul.f32 %v16348_v13, %v16344_v29  ;;  %v11333_v53 = vmul.f32 %v20718_v61, %v11317_v54 }
0x1003   : > { %v15121_v17 = vpop.f32.mrf.mxu0  ;;  %v16352_v10 = vpop.eup %16351  ;;  %v11347_v0 = vmul.f32 %v16350_v40, %v16338_v35 }
0x1004   : > { %16371 = vtanh.f32 %v11287_v52  ;;  %v11290_v20 = vadd.f32 %v15121_v17, %v20922_v38  ;;  %v16354_v46 = vpop.eup %16353  ;;  %v11060_v39 = vadd.f32 1.0, %v16352_v10  ;;  %v20997_v63 = vadd.f32 %v11349_v36, %v11333_v53 }
0x1005   : > { %v11251_v21 = vpop.f32.mrf.mxu0  ;;  %16373 = vrcp.f32 %v11057_v55  ;;  %v20992_v25 = vadd.f32 %v11347_v0, %v11331_v58 }
0x1006   : > { %v11288_v50 = vadd.f32 %v11251_v21, %v20924_v48  ;;  %v16356_v33 = vpop.eup %16355  ;;  %16375 = vtanh.f32 %v11290_v20  ;;  %v11350_v48 = vmul.f32 %v16354_v46, %v16346_v18 }
0x1007   : > { %11383 = vadd.xlane.f32.xlu0 %v20992_v25  ;;  %v11348_v38 = vmul.f32 %v16356_v33, %v16340_v30  ;;  %v16358_v42 = vpop.eup %16357 }
0x1008   : > { %16377 = vtanh.f32 %v11288_v50  ;;  %v16360_v11 = vpop.eup %16359  ;;  %v11058_v3 = vadd.f32 1.0, %v16358_v42  ;;  %v21004_v23 = vadd.f32 %v11350_v48, %v11334_v4 }
0x1009   : > { %v20999_v59 = vadd.f32 %v11348_v38, %v11332_v12  ;;  %v16362_v2 = vpop.eup %16361  ;;  %16379 = vrcp.f32 %v11060_v39  ;;  %v11319_v16 = vsub.f32 1.0, %v16360_v11 }
0x100a   : > { %v16364_v9 = vpop.eup %16363  ;;  %v11059_v14 = vadd.f32 1.0, %v16362_v2  ;;  %16381 = vrcp.f32 %v11058_v3  ;;  %v16603_v3 = vld [vmem:[%s16877_s4 + $0x68] sm:$0xff] }
0x100b   : > { %11387 = vadd.xlane.f32.xlu0 %v20997_v63  ;;  %11385 = vadd.xlane.f32.xlu1 %v20999_v59  ;;  %v16366_v61 = vpop.eup %16365  ;;  %v11320_v56 = vsub.f32 1.0, %v16364_v9  ;;  %v11335_v43 = vmul.f32 %v20727_v7, %v11319_v16 }
0x100c   : > { %v16368_v41 = vpop.eup %16367  ;;  %v11321_v30 = vsub.f32 1.0, %v16366_v61  ;;  %16383 = vrcp.f32 %v11059_v14 }
0x100d   : > { %v11061_v29 = vadd.f32 1.0, %v16368_v41 }
0x100e   : > { %v11337_v17 = vmul.f32 %v20733_v6, %v11321_v30 }
0x100f   : > { %v16370_v35 = vpop.eup %16369  ;;  %11389 = vadd.xlane.f32.xlu1 %v21004_v23 }
0x1010   : > { %v15124_v45 = vpop.f32.mrf.mxu0  ;;  %v11353_v55 = vmul.f32 %v16370_v35, %v16366_v61  ;;  %v15587_v35 = vld [vmem:[%s21802_s12 + $0x70] ss:$8 sps:$4 sm:$0xff]  }
0x1011   : > { %v16372_v62 = vpop.eup %16371  ;;  %v11293_v34 = vadd.f32 %v15124_v45, %v20928_v28  ;;  %v11336_v28 = vmul.f32 %v20724_v15, %v11320_v56 }
0x1012   : > { %v11351_v22 = vmul.f32 %v16372_v62, %v16360_v11  ;;  %v16374_v1 = vpop.eup %16373  ;;  %v11264_v47 = vpop.f32.mrf.mxu0  ;;  %v21017_v20 = vadd.f32 %v11353_v55, %v11337_v17  ;;  %v15589_v62 = vld [vmem:[%s21802_s12 + $0x74] ss:$8 sps:$4 sm:$0xff]  }
0x1013   : > { %v16376_v18 = vpop.eup %16375  ;;  %16385 = vtanh.f32 %v11293_v34  ;;  %v11291_v27 = vadd.f32 %v11264_v47, %v20935_v60  ;;  %v11322_v51 = vsub.f32 1.0, %v16374_v1  ;;  %11699 = vmatprep.subr.bf16.mxu0 %v15589_v62 }
0x1014   : > { %v21010_v13 = vadd.f32 %v11351_v22, %v11335_v43  ;;  %v15125_v40 = vpop.f32.mrf.mxu0  ;;  %v11354_v54 = vmul.f32 %v16376_v18, %v16374_v1  ;;  %11700 = vmatpush1.bf16.msra.mxu0 %v15587_v35  ;;  %v15604_v35 = vld [vmem:[%s21802_s12 + $0x24] ss:$8 sps:$4 sm:$0xff]  }
0x1015   : > { %v16378_v52 = vpop.eup %16377  ;;  %16387 = vtanh.f32 %v11291_v27  ;;  %v11294_v7 = vadd.f32 %v15125_v40, %v20941_v44  ;;  %v11338_v15 = vmul.f32 %v20736_v37, %v11322_v51  ;;  %v15592_v51 = vld [vmem:[%s21802_s12 + $0x64] ss:$8 sps:$4 sm:$0xff]  }
0x1016   : > { %11391 = vadd.xlane.f32.xlu0 %v21010_v13  ;;  %v11352_v58 = vmul.f32 %v16378_v52, %v16364_v9  ;;  %16389 = vrcp.f32 %v11061_v29  ;;  %v11267_v10 = vpop.f32.mrf.mxu0  ;;  %v16380_v6 = vpop.eup %16379  ;;  %11701 = vmatprep.subr.bf16.mxu0 %v15592_v51  ;;  %v15608_v51 = vld [vmem:[%s21802_s12] ss:$8 sps:$4 sm:$0xff]  }
0x1017   : > { %v11292_v60 = vadd.f32 %v11267_v10, %v20943_v8  ;;  %16391 = vtanh.f32 %v11294_v7  ;;  %v21024_v44 = vadd.f32 %v11354_v54, %v11338_v15  ;;  %v16382_v21 = vpop.eup %16381  ;;  %v11325_v8 = vsub.f32 1.0, %v16380_v6 }
0x1018   : > { %v21019_v0 = vadd.f32 %v11352_v58, %v11336_v28  ;;  %v11323_v50 = vsub.f32 1.0, %v16382_v21 }
0x1019   : > { %16393 = vtanh.f32 %v11292_v60  ;;  %v16384_v46 = vpop.eup %16383  ;;  %v11341_v33 = vmul.f32 %v20751_v26, %v11325_v8  ;;  %v15590_v60 = vld [vmem:[%s21802_s12 + $0x60] ss:$8 sps:$4 sm:$0xff]  }
0x101a   : > { %11395 = vadd.xlane.f32.xlu0 %v21017_v20  ;;  %11393 = vadd.xlane.f32.xlu1 %v21019_v0  ;;  %v11339_v24 = vmul.f32 %v20742_v32, %v11323_v50  ;;  %v11324_v39 = vsub.f32 1.0, %v16384_v46  ;;  %v16604_v32 = vld [vmem:[%s16877_s4 + $0x78] sm:$0xff]  ;;  %s21617_s4 = scalar_lea.hbm %s21811_s21, %s21960_s28 }
0x101b   : > { %11702 = vmatpush1.bf16.msra.mxu0 %v15590_v60 }
0x101c   : > { %v11340_v4 = vmul.f32 %v16603_v3, %v11324_v39 }
0x101e   : > { %11397 = vadd.xlane.f32.xlu1 %v21024_v44 }
0x1020   : > { %v16386_v36 = vpop.eup %16385 }
0x1021   : > { %v11357_v12 = vmul.f32 %v16386_v36, %v16380_v6 }
0x1022   : > { %v16388_v53 = vpop.eup %16387 }
0x1023   : > { %v16390_v38 = vpop.eup %16389  ;;  %v11355_v37 = vmul.f32 %v16388_v53, %v16382_v21  ;;  %v21029_v42 = vadd.f32 %v11357_v12, %v11341_v33  ;;  %v15593_v33 = vld [vmem:[%s21802_s12 + $0x50] ss:$8 sps:$4 sm:$0xff]  }
0x1024   : > { %v16392_v48 = vpop.eup %16391  ;;  %v11326_v26 = vsub.f32 1.0, %v16390_v38 }
0x1025   : > { %v21031_v11 = vadd.f32 %v11355_v37, %v11339_v24  ;;  %v11358_v16 = vmul.f32 %v16392_v48, %v16390_v38  ;;  %v15598_v37 = vld [vmem:[%s21802_s12 + $0x44] ss:$8 sps:$4 sm:$0xff]   ;;  %v15596_v48 = vld [vmem:[%s21802_s12 + $0x40] ss:$8 sps:$4 sm:$0xff]  }
0x1026   : > { %v16394_v2 = vpop.eup %16393  ;;  %v11342_v41 = vmul.f32 %v16604_v32, %v11326_v26  ;;  %v15599_v26 = vld [vmem:[%s21802_s12 + $0x30] ss:$8 sps:$4 sm:$0xff]  }
0x1027   : > { %11399 = vadd.xlane.f32.xlu0 %v21031_v11  ;;  %v11356_v9 = vmul.f32 %v16394_v2, %v16384_v46  ;;  %v15595_v46 = vld [vmem:[%s21802_s12 + $0x54] ss:$8 sps:$4 sm:$0xff]  }
0x1028   : > { %v21040_v14 = vadd.f32 %v11358_v16, %v11342_v41  ;;  %11703 = vmatprep.subr.bf16.mxu0 %v15595_v46 }
0x1029   : > { %v21035_v61 = vadd.f32 %v11356_v9, %v11340_v4  ;;  %11704 = vmatpush1.bf16.msra.mxu0 %v15593_v33  ;;  %v15601_v4 = vld [vmem:[%s21802_s12 + $0x34] ss:$8 sps:$4 sm:$0xff]  }
0x102a   : > { %11705 = vmatprep.subr.bf16.mxu0 %v15598_v37 }
0x102b   : > { %11403 = vadd.xlane.f32.xlu0 %v21029_v42  ;;  %11401 = vadd.xlane.f32.xlu1 %v21035_v61 }
0x102d   : > { %11706 = vmatpush1.bf16.msra.mxu0 %v15596_v48 }
0x102e   : > { %11707 = vmatprep.subr.bf16.mxu0 %v15601_v4  ;;  %v15611_v4 = vld [vmem:[%s21804_s14 + $0x78] sm:$0xff]  }
0x102f   : > { %11405 = vadd.xlane.f32.xlu1 %v21040_v14  ;;  %14102 = vmatprep.subr.bf16.mxu1 %v15611_v4 }
0x1031   : > { %11708 = vmatpush1.bf16.msra.mxu0 %v15599_v26  ;;  %v15613_v26 = vld [vmem:[%s21804_s14 + $0x70] sm:$0xff]  }
0x1032   : > { %11709 = vmatprep.subr.bf16.mxu0 %v15604_v35  ;;  %v15616_v35 = vld [vmem:[%s21804_s14 + $0x28] sm:$0xff]  }
0x107f   : > { %v11376_v45 = vpop.xlane.xlu0 %11375 }
0x1080   : > { %v11407_v30 = vmul.f32 0.0078125, %v11376_v45 }
0x1082   : > { %v21050_v56 = vsub.f32 %v20967_v5, %v11407_v30 }
0x1083   : > { %v11380_v34 = vpop.xlane.xlu0 %11379  ;;  %v11378_v43 = vpop.xlane.xlu1 %11377 }
0x1084   : > { %v11409_v22 = vmul.f32 0.0078125, %v11380_v34  ;;  %v11408_v1 = vmul.f32 0.0078125, %v11378_v43  ;;  %v11439_v29 = vmul.f32 %v21050_v56, %v21050_v56  ;;  %v15602_v34 = vld [vmem:[%s21802_s12 + $0x20] ss:$8 sps:$4 sm:$0xff]  }
0x1085   : > { %11710 = vmatpush1.bf16.msra.mxu0 %v15602_v34  ;;  %v15620_v34 = vld [vmem:[%s21804_s14 + $0x18] sm:$0xff]  }
0x1086   : > { %v21055_v47 = vsub.f32 %v20976_v57, %v11409_v22  ;;  %v21058_v18 = vsub.f32 %v20978_v49, %v11408_v1  ;;  %11455 = vadd.xlane.f32.xlu0 %v11439_v29  ;;  %v15607_v29 = vld [vmem:[%s21802_s12 + $0x14] ss:$8 sps:$4 sm:$0xff]  }
0x1087   : > { %v11382_v27 = vpop.xlane.xlu0 %11381  ;;  %11711 = vmatprep.subr.bf16.mxu0 %v15607_v29 }
0x1088   : > { %v11410_v55 = vmul.f32 0.0078125, %v11382_v27  ;;  %v11441_v52 = vmul.f32 %v21055_v47, %v21055_v47  ;;  %v11440_v40 = vmul.f32 %v21058_v18, %v21058_v18 }
0x108a   : > { %v21065_v17 = vsub.f32 %v20984_v19, %v11410_v55  ;;  %11459 = vadd.xlane.f32.xlu0 %v11441_v52  ;;  %11457 = vadd.xlane.f32.xlu1 %v11440_v40  ;;  %v15605_v40 = vld [vmem:[%s21802_s12 + $0x10] ss:$8 sps:$4 sm:$0xff]  }
0x108b   : > { %11712 = vmatpush1.bf16.msra.mxu0 %v15605_v40 }
0x108c   : > { %v11442_v28 = vmul.f32 %v21065_v17, %v21065_v17 }
0x108e   : > { %11461 = vadd.xlane.f32.xlu1 %v11442_v28 }
0x1090   : > { %v11384_v7 = vpop.xlane.xlu0 %11383 }
0x1091   : > { %v11411_v58 = vmul.f32 0.0078125, %v11384_v7  ;;  %v15610_v7 = vld [vmem:[%s21802_s12 + $0x4] ss:$8 sps:$4 sm:$0xff]  }
0x1092   : > { %11713 = vmatprep.subr.bf16.mxu0 %v15610_v7 }
0x1093   : > { %v21073_v10 = vsub.f32 %v20992_v25, %v11411_v58  ;;  %11714 = vmatpush1.bf16.msra.mxu0 %v15608_v51 }
0x1094   : > { %v11388_v54 = vpop.xlane.xlu0 %11387  ;;  %v11386_v15 = vpop.xlane.xlu1 %11385 }
0x1095   : > { %v11413_v6 = vmul.f32 0.0078125, %v11388_v54  ;;  %v11412_v21 = vmul.f32 0.0078125, %v11386_v15  ;;  %v11443_v8 = vmul.f32 %v21073_v10, %v21073_v10 }
0x1097   : > { %v21084_v50 = vsub.f32 %v20997_v63, %v11413_v6  ;;  %v21087_v36 = vsub.f32 %v20999_v59, %v11412_v21  ;;  %11463 = vadd.xlane.f32.xlu0 %v11443_v8 }
0x1098   : > { %v11390_v12 = vpop.xlane.xlu1 %11389 }
0x1099   : > { %v11414_v53 = vmul.f32 0.0078125, %v11390_v12  ;;  %v11445_v38 = vmul.f32 %v21084_v50, %v21084_v50  ;;  %v11444_v24 = vmul.f32 %v21087_v36, %v21087_v36 }
0x109b   : > { %v21100_v39 = vsub.f32 %v21004_v23, %v11414_v53  ;;  %11467 = vadd.xlane.f32.xlu0 %v11445_v38  ;;  %11465 = vadd.xlane.f32.xlu1 %v11444_v24 }
0x109d   : > { %v11446_v2 = vmul.f32 %v21100_v39, %v21100_v39 }
0x109f   : > { %v11392_v3 = vpop.xlane.xlu0 %11391  ;;  %11469 = vadd.xlane.f32.xlu1 %v11446_v2 }
0x10a0   : > { %v11415_v9 = vmul.f32 0.0078125, %v11392_v3 }
0x10a2   : > { %v21114_v16 = vsub.f32 %v21010_v13, %v11415_v9  ;;  %v15612_v9 = vld [vmem:[%s21804_s14 + $0x38] sm:$0xff]  }
0x10a3   : > { %v11396_v32 = vpop.xlane.xlu0 %11395  ;;  %v11394_v41 = vpop.xlane.xlu1 %11393  ;;  %14103 = vmatpush3.bf16.msra.mxu1 %v15612_v9  ;;  %v21205_v9 = vld [vmem:[%s21982_s20] ss:$0 sm:$0xff] }
0x10a4   : > { %v11417_v62 = vmul.f32 0.0078125, %v11396_v32  ;;  %v11416_v45 = vmul.f32 0.0078125, %v11394_v41  ;;  %v11447_v30 = vmul.f32 %v21114_v16, %v21114_v16  ;;  %v15614_v32 = vld [vmem:[%s21804_s14 + $0x30] sm:$0xff]   ;;  %14104 = vmatprep.subr.bf16.mxu1 %v15613_v26  ;;  %v15615_v41 = vld [vmem:[%s21804_s14 + $0x68] sm:$0xff]  }
0x10a6   : > { %v21125_v43 = vsub.f32 %v21017_v20, %v11417_v62  ;;  %v21128_v22 = vsub.f32 %v21019_v0, %v11416_v45  ;;  %11471 = vadd.xlane.f32.xlu0 %v11447_v30  ;;  %v15617_v62 = vld [vmem:[%s21804_s14 + $0x60] sm:$0xff]   ;;  %v15619_v30 = vld [vmem:[%s21804_s14 + $0x58] sm:$0xff]  }
0x10a7   : > { %v11398_v1 = vpop.xlane.xlu1 %11397  ;;  %14105 = vmatpush3.bf16.msra.mxu1 %v15614_v32  ;;  %v15618_v45 = vld [vmem:[%s21804_s14 + $0x20] sm:$0xff]  }
0x10a8   : > { %v11418_v27 = vmul.f32 0.0078125, %v11398_v1  ;;  %v11449_v55 = vmul.f32 %v21125_v43, %v21125_v43  ;;  %v11448_v52 = vmul.f32 %v21128_v22, %v21128_v22  ;;  %14106 = vmatprep.subr.bf16.mxu1 %v15615_v41 }
0x10aa   : > { %v21141_v28 = vsub.f32 %v21024_v44, %v11418_v27  ;;  %11475 = vadd.xlane.f32.xlu0 %v11449_v55  ;;  %11473 = vadd.xlane.f32.xlu1 %v11448_v52 }
0x10ab   : > { %14107 = vmatpush3.bf16.msra.mxu1 %v15616_v35 }
0x10ac   : > { %v11450_v58 = vmul.f32 %v21141_v28, %v21141_v28  ;;  %14108 = vmatprep.subr.bf16.mxu1 %v15617_v62 }
0x10ae   : > { %11477 = vadd.xlane.f32.xlu1 %v11450_v58 }
0x10af   : > { %14109 = vmatpush3.bf16.msra.mxu1 %v15618_v45 }
0x10b0   : > { %v11400_v60 = vpop.xlane.xlu0 %11399  ;;  %14110 = vmatprep.subr.bf16.mxu1 %v15619_v30 }
0x10b1   : > { %v11419_v54 = vmul.f32 0.0078125, %v11400_v60 }
0x10b3   : > { %v21152_v15 = vsub.f32 %v21031_v11, %v11419_v54  ;;  %14111 = vmatpush3.bf16.msra.mxu1 %v15620_v34 }
0x10b4   : > { %v11404_v6 = vpop.xlane.xlu0 %11403  ;;  %v11402_v21 = vpop.xlane.xlu1 %11401 }
0x10b5   : > { %v11421_v8 = vmul.f32 0.0078125, %v11404_v6  ;;  %v11420_v46 = vmul.f32 0.0078125, %v11402_v21  ;;  %v11451_v33 = vmul.f32 %v21152_v15, %v21152_v15 }
0x10b7   : > { %v21157_v12 = vsub.f32 %v21029_v42, %v11421_v8  ;;  %v21160_v53 = vsub.f32 %v21035_v61, %v11420_v46  ;;  %11479 = vadd.xlane.f32.xlu0 %v11451_v33 }
0x10b8   : > { %v11406_v38 = vpop.xlane.xlu1 %11405 }
0x10b9   : > { %v11422_v24 = vmul.f32 0.0078125, %v11406_v38  ;;  %v11453_v37 = vmul.f32 %v21157_v12, %v21157_v12  ;;  %v11452_v48 = vmul.f32 %v21160_v53, %v21160_v53 }
0x10bb   : > { %v21167_v2 = vsub.f32 %v21040_v14, %v11422_v24  ;;  %11483 = vadd.xlane.f32.xlu0 %v11453_v37  ;;  %11481 = vadd.xlane.f32.xlu1 %v11452_v48 }
0x10bd   : > { %v11454_v3 = vmul.f32 %v21167_v2, %v21167_v2 }
0x10bf   : > { %11485 = vadd.xlane.f32.xlu1 %v11454_v3 }
0x110f   : > { %v11456_v1 = vpop.xlane.xlu0 %11455 }
0x1110   : > { %v11487_v29 = vmul.f32 0.0078125, %v11456_v1 }
0x1112   : > { %v11503_v27 = vadd.f32 1e-05, %v11487_v29  ;;  %v21214_v29 = vld [vmem:[%s21985_s0] ss:$0 sm:$0xff] }
0x1113   : > { %v11460_v55 = vpop.xlane.xlu0 %11459  ;;  %v11458_v52 = vpop.xlane.xlu1 %11457 }
0x1114   : > { %16395 = vrsqrt.f32 %v11503_v27  ;;  %v11489_v40 = vmul.f32 0.0078125, %v11460_v55  ;;  %v11488_v7 = vmul.f32 0.0078125, %v11458_v52 }
0x1116   : > { %v11504_v58 = vadd.f32 1e-05, %v11488_v7  ;;  %v11505_v51 = vadd.f32 1e-05, %v11489_v40 }
0x1117   : > { %v11462_v60 = vpop.xlane.xlu1 %11461 }
0x1118   : > { %v11490_v54 = vmul.f32 0.0078125, %v11462_v60  ;;  %16397 = vrsqrt.f32 %v11504_v58 }
0x1119   : > { %16399 = vrsqrt.f32 %v11505_v51 }
0x111a   : > { %v11506_v6 = vadd.f32 1e-05, %v11490_v54 }
0x111c   : > { %16401 = vrsqrt.f32 %v11506_v6 }
0x1120   : > { %v11464_v8 = vpop.xlane.xlu0 %11463 }
0x1121   : > { %v16396_v21 = vpop.eup %16395  ;;  %v11491_v46 = vmul.f32 0.0078125, %v11464_v8 }
0x1122   : > { %v11535_v33 = vmul.f32 %v16396_v21, %v21050_v56 }
0x1123   : > { %v11507_v38 = vadd.f32 1e-05, %v11491_v46 }
0x1124   : > { %v11468_v24 = vpop.xlane.xlu0 %11467  ;;  %v11466_v37 = vpop.xlane.xlu1 %11465  ;;  %v11551_v26 = vmul.f32 %v21205_v9, %v11535_v33 }
0x1125   : > { %v16398_v48 = vpop.eup %16397  ;;  %16403 = vrsqrt.f32 %v11507_v38  ;;  %v11493_v3 = vmul.f32 0.0078125, %v11468_v24  ;;  %v11492_v4 = vmul.f32 0.0078125, %v11466_v37 }
0x1126   : > { %v11536_v32 = vmul.f32 %v16398_v48, %v21058_v18  ;;  %v16400_v41 = vpop.eup %16399  ;;  %v11567_v27 = vadd.f32 %v21214_v29, %v11551_v26 }
0x1127   : > { %v11508_v35 = vadd.f32 1e-05, %v11492_v4  ;;  %v11509_v45 = vadd.f32 1e-05, %v11493_v3  ;;  %v11537_v55 = vmul.f32 %v16400_v41, %v21055_v47 }
0x1128   : > { %v11552_v56 = vmul.f32 %v21205_v9, %v11536_v32  ;;  %v11470_v30 = vpop.xlane.xlu1 %11469 }
0x1129   : > { %v16402_v62 = vpop.eup %16401  ;;  %v11494_v34 = vmul.f32 0.0078125, %v11470_v30  ;;  %16405 = vrsqrt.f32 %v11508_v35  ;;  %v11553_v58 = vmul.f32 %v21205_v9, %v11537_v55 }
0x112a   : > { %v11538_v1 = vmul.f32 %v16402_v62, %v21065_v17  ;;  %v11568_v18 = vadd.f32 %v21214_v29, %v11552_v56  ;;  %16407 = vrsqrt.f32 %v11509_v45 }
0x112b   : > { %v11510_v52 = vadd.f32 1e-05, %v11494_v34  ;;  %v11569_v47 = vadd.f32 %v21214_v29, %v11553_v58 }
0x112c   : > { %v11599_v40 = vpack.c.bf16 %v11568_v18, %v11567_v27  ;;  %v11554_v7 = vmul.f32 %v21205_v9, %v11538_v1 }
0x112d   : > { %16409 = vrsqrt.f32 %v11510_v52 }
0x112e   : > { %11732 = vmatmul.mubr.bf16.vlgmr.msra.gmra.mxu0 %v11599_v40  ;;  %v11570_v60 = vadd.f32 %v21214_v29, %v11554_v7 }
0x112f   : > { %v11472_v17 = vpop.xlane.xlu0 %11471  ;;  %11741 = vmatprep.mubr.bf16.mxu0 %v22308_v31 }
0x1130   : > { %v11495_v51 = vmul.f32 0.0078125, %v11472_v17  ;;  %v11600_v38 = vpack.c.bf16 %v11570_v60, %v11569_v47 }
0x1132   : > { %v11511_v54 = vadd.f32 1e-05, %v11495_v51  ;;  %v16404_v6 = vpop.eup %16403 }
0x1133   : > { %v11476_v21 = vpop.xlane.xlu0 %11475  ;;  %v11474_v8 = vpop.xlane.xlu1 %11473  ;;  %v11539_v24 = vmul.f32 %v16404_v6, %v21073_v10 }
0x1134   : > { %16411 = vrsqrt.f32 %v11511_v54  ;;  %v11496_v46 = vmul.f32 0.0078125, %v11474_v8  ;;  %v11497_v33 = vmul.f32 0.0078125, %v11476_v21 }
0x1135   : > { %v11555_v41 = vmul.f32 %v21205_v9, %v11539_v24 }
0x1136   : > { %v11512_v37 = vadd.f32 1e-05, %v11496_v46  ;;  %11742 = vmatmul.mubr.bf16.gmra.mxu0 %v11600_v38  ;;  %v16406_v3 = vpop.eup %16405  ;;  %v11513_v26 = vadd.f32 1e-05, %v11497_v33 }
0x1137   : > { %v11478_v48 = vpop.xlane.xlu1 %11477  ;;  %11751 = vmatprep.mubr.bf16.mxu0 %v22308_v31  ;;  %v11540_v32 = vmul.f32 %v16406_v3, %v21087_v36  ;;  %v16408_v35 = vpop.eup %16407  ;;  %v11571_v30 = vadd.f32 %v21214_v29, %v11555_v41 }
0x1138   : > { %v11498_v4 = vmul.f32 0.0078125, %v11478_v48  ;;  %16413 = vrsqrt.f32 %v11512_v37  ;;  %v11541_v1 = vmul.f32 %v16408_v35, %v21084_v50 }
0x1139   : > { %v11556_v45 = vmul.f32 %v21205_v9, %v11540_v32 }
0x113a   : > { %v11514_v62 = vadd.f32 1e-05, %v11498_v4  ;;  %v16410_v56 = vpop.eup %16409  ;;  %v11557_v52 = vmul.f32 %v21205_v9, %v11541_v1 }
0x113b   : > { %v11542_v10 = vmul.f32 %v16410_v56, %v21100_v39  ;;  %v11572_v34 = vadd.f32 %v21214_v29, %v11556_v45 }
0x113c   : > { %16415 = vrsqrt.f32 %v11514_v62  ;;  %v11573_v50 = vadd.f32 %v21214_v29, %v11557_v52 }
0x113d   : > { %16417 = vrsqrt.f32 %v11513_v26  ;;  %v11601_v27 = vpack.c.bf16 %v11572_v34, %v11571_v30  ;;  %v11558_v36 = vmul.f32 %v21205_v9, %v11542_v10 }
0x113f   : > { %11752 = vmatmul.mubr.bf16.gmra.mxu0 %v11601_v27  ;;  %v11574_v39 = vadd.f32 %v21214_v29, %v11558_v36 }
0x1140   : > { %v11480_v55 = vpop.xlane.xlu0 %11479  ;;  %11761 = vmatprep.mubr.bf16.mxu0 %v22308_v31 }
0x1141   : > { %v16412_v18 = vpop.eup %16411  ;;  %v11499_v40 = vmul.f32 0.0078125, %v11480_v55  ;;  %v11602_v21 = vpack.c.bf16 %v11574_v39, %v11573_v50  ;;  %v15625_v50 = vld [vmem:[%s21804_s14 + $0x40] sm:$0xff]  }
0x1142   : > { %v11543_v7 = vmul.f32 %v16412_v18, %v21114_v16 }
0x1143   : > { %v11515_v17 = vadd.f32 1e-05, %v11499_v40 }
0x1144   : > { %v11484_v58 = vpop.xlane.xlu0 %11483  ;;  %v11482_v51 = vpop.xlane.xlu1 %11481  ;;  %v11559_v47 = vmul.f32 %v21205_v9, %v11543_v7 }
0x1145   : > { %v16414_v60 = vpop.eup %16413  ;;  %16419 = vrsqrt.f32 %v11515_v17  ;;  %v11501_v54 = vmul.f32 0.0078125, %v11484_v58  ;;  %v11500_v6 = vmul.f32 0.0078125, %v11482_v51 }
0x1146   : > { %v11544_v8 = vmul.f32 %v16414_v60, %v21128_v22  ;;  %v11575_v3 = vadd.f32 %v21214_v29, %v11559_v47  ;;  %v15626_v60 = vld [vmem:[%s21804_s14] sm:$0xff]   ;;  %v15630_v47 = vld [vmem:[%s21806_s16 + $0x90] ss:$12 sps:$4 sm:$0xff]  }
0x1147   : > { %v11516_v46 = vadd.f32 1e-05, %v11500_v6  ;;  %v11517_v38 = vadd.f32 1e-05, %v11501_v54  ;;  %11762 = vmatmul.mubr.bf16.gmra.mxu0 %v11602_v21  ;;  %v15627_v54 = vld [vmem:[%s21806_s16 + $0xa8] ss:$12 sps:$4 sm:$0xff]  }
0x1148   : > { %v11486_v24 = vpop.xlane.xlu1 %11485  ;;  %v11560_v16 = vmul.f32 %v21205_v9, %v11544_v8  ;;  %11771 = vmatprep.mubr.bf16.mxu0 %v22308_v31  ;;  %v15629_v6 = vld [vmem:[%s21806_s16 + $0xac] ss:$12 sps:$4 sm:$0xff]   ;;  %v15632_v21 = vld [vmem:[%s21806_s16 + $0x94] ss:$12 sps:$4 sm:$0xff]   ;;  %v15636_v8 = vld [vmem:[%s21806_s16 + $0xb0] ss:$12 sps:$4 sm:$0xff]  }
0x1149   : > { %v16416_v33 = vpop.eup %16415  ;;  %v11502_v48 = vmul.f32 0.0078125, %v11486_v24  ;;  %16421 = vrsqrt.f32 %v11516_v46  ;;  %12276 = vmatprep.subr.bf16.mxu0 %v15629_v6  ;;  %v15635_v46 = vld [vmem:[%s21806_s16 + $0x7c] ss:$12 sps:$4 sm:$0xff]   ;;  %v15637_v24 = vld [vmem:[%s21806_s16 + $0x60] ss:$12 sps:$4 sm:$0xff]  }
0x114a   : > { %v16418_v37 = vpop.eup %16417  ;;  %v11576_v4 = vadd.f32 %v21214_v29, %v11560_v16  ;;  %v11546_v22 = vmul.f32 %v16416_v33, %v21141_v28  ;;  %16423 = vrsqrt.f32 %v11517_v38  ;;  %12277 = vmatpush1.bf16.msra.mxu0 %v15627_v54  ;;  %v15633_v33 = vld [vmem:[%s21806_s16 + $0x78] ss:$12 sps:$4 sm:$0xff]  }
0x114b   : > { %v11518_v26 = vadd.f32 1e-05, %v11502_v48  ;;  %v11545_v41 = vmul.f32 %v16418_v37, %v21125_v43  ;;  %12278 = vmatprep.subr.bf16.mxu0 %v15632_v21  ;;  %v15639_v38 = vld [vmem:[%s21806_s16 + $0x64] ss:$12 sps:$4 sm:$0xff]   ;;  %v15643_v16 = vld [vmem:[%s21806_s16 + $0x4c] ss:$12 sps:$4 sm:$0xff]  }
0x114c   : > { %v11603_v32 = vpack.c.bf16 %v11576_v4, %v11575_v3  ;;  %v11562_v35 = vmul.f32 %v21205_v9, %v11546_v22  ;;  %v15641_v37 = vld [vmem:[%s21806_s16 + $0x48] ss:$12 sps:$4 sm:$0xff]   ;;  %v11607_v48 = vld [vmem:[%s21803_s13] sm:$0x3] }
0x114d   : > { %16425 = vrsqrt.f32 %v11518_v26  ;;  %v11561_v62 = vmul.f32 %v21205_v9, %v11545_v41  ;;  %v22387_v4 = vld [vmem:[#allocation14_spill] sm:$0xff] }
0x114e   : > { %v11578_v45 = vadd.f32 %v21214_v29, %v11562_v35  ;;  %12279 = vmatpush1.bf16.msra.mxu0 %v15630_v47  ;;  %v22388_v22 = vsub.s32 1, %v22387_v4 }
0x114f   : > { %11772 = vmatmul.mubr.bf16.gmra.mxu0 %v11603_v32  ;;  %v11577_v10 = vadd.f32 %v21214_v29, %v11561_v62  ;;  %12280 = vmatprep.subr.bf16.mxu0 %v15635_v46  ;;  %v22389_v32 = vsub.s32 0, %v22387_v4 }
0x1150   : > { %11781 = vmatprep.mubr.bf16.mxu0 %v22308_v31  ;;  %v21323_v26 = vrot.slane %v11607_v48, %v22388_v22 }
0x1151   : > { %v11604_v30 = vpack.c.bf16 %v11578_v45, %v11577_v10  ;;  %v21327_v41 = vrot.slane %v11607_v48, %v22389_v32 }
0x1152   : > { %v16420_v56 = vpop.eup %16419  ;;  %12281 = vmatpush1.bf16.msra.mxu0 %v15633_v33 }
0x1153   : > { %v11547_v28 = vmul.f32 %v16420_v56, %v21152_v15  ;;  %12282 = vmatprep.subr.bf16.mxu0 %v15639_v38 }
0x1155   : > { %v11563_v1 = vmul.f32 %v21205_v9, %v11547_v28 }
0x1156   : > { %v16422_v34 = vpop.eup %16421  ;;  %12283 = vmatpush1.bf16.msra.mxu0 %v15637_v24 }
0x1157   : > { %11782 = vmatmul.mubr.bf16.gmra.mxu0 %v11604_v30  ;;  %v11548_v43 = vmul.f32 %v16422_v34, %v21160_v53  ;;  %v16424_v27 = vpop.eup %16423  ;;  %v11579_v52 = vadd.f32 %v21214_v29, %v11563_v1  ;;  %12284 = vmatprep.subr.bf16.mxu0 %v15643_v16 }
0x1158   : > { %11791 = vmatprep.mubr.bf16.mxu0 %v22308_v31  ;;  %v11549_v15 = vmul.f32 %v16424_v27, %v21157_v12  ;;  %v15621_v12 = vld [vmem:[%s21804_s14 + $0x50] sm:$0xff]  }
0x1159   : > { %v11564_v18 = vmul.f32 %v21205_v9, %v11548_v43  ;;  %14112 = vmatprep.subr.bf16.mxu1 %v15621_v12  ;;  %v15644_v12 = vld [vmem:[%s21806_s16 + $0x80] ss:$12 sps:$4 sm:$0xff]  }
0x115a   : > { %v16426_v36 = vpop.eup %16425  ;;  %v11565_v53 = vmul.f32 %v21205_v9, %v11549_v15  ;;  %12285 = vmatpush1.bf16.msra.mxu0 %v15641_v37  ;;  %v15640_v15 = vld [vmem:[%s21806_s16 + $0x98] ss:$12 sps:$4 sm:$0xff]  }
0x115b   : > { %v11550_v55 = vmul.f32 %v16426_v36, %v21167_v2  ;;  %v11580_v40 = vadd.f32 %v21214_v29, %v11564_v18  ;;  %v15622_v2 = vld [vmem:[%s21804_s14 + $0x10] sm:$0xff]  }
0x115c   : > { %v11581_v58 = vadd.f32 %v21214_v29, %v11565_v53  ;;  %14113 = vmatpush3.bf16.msra.mxu1 %v15622_v2 }
0x115d   : > { %v11605_v39 = vpack.c.bf16 %v11580_v40, %v11579_v52  ;;  %v11566_v7 = vmul.f32 %v21205_v9, %v11550_v55  ;;  %v15623_v9 = vld [vmem:[%s21804_s14 + $0x48] sm:$0xff]  }
0x115e   : > { %14114 = vmatprep.subr.bf16.mxu1 %v15623_v9 }
0x115f   : > { %11792 = vmatmul.mubr.bf16.gmra.mxu0 %v11605_v39  ;;  %v11582_v17 = vadd.f32 %v21214_v29, %v11566_v7  ;;  %v15624_v29 = vld [vmem:[%s21804_s14 + $0x8] sm:$0xff]  }
0x1160   : > { %11801 = vmatprep.mubr.bf16.mxu0 %v22308_v31  ;;  %14115 = vmatpush3.bf16.msra.mxu1 %v15624_v29 }
0x1161   : > { %v11606_v51 = vpack.c.bf16 %v11582_v17, %v11581_v58  ;;  %14116 = vmatprep.subr.bf16.mxu1 %v15625_v50 }
0x1164   : > { %14117 = vmatpush3.bf16.msra.mxu1 %v15626_v60 }
0x1165   : > { %15126 = vmatprep.subr.bf16.mxu1 %v15636_v8 }
0x1167   : > { %11802 = vmatmul.mubr.bf16.gmra.mxu0 %v11606_v51 }
0x1168   : > { %12308 = vmatprep.mubr.bf16.mxu0 %v22308_v31 }
0x11ee   : > { %v11733_v3 = vpop.f32.mrf.mxu0 }
0x11ef   : > { %v11734_v10 = vadd.f32 %v11733_v3, %v21327_v41 }
0x11f0   : > { %v11735_v35 = vpop.f32.mrf.mxu0 }
0x11f1   : > { %v11736_v56 = vadd.f32 %v11735_v35, %v21323_v26  ;;  %v11812_v36 = vmax.f32 %v11734_v10, 0.0 }
0x11f2   : > { %v11737_v62 = vpop.f32.mrf.mxu0 }
0x11f3   : > { %v11738_v45 = vadd.f32 %v11737_v62, %v21327_v41  ;;  %v11813_v1 = vmax.f32 %v11736_v56, 0.0 }
0x11f4   : > { %v11739_v28 = vpop.f32.mrf.mxu0 }
0x11f5   : > { %v11740_v30 = vadd.f32 %v11739_v28, %v21323_v26  ;;  %v11814_v34 = vmax.f32 %v11738_v45, 0.0 }
0x11f6   : > { %v11743_v43 = vpop.f32.mrf.mxu0 }
0x11f7   : > { %v11815_v27 = vmax.f32 %v11740_v30, 0.0  ;;  %v11876_v52 = vpack.c.bf16 %v11814_v34, %v11812_v36  ;;  %v11744_v53 = vadd.f32 %v11743_v43, %v21327_v41 }
0x11f8   : > { %v11745_v18 = vpop.f32.mrf.mxu0 }
0x11f9   : > { %v11877_v55 = vpack.c.bf16 %v11815_v27, %v11813_v1  ;;  %v11746_v39 = vadd.f32 %v11745_v18, %v21323_v26  ;;  %v11816_v29 = vmax.f32 %v11744_v53, 0.0 }
0x11fa   : > { %v11747_v40 = vpop.f32.mrf.mxu0 }
0x11fb   : > { %v11748_v7 = vadd.f32 %v11747_v40, %v21327_v41  ;;  %12027 = vmatprep.mubr.bf16.mxu1 %v11877_v55  ;;  %v11817_v2 = vmax.f32 %v11746_v39, 0.0 }
0x11fc   : > { %v11749_v17 = vpop.f32.mrf.mxu0  ;;  %12028 = vmatmul.mubr.bf16.vlgmr.msra.gmra.mxu1 %v11876_v52 }
0x11fd   : > { %v11750_v58 = vadd.f32 %v11749_v17, %v21323_v26  ;;  %15127 = vmatpush3.bf16.msra.mxu1 %v15636_v8  ;;  %v11818_v51 = vmax.f32 %v11748_v7, 0.0 }
0x11fe   : > { %15128 = vmatprep.subr.bf16.mxu1 %v15640_v15 }
0x11ff   : > { %v11819_v9 = vmax.f32 %v11750_v58, 0.0  ;;  %v11753_v50 = vpop.f32.mrf.mxu0  ;;  %v11878_v54 = vpack.c.bf16 %v11818_v51, %v11816_v29 }
0x1200   : > { %v11754_v46 = vadd.f32 %v11753_v50, %v21327_v41 }
0x1201   : > { %v11879_v60 = vpack.c.bf16 %v11819_v9, %v11817_v2  ;;  %15129 = vmatpush3.bf16.msra.mxu1 %v15640_v15  ;;  %v11755_v6 = vpop.f32.mrf.mxu0 }
0x1202   : > { %15130 = vmatprep.subr.bf16.mxu1 %v15644_v12  ;;  %v11756_v8 = vadd.f32 %v11755_v6, %v21323_v26  ;;  %v11820_v3 = vmax.f32 %v11754_v46, 0.0 }
0x1203   : > { %12035 = vmatprep.mubr.bf16.mxu1 %v11879_v60  ;;  %v11757_v21 = vpop.f32.mrf.mxu0 }
0x1204   : > { %12036 = vmatmul.mubr.bf16.gmra.mxu1 %v11878_v54  ;;  %v11758_v47 = vadd.f32 %v11757_v21, %v21327_v41  ;;  %v11821_v37 = vmax.f32 %v11756_v8, 0.0 }
0x1205   : > { %15131 = vmatpush3.bf16.msra.mxu1 %v15644_v12  ;;  %v11759_v33 = vpop.f32.mrf.mxu0 }
0x1206   : > { %v11760_v38 = vadd.f32 %v11759_v33, %v21323_v26  ;;  %v11822_v24 = vmax.f32 %v11758_v47, 0.0 }
0x1207   : > { %v11763_v16 = vpop.f32.mrf.mxu0 }
0x1208   : > { %v11823_v48 = vmax.f32 %v11760_v38, 0.0  ;;  %v11880_v32 = vpack.c.bf16 %v11822_v24, %v11820_v3  ;;  %v11764_v45 = vadd.f32 %v11763_v16, %v21327_v41 }
0x1209   : > { %v11765_v4 = vpop.f32.mrf.mxu0 }
0x120a   : > { %v11881_v22 = vpack.c.bf16 %v11823_v48, %v11821_v37  ;;  %v11766_v62 = vadd.f32 %v11765_v4, %v21323_v26  ;;  %v11824_v27 = vmax.f32 %v11764_v45, 0.0 }
0x120b   : > { %v11767_v35 = vpop.f32.mrf.mxu0 }
0x120c   : > { %v11768_v56 = vadd.f32 %v11767_v35, %v21327_v41  ;;  %12043 = vmatprep.mubr.bf16.mxu1 %v11881_v22  ;;  %v11825_v43 = vmax.f32 %v11766_v62, 0.0 }
0x120d   : > { %v11769_v10 = vpop.f32.mrf.mxu0  ;;  %12044 = vmatmul.mubr.bf16.gmra.mxu1 %v11880_v32 }
0x120e   : > { %v11770_v28 = vadd.f32 %v11769_v10, %v21323_v26  ;;  %v11826_v30 = vmax.f32 %v11768_v56, 0.0 }
0x120f   : > { %v11773_v34 = vpop.f32.mrf.mxu0 }
0x1210   : > { %v11827_v1 = vmax.f32 %v11770_v28, 0.0  ;;  %v11882_v55 = vpack.c.bf16 %v11826_v30, %v11824_v27  ;;  %v11774_v39 = vadd.f32 %v11773_v34, %v21327_v41 }
0x1211   : > { %v11775_v36 = vpop.f32.mrf.mxu0 }
0x1212   : > { %v11883_v18 = vpack.c.bf16 %v11827_v1, %v11825_v43  ;;  %v11776_v40 = vadd.f32 %v11775_v36, %v21323_v26  ;;  %v11828_v2 = vmax.f32 %v11774_v39, 0.0 }
0x1213   : > { %v11777_v52 = vpop.f32.mrf.mxu0 }
0x1214   : > { %v11778_v15 = vadd.f32 %v11777_v52, %v21327_v41  ;;  %12051 = vmatprep.mubr.bf16.mxu1 %v11883_v18  ;;  %v11829_v51 = vmax.f32 %v11776_v40, 0.0 }
0x1215   : > { %v11779_v7 = vpop.f32.mrf.mxu0  ;;  %12052 = vmatmul.mubr.bf16.gmra.mxu1 %v11882_v55 }
0x1216   : > { %v11780_v53 = vadd.f32 %v11779_v7, %v21323_v26  ;;  %v11830_v17 = vmax.f32 %v11778_v15, 0.0 }
0x1217   : > { %v11783_v58 = vpop.f32.mrf.mxu0 }
0x1218   : > { %v11831_v12 = vmax.f32 %v11780_v53, 0.0  ;;  %v11884_v50 = vpack.c.bf16 %v11830_v17, %v11828_v2  ;;  %v11784_v21 = vadd.f32 %v11783_v58, %v21327_v41  ;;  %v15651_v2 = vld [vmem:[%s21806_s16 + $0x1c] ss:$12 sps:$4 sm:$0xff]  }
0x1219   : > { %v11785_v9 = vpop.f32.mrf.mxu0 }
0x121a   : > { %v11885_v29 = vpack.c.bf16 %v11831_v12, %v11829_v51  ;;  %v11786_v54 = vadd.f32 %v11785_v9, %v21323_v26  ;;  %v11832_v16 = vmax.f32 %v11784_v21, 0.0  ;;  %v15647_v12 = vld [vmem:[%s21806_s16 + $0x34] ss:$12 sps:$4 sm:$0xff]   ;;  %v15652_v9 = vld [vmem:[%s21806_s16 + $0x50] ss:$12 sps:$4 sm:$0xff]  }
0x121b   : > { %v11787_v60 = vpop.f32.mrf.mxu0  ;;  %12286 = vmatprep.subr.bf16.mxu0 %v15647_v12  ;;  %v15658_v21 = vld [vmem:[%s21806_s16 + $0x8] ss:$12 sps:$4 sm:$0xff]  }
0x121c   : > { %v11788_v6 = vadd.f32 %v11787_v60, %v21327_v41  ;;  %12059 = vmatprep.mubr.bf16.mxu1 %v11885_v29  ;;  %v11833_v38 = vmax.f32 %v11786_v54, 0.0  ;;  %v15649_v29 = vld [vmem:[%s21806_s16 + $0x18] ss:$12 sps:$4 sm:$0xff]   ;;  %v15653_v54 = vld [vmem:[%s21806_s16] ss:$12 sps:$4 sm:$0xff]  }
0x121d   : > { %v11789_v8 = vpop.f32.mrf.mxu0  ;;  %12060 = vmatmul.mubr.bf16.gmra.mxu1 %v11884_v50  ;;  %v15655_v50 = vld [vmem:[%s21806_s16 + $0x4] ss:$12 sps:$4 sm:$0xff]  }
0x121e   : > { %v11790_v47 = vadd.f32 %v11789_v8, %v21323_v26  ;;  %v11834_v46 = vmax.f32 %v11788_v6, 0.0  ;;  %v15656_v60 = vld [vmem:[%s21806_s16 + $0x38] ss:$12 sps:$4 sm:$0xff]   ;;  %v15657_v6 = vld [vmem:[%s21806_s16 + $0x20] ss:$12 sps:$4 sm:$0xff]  }
0x121f   : > { %v11793_v33 = vpop.f32.mrf.mxu0  ;;  %v15661_v8 = vld [vmem:[%s21807_s17 + $0x74] ss:$8 sps:$4 sm:$0xff]  }
0x1220   : > { %v11835_v24 = vmax.f32 %v11790_v47, 0.0  ;;  %v11886_v3 = vpack.c.bf16 %v11834_v46, %v11832_v16  ;;  %v11794_v35 = vadd.f32 %v11793_v33, %v21327_v41 }
0x1221   : > { %v11795_v37 = vpop.f32.mrf.mxu0 }
0x1222   : > { %v11887_v48 = vpack.c.bf16 %v11835_v24, %v11833_v38  ;;  %v11796_v22 = vadd.f32 %v11795_v37, %v21323_v26  ;;  %v11836_v34 = vmax.f32 %v11794_v35, 0.0  ;;  %v21406_v38 = vld [vmem:[%s21805_s15] ss:$0 sm:$0xff] }
0x1223   : > { %v11797_v4 = vpop.f32.mrf.mxu0 }
0x1224   : > { %v11798_v32 = vadd.f32 %v11797_v4, %v21327_v41  ;;  %12067 = vmatprep.mubr.bf16.mxu1 %v11887_v48  ;;  %v11837_v28 = vmax.f32 %v11796_v22, 0.0 }
0x1225   : > { %v11799_v62 = vpop.f32.mrf.mxu0  ;;  %12068 = vmatmul.mubr.bf16.gmra.mxu1 %v11886_v3 }
0x1226   : > { %v11800_v56 = vadd.f32 %v11799_v62, %v21323_v26  ;;  %v11838_v45 = vmax.f32 %v11798_v32, 0.0 }
0x1227   : > { %v11803_v10 = vpop.f32.mrf.mxu0 }
0x1228   : > { %v11839_v30 = vmax.f32 %v11800_v56, 0.0  ;;  %v11888_v27 = vpack.c.bf16 %v11838_v45, %v11836_v34  ;;  %v11804_v52 = vadd.f32 %v11803_v10, %v21327_v41 }
0x1229   : > { %v11805_v43 = vpop.f32.mrf.mxu0 }
0x122a   : > { %v11889_v1 = vpack.c.bf16 %v11839_v30, %v11837_v28  ;;  %v11806_v18 = vadd.f32 %v11805_v43, %v21323_v26  ;;  %v11840_v17 = vmax.f32 %v11804_v52, 0.0 }
0x122b   : > { %v11807_v36 = vpop.f32.mrf.mxu0 }
0x122c   : > { %v11808_v55 = vadd.f32 %v11807_v36, %v21327_v41  ;;  %12075 = vmatprep.mubr.bf16.mxu1 %v11889_v1  ;;  %v11841_v7 = vmax.f32 %v11806_v18, 0.0  ;;  %v15648_v41 = vld [vmem:[%s21806_s16 + $0x68] ss:$12 sps:$4 sm:$0xff]   ;;  %v15659_v18 = vld [vmem:[%s21807_s17 + $0x70] ss:$8 sps:$4 sm:$0xff]  }
0x122d   : > { %v11809_v40 = vpop.f32.mrf.mxu0  ;;  %12076 = vmatmul.mubr.bf16.gmra.mxu1 %v11888_v27  ;;  %15132 = vmatprep.subr.bf16.mxu1 %v15648_v41 }
0x122e   : > { %v11810_v15 = vadd.f32 %v11809_v40, %v21323_v26  ;;  %v11842_v39 = vmax.f32 %v11808_v55, 0.0  ;;  %v15645_v26 = vld [vmem:[%s21806_s16 + $0x30] ss:$12 sps:$4 sm:$0xff]   ;;  %15133 = vmatpush3.bf16.msra.mxu1 %v15648_v41  ;;  %v15664_v40 = vld [vmem:[%s21807_s17 + $0x64] ss:$8 sps:$4 sm:$0xff]  }
0x122f   : > { %12287 = vmatpush1.bf16.msra.mxu0 %v15645_v26  ;;  %15134 = vmatprep.subr.bf16.mxu1 %v15652_v9  ;;  %v15665_v26 = vld [vmem:[%s21807_s17 + $0x50] ss:$8 sps:$4 sm:$0xff]  }
0x1230   : > { %v11843_v53 = vmax.f32 %v11810_v15, 0.0  ;;  %v11890_v51 = vpack.c.bf16 %v11842_v39, %v11840_v17  ;;  %12288 = vmatprep.subr.bf16.mxu0 %v15651_v2 }
0x1232   : > { %v11891_v58 = vpack.c.bf16 %v11843_v53, %v11841_v7  ;;  %15135 = vmatpush3.bf16.msra.mxu1 %v15652_v9  ;;  %v15662_v7 = vld [vmem:[%s21807_s17 + $0x60] ss:$8 sps:$4 sm:$0xff]  }
0x1233   : > { %12289 = vmatpush1.bf16.msra.mxu0 %v15649_v29  ;;  %15136 = vmatprep.subr.bf16.mxu1 %v15656_v60 }
0x1234   : > { %12083 = vmatprep.mubr.bf16.mxu1 %v11891_v58  ;;  %12290 = vmatprep.subr.bf16.mxu0 %v15655_v50  ;;  %v15667_v58 = vld [vmem:[%s21807_s17 + $0x54] ss:$8 sps:$4 sm:$0xff]  }
0x1235   : > { %12084 = vmatmul.mubr.bf16.gmra.mxu1 %v11890_v51 }
0x1236   : > { %15137 = vmatpush3.bf16.msra.mxu1 %v15656_v60  ;;  %v15670_v60 = vld [vmem:[%s21807_s17 + $0x44] ss:$8 sps:$4 sm:$0xff]  }
0x1237   : > { %12291 = vmatpush1.bf16.msra.mxu0 %v15653_v54  ;;  %15138 = vmatprep.subr.bf16.mxu1 %v15657_v6 }
0x123a   : > { %15139 = vmatpush3.bf16.msra.mxu1 %v15657_v6 }
0x123b   : > { %15140 = vmatprep.subr.bf16.mxu1 %v15658_v21 }
0x123e   : > { %15141 = vmatpush3.bf16.msra.mxu1 %v15658_v21  ;;  %v15668_v21 = vld [vmem:[%s21807_s17 + $0x40] ss:$8 sps:$4 sm:$0xff]  }
0x123f   : > { %12590 = vmatprep.subr.bf16.mxu1 %v15661_v8 }
0x12bc   : > { %v14118_v47 = vpop.f32.mrf.mxu1 }
0x12be   : > { %v14119_v46 = vpop.f32.mrf.mxu1 }
0x12bf   : > { %v14120_v33 = vadd.f32 %v14119_v46, %v14118_v47  ;;  %v15673_v46 = vld [vmem:[%s21807_s17 + $0x34] ss:$8 sps:$4 sm:$0xff]  }
0x12c0   : > { %v14121_v24 = vpop.f32.mrf.mxu1 }
0x12c1   : > { %v12030_v37 = vadd.f32 %v14120_v33, %v21406_v38 }
0x12c2   : > { %v14122_v16 = vpop.f32.mrf.mxu1 }
0x12c3   : > { %v14123_v48 = vadd.f32 %v14122_v16, %v14121_v24  ;;  %v12092_v32 = vmax.f32 %v12030_v37, 0.0  ;;  %v15671_v37 = vld [vmem:[%s21807_s17 + $0x30] ss:$8 sps:$4 sm:$0xff]  }
0x12c4   : > { %v14124_v3 = vpop.f32.mrf.mxu1 }
0x12c5   : > { %v12033_v4 = vadd.f32 %v14123_v48, %v21406_v38 }
0x12c6   : > { %v14125_v22 = vpop.f32.mrf.mxu1 }
0x12c7   : > { %v12093_v35 = vmax.f32 %v12033_v4, 0.0  ;;  %v14126_v62 = vadd.f32 %v14125_v22, %v14124_v3 }
0x12c8   : > { %v14127_v56 = vpop.f32.mrf.mxu1 }
0x12c9   : > { %v12140_v45 = vpack.c.bf16 %v12093_v35, %v12092_v32  ;;  %v12038_v28 = vadd.f32 %v14126_v62, %v21406_v38  ;;  %v15676_v32 = vld [vmem:[%s21807_s17 + $0x24] ss:$8 sps:$4 sm:$0xff]  }
0x12ca   : > { %v14128_v10 = vpop.f32.mrf.mxu1 }
0x12cb   : > { %v14129_v30 = vadd.f32 %v14128_v10, %v14127_v56  ;;  %12309 = vmatmul.mubr.bf16.vlgmr.msra.gmra.mxu0 %v12140_v45  ;;  %15142 = vmatprep.mubr.bf16.mxu1 %v12140_v45  ;;  %v12094_v1 = vmax.f32 %v12038_v28, 0.0  ;;  %v15674_v56 = vld [vmem:[%s21807_s17 + $0x20] ss:$8 sps:$4 sm:$0xff]   ;;  %v15679_v28 = vld [vmem:[%s21807_s17 + $0x14] ss:$8 sps:$4 sm:$0xff]  }
0x12cc   : > { %12318 = vmatprep.mubr.bf16.mxu0 %v22308_v31 }
0x12cd   : > { %v12041_v34 = vadd.f32 %v14129_v30, %v21406_v38  ;;  %v14130_v43 = vpop.f32.mrf.mxu1 }
0x12cf   : > { %v12095_v27 = vmax.f32 %v12041_v34, 0.0  ;;  %v14131_v36 = vpop.f32.mrf.mxu1 }
0x12d0   : > { %v14132_v52 = vadd.f32 %v14131_v36, %v14130_v43 }
0x12d1   : > { %v12141_v55 = vpack.c.bf16 %v12095_v27, %v12094_v1  ;;  %v14133_v15 = vpop.f32.mrf.mxu1  ;;  %v15677_v1 = vld [vmem:[%s21807_s17 + $0x10] ss:$8 sps:$4 sm:$0xff]  }
0x12d2   : > { %v12046_v53 = vadd.f32 %v14132_v52, %v21406_v38  ;;  %v15682_v52 = vld [vmem:[%s21807_s17 + $0x4] ss:$8 sps:$4 sm:$0xff]  }
0x12d3   : > { %12319 = vmatmul.mubr.bf16.gmra.mxu0 %v12141_v55  ;;  %15143 = vmatmul.mubr.bf16.vlgmr.msra.gmra.mxu1 %v12141_v55  ;;  %v14134_v39 = vpop.f32.mrf.mxu1 }
0x12d4   : > { %12328 = vmatprep.mubr.bf16.mxu0 %v22308_v31  ;;  %12591 = vmatpush1.bf16.msra.mxu1 %v15659_v18  ;;  %v14135_v17 = vadd.f32 %v14134_v39, %v14133_v15  ;;  %v12096_v2 = vmax.f32 %v12046_v53, 0.0  ;;  %v15680_v39 = vld [vmem:[%s21807_s17] ss:$8 sps:$4 sm:$0xff]  }
0x12d5   : > { %12592 = vmatprep.subr.bf16.mxu1 %v15664_v40  ;;  %v14136_v51 = vpop.f32.mrf.mxu1 }
0x12d6   : > { %v12049_v12 = vadd.f32 %v14135_v17, %v21406_v38 }
0x12d7   : > { %v14137_v41 = vpop.f32.mrf.mxu1 }
0x12d8   : > { %12593 = vmatpush1.bf16.msra.mxu1 %v15662_v7  ;;  %v12097_v9 = vmax.f32 %v12049_v12, 0.0  ;;  %v14138_v29 = vadd.f32 %v14137_v41, %v14136_v51 }
0x12d9   : > { %12594 = vmatprep.subr.bf16.mxu1 %v15667_v58  ;;  %v14139_v50 = vpop.f32.mrf.mxu1 }
0x12da   : > { %v12142_v54 = vpack.c.bf16 %v12097_v9, %v12096_v2  ;;  %v12054_v8 = vadd.f32 %v14138_v29, %v21406_v38 }
0x12db   : > { %v14140_v6 = vpop.f32.mrf.mxu1 }
0x12dc   : > { %12595 = vmatpush1.bf16.msra.mxu1 %v15665_v26  ;;  %v14141_v47 = vadd.f32 %v14140_v6, %v14139_v50  ;;  %12329 = vmatmul.mubr.bf16.gmra.mxu0 %v12142_v54  ;;  %v12098_v48 = vmax.f32 %v12054_v8, 0.0 }
0x12dd   : > { %15146 = vmatprep.mubr.bf16.mxu1 %v12142_v54  ;;  %v14142_v33 = vpop.f32.mrf.mxu1  ;;  %12338 = vmatprep.mubr.bf16.mxu0 %v22308_v31 }
0x12de   : > { %12596 = vmatprep.subr.bf16.mxu1 %v15670_v60  ;;  %v12057_v24 = vadd.f32 %v14141_v47, %v21406_v38 }
0x12df   : > { %v14143_v16 = vpop.f32.mrf.mxu1 }
0x12e0   : > { %12597 = vmatpush1.bf16.msra.mxu1 %v15668_v21  ;;  %v12099_v3 = vmax.f32 %v12057_v24, 0.0  ;;  %v14144_v4 = vadd.f32 %v14143_v16, %v14142_v33 }
0x12e1   : > { %12598 = vmatprep.subr.bf16.mxu1 %v15673_v46  ;;  %v14145_v22 = vpop.f32.mrf.mxu1 }
0x12e2   : > { %v12143_v35 = vpack.c.bf16 %v12099_v3, %v12098_v48  ;;  %v12062_v45 = vadd.f32 %v14144_v4, %v21406_v38 }
0x12e3   : > { %v14146_v62 = vpop.f32.mrf.mxu1 }
0x12e4   : > { %12599 = vmatpush1.bf16.msra.mxu1 %v15671_v37  ;;  %v14147_v10 = vadd.f32 %v14146_v62, %v14145_v22  ;;  %12339 = vmatmul.mubr.bf16.gmra.mxu0 %v12143_v35  ;;  %v12100_v27 = vmax.f32 %v12062_v45, 0.0  ;;  %v12503_v62 = vpack.c.bf16 %v20984_v19, %v20976_v57  ;;  %v12506_v45 = vpack.c.bf16 %v21019_v0, %v21010_v13 }
0x12e5   : > { %15147 = vmatmul.mubr.bf16.gmra.mxu1 %v12143_v35  ;;  %v14148_v30 = vpop.f32.mrf.mxu1  ;;  %12348 = vmatprep.mubr.bf16.mxu0 %v22308_v31  ;;  %v12502_v35 = vpack.c.bf16 %v20978_v49, %v20967_v5 }
0x12e6   : > { %12600 = vmatprep.subr.bf16.mxu1 %v15676_v32  ;;  %v12065_v34 = vadd.f32 %v14147_v10, %v21406_v38  ;;  %v12507_v10 = vpack.c.bf16 %v21024_v44, %v21017_v20 }
0x12e7   : > { %v14149_v43 = vpop.f32.mrf.mxu1 }
0x12e8   : > { %12601 = vmatpush1.bf16.msra.mxu1 %v15674_v56  ;;  %v12101_v36 = vmax.f32 %v12065_v34, 0.0  ;;  %v14150_v18 = vadd.f32 %v14149_v43, %v14148_v30  ;;  %v12505_v56 = vpack.c.bf16 %v21004_v23, %v20997_v63  ;;  %v12509_v30 = vpack.c.bf16 %v21040_v14, %v21029_v42  ;;  %v15683_v34 = vld [vmem:[%s21808_s18 + $0x38] sm:$0xff]   ;;  %v15684_v43 = vld [vmem:[%s21808_s18 + $0x30] sm:$0xff]  }
0x12e9   : > { %12602 = vmatprep.subr.bf16.mxu1 %v15679_v28  ;;  %v14151_v55 = vpop.f32.mrf.mxu1  ;;  %v12508_v28 = vpack.c.bf16 %v21035_v61, %v21031_v11  ;;  %15158 = vmatprep.subr.bf16.mxu0 %v15683_v34 }
0x12ea   : > { %v12144_v40 = vpack.c.bf16 %v12101_v36, %v12100_v27  ;;  %v12070_v7 = vadd.f32 %v14150_v18, %v21406_v38  ;;  %15159 = vmatpush3.bf16.msra.mxu0 %v15683_v34  ;;  %v15687_v27 = vld [vmem:[%s21808_s18 + $0x18] sm:$0xff]   ;;  %v15688_v36 = vld [vmem:[%s21808_s18 + $0x10] sm:$0xff]   ;;  %v15689_v18 = vld [vmem:[%s21808_s18 + $0x8] sm:$0xff]  }
0x12eb   : > { %v14152_v15 = vpop.f32.mrf.mxu1  ;;  %15160 = vmatprep.subr.bf16.mxu0 %v15684_v43 }
0x12ec   : > { %12603 = vmatpush1.bf16.msra.mxu1 %v15677_v1  ;;  %v14153_v53 = vadd.f32 %v14152_v15, %v14151_v55  ;;  %12349 = vmatmul.mubr.bf16.gmra.mxu0 %v12144_v40  ;;  %v12102_v12 = vmax.f32 %v12070_v7, 0.0  ;;  %v15686_v1 = vld [vmem:[%s21808_s18 + $0x20] sm:$0xff]  }
0x12ed   : > { %15150 = vmatprep.mubr.bf16.mxu1 %v12144_v40  ;;  %v14154_v17 = vpop.f32.mrf.mxu1  ;;  %12358 = vmatprep.mubr.bf16.mxu0 %v22308_v31  ;;  %v15690_v55 = vld [vmem:[%s21808_s18] sm:$0xff]  }
0x12ee   : > { %12604 = vmatprep.subr.bf16.mxu1 %v15682_v52  ;;  %v12073_v58 = vadd.f32 %v14153_v53, %v21406_v38  ;;  %15161 = vmatpush3.bf16.msra.mxu0 %v15684_v43 }
0x12ef   : > { %v14155_v51 = vpop.f32.mrf.mxu1 }
0x12f0   : > { %12605 = vmatpush1.bf16.msra.mxu1 %v15680_v39  ;;  %v12103_v41 = vmax.f32 %v12073_v58, 0.0  ;;  %v14156_v26 = vadd.f32 %v14155_v51, %v14154_v17 }
0x12f1   : > { %v14157_v2 = vpop.f32.mrf.mxu1 }
0x12f2   : > { %v12145_v9 = vpack.c.bf16 %v12103_v41, %v12102_v12  ;;  %v12078_v50 = vadd.f32 %v14156_v26, %v21406_v38 }
0x12f3   : > { %v14158_v29 = vpop.f32.mrf.mxu1 }
0x12f4   : > { %v14159_v60 = vadd.f32 %v14158_v29, %v14157_v2  ;;  %12359 = vmatmul.mubr.bf16.gmra.mxu0 %v12145_v9  ;;  %15151 = vmatmul.mubr.bf16.gmra.mxu1 %v12145_v9  ;;  %v12104_v8 = vmax.f32 %v12078_v50, 0.0 }
0x12f5   : > { %v14160_v54 = vpop.f32.mrf.mxu1  ;;  %12368 = vmatprep.mubr.bf16.mxu0 %v22308_v31 }
0x12f6   : > { %v12081_v6 = vadd.f32 %v14159_v60, %v21406_v38 }
0x12f7   : > { %v14161_v21 = vpop.f32.mrf.mxu1 }
0x12f8   : > { %v12105_v47 = vmax.f32 %v12081_v6, 0.0  ;;  %v14162_v46 = vadd.f32 %v14161_v21, %v14160_v54 }
0x12f9   : > { %v14163_v33 = vpop.f32.mrf.mxu1 }
0x12fa   : > { %v12146_v24 = vpack.c.bf16 %v12105_v47, %v12104_v8  ;;  %v12086_v37 = vadd.f32 %v14162_v46, %v21406_v38 }
0x12fb   : > { %v14164_v16 = vpop.f32.mrf.mxu1 }
0x12fc   : > { %v14165_v48 = vadd.f32 %v14164_v16, %v14163_v33  ;;  %12369 = vmatmul.mubr.bf16.gmra.mxu0 %v12146_v24  ;;  %15154 = vmatprep.mubr.bf16.mxu1 %v12146_v24  ;;  %v12106_v4 = vmax.f32 %v12086_v37, 0.0 }
0x12fd   : > { %12378 = vmatprep.mubr.bf16.mxu0 %v22308_v31 }
0x12fe   : > { %v12089_v3 = vadd.f32 %v14165_v48, %v21406_v38  ;;  %v12504_v38 = vpack.c.bf16 %v20999_v59, %v20992_v25 }
0x1300   : > { %v12107_v22 = vmax.f32 %v12089_v3, 0.0 }
0x1302   : > { %v12147_v32 = vpack.c.bf16 %v12107_v22, %v12106_v4 }
0x1304   : > { %12379 = vmatmul.mubr.bf16.gmra.mxu0 %v12147_v32  ;;  %15155 = vmatmul.mubr.bf16.gmra.mxu1 %v12147_v32 }
0x1305   : > { %12622 = vmatprep.mubr.bf16.mxu1 %v22308_v31 }
0x130c   : > { %12623 = vmatmul.mubr.bf16.vlgmr.msra.gmra.mxu1 %v12502_v35 }
0x130d   : > { %12632 = vmatprep.mubr.bf16.mxu1 %v22308_v31 }
0x1314   : > { %12633 = vmatmul.mubr.bf16.gmra.mxu1 %v12503_v62 }
0x1315   : > { %12642 = vmatprep.mubr.bf16.mxu1 %v22308_v31 }
0x131c   : > { %12643 = vmatmul.mubr.bf16.gmra.mxu1 %v12504_v38 }
0x131d   : > { %12652 = vmatprep.mubr.bf16.mxu1 %v22308_v31 }
0x1324   : > { %12653 = vmatmul.mubr.bf16.gmra.mxu1 %v12505_v56 }
0x1325   : > { %12662 = vmatprep.mubr.bf16.mxu1 %v22308_v31 }
0x132c   : > { %12663 = vmatmul.mubr.bf16.gmra.mxu1 %v12506_v45 }
0x132d   : > { %12672 = vmatprep.mubr.bf16.mxu1 %v22308_v31 }
0x1334   : > { %12673 = vmatmul.mubr.bf16.gmra.mxu1 %v12507_v10 }
0x1335   : > { %12682 = vmatprep.mubr.bf16.mxu1 %v22308_v31 }
0x133c   : > { %12683 = vmatmul.mubr.bf16.gmra.mxu1 %v12508_v28 }
0x133d   : > { %12692 = vmatprep.mubr.bf16.mxu1 %v22308_v31  ;;  %v15685_v31 = vld [vmem:[%s21808_s18 + $0x28] sm:$0xff]  }
0x133e   : > { %15162 = vmatprep.subr.bf16.mxu0 %v15685_v31 }
0x133f   : > { %15163 = vmatpush3.bf16.msra.mxu0 %v15685_v31 }
0x1340   : > { %15164 = vmatprep.subr.bf16.mxu0 %v15686_v1 }
0x1343   : > { %15165 = vmatpush3.bf16.msra.mxu0 %v15686_v1 }
0x1344   : > { %12693 = vmatmul.mubr.bf16.gmra.mxu1 %v12509_v30  ;;  %15166 = vmatprep.subr.bf16.mxu0 %v15687_v27 }
0x1347   : > { %15167 = vmatpush3.bf16.msra.mxu0 %v15687_v27 }
0x1348   : > { %15168 = vmatprep.subr.bf16.mxu0 %v15688_v36 }
0x134b   : > { %15169 = vmatpush3.bf16.msra.mxu0 %v15688_v36 }
0x134c   : > { %15170 = vmatprep.subr.bf16.mxu0 %v15689_v18 }
0x134f   : > { %15171 = vmatpush3.bf16.msra.mxu0 %v15689_v18 }
0x1350   : > { %15172 = vmatprep.subr.bf16.mxu0 %v15690_v55 }
0x1353   : > { %15173 = vmatpush3.bf16.msra.mxu0 %v15690_v55 }
0x138b   : > { %v12310_v52 = vpop.f32.mrf.mxu0 }
0x138d   : > { %v21524_v40 = vpop.f32.mrf.mxu0 }
0x138f   : > { %v12314_v15 = vpop.f32.mrf.mxu0 }
0x1391   : > { %v21528_v7 = vpop.f32.mrf.mxu0 }
0x1393   : > { %v21526_v39 = vpop.f32.mrf.mxu1  ;;  %v12320_v17 = vpop.f32.mrf.mxu0 }
0x1395   : > { %v21530_v53 = vpop.f32.mrf.mxu1  ;;  %v21534_v51 = vpop.f32.mrf.mxu0 }
0x1397   : > { %v21532_v58 = vpop.f32.mrf.mxu1  ;;  %v12324_v41 = vpop.f32.mrf.mxu0 }
0x1399   : > { %v21536_v12 = vpop.f32.mrf.mxu1  ;;  %v12326_v2 = vpop.f32.mrf.mxu0 }
0x139c   : > { %v12330_v29 = vpop.f32.mrf.mxu0 }
0x139e   : > { %v12332_v60 = vpop.f32.mrf.mxu0 }
0x13a0   : > { %v12334_v21 = vpop.f32.mrf.mxu0 }
0x13a2   : > { %v12336_v47 = vpop.f32.mrf.mxu0 }
0x13a4   : > { %v12340_v33 = vpop.f32.mrf.mxu0 }
0x13a5   : > { %v21538_v26 = vpop.f32.mrf.mxu1 }
0x13a6   : > { %v12342_v16 = vpop.f32.mrf.mxu0 }
0x13a7   : > { %v21540_v9 = vpop.f32.mrf.mxu1 }
0x13a8   : > { %v12344_v3 = vpop.f32.mrf.mxu0 }
0x13a9   : > { %v21542_v50 = vpop.f32.mrf.mxu1 }
0x13aa   : > { %v21562_v32 = vpop.f32.mrf.mxu0 }
0x13ab   : > { %v21544_v54 = vpop.f32.mrf.mxu1 }
0x13ac   : > { %v12350_v45 = vpop.f32.mrf.mxu0 }
0x13ae   : > { %v12352_v43 = vpop.f32.mrf.mxu0 }
0x13b0   : > { %v12354_v18 = vpop.f32.mrf.mxu0 }
0x13b4   : > { %v21546_v6 = vpop.f32.mrf.mxu1 }
0x13b6   : > { %v21548_v8 = vpop.f32.mrf.mxu1 }
0x13b7   : > { %22390 = vst [vmem:[#allocation48_spill] sm:$0xff] %v21548_v8 }
0x13b8   : > { %v21550_v46 = vpop.f32.mrf.mxu1 }
0x13b9   : > { %22391 = vst [vmem:[#allocation117_spill] sm:$0xff] %v21550_v46 }
0x13ba   : > { %v21552_v24 = vpop.f32.mrf.mxu1 }
0x13bb   : > { %22392 = vst [vmem:[#allocation119_spill] sm:$0xff] %v21552_v24 }
0x13c4   : > { %v21554_v37 = vpop.f32.mrf.mxu1 }
0x13c5   : > { %22393 = vst [vmem:[#allocation15_spill] sm:$0xff] %v21554_v37 }
0x13c6   : > { %v21556_v48 = vpop.f32.mrf.mxu1 }
0x13c7   : > { %22394 = vst [vmem:[#allocation18_spill] sm:$0xff] %v21556_v48 }
0x13c8   : > { %v21558_v4 = vpop.f32.mrf.mxu1 }
0x13c9   : > { %22395 = vst [vmem:[#allocation121_spill] sm:$0xff] %v21558_v4 }
0x13ca   : > { %v21560_v22 = vpop.f32.mrf.mxu1 }
0x13cb   : > { %22396 = vst [vmem:[#allocation122_spill] sm:$0xff] %v21560_v22 }
0x13cc   : > { %v12624_v35 = vpop.f32.mrf.mxu1 }
0x13cd   : > { %v12703_v62 = vadd.f32 %v12624_v35, %v12310_v52 }
0x13ce   : > { %v21564_v38 = vpop.f32.mrf.mxu1 }
0x13cf   : > { %v13715_v56 = vmul.f32 -1.442695, %v12703_v62 }
0x13d0   : > { %v12628_v10 = vpop.f32.mrf.mxu1 }
0x13d1   : > { %16427 = vpow2.f32 %v13715_v56  ;;  %v12704_v28 = vadd.f32 %v12628_v10, %v12314_v15  ;;  %v12356_v56 = vpop.f32.mrf.mxu0 }
0x13d2   : > { %v21566_v30 = vpop.f32.mrf.mxu1 }
0x13d3   : > { %v13716_v34 = vmul.f32 -1.442695, %v12704_v28 }
0x13d4   : > { %v12634_v31 = vpop.f32.mrf.mxu1 }
0x13d5   : > { %v12705_v1 = vadd.f32 %v12634_v31, %v12320_v17  ;;  %16429 = vpow2.f32 %v13716_v34  ;;  %v12360_v34 = vpop.f32.mrf.mxu0 }
0x13d6   : > { %v21568_v27 = vpop.f32.mrf.mxu1 }
0x13d7   : > { %v13717_v36 = vmul.f32 -1.442695, %v12705_v1 }
0x13d8   : > { %v12638_v55 = vpop.f32.mrf.mxu1 }
0x13d9   : > { %v12706_v52 = vadd.f32 %v12638_v55, %v12324_v41  ;;  %16431 = vpow2.f32 %v13717_v36  ;;  %v12362_v36 = vpop.f32.mrf.mxu0 }
0x13da   : > { %v12640_v35 = vpop.f32.mrf.mxu1 }
0x13db   : > { %v13718_v62 = vmul.f32 -1.442695, %v12706_v52  ;;  %v21570_v22 = vadd.f32 %v12640_v35, %v12326_v2 }
0x13dc   : > { %v12644_v15 = vpop.f32.mrf.mxu1 }
0x13dd   : > { %v12707_v10 = vadd.f32 %v12644_v15, %v12330_v29  ;;  %16433 = vpow2.f32 %v13718_v62 }
0x13de   : > { %v16428_v4 = vpop.eup %16427  ;;  %v12646_v28 = vpop.f32.mrf.mxu1 }
0x13df   : > { %v13719_v48 = vmul.f32 -1.442695, %v12707_v10  ;;  %v21572_v17 = vadd.f32 %v12646_v28, %v12332_v60  ;;  %v12767_v31 = vadd.f32 1.0, %v16428_v4  ;;  %v12364_v10 = vpop.f32.mrf.mxu0 }
0x13e0   : > { %v12648_v1 = vpop.f32.mrf.mxu1 }
0x13e1   : > { %v12708_v37 = vadd.f32 %v12648_v1, %v12334_v21  ;;  %16435 = vpow2.f32 %v13719_v48 }
0x13e2   : > { %v12650_v24 = vpop.f32.mrf.mxu1  ;;  %v16430_v41 = vpop.eup %16429  ;;  %16437 = vrcp.f32 %v12767_v31 }
0x13e3   : > { %v12768_v2 = vadd.f32 1.0, %v16430_v41  ;;  %v13720_v55 = vmul.f32 -1.442695, %v12708_v37  ;;  %v21574_v52 = vadd.f32 %v12650_v24, %v12336_v47  ;;  %v12366_v31 = vpop.f32.mrf.mxu0 }
0x13e4   : > { %v12654_v29 = vpop.f32.mrf.mxu1 }
0x13e5   : > { %v12709_v35 = vadd.f32 %v12654_v29, %v12340_v33  ;;  %16439 = vrcp.f32 %v12768_v2 }
0x13e6   : > { %v12656_v62 = vpop.f32.mrf.mxu1  ;;  %v16432_v15 = vpop.eup %16431  ;;  %16441 = vpow2.f32 %v13720_v55 }
0x13e7   : > { %v21576_v60 = vadd.f32 %v12656_v62, %v12342_v16  ;;  %v12769_v4 = vadd.f32 1.0, %v16432_v15  ;;  %v13721_v21 = vmul.f32 -1.442695, %v12709_v35  ;;  %v12370_v35 = vpop.f32.mrf.mxu0 }
0x13e8   : > { %v12658_v28 = vpop.f32.mrf.mxu1 }
0x13e9   : > { %v12710_v1 = vadd.f32 %v12658_v28, %v12344_v3  ;;  %16443 = vrcp.f32 %v12769_v4 }
0x13ea   : > { %v12660_v48 = vpop.f32.mrf.mxu1  ;;  %v16434_v46 = vpop.eup %16433  ;;  %16445 = vpow2.f32 %v13721_v21 }
0x13eb   : > { %v12770_v37 = vadd.f32 1.0, %v16434_v46  ;;  %v13722_v47 = vmul.f32 -1.442695, %v12710_v1  ;;  %v21579_v33 = vadd.f32 %v12660_v48, %v21562_v32  ;;  %v12372_v1 = vpop.f32.mrf.mxu0 }
0x13ec   : > { %v12664_v24 = vpop.f32.mrf.mxu1 }
0x13ed   : > { %v12711_v41 = vadd.f32 %v12664_v24, %v12350_v45  ;;  %16447 = vrcp.f32 %v12770_v37 }
0x13ee   : > { %v12666_v16 = vpop.f32.mrf.mxu1  ;;  %v16436_v55 = vpop.eup %16435  ;;  %16449 = vpow2.f32 %v13722_v47 }
0x13ef   : > { %v13723_v2 = vmul.f32 -1.442695, %v12711_v41  ;;  %v21581_v29 = vadd.f32 %v12666_v16, %v12352_v43  ;;  %v16438_v62 = vpop.eup %16437  ;;  %v12771_v15 = vadd.f32 1.0, %v16436_v55 }
0x13f0   : > { %v12668_v3 = vpop.f32.mrf.mxu1  ;;  %v12950_v48 = vmul.f32 %v16438_v62, %v20967_v5 }
0x13f1   : > { %16451 = vpow2.f32 %v13723_v2  ;;  %v12712_v46 = vadd.f32 %v12668_v3, %v12354_v18  ;;  %v12374_v3 = vpop.f32.mrf.mxu0 }
0x13f2   : > { %v12670_v4 = vpop.f32.mrf.mxu1  ;;  %v16440_v21 = vpop.eup %16439  ;;  %16453 = vrcp.f32 %v12771_v15 }
0x13f3   : > { %v13724_v28 = vmul.f32 -1.442695, %v12712_v46  ;;  %v21583_v32 = vadd.f32 %v12670_v4, %v12356_v56  ;;  %v12951_v43 = vmul.f32 %v16440_v21, %v20978_v49  ;;  %v16442_v37 = vpop.eup %16441 }
0x13f4   : > { %v12674_v45 = vpop.f32.mrf.mxu1  ;;  %v12772_v47 = vadd.f32 1.0, %v16442_v37 }
0x13f5   : > { %v12713_v24 = vadd.f32 %v12674_v45, %v12360_v34  ;;  %16455 = vpow2.f32 %v13724_v28  ;;  %v12982_v16 = vpack.c.bf16 %v12951_v43, %v12950_v48  ;;  %v12376_v28 = vpop.f32.mrf.mxu0 }
0x13f6   : > { %v12676_v41 = vpop.f32.mrf.mxu1  ;;  %v16444_v55 = vpop.eup %16443  ;;  %16457 = vrcp.f32 %v12772_v47 }
0x13f7   : > { %v13725_v2 = vmul.f32 -1.442695, %v12713_v24  ;;  %v21587_v18 = vadd.f32 %v12676_v41, %v12362_v36  ;;  %15174 = vmatprep.mubr.bf16.mxu0 %v12982_v16  ;;  %v16446_v46 = vpop.eup %16445  ;;  %v12952_v48 = vmul.f32 %v16444_v55, %v20976_v57 }
0x13f8   : > { %v12678_v56 = vpop.f32.mrf.mxu1  ;;  %v12773_v62 = vadd.f32 1.0, %v16446_v46 }
0x13f9   : > { %v12714_v4 = vadd.f32 %v12678_v56, %v12364_v10  ;;  %16459 = vpow2.f32 %v13725_v2  ;;  %v12380_v2 = vpop.f32.mrf.mxu0 }
0x13fa   : > { %v12680_v21 = vpop.f32.mrf.mxu1  ;;  %v16448_v8 = vpop.eup %16447  ;;  %16461 = vrcp.f32 %v12773_v62 }
0x13fb   : > { %v13726_v15 = vmul.f32 -1.442695, %v12714_v4  ;;  %v21589_v34 = vadd.f32 %v12680_v21, %v12366_v31  ;;  %v12953_v36 = vmul.f32 %v16448_v8, %v20984_v19  ;;  %v16450_v43 = vpop.eup %16449 }
0x13fc   : > { %v12684_v45 = vpop.f32.mrf.mxu1  ;;  %v12774_v47 = vadd.f32 1.0, %v16450_v43 }
0x13fd   : > { %v12715_v37 = vadd.f32 %v12684_v45, %v12370_v35  ;;  %16463 = vpow2.f32 %v13726_v15  ;;  %v12983_v41 = vpack.c.bf16 %v12953_v36, %v12952_v48  ;;  %v12382_v35 = vpop.f32.mrf.mxu0 }
0x13fe   : > { %v16452_v24 = vpop.eup %16451  ;;  %v12686_v10 = vpop.f32.mrf.mxu1  ;;  %16465 = vrcp.f32 %v12774_v47 }
0x13ff   : > { %v13727_v16 = vmul.f32 -1.442695, %v12715_v37  ;;  %v12775_v56 = vadd.f32 1.0, %v16452_v24  ;;  %v21593_v31 = vadd.f32 %v12686_v10, %v12372_v1  ;;  %15175 = vmatmul.mubr.bf16.vlgmr.msra.gmra.mxu0 %v12983_v41  ;;  %v16454_v55 = vpop.eup %16453  ;;  %v12384_v10 = vpop.f32.mrf.mxu0 }
0x1400   : > { %v12688_v46 = vpop.f32.mrf.mxu1  ;;  %v12954_v1 = vmul.f32 %v16454_v55, %v20992_v25 }
0x1401   : > { %v12716_v4 = vadd.f32 %v12688_v46, %v12374_v3  ;;  %16467 = vpow2.f32 %v13727_v16 }
0x1402   : > { %v12690_v21 = vpop.f32.mrf.mxu1  ;;  %v16456_v8 = vpop.eup %16455  ;;  %16469 = vrcp.f32 %v12775_v56 }
0x1403   : > { %v21595_v62 = vadd.f32 %v12690_v21, %v12376_v28  ;;  %v12776_v15 = vadd.f32 1.0, %v16456_v8  ;;  %v13728_v45 = vmul.f32 -1.442695, %v12716_v4  ;;  %v16458_v36 = vpop.eup %16457 }
0x1404   : > { %v12694_v48 = vpop.f32.mrf.mxu1  ;;  %v12955_v24 = vmul.f32 %v16458_v36, %v20999_v59 }
0x1405   : > { %v12717_v43 = vadd.f32 %v12694_v48, %v12380_v2  ;;  %16471 = vrcp.f32 %v12776_v15 }
0x1406   : > { %v12696_v37 = vpop.f32.mrf.mxu1  ;;  %v16460_v3 = vpop.eup %16459  ;;  %16473 = vpow2.f32 %v13728_v45  ;;  %v12984_v16 = vpack.c.bf16 %v12955_v24, %v12954_v1 }
0x1407   : > { %v13729_v47 = vmul.f32 -1.442695, %v12717_v43  ;;  %v12777_v41 = vadd.f32 1.0, %v16460_v3  ;;  %v21599_v28 = vadd.f32 %v12696_v37, %v12382_v35  ;;  %v16462_v4 = vpop.eup %16461 }
0x1408   : > { %v12698_v56 = vpop.f32.mrf.mxu1  ;;  %15178 = vmatprep.mubr.bf16.mxu0 %v12984_v16  ;;  %v12956_v15 = vmul.f32 %v16462_v4, %v20997_v63 }
0x1409   : > { %v12718_v46 = vadd.f32 %v12698_v56, %v12384_v10  ;;  %16475 = vrcp.f32 %v12777_v41 }
0x140a   : > { %v16464_v21 = vpop.eup %16463  ;;  %16477 = vpow2.f32 %v13729_v47 }
0x140b   : > { %v12778_v2 = vadd.f32 1.0, %v16464_v21  ;;  %v13730_v8 = vmul.f32 -1.442695, %v12718_v46  ;;  %v16466_v55 = vpop.eup %16465 }
0x140c   : > { %v12957_v48 = vmul.f32 %v16466_v55, %v21004_v23 }
0x140d   : > { %16479 = vrcp.f32 %v12778_v2 }
0x140e   : > { %v16468_v36 = vpop.eup %16467  ;;  %16481 = vpow2.f32 %v13730_v8  ;;  %v12985_v35 = vpack.c.bf16 %v12957_v48, %v12956_v15 }
0x140f   : > { %v16470_v45 = vpop.eup %16469  ;;  %v12779_v43 = vadd.f32 1.0, %v16468_v36 }
0x1410   : > { %15179 = vmatmul.mubr.bf16.gmra.mxu0 %v12985_v35  ;;  %v12958_v1 = vmul.f32 %v16470_v45, %v21010_v13 }
0x1411   : > { %16483 = vrcp.f32 %v12779_v43 }
0x1412   : > { %v16472_v37 = vpop.eup %16471 }
0x1413   : > { %v12959_v24 = vmul.f32 %v16472_v37, %v21019_v0  ;;  %v16474_v3 = vpop.eup %16473 }
0x1414   : > { %v12780_v47 = vadd.f32 1.0, %v16474_v3 }
0x1415   : > { %v12986_v10 = vpack.c.bf16 %v12959_v24, %v12958_v1 }
0x1416   : > { %v16476_v41 = vpop.eup %16475  ;;  %16485 = vrcp.f32 %v12780_v47 }
0x1417   : > { %15182 = vmatprep.mubr.bf16.mxu0 %v12986_v10  ;;  %v16478_v16 = vpop.eup %16477  ;;  %v12960_v4 = vmul.f32 %v16476_v41, %v21017_v20 }
0x1418   : > { %v12781_v56 = vadd.f32 1.0, %v16478_v16 }
0x141a   : > { %v16480_v46 = vpop.eup %16479  ;;  %16487 = vrcp.f32 %v12781_v56 }
0x141b   : > { %v12961_v21 = vmul.f32 %v16480_v46, %v21024_v44  ;;  %v16482_v2 = vpop.eup %16481 }
0x141c   : > { %v12782_v8 = vadd.f32 1.0, %v16482_v2 }
0x141d   : > { %v12987_v55 = vpack.c.bf16 %v12961_v21, %v12960_v4 }
0x141e   : > { %16489 = vrcp.f32 %v12782_v8  ;;  %v16484_v15 = vpop.eup %16483 }
0x141f   : > { %15183 = vmatmul.mubr.bf16.gmra.mxu0 %v12987_v55  ;;  %v12962_v36 = vmul.f32 %v16484_v15, %v21031_v11 }
0x1423   : > { %v16486_v48 = vpop.eup %16485 }
0x1424   : > { %v12963_v35 = vmul.f32 %v16486_v48, %v21035_v61 }
0x1426   : > { %v12988_v45 = vpack.c.bf16 %v12963_v35, %v12962_v36 }
0x1427   : > { %v16488_v43 = vpop.eup %16487 }
0x1428   : > { %15186 = vmatprep.mubr.bf16.mxu0 %v12988_v45  ;;  %v12964_v1 = vmul.f32 %v16488_v43, %v21029_v42 }
0x142b   : > { %v16490_v37 = vpop.eup %16489 }
0x142c   : > { %v12965_v24 = vmul.f32 %v16490_v37, %v21040_v14 }
0x142e   : > { %v12989_v3 = vpack.c.bf16 %v12965_v24, %v12964_v1 }
0x1430   : > { %15187 = vmatmul.mubr.bf16.gmra.mxu0 %v12989_v3 }
0x1431   : > { %16620 = shalt.err (!%p16617_p3)
}
0x1432   : > { %s16621_s26 = scalar_lea.hbm %s21617_s4, 2048  ;;  %s16625_s2 = scalar_lea.hbm %s21811_s21, 4096 }
0x1433   : > { %p16622_p4 = scmp.ne.s32.totalorder %s21617_s4, %s16621_s26  ;;  %p16626_p9 = scmp.lt.s32.totalorder %s21617_s4, %s21811_s21 }
0x1434   : > { %p16627_p10 = scmp.lt.s32.totalorder %s16625_s2, %s16621_s26 }
0x1435   : > { %p16623_p7 = pnand %p16622_p4, %p16858_p5 }
0x1436   : > { %p16628_p11 = por %p16627_p10, %p16626_p9 }
0x1437   : > { %p16624_p8 = pneg %p16623_p7 }
0x1439   : > { %p16629_p12 = pnand %p16628_p11, %p16624_p8 }
0x143b   : > { %16632 = shalt.err (!%p16629_p12)
}
0x143c   : > { %s21961_s30 = smov 128   ;;  %s21962_s22 = smov 8   ;;  %v12815_v47 = vadd.f32 %v21564_v38, %v21524_v40  ;;  %v21653_v10 = vld [vmem:[%s21809_s19] ss:$0 sm:$0xff]  ;;  %v12817_v41 = vadd.f32 %v21568_v27, %v21534_v51  ;;  %v12816_v4 = vadd.f32 %v21566_v30, %v21528_v7  ;;  %v12386_v24 = vpop.f32.mrf.mxu0 }
0x143d   : > { %s22397_s24 = scalar_lea.sflag [#allocation5], %s20574_s1  ;;  %v12841_v21 = vsub.f32 %v21570_v22, %v21653_v10  ;;  %v12844_v27 = vsub.f32 %v21576_v60, %v21653_v10  ;;  %v12842_v55 = vsub.f32 %v21572_v17, %v21653_v10  ;;  %v12845_v22 = vsub.f32 %v21579_v33, %v21653_v10  ;;  %s22406_s29 = sshll.u32 %s16841_s3, 11 }
0x143e   : > { %15191 = dma.vmem_to_hbm [thread:$0]  (%p16858_p5), %s21620_s23, 2048, %s21617_s4, %s22397_s24, %s21961_s30, %s21961_s30, %s21962_s22   ;;  %v12838_v16 = vsub.f32 %v12815_v47, %v21653_v10  ;;  %v12840_v56 = vsub.f32 %v12817_v41, %v21653_v10  ;;  %v12839_v38 = vsub.f32 %v12816_v4, %v21653_v10  ;;  %v12843_v15 = vsub.f32 %v21574_v52, %v21653_v10 }
0x143f   : > { %v13735_v2 = vmul.f32 -1.442695, %v12841_v21  ;;  %v13738_v48 = vmul.f32 -1.442695, %v12844_v27  ;;  %v13736_v36 = vmul.f32 -1.442695, %v12842_v55  ;;  %v12846_v17 = vsub.f32 %v21581_v29, %v21653_v10 }
0x1440   : > { %v13732_v46 = vmul.f32 -1.442695, %v12838_v16  ;;  %v13734_v40 = vmul.f32 -1.442695, %v12840_v56  ;;  %v13733_v8 = vmul.f32 -1.442695, %v12839_v38  ;;  %v12848_v3 = vsub.f32 %v21587_v18, %v21653_v10 }
0x1441   : > { %v13739_v43 = vmul.f32 -1.442695, %v12845_v22  ;;  %v13737_v1 = vmul.f32 -1.442695, %v12843_v15  ;;  %v13740_v52 = vmul.f32 -1.442695, %v12846_v17  ;;  %v12847_v18 = vsub.f32 %v21583_v32, %v21653_v10 }
0x1442   : > { %16491 = vpow2.f32 %v13732_v46  ;;  %v13742_v29 = vmul.f32 -1.442695, %v12848_v3  ;;  %v12849_v46 = vsub.f32 %v21589_v34, %v21653_v10  ;;  %v12852_v17 = vsub.f32 %v21599_v28, %v21653_v10  ;;  %s22398_s4 = sshll.u32 %s20574_s1, 7  ;;  %s22407_s24 = sld [smem:[#allocation131_spill]] }
0x1443   : > { %16493 = vpow2.f32 %v13734_v40  ;;  %v13741_v27 = vmul.f32 -1.442695, %v12847_v18  ;;  %s21694_s23 = scalar_lea.vmem [#allocation2], %s22398_s4  ;;  %s13248_s27 = scalar_lea.sflag [#allocation3], %s20574_s1 }
0x1444   : > { %16495 = vpow2.f32 %v13735_v2  ;;  %s13266_s26 = sshll.u32 %s21694_s23, 4  ;;  %s16709_s30 = smov [#allocation2]   ;;  %s21746_s26 = int_to_ptr.vmem [resolvable:$true] %s13266_s26 }
0x1445   : > { %16497 = vpow2.f32 %v13733_v8  ;;  %s16633_s4 = scalar_lea.vmem %s21746_s26, 2048  ;;  %s16637_s22 = sshll.u32 %s16709_s30, 4  ;;  %s16638_s22 = int_to_ptr.vmem [resolvable:$false] %s16637_s22 }
0x1446   : > { %p16634_p13 = scmp.ne.s32.totalorder %s21746_s26, %s16633_s4  ;;  %s16639_s3 = scalar_lea.vmem %s16638_s22, 4096 }
0x1447   : > { %p16640_p2 = scmp.lt.s32.totalorder %s21746_s26, %s16638_s22  ;;  %p16641_p3 = scmp.lt.s32.totalorder %s16639_s3, %s16633_s4 }
0x1448   : > { %s21744_s28 = scalar_lea.hbm %s22407_s24, %s22406_s29  ;;  %p16635_p0 = pnand %p16634_p13, %p16858_p5 }
0x1449   : > { %p16642_p4 = por %p16641_p3, %p16640_p2 }
0x144a   : > { %p16636_p1 = pneg %p16635_p0 }
0x144c   : > { %p16643_p7 = pnand %p16642_p4, %p16636_p1 }
0x144f   : > { %v16492_v51 = vpop.eup %16491 }
0x1450   : > { %v16494_v7 = vpop.eup %16493  ;;  %v12902_v30 = vadd.f32 1.0, %v16492_v51 }
0x1451   : > { %v16496_v35 = vpop.eup %16495  ;;  %v12904_v45 = vadd.f32 1.0, %v16494_v7 }
0x1452   : > { %16499 = vrcp.f32 %v12902_v30  ;;  %v16498_v37 = vpop.eup %16497  ;;  %v12905_v60 = vadd.f32 1.0, %v16496_v35 }
0x1453   : > { %16501 = vpow2.f32 %v13738_v48  ;;  %v12903_v33 = vadd.f32 1.0, %v16498_v37  ;;  %v12700_v48 = vpop.f32.mrf.mxu1 }
0x1454   : > { %16503 = vpow2.f32 %v13736_v36 }
0x1455   : > { %16505 = vrcp.f32 %v12904_v45 }
0x1456   : > { %16507 = vpow2.f32 %v13739_v43 }
0x1457   : > { %16509 = vpow2.f32 %v13737_v1 }
0x1458   : > { %16511 = vrcp.f32 %v12905_v60 }
0x1459   : > { %16513 = vrcp.f32 %v12903_v33  ;;  %v12830_v33 = vadd.f32 %v12700_v48, %v12386_v24 }
0x145f   : > { %v16500_v38 = vpop.eup %16499 }
0x1460   : > { %v16502_v2 = vpop.eup %16501 }
0x1461   : > { %v16504_v8 = vpop.eup %16503  ;;  %v12908_v55 = vadd.f32 1.0, %v16502_v2 }
0x1462   : > { %v16506_v51 = vpop.eup %16505  ;;  %v12906_v30 = vadd.f32 1.0, %v16504_v8 }
0x1463   : > { %v16508_v34 = vpop.eup %16507  ;;  %v13169_v22 = vsub.f32 1.0, %v16506_v51 }
0x1464   : > { %v16510_v7 = vpop.eup %16509  ;;  %v12909_v32 = vadd.f32 1.0, %v16508_v34 }
0x1465   : > { %v12907_v35 = vadd.f32 1.0, %v16510_v7  ;;  %v13185_v37 = vmul.f32 %v13169_v22, %v20976_v57  ;;  %v12850_v57 = vsub.f32 %v21593_v31, %v21653_v10  ;;  %v12851_v31 = vsub.f32 %v21595_v62, %v21653_v10 }
0x14bf   : > { %v15176_v47 = vpop.f32.mrf.mxu0 }
0x14c0   : > { %v13137_v41 = vadd.f32 %v15176_v47, %v21526_v39 }
0x14c1   : > { %v13072_v16 = vpop.f32.mrf.mxu0 }
0x14c2   : > { %16515 = vtanh.f32 %v13137_v41  ;;  %v13135_v56 = vadd.f32 %v13072_v16, %v21530_v53  ;;  %v13743_v53 = vmul.f32 -1.442695, %v12849_v46 }
0x14c3   : > { %16517 = vpow2.f32 %v13740_v52  ;;  %v15177_v4 = vpop.f32.mrf.mxu0 }
0x14c4   : > { %16519 = vtanh.f32 %v13135_v56  ;;  %v13138_v21 = vadd.f32 %v15177_v4, %v21532_v58  ;;  %v16512_v58 = vpop.eup %16511 }
0x14c5   : > { %v13075_v40 = vpop.f32.mrf.mxu0  ;;  %v16514_v15 = vpop.eup %16513  ;;  %v13170_v45 = vsub.f32 1.0, %v16512_v58 }
0x14c6   : > { %16521 = vtanh.f32 %v13138_v21  ;;  %v13136_v39 = vadd.f32 %v13075_v40, %v21536_v12  ;;  %v13167_v12 = vsub.f32 1.0, %v16500_v38  ;;  %v13168_v52 = vsub.f32 1.0, %v16514_v15 }
0x14c7   : > { %16523 = vpow2.f32 %v13742_v29  ;;  %v13186_v4 = vmul.f32 %v13170_v45, %v20984_v19  ;;  %v13746_v40 = vmul.f32 -1.442695, %v12852_v17  ;;  %v12853_v19 = vsub.f32 %v12830_v33, %v21653_v10 }
0x14c8   : > { %16525 = vtanh.f32 %v13136_v39  ;;  %v13183_v41 = vmul.f32 %v13167_v12, %v20967_v5 }
0x14c9   : > { %16527 = vpow2.f32 %v13743_v53  ;;  %v13747_v7 = vmul.f32 -1.442695, %v12853_v19 }
0x14ca   : > { %16529 = vpow2.f32 %v13741_v27 }
0x14cb   : > { %16531 = vrcp.f32 %v12908_v55  ;;  %v13745_v55 = vmul.f32 -1.442695, %v12851_v31 }
0x14cc   : > { %16533 = vrcp.f32 %v12906_v30 }
0x14cd   : > { %16535 = vrcp.f32 %v12909_v32 }
0x14ce   : > { %16537 = vrcp.f32 %v12907_v35 }
0x14cf   : > { %v16516_v36 = vpop.eup %16515 }
0x14d0   : > { %v16518_v43 = vpop.eup %16517  ;;  %v13201_v1 = vmul.f32 %v16516_v36, %v16506_v51  ;;  %v15180_v3 = vpop.f32.mrf.mxu0 }
0x14d1   : > { %v16520_v60 = vpop.eup %16519  ;;  %v13141_v56 = vadd.f32 %v15180_v3, %v21538_v26  ;;  %v12910_v46 = vadd.f32 1.0, %v16518_v43 }
0x14d2   : > { %v13217_v47 = vadd.f32 %v13201_v1, %v13185_v37  ;;  %v13199_v16 = vmul.f32 %v16520_v60, %v16500_v38  ;;  %v13088_v21 = vpop.f32.mrf.mxu0  ;;  %v13184_v38 = vmul.f32 %v13168_v52, %v20978_v49  ;;  %v22399_v60 = vld [vmem:[#allocation48_spill] sm:$0xff] }
0x14d3   : > { %v16522_v29 = vpop.eup %16521  ;;  %16539 = vtanh.f32 %v13141_v56  ;;  %v13139_v26 = vadd.f32 %v13088_v21, %v21540_v9  ;;  %v13744_v9 = vmul.f32 -1.442695, %v12850_v57  ;;  %v22400_v56 = vld [vmem:[#allocation117_spill] sm:$0xff] }
0x14d4   : > { %v16524_v18 = vpop.eup %16523  ;;  %13233 = vst [vmem:[%s21694_s23 + $0x10] sm:$0xff] %v13217_v47  ;;  %v13215_v5 = vadd.f32 %v13199_v16, %v13183_v41  ;;  %v13202_v28 = vmul.f32 %v16522_v29, %v16512_v58  ;;  %v15181_v39 = vpop.f32.mrf.mxu0 }
0x14d5   : > { %v16526_v24 = vpop.eup %16525  ;;  %16541 = vtanh.f32 %v13139_v26  ;;  %v13142_v8 = vadd.f32 %v15181_v39, %v21542_v50  ;;  %v12912_v34 = vadd.f32 1.0, %v16524_v18 }
0x14d6   : > { %13231 = vst [vmem:[%s21694_s23] sm:$0xff] %v13215_v5  ;;  %v13218_v2 = vadd.f32 %v13202_v28, %v13186_v4  ;;  %v13200_v53 = vmul.f32 %v16526_v24, %v16514_v15  ;;  %16543 = vrcp.f32 %v12910_v46  ;;  %v13091_v51 = vpop.f32.mrf.mxu0  ;;  %v16528_v27 = vpop.eup %16527 }
0x14d7   : > { %16545 = vtanh.f32 %v13142_v8  ;;  %v13140_v10 = vadd.f32 %v13091_v51, %v21544_v54  ;;  %v16530_v49 = vpop.eup %16529  ;;  %v12913_v58 = vadd.f32 1.0, %v16528_v27 }
0x14d8   : > { %13234 = vst [vmem:[%s21694_s23 + $0x18] sm:$0xff] %v13218_v2  ;;  %v13216_v62 = vadd.f32 %v13200_v53, %v13184_v38  ;;  %16547 = vpow2.f32 %v13746_v40  ;;  %v16532_v30 = vpop.eup %16531  ;;  %v12911_v22 = vadd.f32 1.0, %v16530_v49 }
0x14d9   : > { %16549 = vtanh.f32 %v13140_v10  ;;  %v16534_v50 = vpop.eup %16533  ;;  %v13173_v15 = vsub.f32 1.0, %v16532_v30 }
0x14da   : > { %13232 = vst [vmem:[%s21694_s23 + $0x8] sm:$0xff] %v13216_v62  ;;  %16551 = vpow2.f32 %v13744_v9  ;;  %v16536_v32 = vpop.eup %16535  ;;  %v13171_v48 = vsub.f32 1.0, %v16534_v50 }
0x14db   : > { %16553 = vrcp.f32 %v12912_v34  ;;  %v16538_v54 = vpop.eup %16537  ;;  %v13174_v45 = vsub.f32 1.0, %v16536_v32  ;;  %v13189_v37 = vmul.f32 %v13173_v15, %v20997_v63  ;;  %v22402_v15 = vld [vmem:[#allocation15_spill] sm:$0xff] }
0x14dc   : > { %16555 = vpow2.f32 %v13745_v55  ;;  %v13187_v52 = vmul.f32 %v13171_v48, %v20992_v25  ;;  %v13172_v3 = vsub.f32 1.0, %v16538_v54  ;;  %v22401_v25 = vld [vmem:[#allocation119_spill] sm:$0xff] }
0x14dd   : > { %16557 = vpow2.f32 %v13747_v7  ;;  %v13190_v63 = vmul.f32 %v13174_v45, %v21004_v23 }
0x14de   : > { %16559 = vrcp.f32 %v12913_v58  ;;  %v13188_v31 = vmul.f32 %v13172_v3, %v20999_v59 }
0x14df   : > { %v15184_v12 = vpop.f32.mrf.mxu0  ;;  %16561 = vrcp.f32 %v12911_v22 }
0x14e0   : > { %v13145_v36 = vadd.f32 %v15184_v12, %v21546_v6  ;;  %v16540_v35 = vpop.eup %16539 }
0x14e1   : > { %v13104_v43 = vpop.f32.mrf.mxu0  ;;  %v13205_v1 = vmul.f32 %v16540_v35, %v16532_v30 }
0x14e2   : > { %16563 = vtanh.f32 %v13145_v36  ;;  %v13143_v17 = vadd.f32 %v13104_v43, %v22399_v60  ;;  %v16542_v33 = vpop.eup %16541 }
0x14e3   : > { %v15185_v47 = vpop.f32.mrf.mxu0  ;;  %v16544_v41 = vpop.eup %16543  ;;  %v13221_v16 = vadd.f32 %v13205_v1, %v13189_v37  ;;  %v13203_v6 = vmul.f32 %v16542_v33, %v16534_v50  ;;  %v22404_v33 = vld [vmem:[#allocation121_spill] sm:$0xff] }
0x14e4   : > { %16565 = vtanh.f32 %v13143_v17  ;;  %v13146_v29 = vadd.f32 %v15185_v47, %v22400_v56  ;;  %v16546_v46 = vpop.eup %16545  ;;  %v13175_v51 = vsub.f32 1.0, %v16544_v41  ;;  %v22405_v47 = vld [vmem:[#allocation122_spill] sm:$0xff] }
0x14e5   : > { %v13107_v57 = vpop.f32.mrf.mxu0  ;;  %v16548_v4 = vpop.eup %16547  ;;  %13237 = vst [vmem:[%s21694_s23 + $0x30] sm:$0xff] %v13221_v16  ;;  %v13219_v21 = vadd.f32 %v13203_v6, %v13187_v52  ;;  %v13206_v18 = vmul.f32 %v16546_v46, %v16536_v32 }
0x14e6   : > { %16567 = vtanh.f32 %v13146_v29  ;;  %v13144_v5 = vadd.f32 %v13107_v57, %v22401_v25  ;;  %v16550_v28 = vpop.eup %16549  ;;  %v12916_v38 = vadd.f32 1.0, %v16548_v4  ;;  %v13191_v30 = vmul.f32 %v13175_v51, %v21010_v13  ;;  %v22403_v13 = vld [vmem:[#allocation18_spill] sm:$0xff] }
0x14e7   : > { %v16552_v26 = vpop.eup %16551  ;;  %13235 = vst [vmem:[%s21694_s23 + $0x20] sm:$0xff] %v13219_v21  ;;  %v13222_v24 = vadd.f32 %v13206_v18, %v13190_v63  ;;  %v13204_v40 = vmul.f32 %v16550_v28, %v16538_v54 }
0x14e8   : > { %16569 = vtanh.f32 %v13144_v5  ;;  %v16554_v19 = vpop.eup %16553  ;;  %v12914_v8 = vadd.f32 1.0, %v16552_v26 }
0x14e9   : > { %v16556_v23 = vpop.eup %16555  ;;  %13238 = vst [vmem:[%s21694_s23 + $0x38] sm:$0xff] %v13222_v24  ;;  %v13220_v39 = vadd.f32 %v13204_v40, %v13188_v31  ;;  %v13177_v9 = vsub.f32 1.0, %v16554_v19  ;;  %16571 = vrcp.f32 %v12916_v38 }
0x14ea   : > { %v16558_v2 = vpop.eup %16557  ;;  %v12915_v10 = vadd.f32 1.0, %v16556_v23  ;;  %16573 = vrcp.f32 %v12914_v8 }
0x14eb   : > { %v16560_v53 = vpop.eup %16559  ;;  %13236 = vst [vmem:[%s21694_s23 + $0x28] sm:$0xff] %v13220_v39  ;;  %v12917_v34 = vadd.f32 1.0, %v16558_v2  ;;  %v13193_v59 = vmul.f32 %v13177_v9, %v21017_v20 }
0x14ec   : > { %v16562_v27 = vpop.eup %16561  ;;  %v13178_v55 = vsub.f32 1.0, %v16560_v53 }
0x14ed   : > { %v13176_v58 = vsub.f32 1.0, %v16562_v27  ;;  %16575 = vrcp.f32 %v12917_v34 }
0x14ee   : > { %16577 = vrcp.f32 %v12915_v10  ;;  %v13194_v54 = vmul.f32 %v13178_v55, %v21024_v44 }
0x14ef   : > { %v16564_v62 = vpop.eup %16563  ;;  %v13192_v37 = vmul.f32 %v13176_v58, %v21019_v0 }
0x14f0   : > { %v13209_v49 = vmul.f32 %v16564_v62, %v16554_v19  ;;  %v15188_v50 = vpop.f32.mrf.mxu0 }
0x14f1   : > { %v16566_v7 = vpop.eup %16565  ;;  %v13149_v48 = vadd.f32 %v15188_v50, %v22402_v15 }
0x14f2   : > { %v13225_v22 = vadd.f32 %v13209_v49, %v13193_v59  ;;  %v13207_v32 = vmul.f32 %v16566_v7, %v16544_v41  ;;  %v13120_v36 = vpop.f32.mrf.mxu0 }
0x14f3   : > { %v16568_v12 = vpop.eup %16567  ;;  %16579 = vtanh.f32 %v13149_v48  ;;  %v13147_v45 = vadd.f32 %v13120_v36, %v22403_v13 }
0x14f4   : > { %13241 = vst [vmem:[%s21694_s23 + $0x50] sm:$0xff] %v13225_v22  ;;  %v13223_v20 = vadd.f32 %v13207_v32, %v13191_v30  ;;  %v13210_v35 = vmul.f32 %v16568_v12, %v16560_v53  ;;  %v15189_v1 = vpop.f32.mrf.mxu0 }
0x14f5   : > { %v16570_v43 = vpop.eup %16569  ;;  %16581 = vtanh.f32 %v13147_v45  ;;  %v13150_v52 = vadd.f32 %v15189_v1, %v22404_v33 }
0x14f6   : > { %13239 = vst [vmem:[%s21694_s23 + $0x40] sm:$0xff] %v13223_v20  ;;  %v13226_v60 = vadd.f32 %v13210_v35, %v13194_v54  ;;  %v13208_v17 = vmul.f32 %v16570_v43, %v16562_v27  ;;  %v13123_v44 = vpop.f32.mrf.mxu0  ;;  %v16572_v16 = vpop.eup %16571 }
0x14f7   : > { %16583 = vtanh.f32 %v13150_v52  ;;  %v13148_v41 = vadd.f32 %v13123_v44, %v22405_v47  ;;  %v16574_v6 = vpop.eup %16573  ;;  %v13181_v56 = vsub.f32 1.0, %v16572_v16 }
0x14f8   : > { %13242 = vst [vmem:[%s21694_s23 + $0x58] sm:$0xff] %v13226_v60  ;;  %v13224_v3 = vadd.f32 %v13208_v17, %v13192_v37  ;;  %v13179_v46 = vsub.f32 1.0, %v16574_v6 }
0x14f9   : > { %16585 = vtanh.f32 %v13148_v41  ;;  %v13197_v57 = vmul.f32 %v13181_v56, %v21029_v42 }
0x14fa   : > { %13240 = vst [vmem:[%s21694_s23 + $0x48] sm:$0xff] %v13224_v3  ;;  %v16576_v0 = vpop.eup %16575  ;;  %v13195_v5 = vmul.f32 %v13179_v46, %v21031_v11 }
0x14fb   : > { %v16578_v29 = vpop.eup %16577  ;;  %v13182_v21 = vsub.f32 1.0, %v16576_v0 }
0x14fc   : > { %v13180_v26 = vsub.f32 1.0, %v16578_v29 }
0x14fd   : > { %v13198_v40 = vmul.f32 %v13182_v21, %v21040_v14 }
0x14fe   : > { %v13196_v38 = vmul.f32 %v13180_v26, %v21035_v61 }
0x1500   : > { %v16580_v63 = vpop.eup %16579 }
0x1501   : > { %v13213_v4 = vmul.f32 %v16580_v63, %v16572_v16 }
0x1502   : > { %v16582_v18 = vpop.eup %16581 }
0x1503   : > { %v13229_v25 = vadd.f32 %v13213_v4, %v13197_v57  ;;  %v13211_v28 = vmul.f32 %v16582_v18, %v16574_v6 }
0x1504   : > { %v16584_v24 = vpop.eup %16583 }
0x1505   : > { %13245 = vst [vmem:[%s21694_s23 + $0x70] sm:$0xff] %v13229_v25  ;;  %v13227_v31 = vadd.f32 %v13211_v28, %v13195_v5  ;;  %v13214_v19 = vmul.f32 %v16584_v24, %v16576_v0 }
0x1506   : > { %v16586_v42 = vpop.eup %16585 }
0x1507   : > { %13243 = vst [vmem:[%s21694_s23 + $0x60] sm:$0xff] %v13227_v31  ;;  %v13230_v23 = vadd.f32 %v13214_v19, %v13198_v40  ;;  %v13212_v39 = vmul.f32 %v16586_v42, %v16578_v29 }
0x1509   : > { %13246 = vst [vmem:[%s21694_s23 + $0x78] sm:$0xff] %v13230_v23  ;;  %v13228_v11 = vadd.f32 %v13212_v39, %v13196_v38 }
0x150b   : > { %13244 = vst [vmem:[%s21694_s23 + $0x68] sm:$0xff] %v13228_v11 }
0x150c   : > { %16646 = shalt.err (!%p16643_p7)
}
0x150d   : > { %s16647_s23 = scalar_lea.hbm %s21744_s28, 2048  ;;  %s16651_s30 = scalar_lea.hbm %s22407_s24, 4096 }
0x150e   : > { %p16648_p8 = scmp.ne.s32.totalorder %s21744_s28, %s16647_s23  ;;  %p16652_p11 = scmp.lt.s32.totalorder %s21744_s28, %s22407_s24 }
0x150f   : > { %p16653_p12 = scmp.lt.s32.totalorder %s16651_s30, %s16647_s23 }
0x1510   : > { %p16649_p9 = pnand %p16648_p8, %p16858_p5 }
0x1511   : > { %p16654_p13 = por %p16653_p12, %p16652_p11 }
0x1512   : > { %p16650_p10 = pneg %p16649_p9 }
0x1514   : > { %p16655_p0 = pnand %p16654_p13, %p16650_p10 }
0x1516   : > { %16658 = shalt.err (!%p16655_p0)
}
0x1517   : > { %s22408_s22 = smov 8   ;;  %s22409_s4 = smov 128  }
0x1518   : > { %15190 = dma.vmem_to_hbm [thread:$0]  (%p16858_p5), %s21746_s26, 2048, %s21744_s28, %s13248_s27, %s22409_s4, %s22409_s4, %s22408_s22  }
0x1519 PF: > { %s22410_s3 = sld [smem:[#allocation10_spill]] }
0x151a   : > { %s22411_s1 = sld [smem:[#allocation8_spill]] }
0x151f   : > { %p15201_p1 = scmp.ge.s32.totalorder %s22410_s3, 2 }
0x1520   : > { %s13297_s0 = sand.u32 1, %s22411_s1  }
0x1521   : > { %p15195_p2 = pnand %p15201_p1, %p16862_p6  ;;  %s13298_s23 = scalar_lea.sflag [#allocation3], %s13297_s0 }
0x1523   : > { %p15196_p3 = pneg %p15195_p2 }
0x1525   : > { %16676 = dma.done.wait (%p15196_p3), %s13298_s23, 2048  }
0x1526   : > { %16678 = vsyncadd (%p15196_p3), %s13298_s23, 4294965248  ;;  %s13307_s30 = scalar_lea.sflag [#allocation5], %s13297_s0 }
0x1527   : > { %16680 = dma.done.wait (%p15196_p3), %s13307_s30, 2048  }
0x1528   : > { %16682 = vsyncadd (%p15196_p3), %s13307_s30, 4294965248  ;;  %s22413_s27 = sld [smem:[#allocation11_spill]]  ;;  %s22416_s2 = smov %s16689_s25 }
0x1529   : > { %s22414_s5 = sld [smem:[#allocation9_spill]] }
0x152a   : > { %s22415_s26 = sld [smem:[#allocation12_spill]] }
0x152e   : > { %p35_p5 = scmp.ge.s32.totalorder %s22413_s27, 4  }
0x152f   : > { %s22417_s25 = smov %s22414_s5 }
0x1530   :  { %37 = sbr.rel (!%p35_p5) target bundleno = 14 (0xe), region = 155 }
0x1535   :  { %13312 = vsyncpa [#allocation3], 1 }
0x1536   :  { %13314 = vsyncpa [#allocation3 + $0x1], 1 }
0x1537   :  { %13315 = vsyncpa [#allocation5], 1 }
0x1538   :  { %13317 = vsyncpa [#allocation5 + $0x1], 1 }

</bundles_post_ra>
